<compile_context>
chip_gen: v7x
topology: tpu7x:2x2x1
jax: 0.10.0
libtpu: 0.0.40
codegen_flags: <defaults>
</compile_context>

<pallas_src>
import functools
import math

import jax
import jax.numpy as jnp
from jax.experimental import pallas as pl
from jax.experimental.pallas import tpu as pltpu

BN_EPS = 1e-5


def _round_up(x, m):
    return (x + m - 1) // m * m


# ------------------------------------------------------------------
# Kernel 1: fused matmul + BN scale/bias (+ReLU)   (im2col conv path)
# ------------------------------------------------------------------

def _mm_bn_kernel(a_ref, b_ref, s_ref, c_ref, o_ref, *, relu):
    y = jnp.dot(a_ref[...], b_ref[...], preferred_element_type=jnp.float32)
    y = y * s_ref[...] + c_ref[...]
    if relu:
        y = jnp.maximum(y, 0.0)
    o_ref[...] = y.astype(o_ref.dtype)


def _choose_m_tiling(m):
    """Return (padded_M, tile_M): full-M block when small, else the largest
    divisor of padded_M that is <= 4096 (a multiple of 8)."""
    mp = _round_up(m, 8)
    if mp <= 4096:
        return mp, mp
    for tm in range(4096, 7, -8):
        if mp % tm == 0:
            return mp, tm
    mp = _round_up(m, 512)
    return mp, 512


def matmul_bn_fused(a, b, scale, bias, relu):
    """(M,K)@(K,N) with per-output-channel scale/bias (+ReLU) fused into the
    epilogue.  Full-K blocks (no reduction grid), full-N or 256-wide N tiles,
    large M tiles -> inputs streamed once, output stored exactly once."""
    m, k = a.shape
    k2, n = b.shape
    assert k == k2
    mp, tm = _choose_m_tiling(m)
    if mp != m:
        a = jnp.pad(a, ((0, mp - m), (0, 0)))
    tn = n if (n <= 256 or n % 256 != 0) else 256
    out = pl.pallas_call(
        functools.partial(_mm_bn_kernel, relu=relu),
        out_shape=jax.ShapeDtypeStruct((mp, n), jnp.bfloat16),
        grid=(mp // tm, n // tn),
        in_specs=[pl.BlockSpec((tm, k), lambda i, j: (i, 0)),
                  pl.BlockSpec((k, tn), lambda i, j: (0, j)),
                  pl.BlockSpec((1, tn), lambda i, j: (0, j)),
                  pl.BlockSpec((1, tn), lambda i, j: (0, j))],
        out_specs=pl.BlockSpec((tm, tn), lambda i, j: (i, j)),
        compiler_params=pltpu.CompilerParams(
            dimension_semantics=("parallel", "parallel")),
    )(a, b, scale.reshape(1, -1), bias.reshape(1, -1))
    return out[:m] if mp != m else out


def _im2col(x, kh, kw, stride, pad):
    n, h, w, c = x.shape
    ho = (h + 2 * pad - kh) // stride + 1
    wo = (w + 2 * pad - kw) // stride + 1
    xp = jnp.pad(x, ((0, 0), (pad, pad), (pad, pad), (0, 0))) if pad else x
    cols = [xp[:, i:i + stride * (ho - 1) + 1:stride,
               j:j + stride * (wo - 1) + 1:stride, :]
            for i in range(kh) for j in range(kw)]
    pm = jnp.concatenate(cols, axis=-1).reshape(n * ho * wo, kh * kw * c)
    return pm, ho, wo


def conv_im2col_fused(x, w_mat, kh, kw, stride, pad, scale, bias, relu):
    """Conv (via small JAX-side im2col) + BN (+ReLU), matmul epilogue fused.
    Used only for the 7x7/2 stem, stride-2 3x3 convs and 1x1 downsamples,
    whose im2col matrices are small."""
    n = x.shape[0]
    pm, ho, wo = _im2col(x, kh, kw, stride, pad)
    out = matmul_bn_fused(pm, w_mat, scale, bias, relu)
    return out.reshape(n, ho, wo, w_mat.shape[-1])


# ------------------------------------------------------------------
# Kernel 2: fused 3x3 stride-1 conv + BN (+residual add) (+ReLU)
#           (no im2col materialization)
# ------------------------------------------------------------------

def _conv3x3_s1_kernel(x_ref, w_ref, s_ref, c_ref, *rest,
                       offsets, relu, has_res):
    if has_res:
        r_ref, o_ref = rest
    else:
        (o_ref,) = rest
    m, cout = o_ref.shape
    acc = None
    for t, off in enumerate(offsets):
        # tap t is a contiguous row-shifted slab of the flattened padded image
        a = x_ref[pl.ds(off, m), :].astype(jnp.bfloat16)
        d = jnp.dot(a, w_ref[t], preferred_element_type=jnp.float32)
        acc = d if acc is None else acc + d
    y = acc * s_ref[...] + c_ref[...]
    if has_res:
        y = y + r_ref[...].astype(jnp.float32)
    if relu:
        y = jnp.maximum(y, 0.0)
    o_ref[...] = y.astype(o_ref.dtype)


def conv3x3_s1_fused(x, w9, scale, bias, relu, residual=None):
    """3x3 / stride-1 / pad-1 conv + BN (+residual) (+ReLU), fully fused.

    The padded activation lives in VMEM once per image; each of the 9 taps is
    a contiguous slab of the flattened (Hp*Wp, Cin) image, so the conv is 9
    accumulated MXU matmuls with no im2col copy in HBM.  The output is
    computed on a (H, Wp) "wide" grid; the 2 wrap-around garbage columns per
    row are stripped by the slice below (it fuses with the consumer's pad).
    """
    n, h, w, cin = x.shape
    cout = w9.shape[-1]
    hp, wp = h + 2, w + 2
    m = h * wp                       # wide rows (2 garbage columns per row)
    lrows = hp * wp + 8              # +8 rows so the last tap never reads OOB
    xp = jnp.pad(x.astype(jnp.float32),
                 ((0, 0), (1, 1), (1, 1), (0, 0))).reshape(n, hp * wp, cin)
    xp = jnp.pad(xp, ((0, 0), (0, 8), (0, 0)))
    offsets = tuple(ki * wp + kj for ki in range(3) for kj in range(3))

    args = [xp, w9, scale.reshape(1, -1), bias.reshape(1, -1)]
    in_specs = [pl.BlockSpec((None, lrows, cin), lambda i: (i, 0, 0)),
                pl.BlockSpec((9, cin, cout), lambda i: (0, 0, 0)),
                pl.BlockSpec((1, cout), lambda i: (0, 0)),
                pl.BlockSpec((1, cout), lambda i: (0, 0))]
    has_res = residual is not None
    if has_res:
        rw = jnp.pad(residual.astype(jnp.bfloat16),
                     ((0, 0), (0, 0), (0, 2), (0, 0))).reshape(n, m, cout)
        args.append(rw)
        in_specs.append(pl.BlockSpec((None, m, cout), lambda i: (i, 0, 0)))

    out = pl.pallas_call(
        functools.partial(_conv3x3_s1_kernel, offsets=offsets, relu=relu,
                          has_res=has_res),
        out_shape=jax.ShapeDtypeStruct((n, m, cout), jnp.bfloat16),
        grid=(n,),
        in_specs=in_specs,
        out_specs=pl.BlockSpec((None, m, cout), lambda i: (i, 0, 0)),
        compiler_params=pltpu.CompilerParams(
            dimension_semantics=("parallel",),
            vmem_limit_bytes=32 * 1024 * 1024),
    )(*args)
    # strip the 2 garbage columns per row
    return out.reshape(n, h, wp, cout)[:, :, :w, :]


# ------------------------------------------------------------------
# Kernel 3: MaxPool2d(3, stride=2, padding=1) via parity planes
# ------------------------------------------------------------------

def _maxpool_kernel(p_ref, o_ref):
    ho, wo = o_ref.shape[0], o_ref.shape[1]
    r = None
    for ki in range(3):
        for kj in range(3):
            plane = (ki % 2) * 2 + (kj % 2)
            si, sj = ki // 2, kj // 2
            slab = p_ref[plane, si:si + ho, sj:sj + wo, :]
            r = slab if r is None else jnp.maximum(r, slab)
    o_ref[...] = r.astype(o_ref.dtype)


def maxpool_3x3_s2_p1(x):
    """The padded map is split into its 4 (row, col) parity planes (one copy,
    same total size as the input); every pooling tap is then a plain shifted
    slab of one plane -> no 9x window stack in HBM.  Zero padding is
    equivalent to -inf padding because the input is post-ReLU (>= 0)."""
    n, h, w, c = x.shape
    ho, wo = (h + 2 - 3) // 2 + 1, (w + 2 - 3) // 2 + 1
    xp = jnp.pad(x.astype(jnp.float32), ((0, 0), (1, 1), (1, 1), (0, 0)))
    planes = jnp.stack([xp[:, pi::2, pj::2, :]
                        for pi in (0, 1) for pj in (0, 1)], axis=1)
    hq, wq = planes.shape[2], planes.shape[3]
    return pl.pallas_call(
        _maxpool_kernel,
        out_shape=jax.ShapeDtypeStruct((n, ho, wo, c), jnp.bfloat16),
        grid=(n,),
        in_specs=[pl.BlockSpec((None, 4, hq, wq, c),
                               lambda i: (i, 0, 0, 0, 0))],
        out_specs=pl.BlockSpec((None, ho, wo, c), lambda i: (i, 0, 0, 0)),
        compiler_params=pltpu.CompilerParams(
            dimension_semantics=("parallel",)),
    )(planes)


# ------------------------------------------------------------------
# Kernel 4: AvgPool2d(7) + flatten + Linear head (tiny fused GEMV)
# ------------------------------------------------------------------

def _head_kernel(x_ref, w_ref, b_ref, o_ref):
    pooled = jnp.mean(x_ref[...].astype(jnp.float32), axis=1)    # (N, C)
    o_ref[...] = (jnp.dot(pooled, w_ref[...],
                          preferred_element_type=jnp.float32) + b_ref[...])


def avgpool_fc(x, fc_w, fc_b):
    n, h, w, c = x.shape
    xr = x.reshape(n, h * w, c)
    num_class = fc_w.shape[-1]
    return pl.pallas_call(
        _head_kernel,
        out_shape=jax.ShapeDtypeStruct((n, num_class), jnp.float32),
        grid=(1,),
        in_specs=[pl.BlockSpec((n, h * w, c), lambda i: (0, 0, 0)),
                  pl.BlockSpec((c, num_class), lambda i: (0, 0)),
                  pl.BlockSpec((1, num_class), lambda i: (0, 0))],
        out_specs=pl.BlockSpec((n, num_class), lambda i: (0, 0)),
    )(xr, fc_w, fc_b.reshape(1, -1))


# ------------------------------------------------------------------
# Parameters (deterministic, matching the module's __init__ shapes)
# ------------------------------------------------------------------

def _conv_weight(key, in_c, out_c, kh, kw):
    # PyTorch init: normal(0, sqrt(2/(kh*kw*out_c))); stored as
    # (kh*kw, in_c, out_c) bf16 (tap-major, cin-minor) -> matches both the
    # in-kernel tap loop and the im2col column ordering.
    n = kh * kw * out_c
    std = math.sqrt(2.0 / n)
    wt = jax.random.normal(key, (out_c, in_c, kh, kw), jnp.float32) * std
    wt = jnp.transpose(wt, (2, 3, 1, 0)).reshape(kh * kw, in_c, out_c)
    return wt.astype(jnp.bfloat16)


def _bn_params(c):
    # eval-mode fold: gamma=1, beta=0, running_mean=0, running_var=1
    scale = jnp.full((c,), 1.0 / math.sqrt(1.0 + BN_EPS), jnp.float32)
    bias = jnp.zeros((c,), jnp.float32)
    return scale, bias


def init_params(key, in_channel=3, width=1, num_class=10):
    base = int(64 * width)
    keys = iter(jax.random.split(key, 64))
    p = {}
    p['conv1_w'] = _conv_weight(next(keys), in_channel, 64, 7, 7)
    p['bn1'] = _bn_params(64)
    inplanes = 64
    plan = [(base, 1), (base * 2, 2), (base * 4, 2), (base * 8, 2)]
    for li, (planes, stride) in enumerate(plan, start=1):
        blk = {'planes': planes, 'stride': stride}
        blk['conv1_w'] = _conv_weight(next(keys), inplanes, planes, 3, 3)
        blk['bn1'] = _bn_params(planes)
        blk['conv2_w'] = _conv_weight(next(keys), planes, planes, 3, 3)
        blk['bn2'] = _bn_params(planes)
        if stride != 1 or inplanes != planes:       # BasicBlock.expansion == 1
            blk['down_w'] = _conv_weight(next(keys), inplanes, planes, 1, 1)
            blk['down_bn'] = _bn_params(planes)
        p['layer%d' % li] = blk
        inplanes = planes
    # nn.Linear(base*8*expansion, num_class): deterministic synthetic init
    p['fc_w'] = jax.random.normal(next(keys), (base * 8, num_class),
                                  jnp.float32) * 0.01
    p['fc_b'] = jnp.zeros((num_class,), jnp.float32)
    return p


# ------------------------------------------------------------------
# Forward pass
# ------------------------------------------------------------------

def basic_block(x, blk):
    planes, stride = blk['planes'], blk['stride']
    if stride == 1 and x.shape[-1] == planes:
        out = conv3x3_s1_fused(x, blk['conv1_w'], *blk['bn1'], relu=True)
        residual = x
    else:
        kk, ci, co = blk['conv1_w'].shape
        out = conv_im2col_fused(x, blk['conv1_w'].reshape(kk * ci, co),
                                3, 3, stride, 1, *blk['bn1'], relu=True)
        dk, dci, dco = blk['down_w'].shape
        residual = conv_im2col_fused(x, blk['down_w'].reshape(dk * dci, dco),
                                     1, 1, stride, 0, *blk['down_bn'],
                                     relu=False)
    # conv2 + bn2 + residual add + ReLU, all fused in one kernel
    return conv3x3_s1_fused(out, blk['conv2_w'], *blk['bn2'],
                            relu=True, residual=residual)


def resnet_forward(x_nchw, params, export_layer=4):
    # input is NCHW (PyTorch); compute in NHWC / bf16, f32 accumulation
    x = jnp.transpose(x_nchw, (0, 2, 3, 1)).astype(jnp.bfloat16)
    kk, ci, co = params['conv1_w'].shape
    x = conv_im2col_fused(x, params['conv1_w'].reshape(kk * ci, co),
                          7, 7, 2, 3, *params['bn1'], relu=True)
    x = maxpool_3x3_s2_p1(x)
    feature = None
    x = basic_block(x, params['layer1'])
    x = basic_block(x, params['layer2'])
    if export_layer == 2:
        feature = jnp.transpose(x, (0, 3, 1, 2)).astype(jnp.float32)
    x = basic_block(x, params['layer3'])
    if export_layer == 3:
        feature = jnp.transpose(x, (0, 3, 1, 2)).astype(jnp.float32)
    x = basic_block(x, params['layer4'])
    if export_layer == 4:
        feature = jnp.transpose(x, (0, 3, 1, 2)).astype(jnp.float32)
    logits = avgpool_fc(x, params['fc_w'], params['fc_b'])
    return logits, feature


if __name__ == "__main__":
    key = jax.random.PRNGKey(0)
    kx, kp = jax.random.split(key)
    # AvgPool2d(7) + Linear(512, num_class) implies 224x224 input spatial size.
    x = jax.random.normal(kx, (2, 3, 224, 224), jnp.float32)   # NCHW
    params = init_params(kp, in_channel=3, width=1, num_class=10)
    logits, feature = resnet_forward(x, params, export_layer=4)
    jax.block_until_ready(logits)
    jax.block_until_ready(feature)
    assert logits.shape == (2, 10), logits.shape
    assert feature.shape == (2, 512, 7, 7), feature.shape
    assert jnp.all(jnp.isfinite(logits))
    print("KERNEL_OK")
</pallas_src>

<mosaic_0001>
module attributes {stable_mosaic.version = 11 : i64} {
  func.func @_mm_bn_kernel(%arg0: i32, %arg1: i32, %arg2: memref<3584x147xbf16, #tpu.memory_space<vmem>>, %arg3: memref<147x64xbf16, #tpu.memory_space<vmem>>, %arg4: memref<1x64xf32, #tpu.memory_space<vmem>>, %arg5: memref<1x64xf32, #tpu.memory_space<vmem>>, %arg6: memref<3584x64xbf16, #tpu.memory_space<vmem>>) attributes {dimension_semantics = [#tpu.dimension_semantics<parallel>, #tpu.dimension_semantics<parallel>], iteration_bounds = array<i64: 7, 1>, scalar_prefetch = 0 : i64, scratch_operands = 0 : i64, tpu.core_type = #tpu.core_type<tc>, window_params = [{transform_indices = @transform_0, window_bounds = array<i64: 3584, 147>}, {transform_indices = @transform_1, window_bounds = array<i64: 147, 64>}, {transform_indices = @transform_2, window_bounds = array<i64: 1, 64>}, {transform_indices = @transform_3, window_bounds = array<i64: 1, 64>}, {transform_indices = @transform_4, window_bounds = array<i64: 3584, 64>}]} {
    %c0 = arith.constant 0 : index
    %c0_0 = arith.constant 0 : index
    %0 = vector.load %arg2[%c0, %c0_0] : memref<3584x147xbf16, #tpu.memory_space<vmem>>, vector<3584x147xbf16>
    %c0_1 = arith.constant 0 : index
    %c0_2 = arith.constant 0 : index
    %1 = vector.load %arg3[%c0_1, %c0_2] : memref<147x64xbf16, #tpu.memory_space<vmem>>, vector<147x64xbf16>
    %cst = arith.constant dense<0.000000e+00> : vector<3584x64xf32>
    %2 = tpu.matmul %0, %1, %cst {dimension_numbers = #tpu.dot_dimension_numbers<[1], [0], [0], [1], [0, 0, 1, 1], [], []>} : vector<3584x147xbf16>, vector<147x64xbf16>, vector<3584x64xf32> -> vector<3584x64xf32>
    %c0_3 = arith.constant 0 : index
    %c0_4 = arith.constant 0 : index
    %3 = vector.load %arg4[%c0_3, %c0_4] : memref<1x64xf32, #tpu.memory_space<vmem>>, vector<1x64xf32>
    %4 = vector.broadcast %3 : vector<1x64xf32> to vector<3584x64xf32>
    %5 = arith.mulf %2, %4 : vector<3584x64xf32>
    %c0_5 = arith.constant 0 : index
    %c0_6 = arith.constant 0 : index
    %6 = vector.load %arg5[%c0_5, %c0_6] : memref<1x64xf32, #tpu.memory_space<vmem>>, vector<1x64xf32>
    %7 = vector.broadcast %6 : vector<1x64xf32> to vector<3584x64xf32>
    %8 = arith.addf %5, %7 : vector<3584x64xf32>
    %cst_7 = arith.constant 0.000000e+00 : f32
    %9 = vector.broadcast %cst_7 : f32 to vector<3584x64xf32>
    %10 = arith.maximumf %8, %9 : vector<3584x64xf32>
    %11 = arith.truncf %10 : vector<3584x64xf32> to vector<3584x64xbf16>
    %c0_8 = arith.constant 0 : index
    %c0_9 = arith.constant 0 : index
    %12 = vector.load %arg6[%c0_8, %c0_9] : memref<3584x64xbf16, #tpu.memory_space<vmem>>, vector<3584x64xbf16>
    tpu.vector_store %arg6[%c0_8, %c0_9], %11 {strides = array<i32>} : memref<3584x64xbf16, #tpu.memory_space<vmem>>, vector<3584x64xbf16>,
    return
  }
  func.func @transform_0(%arg0: i32, %arg1: i32) -> (i32, i32) {
    %c0_i32 = arith.constant 0 : i32
    %c0_i32_0 = arith.constant 0 : i32
    return %arg0, %c0_i32 : i32, i32
  }
  func.func @transform_1(%arg0: i32, %arg1: i32) -> (i32, i32) {
    %c0_i32 = arith.constant 0 : i32
    %c0_i32_0 = arith.constant 0 : i32
    return %c0_i32, %arg1 : i32, i32
  }
  func.func @transform_2(%arg0: i32, %arg1: i32) -> (i32, i32) {
    %c0_i32 = arith.constant 0 : i32
    %c0_i32_0 = arith.constant 0 : i32
    return %c0_i32, %arg1 : i32, i32
  }
  func.func @transform_3(%arg0: i32, %arg1: i32) -> (i32, i32) {
    %c0_i32 = arith.constant 0 : i32
    %c0_i32_0 = arith.constant 0 : i32
    return %c0_i32, %arg1 : i32, i32
  }
  func.func @transform_4(%arg0: i32, %arg1: i32) -> (i32, i32) {
    %c0_i32 = arith.constant 0 : i32
    return %arg0, %arg1 : i32, i32
  }
}

</mosaic_0001>

<bundles_post_ra>
// kernel: tpu_custom_call.1
= control target key start
LH: loop header
LB: loop body
LE: loop exit
PB: predicated region body
PF: predicated region fallthrough
CT: control target
= control target key end

     0   :  { %s11415_s15 = smov 0   ;;  %s11417_s16 = smov 0   ;;  %s14033_s0 = inlined_call_operand.vmem [shape: bf16[25088,147], index: 0, kind: input, shape index: {}]   ;;  %s14034_s1 = inlined_call_operand.vmem [shape: bf16[147,64], index: 1, kind: input, shape index: {}]   ;;  %s14035_s2 = inlined_call_operand.vmem [shape: f32[1,64], index: 2, kind: input, shape index: {}]   ;;  %s14036_s3 = inlined_call_operand.vmem [shape: f32[1,64], index: 3, kind: input, shape index: {}]   ;;  %s14037_s4 = inlined_call_operand.vmem [shape: bf16[25088,64], index: 4, kind: output, shape index: {}]  }
   0x1   :  { %s11419_s17 = smov 0  }
   0x2 LB: > { %s26_s18 = sadd.s32 1, %s11382_s16  ;;  %p9035_p0 = scmp.ge.s32.totalorder %s11386_s17, 1  ;;  %s11386_s17 = sphi %s11419_s17, %s14_s17   ;;  %s11382_s16 = sphi %s11417_s16, %s14039_s16   ;;  %s11378_s15 = sphi %s11415_s15, %s14038_s15  }
   0x3   : > { %p28_p1 = scmp.ge.s32.totalorder %s26_s18, 7  ;;  %p203_p2 = scmp.lt.s32.totalorder %s11386_s17, 8 }
   0x5   : > { %s14041_s18 = smov (%p28_p1, %s26_s18), 0  ;;  %p204_p3 = pnand %p9035_p0, %p203_p2 }
   0x6   : > { %v10668_v0 = vld [vmem:[%s14034_s1] sm:$0xff] (!%p204_p3)   ;;  %v11388_v1 = vmov (!%p204_p3), 0   ;;  %v10669_v2 = vld [vmem:[%s14034_s1 + $0x8] sm:$0xff] (!%p204_p3)   ;;  %v10670_v3 = vld [vmem:[%s14034_s1 + $0x10] sm:$0xff] (!%p204_p3)   ;;  %s243_s25 = smul.u32 (!%p204_p3), 448, %s11378_s15  ;;  %vm2810_vm0 = vcmask (!%p204_p3), 154624  }
   0x7   : > { %207 = sbr.rel (%p204_p3) target bundleno = 1158 (0x486), region = 36  ;;  %3490 = vmatprep.subr.bf16.mxu0 (!%p204_p3), %v11388_v1  ;;  %10622 = vmatprep.subr.bf16.mxu1 (!%p204_p3), %v11388_v1  ;;  %v10671_v4 = vld [vmem:[%s14034_s1 + $0x18] sm:$0xff] (!%p204_p3)   ;;  %v10672_v5 = vld [vmem:[%s14034_s1 + $0x20] sm:$0xff] (!%p204_p3)   ;;  %v10673_v8 = vld [vmem:[%s14034_s1 + $0x28] sm:$0xff] (!%p204_p3)   ;;  %vm3483_vm1 = vcmask (!%p204_p3), 1040384   ;;  %vm3484_vm2 = vcmask (!%p204_p3), 1041408  }
   0x8   : > { %3491 = vmatpush1.bf16.msra.mxu0 (!%p204_p3), %v10668_v0  ;;  %10632 = vmatpush1.bf16.msra.mxu1 (!%p204_p3), %v10668_v0  ;;  %p244_p4 = scmp.lt.s32.totalorder (!%p204_p3), %s243_s25, 3135  ;;  %v10674_v9 = vld [vmem:[%s14034_s1 + $0x30] sm:$0xff] (!%p204_p3)   ;;  %v10675_v10 = vld [vmem:[%s14034_s1 + $0x38] sm:$0xff] (!%p204_p3)   ;;  %v11389_v11 = vmov (!%p204_p3), 65535   ;;  %v10676_v13 = vld [vmem:[%s14034_s1 + $0x40] sm:$0xff] (!%p204_p3)   ;;  %vm8465_vm3 = vcmask (!%p204_p3), 519168  }
   0x9   : > { %3492 = vmatprep.subr.bf16.mxu0 (!%p204_p3), %v11388_v1  ;;  %10623 = vmatprep.subr.bf16.mxu1 (!%p204_p3), %v11388_v1  ;;  %v3485_v12 = vsel (!%p204_p3), %vm3483_vm1, 4294967295, %v11389_v11  ;;  %v10677_v14 = vld [vmem:[%s14034_s1 + $0x48] ss:$0 sps:$4 sm:$0x33] (!%p204_p3)  }
   0xa   : > { %v3486_v15 = vsel (!%p204_p3), %vm3484_vm2, %v3485_v12, 0 }
   0xb   : > { %v3488_v16 = vand.u32 (!%p204_p3), %v10677_v14, %v3486_v15 }
   0xc   : > { %3493 = vmatpush1.bf16.msra.mxu0 (!%p204_p3), %v10669_v2  ;;  %10633 = vmatpush1.bf16.msra.mxu1 (!%p204_p3), %v10669_v2 }
   0xd   : > { %3494 = vmatprep.subr.bf16.mxu0 (!%p204_p3), %v11388_v1  ;;  %10624 = vmatprep.subr.bf16.mxu1 (!%p204_p3), %v11388_v1 }
   0xe   : > { %s14043_s25 = smov (!%p244_p4, %s243_s25), 3135 }
   0xf   : > { %s10173_s28 = sshll.u32 %s14043_s25, 3  ;;  %s9038_s26 = sshll.u32 %s14043_s25, 2 }
  0x10   : > { %3495 = vmatpush1.bf16.msra.mxu0 %v10670_v3  ;;  %10634 = vmatpush1.bf16.msra.mxu1 %v10670_v3  ;;  %s11454_s5 = scalar_lea.vmem %s14033_s0, %s10173_s28  ;;  %s11666_s28 = scalar_lea.vmem %s14037_s4, %s9038_s26 }
  0x11   : > { %3496 = vmatprep.subr.bf16.mxu0 %v11388_v1  ;;  %10625 = vmatprep.subr.bf16.mxu1 %v11388_v1  ;;  %v10680_v6 = vld [vmem:[%s11454_s5 + $0x4] ss:$8 sps:$4 sm:$0xff]   ;;  %v10678_v17 = vld [vmem:[%s11454_s5] ss:$8 sps:$4 sm:$0xff]   ;;  %v10684_v19 = vld [vmem:[%s11454_s5 + $0x14] ss:$8 sps:$4 sm:$0xff]  }
  0x12   : > { %v10683_v7 = vld [vmem:[%s11454_s5 + $0x704] ss:$8 sps:$4 sm:$0xff]   ;;  %9497 = vmatprep.mubr.msk.bf16.mxu0 %vm2810_vm0, %v10680_v6  ;;  %v10681_v18 = vld [vmem:[%s11454_s5 + $0x700] ss:$8 sps:$4 sm:$0xff]   ;;  %v10686_v20 = vld [vmem:[%s11454_s5 + $0x714] ss:$8 sps:$4 sm:$0xff]  }
  0x13   : > { %9609 = vmatprep.mubr.msk.bf16.mxu1 %vm2810_vm0, %v10683_v7  ;;  %v10688_v21 = vld [vmem:[%s11454_s5 + $0x10] ss:$8 sps:$4 sm:$0xff]   ;;  %v10690_v23 = vld [vmem:[%s11454_s5 + $0x24] ss:$8 sps:$4 sm:$0xff]   ;;  %v10694_v25 = vld [vmem:[%s11454_s5 + $0x20] ss:$8 sps:$4 sm:$0xff]  }
  0x14   : > { %3497 = vmatpush1.bf16.msra.mxu0 %v10671_v4  ;;  %10635 = vmatpush1.bf16.msra.mxu1 %v10671_v4  ;;  %v10689_v22 = vld [vmem:[%s11454_s5 + $0x710] ss:$8 sps:$4 sm:$0xff]   ;;  %v10692_v24 = vld [vmem:[%s11454_s5 + $0x724] ss:$8 sps:$4 sm:$0xff]   ;;  %v10695_v26 = vld [vmem:[%s11454_s5 + $0x720] ss:$8 sps:$4 sm:$0xff]  }
  0x15   : > { %3498 = vmatprep.subr.bf16.mxu0 %v11388_v1  ;;  %10626 = vmatprep.subr.bf16.mxu1 %v11388_v1  ;;  %v10696_v27 = vld [vmem:[%s11454_s5 + $0x34] ss:$8 sps:$4 sm:$0xff]   ;;  %v10700_v29 = vld [vmem:[%s11454_s5 + $0x30] ss:$8 sps:$4 sm:$0xff]   ;;  %v10702_v31 = vld [vmem:[%s11454_s5 + $0x44] ss:$8 sps:$4 sm:$0xff]  }
  0x16   : > { %v10698_v28 = vld [vmem:[%s11454_s5 + $0x734] ss:$8 sps:$4 sm:$0xff]   ;;  %v10701_v30 = vld [vmem:[%s11454_s5 + $0x730] ss:$8 sps:$4 sm:$0xff]   ;;  %v10704_v32 = vld [vmem:[%s11454_s5 + $0x744] ss:$8 sps:$4 sm:$0xff]  }
  0x17   : > { %v10706_v33 = vld [vmem:[%s11454_s5 + $0x40] ss:$8 sps:$4 sm:$0xff]   ;;  %v10708_v35 = vld [vmem:[%s11454_s5 + $0x54] ss:$8 sps:$4 sm:$0xff]   ;;  %v10712_v37 = vld [vmem:[%s11454_s5 + $0x50] ss:$8 sps:$4 sm:$0xff]  }
  0x18   : > { %3499 = vmatpush1.bf16.msra.mxu0 %v10672_v5  ;;  %10636 = vmatpush1.bf16.msra.mxu1 %v10672_v5  ;;  %v10707_v34 = vld [vmem:[%s11454_s5 + $0x740] ss:$8 sps:$4 sm:$0xff]   ;;  %v10710_v36 = vld [vmem:[%s11454_s5 + $0x754] ss:$8 sps:$4 sm:$0xff]   ;;  %v10713_v38 = vld [vmem:[%s11454_s5 + $0x750] ss:$8 sps:$4 sm:$0xff]  }
  0x19   : > { %3500 = vmatprep.subr.bf16.mxu0 %v11388_v1  ;;  %10627 = vmatprep.subr.bf16.mxu1 %v11388_v1  ;;  %v10714_v39 = vld [vmem:[%s11454_s5 + $0x64] ss:$8 sps:$4 sm:$0xff]   ;;  %v10718_v41 = vld [vmem:[%s11454_s5 + $0x60] ss:$8 sps:$4 sm:$0xff]   ;;  %v10720_v43 = vld [vmem:[%s11454_s5 + $0x74] ss:$8 sps:$4 sm:$0xff]  }
  0x1a   : > { %v10716_v40 = vld [vmem:[%s11454_s5 + $0x764] ss:$8 sps:$4 sm:$0xff]   ;;  %v10719_v42 = vld [vmem:[%s11454_s5 + $0x760] ss:$8 sps:$4 sm:$0xff]   ;;  %v10722_v44 = vld [vmem:[%s11454_s5 + $0x774] ss:$8 sps:$4 sm:$0xff]  }
  0x1b   : > { %v10724_v45 = vld [vmem:[%s11454_s5 + $0x70] ss:$8 sps:$4 sm:$0xff]   ;;  %v10726_v47 = vld [vmem:[%s11454_s5 + $0x84] ss:$8 sps:$4 sm:$0xff]   ;;  %v10730_v49 = vld [vmem:[%s11454_s5 + $0x80] ss:$8 sps:$4 sm:$0xff]  }
  0x1c   : > { %3501 = vmatpush1.bf16.msra.mxu0 %v10673_v8  ;;  %10637 = vmatpush1.bf16.msra.mxu1 %v10673_v8  ;;  %v10725_v46 = vld [vmem:[%s11454_s5 + $0x770] ss:$8 sps:$4 sm:$0xff]   ;;  %v10728_v48 = vld [vmem:[%s11454_s5 + $0x784] ss:$8 sps:$4 sm:$0xff]   ;;  %v10731_v50 = vld [vmem:[%s11454_s5 + $0x780] ss:$8 sps:$4 sm:$0xff]  }
  0x1d   : > { %3502 = vmatprep.subr.bf16.mxu0 %v11388_v1  ;;  %10628 = vmatprep.subr.bf16.mxu1 %v11388_v1  ;;  %v10732_v51 = vld [vmem:[%s11454_s5 + $0x94] ss:$8 sps:$4 sm:$0xff]   ;;  %v10736_v53 = vld [vmem:[%s11454_s5 + $0x90] ss:$8 sps:$4 sm:$0xff]   ;;  %v10738_v55 = vld [vmem:[%s11454_s5 + $0xa4] ss:$8 sps:$4 sm:$0xff]  }
  0x1e   : > { %v10734_v52 = vld [vmem:[%s11454_s5 + $0x794] ss:$8 sps:$4 sm:$0xff]   ;;  %v10737_v54 = vld [vmem:[%s11454_s5 + $0x790] ss:$8 sps:$4 sm:$0xff]   ;;  %v10740_v56 = vld [vmem:[%s11454_s5 + $0x7a4] ss:$8 sps:$4 sm:$0xff]  }
  0x1f   : > { %v10742_v57 = vld [vmem:[%s11454_s5 + $0xa0] ss:$8 sps:$4 sm:$0xff]   ;;  %v10744_v59 = vld [vmem:[%s11454_s5 + $0xb4] ss:$8 sps:$4 sm:$0xff]   ;;  %v10748_v61 = vld [vmem:[%s11454_s5 + $0xb0] ss:$8 sps:$4 sm:$0xff]  }
  0x20   : > { %3503 = vmatpush1.bf16.msra.mxu0 %v10674_v9  ;;  %10638 = vmatpush1.bf16.msra.mxu1 %v10674_v9  ;;  %v10743_v58 = vld [vmem:[%s11454_s5 + $0x7a0] ss:$8 sps:$4 sm:$0xff]   ;;  %v10746_v60 = vld [vmem:[%s11454_s5 + $0x7b4] ss:$8 sps:$4 sm:$0xff]   ;;  %v10749_v62 = vld [vmem:[%s11454_s5 + $0x7b0] ss:$8 sps:$4 sm:$0xff]  }
  0x21   : > { %3504 = vmatprep.subr.bf16.mxu0 %v11388_v1  ;;  %10629 = vmatprep.subr.bf16.mxu1 %v11388_v1  ;;  %v10750_v63 = vld [vmem:[%s11454_s5 + $0xc4] ss:$8 sps:$4 sm:$0xff]   ;;  %v10755_v2 = vld [vmem:[%s11454_s5 + $0x7c0] ss:$8 sps:$4 sm:$0xff]   ;;  %v10756_v3 = vld [vmem:[%s11454_s5 + $0xd4] ss:$8 sps:$4 sm:$0xff]  }
  0x22   : > { %v10752_v0 = vld [vmem:[%s11454_s5 + $0x7c4] ss:$8 sps:$4 sm:$0xff]   ;;  %v10758_v4 = vld [vmem:[%s11454_s5 + $0x7d4] ss:$8 sps:$4 sm:$0xff]   ;;  %v10760_v5 = vld [vmem:[%s11454_s5 + $0xd0] ss:$8 sps:$4 sm:$0xff]  }
  0x23   : > { %v10761_v6 = vld [vmem:[%s11454_s5 + $0x7d0] ss:$8 sps:$4 sm:$0xff]   ;;  %v10762_v7 = vld [vmem:[%s11454_s5 + $0xe4] ss:$8 sps:$4 sm:$0xff]   ;;  %v10766_v9 = vld [vmem:[%s11454_s5 + $0xe0] ss:$8 sps:$4 sm:$0xff]  }
  0x24   : > { %3505 = vmatpush1.bf16.msra.mxu0 %v10675_v10  ;;  %10639 = vmatpush1.bf16.msra.mxu1 %v10675_v10  ;;  %v10764_v8 = vld [vmem:[%s11454_s5 + $0x7e4] ss:$8 sps:$4 sm:$0xff]   ;;  %v10767_v10 = vld [vmem:[%s11454_s5 + $0x7e0] ss:$8 sps:$4 sm:$0xff]   ;;  %v10768_v11 = vld [vmem:[%s11454_s5 + $0xf4] ss:$8 sps:$4 sm:$0xff]  }
  0x25   : > { %3506 = vmatprep.subr.bf16.mxu0 %v11388_v1  ;;  %10630 = vmatprep.subr.bf16.mxu1 %v11388_v1  ;;  %v10770_v12 = vld [vmem:[%s11454_s5 + $0x7f4] ss:$8 sps:$4 sm:$0xff]   ;;  %v10773_v14 = vld [vmem:[%s11454_s5 + $0x7f0] ss:$8 sps:$4 sm:$0xff]   ;;  %v10774_v15 = vld [vmem:[%s11454_s5 + $0x104] ss:$8 sps:$4 sm:$0xff]  }
  0x28   : > { %3507 = vmatpush1.bf16.msra.mxu0 %v10676_v13  ;;  %10640 = vmatpush1.bf16.msra.mxu1 %v10676_v13  ;;  %v10772_v13 = vld [vmem:[%s11454_s5 + $0xf0] ss:$8 sps:$4 sm:$0xff]  }
  0x29   : > { %3508 = vmatprep.subr.bf16.mxu0 %v11388_v1  ;;  %10631 = vmatprep.subr.bf16.mxu1 %v11388_v1  ;;  %v10754_v1 = vld [vmem:[%s11454_s5 + $0xc0] ss:$8 sps:$4 sm:$0xff]  }
  0x2c   : > { %3509 = vmatpush1.bf16.msra.mxu0 %v3488_v16  ;;  %10641 = vmatpush1.bf16.msra.mxu1 %v3488_v16  ;;  %v10776_v16 = vld [vmem:[%s11454_s5 + $0x804] ss:$8 sps:$4 sm:$0xff]  }
  0x2f   : > { %3523 = vmatmul.mubr.bf16.vlgmr.msra.gmra.mrb[0].mxu0 %v10678_v17  ;;  %4419 = vmatmul.mubr.bf16.vlgmr.msra.gmra.mrb[0].mxu1 %v10681_v18  ;;  %v10778_v17 = vld [vmem:[%s11454_s5 + $0x100] ss:$8 sps:$4 sm:$0xff]  }
  0x30   : > { %9498 = vmatprep.mubr.msk.bf16.mxu0 %vm2810_vm0, %v10684_v19  ;;  %9610 = vmatprep.mubr.msk.bf16.mxu1 %vm2810_vm0, %v10686_v20  ;;  %v10779_v18 = vld [vmem:[%s11454_s5 + $0x800] ss:$8 sps:$4 sm:$0xff]   ;;  %v10780_v19 = vld [vmem:[%s11454_s5 + $0x114] ss:$8 sps:$4 sm:$0xff]  }
  0x31   : > { %v10782_v20 = vld [vmem:[%s11454_s5 + $0x814] ss:$8 sps:$4 sm:$0xff]  }
  0x37   : > { %3531 = vmatmul.mubr.bf16.gmra.mrb[4].mxu0 %v10688_v21  ;;  %4427 = vmatmul.mubr.bf16.gmra.mrb[4].mxu1 %v10689_v22  ;;  %v10784_v21 = vld [vmem:[%s11454_s5 + $0x110] ss:$8 sps:$4 sm:$0xff]  }
  0x38   : > { %9499 = vmatprep.mubr.msk.bf16.mxu0 %vm2810_vm0, %v10690_v23  ;;  %9611 = vmatprep.mubr.msk.bf16.mxu1 %vm2810_vm0, %v10692_v24  ;;  %v10785_v22 = vld [vmem:[%s11454_s5 + $0x810] ss:$8 sps:$4 sm:$0xff]   ;;  %v10786_v23 = vld [vmem:[%s11454_s5 + $0x124] ss:$8 sps:$4 sm:$0xff]  }
  0x39   : > { %v10788_v24 = vld [vmem:[%s11454_s5 + $0x824] ss:$8 sps:$4 sm:$0xff]  }
  0x3f   : > { %3539 = vmatmul.mubr.bf16.gmra.mrb[8].mxu0 %v10694_v25  ;;  %4435 = vmatmul.mubr.bf16.gmra.mrb[8].mxu1 %v10695_v26  ;;  %v10790_v25 = vld [vmem:[%s11454_s5 + $0x120] ss:$8 sps:$4 sm:$0xff]  }
  0x40   : > { %9500 = vmatprep.mubr.msk.bf16.mxu0 %vm2810_vm0, %v10696_v27  ;;  %9612 = vmatprep.mubr.msk.bf16.mxu1 %vm2810_vm0, %v10698_v28  ;;  %v10791_v26 = vld [vmem:[%s11454_s5 + $0x820] ss:$8 sps:$4 sm:$0xff]   ;;  %v10792_v27 = vld [vmem:[%s11454_s5 + $0x134] ss:$8 sps:$4 sm:$0xff]  }
  0x41   : > { %v10794_v28 = vld [vmem:[%s11454_s5 + $0x834] ss:$8 sps:$4 sm:$0xff]  }
  0x47   : > { %3547 = vmatmul.mubr.bf16.gmra.mrb[12].mxu0 %v10700_v29  ;;  %4443 = vmatmul.mubr.bf16.gmra.mrb[12].mxu1 %v10701_v30  ;;  %v10796_v29 = vld [vmem:[%s11454_s5 + $0x130] ss:$8 sps:$4 sm:$0xff]  }
  0x48   : > { %9501 = vmatprep.mubr.msk.bf16.mxu0 %vm2810_vm0, %v10702_v31  ;;  %9613 = vmatprep.mubr.msk.bf16.mxu1 %vm2810_vm0, %v10704_v32  ;;  %v10797_v30 = vld [vmem:[%s11454_s5 + $0x830] ss:$8 sps:$4 sm:$0xff]   ;;  %v10798_v31 = vld [vmem:[%s11454_s5 + $0x144] ss:$8 sps:$4 sm:$0xff]  }
  0x49   : > { %v10800_v32 = vld [vmem:[%s11454_s5 + $0x844] ss:$8 sps:$4 sm:$0xff]  }
  0x4f   : > { %3555 = vmatmul.mubr.bf16.gmra.mrb[16].mxu0 %v10706_v33  ;;  %4451 = vmatmul.mubr.bf16.gmra.mrb[16].mxu1 %v10707_v34  ;;  %v10802_v33 = vld [vmem:[%s11454_s5 + $0x140] ss:$8 sps:$4 sm:$0xff]  }
  0x50   : > { %9502 = vmatprep.mubr.msk.bf16.mxu0 %vm2810_vm0, %v10708_v35  ;;  %9614 = vmatprep.mubr.msk.bf16.mxu1 %vm2810_vm0, %v10710_v36  ;;  %v10803_v34 = vld [vmem:[%s11454_s5 + $0x840] ss:$8 sps:$4 sm:$0xff]   ;;  %v10804_v35 = vld [vmem:[%s11454_s5 + $0x154] ss:$8 sps:$4 sm:$0xff]  }
  0x51   : > { %v10806_v36 = vld [vmem:[%s11454_s5 + $0x854] ss:$8 sps:$4 sm:$0xff]  }
  0x57   : > { %3563 = vmatmul.mubr.bf16.gmra.mrb[20].mxu0 %v10712_v37  ;;  %4459 = vmatmul.mubr.bf16.gmra.mrb[20].mxu1 %v10713_v38  ;;  %v10808_v37 = vld [vmem:[%s11454_s5 + $0x150] ss:$8 sps:$4 sm:$0xff]  }
  0x58   : > { %9503 = vmatprep.mubr.msk.bf16.mxu0 %vm2810_vm0, %v10714_v39  ;;  %9615 = vmatprep.mubr.msk.bf16.mxu1 %vm2810_vm0, %v10716_v40  ;;  %v10809_v38 = vld [vmem:[%s11454_s5 + $0x850] ss:$8 sps:$4 sm:$0xff]   ;;  %v10810_v39 = vld [vmem:[%s11454_s5 + $0x164] ss:$8 sps:$4 sm:$0xff]  }
  0x59   : > { %v10812_v40 = vld [vmem:[%s11454_s5 + $0x864] ss:$8 sps:$4 sm:$0xff]  }
  0x5f   : > { %3571 = vmatmul.mubr.bf16.gmra.mrb[24].mxu0 %v10718_v41  ;;  %4467 = vmatmul.mubr.bf16.gmra.mrb[24].mxu1 %v10719_v42  ;;  %v10814_v41 = vld [vmem:[%s11454_s5 + $0x160] ss:$8 sps:$4 sm:$0xff]  }
  0x60   : > { %9504 = vmatprep.mubr.msk.bf16.mxu0 %vm2810_vm0, %v10720_v43  ;;  %9616 = vmatprep.mubr.msk.bf16.mxu1 %vm2810_vm0, %v10722_v44  ;;  %v10815_v42 = vld [vmem:[%s11454_s5 + $0x860] ss:$8 sps:$4 sm:$0xff]   ;;  %v10816_v43 = vld [vmem:[%s11454_s5 + $0x174] ss:$8 sps:$4 sm:$0xff]  }
  0x61   : > { %v10818_v44 = vld [vmem:[%s11454_s5 + $0x874] ss:$8 sps:$4 sm:$0xff]  }
  0x67   : > { %3579 = vmatmul.mubr.bf16.gmra.mrb[28].mxu0 %v10724_v45  ;;  %4475 = vmatmul.mubr.bf16.gmra.mrb[28].mxu1 %v10725_v46  ;;  %v10820_v45 = vld [vmem:[%s11454_s5 + $0x170] ss:$8 sps:$4 sm:$0xff]  }
  0x68   : > { %9505 = vmatprep.mubr.msk.bf16.mxu0 %vm2810_vm0, %v10726_v47  ;;  %9617 = vmatprep.mubr.msk.bf16.mxu1 %vm2810_vm0, %v10728_v48  ;;  %v10821_v46 = vld [vmem:[%s11454_s5 + $0x870] ss:$8 sps:$4 sm:$0xff]   ;;  %v10822_v47 = vld [vmem:[%s11454_s5 + $0x184] ss:$8 sps:$4 sm:$0xff]  }
  0x69   : > { %v10824_v48 = vld [vmem:[%s11454_s5 + $0x884] ss:$8 sps:$4 sm:$0xff]  }
  0x6f   : > { %3587 = vmatmul.mubr.bf16.gmra.mrb[32].mxu0 %v10730_v49  ;;  %4483 = vmatmul.mubr.bf16.gmra.mrb[32].mxu1 %v10731_v50  ;;  %v10826_v49 = vld [vmem:[%s11454_s5 + $0x180] ss:$8 sps:$4 sm:$0xff]  }
  0x70   : > { %9506 = vmatprep.mubr.msk.bf16.mxu0 %vm2810_vm0, %v10732_v51  ;;  %9618 = vmatprep.mubr.msk.bf16.mxu1 %vm2810_vm0, %v10734_v52  ;;  %v10827_v50 = vld [vmem:[%s11454_s5 + $0x880] ss:$8 sps:$4 sm:$0xff]   ;;  %v10828_v51 = vld [vmem:[%s11454_s5 + $0x194] ss:$8 sps:$4 sm:$0xff]  }
  0x71   : > { %v10830_v52 = vld [vmem:[%s11454_s5 + $0x894] ss:$8 sps:$4 sm:$0xff]  }
  0x77   : > { %3595 = vmatmul.mubr.bf16.gmra.mrb[36].mxu0 %v10736_v53  ;;  %4491 = vmatmul.mubr.bf16.gmra.mrb[36].mxu1 %v10737_v54  ;;  %v10832_v53 = vld [vmem:[%s11454_s5 + $0x190] ss:$8 sps:$4 sm:$0xff]  }
  0x78   : > { %9507 = vmatprep.mubr.msk.bf16.mxu0 %vm2810_vm0, %v10738_v55  ;;  %9619 = vmatprep.mubr.msk.bf16.mxu1 %vm2810_vm0, %v10740_v56  ;;  %v10833_v54 = vld [vmem:[%s11454_s5 + $0x890] ss:$8 sps:$4 sm:$0xff]   ;;  %v10834_v55 = vld [vmem:[%s11454_s5 + $0x1a4] ss:$8 sps:$4 sm:$0xff]  }
  0x79   : > { %v10836_v56 = vld [vmem:[%s11454_s5 + $0x8a4] ss:$8 sps:$4 sm:$0xff]  }
  0x7f   : > { %3603 = vmatmul.mubr.bf16.gmra.mrb[40].mxu0 %v10742_v57  ;;  %4499 = vmatmul.mubr.bf16.gmra.mrb[40].mxu1 %v10743_v58  ;;  %v10838_v57 = vld [vmem:[%s11454_s5 + $0x1a0] ss:$8 sps:$4 sm:$0xff]  }
  0x80   : > { %9508 = vmatprep.mubr.msk.bf16.mxu0 %vm2810_vm0, %v10744_v59  ;;  %9620 = vmatprep.mubr.msk.bf16.mxu1 %vm2810_vm0, %v10746_v60  ;;  %v10839_v58 = vld [vmem:[%s11454_s5 + $0x8a0] ss:$8 sps:$4 sm:$0xff]   ;;  %v10840_v59 = vld [vmem:[%s11454_s5 + $0x1b4] ss:$8 sps:$4 sm:$0xff]  }
  0x81   : > { %v10842_v60 = vld [vmem:[%s11454_s5 + $0x8b4] ss:$8 sps:$4 sm:$0xff]  }
  0x87   : > { %3611 = vmatmul.mubr.bf16.gmra.mrb[44].mxu0 %v10748_v61  ;;  %4507 = vmatmul.mubr.bf16.gmra.mrb[44].mxu1 %v10749_v62  ;;  %v11641_v61 = vld [vmem:[%s14035_s2] ss:$0 sm:$0xff] }
  0x88   : > { %9509 = vmatprep.mubr.msk.bf16.mxu0 %vm2810_vm0, %v10750_v63  ;;  %9621 = vmatprep.mubr.msk.bf16.mxu1 %vm2810_vm0, %v10752_v0  ;;  %v11648_v63 = vld [vmem:[%s14036_s3] ss:$0 sm:$0xff] }
  0x8f   : > { %3619 = vmatmul.mubr.bf16.gmra.mrb[48].mxu0 %v10754_v1  ;;  %4515 = vmatmul.mubr.bf16.gmra.mrb[48].mxu1 %v10755_v2 }
  0x90   : > { %9510 = vmatprep.mubr.msk.bf16.mxu0 %vm2810_vm0, %v10756_v3  ;;  %9622 = vmatprep.mubr.msk.bf16.mxu1 %vm2810_vm0, %v10758_v4 }
  0x97   : > { %3627 = vmatmul.mubr.bf16.gmra.mrb[52].mxu0 %v10760_v5  ;;  %4523 = vmatmul.mubr.bf16.gmra.mrb[52].mxu1 %v10761_v6  ;;  %v10844_v5 = vld [vmem:[%s11454_s5 + $0x1b0] ss:$8 sps:$4 sm:$0xff]  }
  0x98   : > { %9511 = vmatprep.mubr.msk.bf16.mxu0 %vm2810_vm0, %v10762_v7  ;;  %9623 = vmatprep.mubr.msk.bf16.mxu1 %vm2810_vm0, %v10764_v8  ;;  %v10845_v6 = vld [vmem:[%s11454_s5 + $0x8b0] ss:$8 sps:$4 sm:$0xff]  }
  0x9f   : > { %3635 = vmatmul.mubr.bf16.gmra.mrb[56].mxu0 %v10766_v9  ;;  %4531 = vmatmul.mubr.bf16.gmra.mrb[56].mxu1 %v10767_v10  ;;  %v10846_v9 = vld [vmem:[%s11454_s5 + $0x1c4] ss:$8 sps:$4 sm:$0xff]  }
  0xa0   : > { %9512 = vmatprep.mubr.msk.bf16.mxu0 %vm2810_vm0, %v10768_v11  ;;  %9624 = vmatprep.mubr.msk.bf16.mxu1 %vm2810_vm0, %v10770_v12  ;;  %v10848_v10 = vld [vmem:[%s11454_s5 + $0x8c4] ss:$8 sps:$4 sm:$0xff]  }
  0xa7   : > { %3643 = vmatmul.mubr.bf16.gmra.mrb[60].mxu0 %v10772_v13  ;;  %4539 = vmatmul.mubr.bf16.gmra.mrb[60].mxu1 %v10773_v14 }
  0xa8   : > { %9513 = vmatprep.mubr.msk.bf16.mxu0 %vm2810_vm0, %v10774_v15  ;;  %9625 = vmatprep.mubr.msk.bf16.mxu1 %vm2810_vm0, %v10776_v16 }
  0xaf   : > { %3651 = vmatmul.mubr.bf16.gmra.mrb[64].mxu0 %v10778_v17  ;;  %4547 = vmatmul.mubr.bf16.gmra.mrb[64].mxu1 %v10779_v18 }
  0xb0   : > { %9514 = vmatprep.mubr.msk.bf16.mxu0 %vm2810_vm0, %v10780_v19  ;;  %9626 = vmatprep.mubr.msk.bf16.mxu1 %vm2810_vm0, %v10782_v20 }
  0xb7   : > { %3659 = vmatmul.mubr.bf16.gmra.mrb[68].mxu0 %v10784_v21  ;;  %4555 = vmatmul.mubr.bf16.gmra.mrb[68].mxu1 %v10785_v22 }
  0xb8   : > { %9515 = vmatprep.mubr.msk.bf16.mxu0 %vm2810_vm0, %v10786_v23  ;;  %9627 = vmatprep.mubr.msk.bf16.mxu1 %vm2810_vm0, %v10788_v24 }
  0xbf   : > { %3667 = vmatmul.mubr.bf16.gmra.mrb[72].mxu0 %v10790_v25  ;;  %4563 = vmatmul.mubr.bf16.gmra.mrb[72].mxu1 %v10791_v26 }
  0xc0   : > { %9516 = vmatprep.mubr.msk.bf16.mxu0 %vm2810_vm0, %v10792_v27  ;;  %9628 = vmatprep.mubr.msk.bf16.mxu1 %vm2810_vm0, %v10794_v28 }
  0xc7   : > { %3675 = vmatmul.mubr.bf16.gmra.mrb[76].mxu0 %v10796_v29  ;;  %4571 = vmatmul.mubr.bf16.gmra.mrb[76].mxu1 %v10797_v30 }
  0xc8   : > { %9517 = vmatprep.mubr.msk.bf16.mxu0 %vm2810_vm0, %v10798_v31  ;;  %9629 = vmatprep.mubr.msk.bf16.mxu1 %vm2810_vm0, %v10800_v32 }
  0xcf   : > { %3683 = vmatmul.mubr.bf16.gmra.mrb[80].mxu0 %v10802_v33  ;;  %4579 = vmatmul.mubr.bf16.gmra.mrb[80].mxu1 %v10803_v34  ;;  %v10850_v33 = vld [vmem:[%s11454_s5 + $0x1c0] ss:$8 sps:$4 sm:$0xff]  }
  0xd0   : > { %9518 = vmatprep.mubr.msk.bf16.mxu0 %vm2810_vm0, %v10804_v35  ;;  %9630 = vmatprep.mubr.msk.bf16.mxu1 %vm2810_vm0, %v10806_v36  ;;  %v10851_v34 = vld [vmem:[%s11454_s5 + $0x8c0] ss:$8 sps:$4 sm:$0xff]  }
  0xd7   : > { %3691 = vmatmul.mubr.bf16.gmra.mrb[84].mxu0 %v10808_v37  ;;  %4587 = vmatmul.mubr.bf16.gmra.mrb[84].mxu1 %v10809_v38  ;;  %v10852_v37 = vld [vmem:[%s11454_s5 + $0x1d4] ss:$8 sps:$4 sm:$0xff]  }
  0xd8   : > { %9519 = vmatprep.mubr.msk.bf16.mxu0 %vm2810_vm0, %v10810_v39  ;;  %9631 = vmatprep.mubr.msk.bf16.mxu1 %vm2810_vm0, %v10812_v40  ;;  %v10854_v38 = vld [vmem:[%s11454_s5 + $0x8d4] ss:$8 sps:$4 sm:$0xff]  }
  0xdf   : > { %3699 = vmatmul.mubr.bf16.gmra.mrb[88].mxu0 %v10814_v41  ;;  %4595 = vmatmul.mubr.bf16.gmra.mrb[88].mxu1 %v10815_v42 }
  0xe0   : > { %9520 = vmatprep.mubr.msk.bf16.mxu0 %vm2810_vm0, %v10816_v43  ;;  %9632 = vmatprep.mubr.msk.bf16.mxu1 %vm2810_vm0, %v10818_v44 }
  0xe7   : > { %3707 = vmatmul.mubr.bf16.gmra.mrb[92].mxu0 %v10820_v45  ;;  %4603 = vmatmul.mubr.bf16.gmra.mrb[92].mxu1 %v10821_v46 }
  0xe8   : > { %9521 = vmatprep.mubr.msk.bf16.mxu0 %vm2810_vm0, %v10822_v47  ;;  %9633 = vmatprep.mubr.msk.bf16.mxu1 %vm2810_vm0, %v10824_v48 }
  0xef   : > { %3715 = vmatmul.mubr.bf16.gmra.mrb[96].mxu0 %v10826_v49  ;;  %4611 = vmatmul.mubr.bf16.gmra.mrb[96].mxu1 %v10827_v50 }
  0xf0   : > { %9522 = vmatprep.mubr.msk.bf16.mxu0 %vm2810_vm0, %v10828_v51  ;;  %9634 = vmatprep.mubr.msk.bf16.mxu1 %vm2810_vm0, %v10830_v52 }
  0xf7   : > { %3723 = vmatmul.mubr.bf16.gmra.mrb[100].mxu0 %v10832_v53  ;;  %4619 = vmatmul.mubr.bf16.gmra.mrb[100].mxu1 %v10833_v54 }
  0xf8   : > { %9523 = vmatprep.mubr.msk.bf16.mxu0 %vm2810_vm0, %v10834_v55  ;;  %9635 = vmatprep.mubr.msk.bf16.mxu1 %vm2810_vm0, %v10836_v56 }
  0xff   : > { %3731 = vmatmul.mubr.bf16.gmra.mrb[104].mxu0 %v10838_v57  ;;  %4627 = vmatmul.mubr.bf16.gmra.mrb[104].mxu1 %v10839_v58 }
 0x100   : > { %9524 = vmatprep.mubr.msk.bf16.mxu0 %vm2810_vm0, %v10840_v59  ;;  %9636 = vmatprep.mubr.msk.bf16.mxu1 %vm2810_vm0, %v10842_v60 }
 0x102   : > { %v3524_v62 = vpop.f32.mrb[0].mxu0  ;;  %v4420_v0 = vpop.f32.mrb[0].mxu1 }
 0x103   : > { %v5322_v1 = vmul.f32 %v11641_v61, %v3524_v62  ;;  %v5546_v2 = vmul.f32 %v11641_v61, %v4420_v0  ;;  %v3526_v3 = vpop.f32.mrb[1].mxu0  ;;  %v4422_v4 = vpop.f32.mrb[1].mxu1  ;;  %v10856_v62 = vld [vmem:[%s11454_s5 + $0x1d0] ss:$8 sps:$4 sm:$0xff]  }
 0x104   : > { %v3527_v7 = vpop.f32.mrb[2].mxu0  ;;  %v4423_v8 = vpop.f32.mrb[2].mxu1  ;;  %v10857_v0 = vld [vmem:[%s11454_s5 + $0x8d0] ss:$8 sps:$4 sm:$0xff]   ;;  %v10858_v3 = vld [vmem:[%s11454_s5 + $0x1e4] ss:$8 sps:$4 sm:$0xff]  }
 0x105   : > { %v5777_v11 = vadd.f32 %v11648_v63, %v5322_v1  ;;  %v6001_v12 = vadd.f32 %v11648_v63, %v5546_v2  ;;  %v5323_v13 = vmul.f32 %v11641_v61, %v3527_v7  ;;  %v5547_v14 = vmul.f32 %v11641_v61, %v4423_v8  ;;  %v3529_v15 = vpop.f32.mrb[3].mxu0  ;;  %v4425_v16 = vpop.f32.mrb[3].mxu1  ;;  %v10860_v4 = vld [vmem:[%s11454_s5 + $0x8e4] ss:$8 sps:$4 sm:$0xff]  }
 0x107   : > { %v6225_v17 = vmax.f32 %v5777_v11, 0.0  ;;  %v6449_v18 = vmax.f32 %v6001_v12, 0.0  ;;  %v5778_v19 = vadd.f32 %v11648_v63, %v5323_v13  ;;  %v6002_v20 = vadd.f32 %v11648_v63, %v5547_v14  ;;  %3739 = vmatmul.mubr.bf16.gmra.mrb[108].mxu0 %v10844_v5  ;;  %4635 = vmatmul.mubr.bf16.gmra.mrb[108].mxu1 %v10845_v6 }
 0x108   : > { %9525 = vmatprep.mubr.msk.bf16.mxu0 %vm2810_vm0, %v10846_v9  ;;  %9637 = vmatprep.mubr.msk.bf16.mxu1 %vm2810_vm0, %v10848_v10 }
 0x109   : > { %v10174_v21 = vpack.c.bf16 %v6225_v17, %v6225_v17  ;;  %v10398_v22 = vpack.c.bf16 %v6449_v18, %v6449_v18  ;;  %v6226_v23 = vmax.f32 %v5778_v19, 0.0  ;;  %v6450_v24 = vmax.f32 %v6002_v20, 0.0 }
 0x10a   : > { %v3532_v25 = vpop.f32.mrb[4].mxu0  ;;  %v4428_v26 = vpop.f32.mrb[4].mxu1 }
 0x10b   : > { %8466 = vst.msk [vmem:[%s11666_s28] sm:$0xf] %vm8465_vm3, %v10174_v21  ;;  %8690 = vst.msk [vmem:[%s11666_s28 + $0x380] sm:$0xf] %vm8465_vm3, %v10398_v22  ;;  %v10175_v27 = vpack.c.bf16 %v6226_v23, %v6226_v23  ;;  %v10399_v28 = vpack.c.bf16 %v6450_v24, %v6450_v24  ;;  %v5324_v29 = vmul.f32 %v11641_v61, %v3532_v25  ;;  %v3534_v31 = vpop.f32.mrb[5].mxu0  ;;  %v4430_v32 = vpop.f32.mrb[5].mxu1 }
 0x10c   : > { %v5548_v30 = vmul.f32 %v11641_v61, %v4428_v26  ;;  %v3535_v35 = vpop.f32.mrb[6].mxu0  ;;  %v4431_v36 = vpop.f32.mrb[6].mxu1  ;;  %v10864_v31 = vld [vmem:[%s11454_s5 + $0x1f4] ss:$8 sps:$4 sm:$0xff]  }
 0x10d   : > { %8467 = vst.msk [vmem:[%s11666_s28 + $0x4] sm:$0xf] %vm8465_vm3, %v10175_v27  ;;  %8691 = vst.msk [vmem:[%s11666_s28 + $0x384] sm:$0xf] %vm8465_vm3, %v10399_v28  ;;  %v5779_v39 = vadd.f32 %v11648_v63, %v5324_v29  ;;  %v5325_v41 = vmul.f32 %v11641_v61, %v3535_v35  ;;  %v5549_v42 = vmul.f32 %v11641_v61, %v4431_v36  ;;  %v3537_v43 = vpop.f32.mrb[7].mxu0  ;;  %v4433_v44 = vpop.f32.mrb[7].mxu1 }
 0x10e   : > { %v6003_v40 = vadd.f32 %v11648_v63, %v5548_v30  ;;  %v10862_v27 = vld [vmem:[%s11454_s5 + $0x1e0] ss:$8 sps:$4 sm:$0xff]   ;;  %v10866_v32 = vld [vmem:[%s11454_s5 + $0x8f4] ss:$8 sps:$4 sm:$0xff]  }
 0x10f   : > { %v6227_v45 = vmax.f32 %v5779_v39, 0.0  ;;  %v5780_v47 = vadd.f32 %v11648_v63, %v5325_v41  ;;  %v6004_v48 = vadd.f32 %v11648_v63, %v5549_v42  ;;  %3747 = vmatmul.mubr.bf16.gmra.mrb[112].mxu0 %v10850_v33  ;;  %4643 = vmatmul.mubr.bf16.gmra.mrb[112].mxu1 %v10851_v34  ;;  %v10863_v28 = vld [vmem:[%s11454_s5 + $0x8e0] ss:$8 sps:$4 sm:$0xff]  }
 0x110   : > { %v6451_v46 = vmax.f32 %v6003_v40, 0.0  ;;  %9526 = vmatprep.mubr.msk.bf16.mxu0 %vm2810_vm0, %v10852_v37  ;;  %9638 = vmatprep.mubr.msk.bf16.mxu1 %vm2810_vm0, %v10854_v38 }
 0x111   : > { %v10176_v49 = vpack.c.bf16 %v6227_v45, %v6227_v45  ;;  %v6228_v51 = vmax.f32 %v5780_v47, 0.0  ;;  %v6452_v52 = vmax.f32 %v6004_v48, 0.0 }
 0x112   : > { %v10400_v50 = vpack.c.bf16 %v6451_v46, %v6451_v46  ;;  %v3540_v53 = vpop.f32.mrb[8].mxu0  ;;  %v4436_v54 = vpop.f32.mrb[8].mxu1 }
 0x113   : > { %8468 = vst.msk [vmem:[%s11666_s28 + $0x8] sm:$0xf] %vm8465_vm3, %v10176_v49  ;;  %v10177_v55 = vpack.c.bf16 %v6228_v51, %v6228_v51  ;;  %v10401_v56 = vpack.c.bf16 %v6452_v52, %v6452_v52  ;;  %v5326_v57 = vmul.f32 %v11641_v61, %v3540_v53  ;;  %v5550_v58 = vmul.f32 %v11641_v61, %v4436_v54  ;;  %v3542_v59 = vpop.f32.mrb[9].mxu0  ;;  %v4438_v60 = vpop.f32.mrb[9].mxu1 }
 0x114   : > { %8692 = vst.msk [vmem:[%s11666_s28 + $0x388] sm:$0xf] %vm8465_vm3, %v10400_v50  ;;  %v3543_v1 = vpop.f32.mrb[10].mxu0  ;;  %v4439_v2 = vpop.f32.mrb[10].mxu1  ;;  %v10870_v59 = vld [vmem:[%s11454_s5 + $0x204] ss:$8 sps:$4 sm:$0xff]  }
 0x115   : > { %8469 = vst.msk [vmem:[%s11666_s28 + $0xc] sm:$0xf] %vm8465_vm3, %v10177_v55  ;;  %8693 = vst.msk [vmem:[%s11666_s28 + $0x38c] sm:$0xf] %vm8465_vm3, %v10401_v56  ;;  %v5781_v5 = vadd.f32 %v11648_v63, %v5326_v57  ;;  %v6005_v6 = vadd.f32 %v11648_v63, %v5550_v58  ;;  %v5327_v7 = vmul.f32 %v11641_v61, %v3543_v1  ;;  %v3545_v9 = vpop.f32.mrb[11].mxu0  ;;  %v4441_v10 = vpop.f32.mrb[11].mxu1 }
 0x116   : > { %v5551_v8 = vmul.f32 %v11641_v61, %v4439_v2  ;;  %v10868_v55 = vld [vmem:[%s11454_s5 + $0x1f0] ss:$8 sps:$4 sm:$0xff]   ;;  %v10872_v60 = vld [vmem:[%s11454_s5 + $0x904] ss:$8 sps:$4 sm:$0xff]  }
 0x117   : > { %v6229_v11 = vmax.f32 %v5781_v5, 0.0  ;;  %v6453_v12 = vmax.f32 %v6005_v6, 0.0  ;;  %v5782_v13 = vadd.f32 %v11648_v63, %v5327_v7  ;;  %3755 = vmatmul.mubr.bf16.gmra.mrb[116].mxu0 %v10856_v62  ;;  %4651 = vmatmul.mubr.bf16.gmra.mrb[116].mxu1 %v10857_v0  ;;  %v10869_v56 = vld [vmem:[%s11454_s5 + $0x8f0] ss:$8 sps:$4 sm:$0xff]  }
 0x118   : > { %v6006_v14 = vadd.f32 %v11648_v63, %v5551_v8  ;;  %9527 = vmatprep.mubr.msk.bf16.mxu0 %vm2810_vm0, %v10858_v3  ;;  %9639 = vmatprep.mubr.msk.bf16.mxu1 %vm2810_vm0, %v10860_v4 }
 0x119   : > { %v10178_v15 = vpack.c.bf16 %v6229_v11, %v6229_v11  ;;  %v10402_v16 = vpack.c.bf16 %v6453_v12, %v6453_v12  ;;  %v6230_v17 = vmax.f32 %v5782_v13, 0.0 }
 0x11a   : > { %v6454_v18 = vmax.f32 %v6006_v14, 0.0  ;;  %v3548_v19 = vpop.f32.mrb[12].mxu0  ;;  %v4444_v20 = vpop.f32.mrb[12].mxu1 }
 0x11b   : > { %8470 = vst.msk [vmem:[%s11666_s28 + $0x10] sm:$0xf] %vm8465_vm3, %v10178_v15  ;;  %8694 = vst.msk [vmem:[%s11666_s28 + $0x390] sm:$0xf] %vm8465_vm3, %v10402_v16  ;;  %v10179_v21 = vpack.c.bf16 %v6230_v17, %v6230_v17  ;;  %v5328_v23 = vmul.f32 %v11641_v61, %v3548_v19  ;;  %v5552_v24 = vmul.f32 %v11641_v61, %v4444_v20  ;;  %v3550_v25 = vpop.f32.mrb[13].mxu0  ;;  %v4446_v26 = vpop.f32.mrb[13].mxu1 }
 0x11c   : > { %v10403_v22 = vpack.c.bf16 %v6454_v18, %v6454_v18  ;;  %v3551_v29 = vpop.f32.mrb[14].mxu0  ;;  %v4447_v30 = vpop.f32.mrb[14].mxu1  ;;  %v10876_v25 = vld [vmem:[%s11454_s5 + $0x214] ss:$8 sps:$4 sm:$0xff]  }
 0x11d   : > { %8471 = vst.msk [vmem:[%s11666_s28 + $0x14] sm:$0xf] %vm8465_vm3, %v10179_v21  ;;  %v5783_v33 = vadd.f32 %v11648_v63, %v5328_v23  ;;  %v6007_v34 = vadd.f32 %v11648_v63, %v5552_v24  ;;  %v5329_v35 = vmul.f32 %v11641_v61, %v3551_v29  ;;  %v5553_v36 = vmul.f32 %v11641_v61, %v4447_v30  ;;  %v3553_v37 = vpop.f32.mrb[15].mxu0  ;;  %v4449_v38 = vpop.f32.mrb[15].mxu1  ;;  %v10874_v21 = vld [vmem:[%s11454_s5 + $0x200] ss:$8 sps:$4 sm:$0xff]  }
 0x11e   : > { %8695 = vst.msk [vmem:[%s11666_s28 + $0x394] sm:$0xf] %vm8465_vm3, %v10403_v22  ;;  %v10875_v22 = vld [vmem:[%s11454_s5 + $0x900] ss:$8 sps:$4 sm:$0xff]   ;;  %v10878_v26 = vld [vmem:[%s11454_s5 + $0x914] ss:$8 sps:$4 sm:$0xff]  }
 0x11f   : > { %v6231_v39 = vmax.f32 %v5783_v33, 0.0  ;;  %v6455_v40 = vmax.f32 %v6007_v34, 0.0  ;;  %v5784_v41 = vadd.f32 %v11648_v63, %v5329_v35  ;;  %v6008_v42 = vadd.f32 %v11648_v63, %v5553_v36  ;;  %3763 = vmatmul.mubr.bf16.gmra.mrb[120].mxu0 %v10862_v27  ;;  %4659 = vmatmul.mubr.bf16.gmra.mrb[120].mxu1 %v10863_v28 }
 0x120   : > { %9528 = vmatprep.mubr.msk.bf16.mxu0 %vm2810_vm0, %v10864_v31  ;;  %9640 = vmatprep.mubr.msk.bf16.mxu1 %vm2810_vm0, %v10866_v32 }
 0x121   : > { %v10180_v43 = vpack.c.bf16 %v6231_v39, %v6231_v39  ;;  %v10404_v44 = vpack.c.bf16 %v6455_v40, %v6455_v40  ;;  %v6232_v45 = vmax.f32 %v5784_v41, 0.0  ;;  %v6456_v46 = vmax.f32 %v6008_v42, 0.0 }
 0x122   : > { %v3556_v47 = vpop.f32.mrb[16].mxu0  ;;  %v4452_v48 = vpop.f32.mrb[16].mxu1 }
 0x123   : > { %8472 = vst.msk [vmem:[%s11666_s28 + $0x18] sm:$0xf] %vm8465_vm3, %v10180_v43  ;;  %8696 = vst.msk [vmem:[%s11666_s28 + $0x398] sm:$0xf] %vm8465_vm3, %v10404_v44  ;;  %v10181_v49 = vpack.c.bf16 %v6232_v45, %v6232_v45  ;;  %v10405_v50 = vpack.c.bf16 %v6456_v46, %v6456_v46  ;;  %v5330_v51 = vmul.f32 %v11641_v61, %v3556_v47  ;;  %v3558_v53 = vpop.f32.mrb[17].mxu0  ;;  %v4454_v54 = vpop.f32.mrb[17].mxu1 }
 0x124   : > { %v5554_v52 = vmul.f32 %v11641_v61, %v4452_v48  ;;  %v3559_v57 = vpop.f32.mrb[18].mxu0  ;;  %v4455_v58 = vpop.f32.mrb[18].mxu1  ;;  %v10882_v53 = vld [vmem:[%s11454_s5 + $0x224] ss:$8 sps:$4 sm:$0xff]  }
 0x125   : > { %8473 = vst.msk [vmem:[%s11666_s28 + $0x1c] sm:$0xf] %vm8465_vm3, %v10181_v49  ;;  %8697 = vst.msk [vmem:[%s11666_s28 + $0x39c] sm:$0xf] %vm8465_vm3, %v10405_v50  ;;  %v5785_v62 = vadd.f32 %v11648_v63, %v5330_v51  ;;  %v5331_v1 = vmul.f32 %v11641_v61, %v3559_v57  ;;  %v5555_v2 = vmul.f32 %v11641_v61, %v4455_v58  ;;  %v3561_v3 = vpop.f32.mrb[19].mxu0  ;;  %v4457_v4 = vpop.f32.mrb[19].mxu1 }
 0x126   : > { %v6009_v0 = vadd.f32 %v11648_v63, %v5554_v52  ;;  %v10880_v49 = vld [vmem:[%s11454_s5 + $0x210] ss:$8 sps:$4 sm:$0xff]   ;;  %v10884_v54 = vld [vmem:[%s11454_s5 + $0x924] ss:$8 sps:$4 sm:$0xff]  }
 0x127   : > { %v6233_v5 = vmax.f32 %v5785_v62, 0.0  ;;  %v5786_v7 = vadd.f32 %v11648_v63, %v5331_v1  ;;  %v6010_v8 = vadd.f32 %v11648_v63, %v5555_v2  ;;  %3771 = vmatmul.mubr.bf16.gmra.mrb[124].mxu0 %v10868_v55  ;;  %4667 = vmatmul.mubr.bf16.gmra.mrb[124].mxu1 %v10869_v56  ;;  %v10881_v50 = vld [vmem:[%s11454_s5 + $0x910] ss:$8 sps:$4 sm:$0xff]  }
 0x128   : > { %v6457_v6 = vmax.f32 %v6009_v0, 0.0  ;;  %9529 = vmatprep.mubr.msk.bf16.mxu0 %vm2810_vm0, %v10870_v59  ;;  %9641 = vmatprep.mubr.msk.bf16.mxu1 %vm2810_vm0, %v10872_v60 }
 0x129   : > { %v10182_v9 = vpack.c.bf16 %v6233_v5, %v6233_v5  ;;  %v6234_v11 = vmax.f32 %v5786_v7, 0.0  ;;  %v6458_v12 = vmax.f32 %v6010_v8, 0.0 }
 0x12a   : > { %v10406_v10 = vpack.c.bf16 %v6457_v6, %v6457_v6  ;;  %v3564_v13 = vpop.f32.mrb[20].mxu0  ;;  %v4460_v14 = vpop.f32.mrb[20].mxu1 }
 0x12b   : > { %8474 = vst.msk [vmem:[%s11666_s28 + $0x20] sm:$0xf] %vm8465_vm3, %v10182_v9  ;;  %v10183_v15 = vpack.c.bf16 %v6234_v11, %v6234_v11  ;;  %v10407_v16 = vpack.c.bf16 %v6458_v12, %v6458_v12  ;;  %v5332_v17 = vmul.f32 %v11641_v61, %v3564_v13  ;;  %v5556_v18 = vmul.f32 %v11641_v61, %v4460_v14  ;;  %v3566_v19 = vpop.f32.mrb[21].mxu0  ;;  %v4462_v20 = vpop.f32.mrb[21].mxu1 }
 0x12c   : > { %8698 = vst.msk [vmem:[%s11666_s28 + $0x3a0] sm:$0xf] %vm8465_vm3, %v10406_v10  ;;  %v3567_v23 = vpop.f32.mrb[22].mxu0  ;;  %v4463_v24 = vpop.f32.mrb[22].mxu1  ;;  %v10888_v19 = vld [vmem:[%s11454_s5 + $0x234] ss:$8 sps:$4 sm:$0xff]  }
 0x12d   : > { %8475 = vst.msk [vmem:[%s11666_s28 + $0x24] sm:$0xf] %vm8465_vm3, %v10183_v15  ;;  %8699 = vst.msk [vmem:[%s11666_s28 + $0x3a4] sm:$0xf] %vm8465_vm3, %v10407_v16  ;;  %v5787_v27 = vadd.f32 %v11648_v63, %v5332_v17  ;;  %v6011_v28 = vadd.f32 %v11648_v63, %v5556_v18  ;;  %v5333_v29 = vmul.f32 %v11641_v61, %v3567_v23  ;;  %v3569_v31 = vpop.f32.mrb[23].mxu0  ;;  %v4465_v32 = vpop.f32.mrb[23].mxu1 }
 0x12e   : > { %v5557_v30 = vmul.f32 %v11641_v61, %v4463_v24  ;;  %v10886_v15 = vld [vmem:[%s11454_s5 + $0x220] ss:$8 sps:$4 sm:$0xff]   ;;  %v10890_v20 = vld [vmem:[%s11454_s5 + $0x934] ss:$8 sps:$4 sm:$0xff]  }
 0x12f   : > { %v6235_v33 = vmax.f32 %v5787_v27, 0.0  ;;  %v6459_v34 = vmax.f32 %v6011_v28, 0.0  ;;  %v5788_v35 = vadd.f32 %v11648_v63, %v5333_v29  ;;  %3779 = vmatmul.mubr.bf16.gmra.mrb[128].mxu0 %v10874_v21  ;;  %4675 = vmatmul.mubr.bf16.gmra.mrb[128].mxu1 %v10875_v22  ;;  %v10887_v16 = vld [vmem:[%s11454_s5 + $0x920] ss:$8 sps:$4 sm:$0xff]  }
 0x130   : > { %v6012_v36 = vadd.f32 %v11648_v63, %v5557_v30  ;;  %9530 = vmatprep.mubr.msk.bf16.mxu0 %vm2810_vm0, %v10876_v25  ;;  %9642 = vmatprep.mubr.msk.bf16.mxu1 %vm2810_vm0, %v10878_v26 }
 0x131   : > { %v10184_v37 = vpack.c.bf16 %v6235_v33, %v6235_v33  ;;  %v10408_v38 = vpack.c.bf16 %v6459_v34, %v6459_v34  ;;  %v6236_v39 = vmax.f32 %v5788_v35, 0.0 }
 0x132   : > { %v6460_v40 = vmax.f32 %v6012_v36, 0.0  ;;  %v3572_v41 = vpop.f32.mrb[24].mxu0  ;;  %v4468_v42 = vpop.f32.mrb[24].mxu1 }
 0x133   : > { %8476 = vst.msk [vmem:[%s11666_s28 + $0x28] sm:$0xf] %vm8465_vm3, %v10184_v37  ;;  %8700 = vst.msk [vmem:[%s11666_s28 + $0x3a8] sm:$0xf] %vm8465_vm3, %v10408_v38  ;;  %v10185_v43 = vpack.c.bf16 %v6236_v39, %v6236_v39  ;;  %v5334_v45 = vmul.f32 %v11641_v61, %v3572_v41  ;;  %v5558_v46 = vmul.f32 %v11641_v61, %v4468_v42  ;;  %v3574_v47 = vpop.f32.mrb[25].mxu0  ;;  %v4470_v48 = vpop.f32.mrb[25].mxu1 }
 0x134   : > { %v10409_v44 = vpack.c.bf16 %v6460_v40, %v6460_v40  ;;  %v3575_v51 = vpop.f32.mrb[26].mxu0  ;;  %v4471_v52 = vpop.f32.mrb[26].mxu1  ;;  %v10894_v47 = vld [vmem:[%s11454_s5 + $0x244] ss:$8 sps:$4 sm:$0xff]  }
 0x135   : > { %8477 = vst.msk [vmem:[%s11666_s28 + $0x2c] sm:$0xf] %vm8465_vm3, %v10185_v43  ;;  %v5789_v55 = vadd.f32 %v11648_v63, %v5334_v45  ;;  %v6013_v56 = vadd.f32 %v11648_v63, %v5558_v46  ;;  %v5335_v57 = vmul.f32 %v11641_v61, %v3575_v51  ;;  %v5559_v58 = vmul.f32 %v11641_v61, %v4471_v52  ;;  %v3577_v59 = vpop.f32.mrb[27].mxu0  ;;  %v4473_v60 = vpop.f32.mrb[27].mxu1  ;;  %v10892_v43 = vld [vmem:[%s11454_s5 + $0x230] ss:$8 sps:$4 sm:$0xff]  }
 0x136   : > { %8701 = vst.msk [vmem:[%s11666_s28 + $0x3ac] sm:$0xf] %vm8465_vm3, %v10409_v44  ;;  %v10893_v44 = vld [vmem:[%s11454_s5 + $0x930] ss:$8 sps:$4 sm:$0xff]   ;;  %v10896_v48 = vld [vmem:[%s11454_s5 + $0x944] ss:$8 sps:$4 sm:$0xff]  }
 0x137   : > { %v6237_v62 = vmax.f32 %v5789_v55, 0.0  ;;  %v6461_v0 = vmax.f32 %v6013_v56, 0.0  ;;  %v5790_v1 = vadd.f32 %v11648_v63, %v5335_v57  ;;  %v6014_v2 = vadd.f32 %v11648_v63, %v5559_v58  ;;  %3787 = vmatmul.mubr.bf16.gmra.mrb[132].mxu0 %v10880_v49  ;;  %4683 = vmatmul.mubr.bf16.gmra.mrb[132].mxu1 %v10881_v50 }
 0x138   : > { %9531 = vmatprep.mubr.msk.bf16.mxu0 %vm2810_vm0, %v10882_v53  ;;  %9643 = vmatprep.mubr.msk.bf16.mxu1 %vm2810_vm0, %v10884_v54 }
 0x139   : > { %v10186_v3 = vpack.c.bf16 %v6237_v62, %v6237_v62  ;;  %v10410_v4 = vpack.c.bf16 %v6461_v0, %v6461_v0  ;;  %v6238_v5 = vmax.f32 %v5790_v1, 0.0  ;;  %v6462_v6 = vmax.f32 %v6014_v2, 0.0 }
 0x13a   : > { %v3580_v7 = vpop.f32.mrb[28].mxu0  ;;  %v4476_v8 = vpop.f32.mrb[28].mxu1 }
 0x13b   : > { %8478 = vst.msk [vmem:[%s11666_s28 + $0x30] sm:$0xf] %vm8465_vm3, %v10186_v3  ;;  %8702 = vst.msk [vmem:[%s11666_s28 + $0x3b0] sm:$0xf] %vm8465_vm3, %v10410_v4  ;;  %v10187_v9 = vpack.c.bf16 %v6238_v5, %v6238_v5  ;;  %v10411_v10 = vpack.c.bf16 %v6462_v6, %v6462_v6  ;;  %v5336_v11 = vmul.f32 %v11641_v61, %v3580_v7  ;;  %v3582_v13 = vpop.f32.mrb[29].mxu0  ;;  %v4478_v14 = vpop.f32.mrb[29].mxu1 }
 0x13c   : > { %v5560_v12 = vmul.f32 %v11641_v61, %v4476_v8  ;;  %v3583_v17 = vpop.f32.mrb[30].mxu0  ;;  %v4479_v18 = vpop.f32.mrb[30].mxu1  ;;  %v10900_v13 = vld [vmem:[%s11454_s5 + $0x254] ss:$8 sps:$4 sm:$0xff]  }
 0x13d   : > { %8479 = vst.msk [vmem:[%s11666_s28 + $0x34] sm:$0xf] %vm8465_vm3, %v10187_v9  ;;  %8703 = vst.msk [vmem:[%s11666_s28 + $0x3b4] sm:$0xf] %vm8465_vm3, %v10411_v10  ;;  %v5791_v21 = vadd.f32 %v11648_v63, %v5336_v11  ;;  %v5337_v23 = vmul.f32 %v11641_v61, %v3583_v17  ;;  %v5561_v24 = vmul.f32 %v11641_v61, %v4479_v18  ;;  %v3585_v25 = vpop.f32.mrb[31].mxu0  ;;  %v4481_v26 = vpop.f32.mrb[31].mxu1 }
 0x13e   : > { %v6015_v22 = vadd.f32 %v11648_v63, %v5560_v12  ;;  %v10898_v9 = vld [vmem:[%s11454_s5 + $0x240] ss:$8 sps:$4 sm:$0xff]   ;;  %v10902_v14 = vld [vmem:[%s11454_s5 + $0x954] ss:$8 sps:$4 sm:$0xff]  }
 0x13f   : > { %v6239_v27 = vmax.f32 %v5791_v21, 0.0  ;;  %v5792_v29 = vadd.f32 %v11648_v63, %v5337_v23  ;;  %v6016_v30 = vadd.f32 %v11648_v63, %v5561_v24  ;;  %3795 = vmatmul.mubr.bf16.gmra.mrb[136].mxu0 %v10886_v15  ;;  %4691 = vmatmul.mubr.bf16.gmra.mrb[136].mxu1 %v10887_v16  ;;  %v10899_v10 = vld [vmem:[%s11454_s5 + $0x940] ss:$8 sps:$4 sm:$0xff]  }
 0x140   : > { %v6463_v28 = vmax.f32 %v6015_v22, 0.0  ;;  %9532 = vmatprep.mubr.msk.bf16.mxu0 %vm2810_vm0, %v10888_v19  ;;  %9644 = vmatprep.mubr.msk.bf16.mxu1 %vm2810_vm0, %v10890_v20 }
 0x141   : > { %v10188_v31 = vpack.c.bf16 %v6239_v27, %v6239_v27  ;;  %v6240_v33 = vmax.f32 %v5792_v29, 0.0  ;;  %v6464_v34 = vmax.f32 %v6016_v30, 0.0 }
 0x142   : > { %v10412_v32 = vpack.c.bf16 %v6463_v28, %v6463_v28  ;;  %v3588_v35 = vpop.f32.mrb[32].mxu0  ;;  %v4484_v36 = vpop.f32.mrb[32].mxu1 }
 0x143   : > { %8480 = vst.msk [vmem:[%s11666_s28 + $0x38] sm:$0xf] %vm8465_vm3, %v10188_v31  ;;  %v10189_v37 = vpack.c.bf16 %v6240_v33, %v6240_v33  ;;  %v10413_v38 = vpack.c.bf16 %v6464_v34, %v6464_v34  ;;  %v5338_v39 = vmul.f32 %v11641_v61, %v3588_v35  ;;  %v5562_v40 = vmul.f32 %v11641_v61, %v4484_v36  ;;  %v3590_v41 = vpop.f32.mrb[33].mxu0  ;;  %v4486_v42 = vpop.f32.mrb[33].mxu1 }
 0x144   : > { %8704 = vst.msk [vmem:[%s11666_s28 + $0x3b8] sm:$0xf] %vm8465_vm3, %v10412_v32  ;;  %v3591_v45 = vpop.f32.mrb[34].mxu0  ;;  %v4487_v46 = vpop.f32.mrb[34].mxu1  ;;  %v10906_v41 = vld [vmem:[%s11454_s5 + $0x264] ss:$8 sps:$4 sm:$0xff]  }
 0x145   : > { %8481 = vst.msk [vmem:[%s11666_s28 + $0x3c] sm:$0xf] %vm8465_vm3, %v10189_v37  ;;  %8705 = vst.msk [vmem:[%s11666_s28 + $0x3bc] sm:$0xf] %vm8465_vm3, %v10413_v38  ;;  %v5793_v49 = vadd.f32 %v11648_v63, %v5338_v39  ;;  %v6017_v50 = vadd.f32 %v11648_v63, %v5562_v40  ;;  %v5339_v51 = vmul.f32 %v11641_v61, %v3591_v45  ;;  %v3593_v53 = vpop.f32.mrb[35].mxu0  ;;  %v4489_v54 = vpop.f32.mrb[35].mxu1 }
 0x146   : > { %v5563_v52 = vmul.f32 %v11641_v61, %v4487_v46  ;;  %v10904_v37 = vld [vmem:[%s11454_s5 + $0x250] ss:$8 sps:$4 sm:$0xff]   ;;  %v10908_v42 = vld [vmem:[%s11454_s5 + $0x964] ss:$8 sps:$4 sm:$0xff]  }
 0x147   : > { %v6241_v55 = vmax.f32 %v5793_v49, 0.0  ;;  %v6465_v56 = vmax.f32 %v6017_v50, 0.0  ;;  %v5794_v57 = vadd.f32 %v11648_v63, %v5339_v51  ;;  %3803 = vmatmul.mubr.bf16.gmra.mrb[140].mxu0 %v10892_v43  ;;  %4699 = vmatmul.mubr.bf16.gmra.mrb[140].mxu1 %v10893_v44  ;;  %v10905_v38 = vld [vmem:[%s11454_s5 + $0x950] ss:$8 sps:$4 sm:$0xff]  }
 0x148   : > { %v6018_v58 = vadd.f32 %v11648_v63, %v5563_v52  ;;  %9533 = vmatprep.mubr.msk.bf16.mxu0 %vm2810_vm0, %v10894_v47  ;;  %9645 = vmatprep.mubr.msk.bf16.mxu1 %vm2810_vm0, %v10896_v48 }
 0x149   : > { %v10190_v59 = vpack.c.bf16 %v6241_v55, %v6241_v55  ;;  %v10414_v60 = vpack.c.bf16 %v6465_v56, %v6465_v56  ;;  %v6242_v62 = vmax.f32 %v5794_v57, 0.0 }
 0x14a   : > { %v6466_v0 = vmax.f32 %v6018_v58, 0.0  ;;  %v3596_v1 = vpop.f32.mrb[36].mxu0  ;;  %v4492_v2 = vpop.f32.mrb[36].mxu1 }
 0x14b   : > { %8482 = vst.msk [vmem:[%s11666_s28 + $0x40] sm:$0xf] %vm8465_vm3, %v10190_v59  ;;  %8706 = vst.msk [vmem:[%s11666_s28 + $0x3c0] sm:$0xf] %vm8465_vm3, %v10414_v60  ;;  %v10191_v3 = vpack.c.bf16 %v6242_v62, %v6242_v62  ;;  %v5340_v5 = vmul.f32 %v11641_v61, %v3596_v1  ;;  %v5564_v6 = vmul.f32 %v11641_v61, %v4492_v2  ;;  %v3598_v7 = vpop.f32.mrb[37].mxu0  ;;  %v4494_v8 = vpop.f32.mrb[37].mxu1 }
 0x14c   : > { %v10415_v4 = vpack.c.bf16 %v6466_v0, %v6466_v0  ;;  %v3599_v11 = vpop.f32.mrb[38].mxu0  ;;  %v4495_v12 = vpop.f32.mrb[38].mxu1  ;;  %v10912_v7 = vld [vmem:[%s11454_s5 + $0x274] ss:$8 sps:$4 sm:$0xff]  }
 0x14d   : > { %8483 = vst.msk [vmem:[%s11666_s28 + $0x44] sm:$0xf] %vm8465_vm3, %v10191_v3  ;;  %v5795_v15 = vadd.f32 %v11648_v63, %v5340_v5  ;;  %v6019_v16 = vadd.f32 %v11648_v63, %v5564_v6  ;;  %v5341_v17 = vmul.f32 %v11641_v61, %v3599_v11  ;;  %v5565_v18 = vmul.f32 %v11641_v61, %v4495_v12  ;;  %v3601_v19 = vpop.f32.mrb[39].mxu0  ;;  %v4497_v20 = vpop.f32.mrb[39].mxu1  ;;  %v10910_v3 = vld [vmem:[%s11454_s5 + $0x260] ss:$8 sps:$4 sm:$0xff]  }
 0x14e   : > { %8707 = vst.msk [vmem:[%s11666_s28 + $0x3c4] sm:$0xf] %vm8465_vm3, %v10415_v4  ;;  %v10911_v4 = vld [vmem:[%s11454_s5 + $0x960] ss:$8 sps:$4 sm:$0xff]   ;;  %v10914_v8 = vld [vmem:[%s11454_s5 + $0x974] ss:$8 sps:$4 sm:$0xff]  }
 0x14f   : > { %v6243_v21 = vmax.f32 %v5795_v15, 0.0  ;;  %v6467_v22 = vmax.f32 %v6019_v16, 0.0  ;;  %v5796_v23 = vadd.f32 %v11648_v63, %v5341_v17  ;;  %v6020_v24 = vadd.f32 %v11648_v63, %v5565_v18  ;;  %3811 = vmatmul.mubr.bf16.gmra.mrb[144].mxu0 %v10898_v9  ;;  %4707 = vmatmul.mubr.bf16.gmra.mrb[144].mxu1 %v10899_v10 }
 0x150   : > { %9534 = vmatprep.mubr.msk.bf16.mxu0 %vm2810_vm0, %v10900_v13  ;;  %9646 = vmatprep.mubr.msk.bf16.mxu1 %vm2810_vm0, %v10902_v14 }
 0x151   : > { %v10192_v25 = vpack.c.bf16 %v6243_v21, %v6243_v21  ;;  %v10416_v26 = vpack.c.bf16 %v6467_v22, %v6467_v22  ;;  %v6244_v27 = vmax.f32 %v5796_v23, 0.0  ;;  %v6468_v28 = vmax.f32 %v6020_v24, 0.0 }
 0x152   : > { %v3604_v29 = vpop.f32.mrb[40].mxu0  ;;  %v4500_v30 = vpop.f32.mrb[40].mxu1 }
 0x153   : > { %8484 = vst.msk [vmem:[%s11666_s28 + $0x48] sm:$0xf] %vm8465_vm3, %v10192_v25  ;;  %8708 = vst.msk [vmem:[%s11666_s28 + $0x3c8] sm:$0xf] %vm8465_vm3, %v10416_v26  ;;  %v10193_v31 = vpack.c.bf16 %v6244_v27, %v6244_v27  ;;  %v10417_v32 = vpack.c.bf16 %v6468_v28, %v6468_v28  ;;  %v5342_v33 = vmul.f32 %v11641_v61, %v3604_v29  ;;  %v3606_v35 = vpop.f32.mrb[41].mxu0  ;;  %v4502_v36 = vpop.f32.mrb[41].mxu1 }
 0x154   : > { %v5566_v34 = vmul.f32 %v11641_v61, %v4500_v30  ;;  %v3607_v39 = vpop.f32.mrb[42].mxu0  ;;  %v4503_v40 = vpop.f32.mrb[42].mxu1  ;;  %v10918_v35 = vld [vmem:[%s11454_s5 + $0x284] ss:$8 sps:$4 sm:$0xff]  }
 0x155   : > { %8485 = vst.msk [vmem:[%s11666_s28 + $0x4c] sm:$0xf] %vm8465_vm3, %v10193_v31  ;;  %8709 = vst.msk [vmem:[%s11666_s28 + $0x3cc] sm:$0xf] %vm8465_vm3, %v10417_v32  ;;  %v5797_v43 = vadd.f32 %v11648_v63, %v5342_v33  ;;  %v5343_v45 = vmul.f32 %v11641_v61, %v3607_v39  ;;  %v5567_v46 = vmul.f32 %v11641_v61, %v4503_v40  ;;  %v3609_v47 = vpop.f32.mrb[43].mxu0  ;;  %v4505_v48 = vpop.f32.mrb[43].mxu1 }
 0x156   : > { %v6021_v44 = vadd.f32 %v11648_v63, %v5566_v34  ;;  %v10916_v31 = vld [vmem:[%s11454_s5 + $0x270] ss:$8 sps:$4 sm:$0xff]   ;;  %v10920_v36 = vld [vmem:[%s11454_s5 + $0x984] ss:$8 sps:$4 sm:$0xff]  }
 0x157   : > { %v6245_v49 = vmax.f32 %v5797_v43, 0.0  ;;  %v5798_v51 = vadd.f32 %v11648_v63, %v5343_v45  ;;  %v6022_v52 = vadd.f32 %v11648_v63, %v5567_v46  ;;  %3819 = vmatmul.mubr.bf16.gmra.mrb[148].mxu0 %v10904_v37  ;;  %4715 = vmatmul.mubr.bf16.gmra.mrb[148].mxu1 %v10905_v38  ;;  %v10917_v32 = vld [vmem:[%s11454_s5 + $0x970] ss:$8 sps:$4 sm:$0xff]  }
 0x158   : > { %v6469_v50 = vmax.f32 %v6021_v44, 0.0  ;;  %9535 = vmatprep.mubr.msk.bf16.mxu0 %vm2810_vm0, %v10906_v41  ;;  %9647 = vmatprep.mubr.msk.bf16.mxu1 %vm2810_vm0, %v10908_v42 }
 0x159   : > { %v10194_v53 = vpack.c.bf16 %v6245_v49, %v6245_v49  ;;  %v6246_v55 = vmax.f32 %v5798_v51, 0.0  ;;  %v6470_v56 = vmax.f32 %v6022_v52, 0.0 }
 0x15a   : > { %v10418_v54 = vpack.c.bf16 %v6469_v50, %v6469_v50  ;;  %v3612_v57 = vpop.f32.mrb[44].mxu0  ;;  %v4508_v58 = vpop.f32.mrb[44].mxu1 }
 0x15b   : > { %8486 = vst.msk [vmem:[%s11666_s28 + $0x50] sm:$0xf] %vm8465_vm3, %v10194_v53  ;;  %v10195_v59 = vpack.c.bf16 %v6246_v55, %v6246_v55  ;;  %v10419_v60 = vpack.c.bf16 %v6470_v56, %v6470_v56  ;;  %v5344_v62 = vmul.f32 %v11641_v61, %v3612_v57  ;;  %v5568_v0 = vmul.f32 %v11641_v61, %v4508_v58  ;;  %v3614_v1 = vpop.f32.mrb[45].mxu0  ;;  %v4510_v2 = vpop.f32.mrb[45].mxu1 }
 0x15c   : > { %8710 = vst.msk [vmem:[%s11666_s28 + $0x3d0] sm:$0xf] %vm8465_vm3, %v10418_v54  ;;  %v3615_v5 = vpop.f32.mrb[46].mxu0  ;;  %v4511_v6 = vpop.f32.mrb[46].mxu1  ;;  %v10924_v1 = vld [vmem:[%s11454_s5 + $0x294] ss:$8 sps:$4 sm:$0xff]  }
 0x15d   : > { %8487 = vst.msk [vmem:[%s11666_s28 + $0x54] sm:$0xf] %vm8465_vm3, %v10195_v59  ;;  %8711 = vst.msk [vmem:[%s11666_s28 + $0x3d4] sm:$0xf] %vm8465_vm3, %v10419_v60  ;;  %v5799_v9 = vadd.f32 %v11648_v63, %v5344_v62  ;;  %v6023_v10 = vadd.f32 %v11648_v63, %v5568_v0  ;;  %v5345_v11 = vmul.f32 %v11641_v61, %v3615_v5  ;;  %v3617_v13 = vpop.f32.mrb[47].mxu0  ;;  %v4513_v14 = vpop.f32.mrb[47].mxu1 }
 0x15e   : > { %v5569_v12 = vmul.f32 %v11641_v61, %v4511_v6  ;;  %v10922_v59 = vld [vmem:[%s11454_s5 + $0x280] ss:$8 sps:$4 sm:$0xff]   ;;  %v10926_v2 = vld [vmem:[%s11454_s5 + $0x994] ss:$8 sps:$4 sm:$0xff]  }
 0x15f   : > { %v6247_v15 = vmax.f32 %v5799_v9, 0.0  ;;  %v6471_v16 = vmax.f32 %v6023_v10, 0.0  ;;  %v5800_v17 = vadd.f32 %v11648_v63, %v5345_v11  ;;  %3827 = vmatmul.mubr.bf16.gmra.mrb[152].mxu0 %v10910_v3  ;;  %4723 = vmatmul.mubr.bf16.gmra.mrb[152].mxu1 %v10911_v4  ;;  %v10923_v60 = vld [vmem:[%s11454_s5 + $0x980] ss:$8 sps:$4 sm:$0xff]  }
 0x160   : > { %v6024_v18 = vadd.f32 %v11648_v63, %v5569_v12  ;;  %9536 = vmatprep.mubr.msk.bf16.mxu0 %vm2810_vm0, %v10912_v7  ;;  %9648 = vmatprep.mubr.msk.bf16.mxu1 %vm2810_vm0, %v10914_v8 }
 0x161   : > { %v10196_v19 = vpack.c.bf16 %v6247_v15, %v6247_v15  ;;  %v10420_v20 = vpack.c.bf16 %v6471_v16, %v6471_v16  ;;  %v6248_v21 = vmax.f32 %v5800_v17, 0.0 }
 0x162   : > { %v6472_v22 = vmax.f32 %v6024_v18, 0.0  ;;  %v3620_v23 = vpop.f32.mrb[48].mxu0  ;;  %v4516_v24 = vpop.f32.mrb[48].mxu1 }
 0x163   : > { %8488 = vst.msk [vmem:[%s11666_s28 + $0x58] sm:$0xf] %vm8465_vm3, %v10196_v19  ;;  %8712 = vst.msk [vmem:[%s11666_s28 + $0x3d8] sm:$0xf] %vm8465_vm3, %v10420_v20  ;;  %v10197_v25 = vpack.c.bf16 %v6248_v21, %v6248_v21  ;;  %v5346_v27 = vmul.f32 %v11641_v61, %v3620_v23  ;;  %v5570_v28 = vmul.f32 %v11641_v61, %v4516_v24  ;;  %v3622_v29 = vpop.f32.mrb[49].mxu0  ;;  %v4518_v30 = vpop.f32.mrb[49].mxu1 }
 0x164   : > { %v10421_v26 = vpack.c.bf16 %v6472_v22, %v6472_v22  ;;  %v3623_v33 = vpop.f32.mrb[50].mxu0  ;;  %v4519_v34 = vpop.f32.mrb[50].mxu1  ;;  %v11964_v21 = vld [vmem:[%s14035_s2] ss:$0 sm:$0xff]  ;;  %v10930_v29 = vld [vmem:[%s11454_s5 + $0x2a4] ss:$8 sps:$4 sm:$0xff]  }
 0x165   : > { %8489 = vst.msk [vmem:[%s11666_s28 + $0x5c] sm:$0xf] %vm8465_vm3, %v10197_v25  ;;  %v5801_v37 = vadd.f32 %v11648_v63, %v5346_v27  ;;  %v6025_v38 = vadd.f32 %v11648_v63, %v5570_v28  ;;  %v5347_v39 = vmul.f32 %v11641_v61, %v3623_v33  ;;  %v5571_v40 = vmul.f32 %v11641_v61, %v4519_v34  ;;  %v3625_v41 = vpop.f32.mrb[51].mxu0  ;;  %v4521_v42 = vpop.f32.mrb[51].mxu1  ;;  %v10928_v25 = vld [vmem:[%s11454_s5 + $0x290] ss:$8 sps:$4 sm:$0xff]  }
 0x166   : > { %8713 = vst.msk [vmem:[%s11666_s28 + $0x3dc] sm:$0xf] %vm8465_vm3, %v10421_v26  ;;  %v10929_v26 = vld [vmem:[%s11454_s5 + $0x990] ss:$8 sps:$4 sm:$0xff]   ;;  %v10932_v30 = vld [vmem:[%s11454_s5 + $0x9a4] ss:$8 sps:$4 sm:$0xff]  }
 0x167   : > { %v6249_v43 = vmax.f32 %v5801_v37, 0.0  ;;  %v6473_v44 = vmax.f32 %v6025_v38, 0.0  ;;  %v5802_v45 = vadd.f32 %v11648_v63, %v5347_v39  ;;  %v6026_v46 = vadd.f32 %v11648_v63, %v5571_v40  ;;  %3835 = vmatmul.mubr.bf16.gmra.mrb[156].mxu0 %v10916_v31  ;;  %4731 = vmatmul.mubr.bf16.gmra.mrb[156].mxu1 %v10917_v32 }
 0x168   : > { %9537 = vmatprep.mubr.msk.bf16.mxu0 %vm2810_vm0, %v10918_v35  ;;  %9649 = vmatprep.mubr.msk.bf16.mxu1 %vm2810_vm0, %v10920_v36 }
 0x169   : > { %v10198_v47 = vpack.c.bf16 %v6249_v43, %v6249_v43  ;;  %v10422_v48 = vpack.c.bf16 %v6473_v44, %v6473_v44  ;;  %v6250_v49 = vmax.f32 %v5802_v45, 0.0  ;;  %v6474_v50 = vmax.f32 %v6026_v46, 0.0 }
 0x16a   : > { %v3628_v51 = vpop.f32.mrb[52].mxu0  ;;  %v4524_v52 = vpop.f32.mrb[52].mxu1 }
 0x16b   : > { %8490 = vst.msk [vmem:[%s11666_s28 + $0x60] sm:$0xf] %vm8465_vm3, %v10198_v47  ;;  %8714 = vst.msk [vmem:[%s11666_s28 + $0x3e0] sm:$0xf] %vm8465_vm3, %v10422_v48  ;;  %v10199_v53 = vpack.c.bf16 %v6250_v49, %v6250_v49  ;;  %v10423_v54 = vpack.c.bf16 %v6474_v50, %v6474_v50  ;;  %v5348_v55 = vmul.f32 %v11641_v61, %v3628_v51  ;;  %v3630_v57 = vpop.f32.mrb[53].mxu0  ;;  %v4526_v58 = vpop.f32.mrb[53].mxu1 }
 0x16c   : > { %v5572_v56 = vmul.f32 %v11641_v61, %v4524_v52  ;;  %v3631_v62 = vpop.f32.mrb[54].mxu0  ;;  %v4527_v0 = vpop.f32.mrb[54].mxu1  ;;  %v10936_v57 = vld [vmem:[%s11454_s5 + $0x2b4] ss:$8 sps:$4 sm:$0xff]  }
 0x16d   : > { %8491 = vst.msk [vmem:[%s11666_s28 + $0x64] sm:$0xf] %vm8465_vm3, %v10199_v53  ;;  %8715 = vst.msk [vmem:[%s11666_s28 + $0x3e4] sm:$0xf] %vm8465_vm3, %v10423_v54  ;;  %v5803_v3 = vadd.f32 %v11648_v63, %v5348_v55  ;;  %v5349_v5 = vmul.f32 %v11641_v61, %v3631_v62  ;;  %v5573_v6 = vmul.f32 %v11641_v61, %v4527_v0  ;;  %v3633_v7 = vpop.f32.mrb[55].mxu0  ;;  %v4529_v8 = vpop.f32.mrb[55].mxu1 }
 0x16e   : > { %v6027_v4 = vadd.f32 %v11648_v63, %v5572_v56  ;;  %v10934_v53 = vld [vmem:[%s11454_s5 + $0x2a0] ss:$8 sps:$4 sm:$0xff]   ;;  %v10938_v58 = vld [vmem:[%s11454_s5 + $0x9b4] ss:$8 sps:$4 sm:$0xff]  }
 0x16f   : > { %v6251_v9 = vmax.f32 %v5803_v3, 0.0  ;;  %v5804_v11 = vadd.f32 %v11648_v63, %v5349_v5  ;;  %v6028_v12 = vadd.f32 %v11648_v63, %v5573_v6  ;;  %3843 = vmatmul.mubr.bf16.gmra.mrb[160].mxu0 %v10922_v59  ;;  %4739 = vmatmul.mubr.bf16.gmra.mrb[160].mxu1 %v10923_v60  ;;  %v10935_v54 = vld [vmem:[%s11454_s5 + $0x9a0] ss:$8 sps:$4 sm:$0xff]  }
 0x170   : > { %v6475_v10 = vmax.f32 %v6027_v4, 0.0  ;;  %9538 = vmatprep.mubr.msk.bf16.mxu0 %vm2810_vm0, %v10924_v1  ;;  %9650 = vmatprep.mubr.msk.bf16.mxu1 %vm2810_vm0, %v10926_v2 }
 0x171   : > { %v10200_v13 = vpack.c.bf16 %v6251_v9, %v6251_v9  ;;  %v6252_v15 = vmax.f32 %v5804_v11, 0.0  ;;  %v6476_v16 = vmax.f32 %v6028_v12, 0.0 }
 0x172   : > { %v10424_v14 = vpack.c.bf16 %v6475_v10, %v6475_v10  ;;  %v3636_v17 = vpop.f32.mrb[56].mxu0  ;;  %v4532_v18 = vpop.f32.mrb[56].mxu1 }
 0x173   : > { %8492 = vst.msk [vmem:[%s11666_s28 + $0x68] sm:$0xf] %vm8465_vm3, %v10200_v13  ;;  %v10201_v63 = vpack.c.bf16 %v6252_v15, %v6252_v15  ;;  %v10425_v19 = vpack.c.bf16 %v6476_v16, %v6476_v16  ;;  %v5350_v20 = vmul.f32 %v11641_v61, %v3636_v17  ;;  %v5574_v22 = vmul.f32 %v11964_v21, %v4532_v18  ;;  %v3638_v23 = vpop.f32.mrb[57].mxu0  ;;  %v4534_v24 = vpop.f32.mrb[57].mxu1  ;;  %v11978_v61 = vld [vmem:[%s14036_s3] ss:$0 sm:$0xff] }
 0x174   : > { %8716 = vst.msk [vmem:[%s11666_s28 + $0x3e8] sm:$0xf] %vm8465_vm3, %v10424_v14  ;;  %v3639_v27 = vpop.f32.mrb[58].mxu0  ;;  %v4535_v28 = vpop.f32.mrb[58].mxu1  ;;  %v10942_v23 = vld [vmem:[%s11454_s5 + $0x2c4] ss:$8 sps:$4 sm:$0xff]  }
 0x175   : > { %8493 = vst.msk [vmem:[%s11666_s28 + $0x6c] sm:$0xf] %vm8465_vm3, %v10201_v63  ;;  %8717 = vst.msk [vmem:[%s11666_s28 + $0x3ec] sm:$0xf] %vm8465_vm3, %v10425_v19  ;;  %v5805_v31 = vadd.f32 %v11978_v61, %v5350_v20  ;;  %v6029_v32 = vadd.f32 %v11978_v61, %v5574_v22  ;;  %v5351_v33 = vmul.f32 %v11964_v21, %v3639_v27  ;;  %v3641_v35 = vpop.f32.mrb[59].mxu0  ;;  %v4537_v36 = vpop.f32.mrb[59].mxu1 }
 0x176   : > { %v5575_v34 = vmul.f32 %v11964_v21, %v4535_v28  ;;  %v10940_v63 = vld [vmem:[%s11454_s5 + $0x2b0] ss:$8 sps:$4 sm:$0xff]   ;;  %v10944_v24 = vld [vmem:[%s11454_s5 + $0x9c4] ss:$8 sps:$4 sm:$0xff]  }
 0x177   : > { %v6253_v37 = vmax.f32 %v5805_v31, 0.0  ;;  %v6477_v38 = vmax.f32 %v6029_v32, 0.0  ;;  %v5806_v39 = vadd.f32 %v11978_v61, %v5351_v33  ;;  %3851 = vmatmul.mubr.bf16.gmra.mrb[164].mxu0 %v10928_v25  ;;  %4747 = vmatmul.mubr.bf16.gmra.mrb[164].mxu1 %v10929_v26  ;;  %v10941_v19 = vld [vmem:[%s11454_s5 + $0x9b0] ss:$8 sps:$4 sm:$0xff]  }
 0x178   : > { %v6030_v40 = vadd.f32 %v11978_v61, %v5575_v34  ;;  %9539 = vmatprep.mubr.msk.bf16.mxu0 %vm2810_vm0, %v10930_v29  ;;  %9651 = vmatprep.mubr.msk.bf16.mxu1 %vm2810_vm0, %v10932_v30 }
 0x179   : > { %v10202_v41 = vpack.c.bf16 %v6253_v37, %v6253_v37  ;;  %v10426_v42 = vpack.c.bf16 %v6477_v38, %v6477_v38  ;;  %v6254_v43 = vmax.f32 %v5806_v39, 0.0 }
 0x17a   : > { %v6478_v44 = vmax.f32 %v6030_v40, 0.0  ;;  %v3644_v45 = vpop.f32.mrb[60].mxu0  ;;  %v4540_v46 = vpop.f32.mrb[60].mxu1 }
 0x17b   : > { %8494 = vst.msk [vmem:[%s11666_s28 + $0x70] sm:$0xf] %vm8465_vm3, %v10202_v41  ;;  %8718 = vst.msk [vmem:[%s11666_s28 + $0x3f0] sm:$0xf] %vm8465_vm3, %v10426_v42  ;;  %v10203_v47 = vpack.c.bf16 %v6254_v43, %v6254_v43  ;;  %v5352_v49 = vmul.f32 %v11964_v21, %v3644_v45  ;;  %v5576_v50 = vmul.f32 %v11964_v21, %v4540_v46  ;;  %v3646_v51 = vpop.f32.mrb[61].mxu0  ;;  %v4542_v52 = vpop.f32.mrb[61].mxu1 }
 0x17c   : > { %v10427_v48 = vpack.c.bf16 %v6478_v44, %v6478_v44  ;;  %v3647_v55 = vpop.f32.mrb[62].mxu0  ;;  %v4543_v56 = vpop.f32.mrb[62].mxu1  ;;  %v10948_v51 = vld [vmem:[%s11454_s5 + $0x2d4] ss:$8 sps:$4 sm:$0xff]  }
 0x17d   : > { %8495 = vst.msk [vmem:[%s11666_s28 + $0x74] sm:$0xf] %vm8465_vm3, %v10203_v47  ;;  %v5807_v59 = vadd.f32 %v11978_v61, %v5352_v49  ;;  %v6031_v60 = vadd.f32 %v11978_v61, %v5576_v50  ;;  %v5353_v62 = vmul.f32 %v11964_v21, %v3647_v55  ;;  %v5577_v0 = vmul.f32 %v11964_v21, %v4543_v56  ;;  %v3649_v1 = vpop.f32.mrb[63].mxu0  ;;  %v4545_v2 = vpop.f32.mrb[63].mxu1  ;;  %v10946_v47 = vld [vmem:[%s11454_s5 + $0x2c0] ss:$8 sps:$4 sm:$0xff]  }
 0x17e   : > { %8719 = vst.msk [vmem:[%s11666_s28 + $0x3f4] sm:$0xf] %vm8465_vm3, %v10427_v48  ;;  %v10947_v48 = vld [vmem:[%s11454_s5 + $0x9c0] ss:$8 sps:$4 sm:$0xff]   ;;  %v10950_v52 = vld [vmem:[%s11454_s5 + $0x9d4] ss:$8 sps:$4 sm:$0xff]  }
 0x17f   : > { %v6255_v3 = vmax.f32 %v5807_v59, 0.0  ;;  %v6479_v4 = vmax.f32 %v6031_v60, 0.0  ;;  %v5808_v5 = vadd.f32 %v11978_v61, %v5353_v62  ;;  %v6032_v6 = vadd.f32 %v11978_v61, %v5577_v0  ;;  %3859 = vmatmul.mubr.bf16.gmra.mrb[168].mxu0 %v10934_v53  ;;  %4755 = vmatmul.mubr.bf16.gmra.mrb[168].mxu1 %v10935_v54 }
 0x180   : > { %9540 = vmatprep.mubr.msk.bf16.mxu0 %vm2810_vm0, %v10936_v57  ;;  %9652 = vmatprep.mubr.msk.bf16.mxu1 %vm2810_vm0, %v10938_v58 }
 0x181   : > { %v10204_v7 = vpack.c.bf16 %v6255_v3, %v6255_v3  ;;  %v10428_v8 = vpack.c.bf16 %v6479_v4, %v6479_v4  ;;  %v6256_v9 = vmax.f32 %v5808_v5, 0.0  ;;  %v6480_v10 = vmax.f32 %v6032_v6, 0.0 }
 0x182   : > { %v3652_v11 = vpop.f32.mrb[64].mxu0  ;;  %v4548_v12 = vpop.f32.mrb[64].mxu1 }
 0x183   : > { %8496 = vst.msk [vmem:[%s11666_s28 + $0x78] sm:$0xf] %vm8465_vm3, %v10204_v7  ;;  %8720 = vst.msk [vmem:[%s11666_s28 + $0x3f8] sm:$0xf] %vm8465_vm3, %v10428_v8  ;;  %v10205_v13 = vpack.c.bf16 %v6256_v9, %v6256_v9  ;;  %v10429_v14 = vpack.c.bf16 %v6480_v10, %v6480_v10  ;;  %v5354_v15 = vmul.f32 %v11964_v21, %v3652_v11  ;;  %v3654_v17 = vpop.f32.mrb[65].mxu0  ;;  %v4550_v18 = vpop.f32.mrb[65].mxu1 }
 0x184   : > { %v5578_v16 = vmul.f32 %v11964_v21, %v4548_v12  ;;  %v3655_v20 = vpop.f32.mrb[66].mxu0  ;;  %v4551_v22 = vpop.f32.mrb[66].mxu1  ;;  %v10954_v17 = vld [vmem:[%s11454_s5 + $0x2e4] ss:$8 sps:$4 sm:$0xff]  }
 0x185   : > { %8497 = vst.msk [vmem:[%s11666_s28 + $0x7c] sm:$0xf] %vm8465_vm3, %v10205_v13  ;;  %8721 = vst.msk [vmem:[%s11666_s28 + $0x3fc] sm:$0xf] %vm8465_vm3, %v10429_v14  ;;  %v5809_v25 = vadd.f32 %v11978_v61, %v5354_v15  ;;  %v5355_v27 = vmul.f32 %v11964_v21, %v3655_v20  ;;  %v5579_v28 = vmul.f32 %v11964_v21, %v4551_v22  ;;  %v3657_v29 = vpop.f32.mrb[67].mxu0  ;;  %v4553_v30 = vpop.f32.mrb[67].mxu1 }
 0x186   : > { %v6033_v26 = vadd.f32 %v11978_v61, %v5578_v16  ;;  %v10952_v13 = vld [vmem:[%s11454_s5 + $0x2d0] ss:$8 sps:$4 sm:$0xff]   ;;  %v10956_v18 = vld [vmem:[%s11454_s5 + $0x9e4] ss:$8 sps:$4 sm:$0xff]  }
 0x187   : > { %v6257_v31 = vmax.f32 %v5809_v25, 0.0  ;;  %v5810_v33 = vadd.f32 %v11978_v61, %v5355_v27  ;;  %v6034_v34 = vadd.f32 %v11978_v61, %v5579_v28  ;;  %3867 = vmatmul.mubr.bf16.gmra.mrb[172].mxu0 %v10940_v63  ;;  %4763 = vmatmul.mubr.bf16.gmra.mrb[172].mxu1 %v10941_v19  ;;  %v10953_v14 = vld [vmem:[%s11454_s5 + $0x9d0] ss:$8 sps:$4 sm:$0xff]  }
 0x188   : > { %v6481_v32 = vmax.f32 %v6033_v26, 0.0  ;;  %9541 = vmatprep.mubr.msk.bf16.mxu0 %vm2810_vm0, %v10942_v23  ;;  %9653 = vmatprep.mubr.msk.bf16.mxu1 %vm2810_vm0, %v10944_v24 }
 0x189   : > { %v10206_v35 = vpack.c.bf16 %v6257_v31, %v6257_v31  ;;  %v6258_v37 = vmax.f32 %v5810_v33, 0.0  ;;  %v6482_v38 = vmax.f32 %v6034_v34, 0.0 }
 0x18a   : > { %v10430_v36 = vpack.c.bf16 %v6481_v32, %v6481_v32  ;;  %v3660_v39 = vpop.f32.mrb[68].mxu0  ;;  %v4556_v40 = vpop.f32.mrb[68].mxu1 }
 0x18b   : > { %8498 = vst.msk [vmem:[%s11666_s28 + $0x80] sm:$0xf] %vm8465_vm3, %v10206_v35  ;;  %v10207_v41 = vpack.c.bf16 %v6258_v37, %v6258_v37  ;;  %v10431_v42 = vpack.c.bf16 %v6482_v38, %v6482_v38  ;;  %v5356_v43 = vmul.f32 %v11964_v21, %v3660_v39  ;;  %v5580_v44 = vmul.f32 %v11964_v21, %v4556_v40  ;;  %v3662_v45 = vpop.f32.mrb[69].mxu0  ;;  %v4558_v46 = vpop.f32.mrb[69].mxu1 }
 0x18c   : > { %8722 = vst.msk [vmem:[%s11666_s28 + $0x400] sm:$0xf] %vm8465_vm3, %v10430_v36  ;;  %v3663_v49 = vpop.f32.mrb[70].mxu0  ;;  %v4559_v50 = vpop.f32.mrb[70].mxu1  ;;  %v10960_v45 = vld [vmem:[%s11454_s5 + $0x2f4] ss:$8 sps:$4 sm:$0xff]  }
 0x18d   : > { %8499 = vst.msk [vmem:[%s11666_s28 + $0x84] sm:$0xf] %vm8465_vm3, %v10207_v41  ;;  %8723 = vst.msk [vmem:[%s11666_s28 + $0x404] sm:$0xf] %vm8465_vm3, %v10431_v42  ;;  %v5811_v53 = vadd.f32 %v11978_v61, %v5356_v43  ;;  %v6035_v54 = vadd.f32 %v11978_v61, %v5580_v44  ;;  %v5357_v55 = vmul.f32 %v11964_v21, %v3663_v49  ;;  %v3665_v57 = vpop.f32.mrb[71].mxu0  ;;  %v4561_v58 = vpop.f32.mrb[71].mxu1 }
 0x18e   : > { %v5581_v56 = vmul.f32 %v11964_v21, %v4559_v50  ;;  %v10958_v41 = vld [vmem:[%s11454_s5 + $0x2e0] ss:$8 sps:$4 sm:$0xff]   ;;  %v10962_v46 = vld [vmem:[%s11454_s5 + $0x9f4] ss:$8 sps:$4 sm:$0xff]  }
 0x18f   : > { %v6259_v59 = vmax.f32 %v5811_v53, 0.0  ;;  %v6483_v60 = vmax.f32 %v6035_v54, 0.0  ;;  %v5812_v62 = vadd.f32 %v11978_v61, %v5357_v55  ;;  %3875 = vmatmul.mubr.bf16.gmra.mrb[176].mxu0 %v10946_v47  ;;  %4771 = vmatmul.mubr.bf16.gmra.mrb[176].mxu1 %v10947_v48  ;;  %v10959_v42 = vld [vmem:[%s11454_s5 + $0x9e0] ss:$8 sps:$4 sm:$0xff]  }
 0x190   : > { %v6036_v0 = vadd.f32 %v11978_v61, %v5581_v56  ;;  %9542 = vmatprep.mubr.msk.bf16.mxu0 %vm2810_vm0, %v10948_v51  ;;  %9654 = vmatprep.mubr.msk.bf16.mxu1 %vm2810_vm0, %v10950_v52 }
 0x191   : > { %v10208_v1 = vpack.c.bf16 %v6259_v59, %v6259_v59  ;;  %v10432_v2 = vpack.c.bf16 %v6483_v60, %v6483_v60  ;;  %v6260_v3 = vmax.f32 %v5812_v62, 0.0 }
 0x192   : > { %v6484_v4 = vmax.f32 %v6036_v0, 0.0  ;;  %v3668_v5 = vpop.f32.mrb[72].mxu0  ;;  %v4564_v6 = vpop.f32.mrb[72].mxu1 }
 0x193   : > { %8500 = vst.msk [vmem:[%s11666_s28 + $0x88] sm:$0xf] %vm8465_vm3, %v10208_v1  ;;  %8724 = vst.msk [vmem:[%s11666_s28 + $0x408] sm:$0xf] %vm8465_vm3, %v10432_v2  ;;  %v10209_v7 = vpack.c.bf16 %v6260_v3, %v6260_v3  ;;  %v5358_v9 = vmul.f32 %v11964_v21, %v3668_v5  ;;  %v5582_v10 = vmul.f32 %v11964_v21, %v4564_v6  ;;  %v3670_v11 = vpop.f32.mrb[73].mxu0  ;;  %v4566_v12 = vpop.f32.mrb[73].mxu1 }
 0x194   : > { %v10433_v8 = vpack.c.bf16 %v6484_v4, %v6484_v4  ;;  %v3671_v15 = vpop.f32.mrb[74].mxu0  ;;  %v4567_v16 = vpop.f32.mrb[74].mxu1  ;;  %v10966_v11 = vld [vmem:[%s11454_s5 + $0x304] ss:$8 sps:$4 sm:$0xff]  }
 0x195   : > { %8501 = vst.msk [vmem:[%s11666_s28 + $0x8c] sm:$0xf] %vm8465_vm3, %v10209_v7  ;;  %v5813_v63 = vadd.f32 %v11978_v61, %v5358_v9  ;;  %v6037_v19 = vadd.f32 %v11978_v61, %v5582_v10  ;;  %v5359_v20 = vmul.f32 %v11964_v21, %v3671_v15  ;;  %v5583_v22 = vmul.f32 %v11964_v21, %v4567_v16  ;;  %v3673_v23 = vpop.f32.mrb[75].mxu0  ;;  %v4569_v24 = vpop.f32.mrb[75].mxu1  ;;  %v10964_v7 = vld [vmem:[%s11454_s5 + $0x2f0] ss:$8 sps:$4 sm:$0xff]  }
 0x196   : > { %8725 = vst.msk [vmem:[%s11666_s28 + $0x40c] sm:$0xf] %vm8465_vm3, %v10433_v8  ;;  %v10965_v8 = vld [vmem:[%s11454_s5 + $0x9f0] ss:$8 sps:$4 sm:$0xff]   ;;  %v10968_v12 = vld [vmem:[%s11454_s5 + $0xa04] ss:$8 sps:$4 sm:$0xff]  }
 0x197   : > { %v6261_v25 = vmax.f32 %v5813_v63, 0.0  ;;  %v6485_v26 = vmax.f32 %v6037_v19, 0.0  ;;  %v5814_v27 = vadd.f32 %v11978_v61, %v5359_v20  ;;  %v6038_v28 = vadd.f32 %v11978_v61, %v5583_v22  ;;  %3883 = vmatmul.mubr.bf16.gmra.mrb[180].mxu0 %v10952_v13  ;;  %4779 = vmatmul.mubr.bf16.gmra.mrb[180].mxu1 %v10953_v14 }
 0x198   : > { %9543 = vmatprep.mubr.msk.bf16.mxu0 %vm2810_vm0, %v10954_v17  ;;  %9655 = vmatprep.mubr.msk.bf16.mxu1 %vm2810_vm0, %v10956_v18 }
 0x199   : > { %v10210_v29 = vpack.c.bf16 %v6261_v25, %v6261_v25  ;;  %v10434_v30 = vpack.c.bf16 %v6485_v26, %v6485_v26  ;;  %v6262_v31 = vmax.f32 %v5814_v27, 0.0  ;;  %v6486_v32 = vmax.f32 %v6038_v28, 0.0 }
 0x19a   : > { %v3676_v33 = vpop.f32.mrb[76].mxu0  ;;  %v4572_v34 = vpop.f32.mrb[76].mxu1 }
 0x19b   : > { %8502 = vst.msk [vmem:[%s11666_s28 + $0x90] sm:$0xf] %vm8465_vm3, %v10210_v29  ;;  %8726 = vst.msk [vmem:[%s11666_s28 + $0x410] sm:$0xf] %vm8465_vm3, %v10434_v30  ;;  %v10211_v35 = vpack.c.bf16 %v6262_v31, %v6262_v31  ;;  %v10435_v36 = vpack.c.bf16 %v6486_v32, %v6486_v32  ;;  %v5360_v37 = vmul.f32 %v11964_v21, %v3676_v33  ;;  %v3678_v39 = vpop.f32.mrb[77].mxu0  ;;  %v4574_v40 = vpop.f32.mrb[77].mxu1 }
 0x19c   : > { %v5584_v38 = vmul.f32 %v11964_v21, %v4572_v34  ;;  %v3679_v43 = vpop.f32.mrb[78].mxu0  ;;  %v4575_v44 = vpop.f32.mrb[78].mxu1  ;;  %v10972_v39 = vld [vmem:[%s11454_s5 + $0x314] ss:$8 sps:$4 sm:$0xff]  }
 0x19d   : > { %8503 = vst.msk [vmem:[%s11666_s28 + $0x94] sm:$0xf] %vm8465_vm3, %v10211_v35  ;;  %8727 = vst.msk [vmem:[%s11666_s28 + $0x414] sm:$0xf] %vm8465_vm3, %v10435_v36  ;;  %v5815_v47 = vadd.f32 %v11978_v61, %v5360_v37  ;;  %v5361_v49 = vmul.f32 %v11964_v21, %v3679_v43  ;;  %v5585_v50 = vmul.f32 %v11964_v21, %v4575_v44  ;;  %v3681_v51 = vpop.f32.mrb[79].mxu0  ;;  %v4577_v52 = vpop.f32.mrb[79].mxu1 }
 0x19e   : > { %v6039_v48 = vadd.f32 %v11978_v61, %v5584_v38  ;;  %v10970_v35 = vld [vmem:[%s11454_s5 + $0x300] ss:$8 sps:$4 sm:$0xff]   ;;  %v10974_v40 = vld [vmem:[%s11454_s5 + $0xa14] ss:$8 sps:$4 sm:$0xff]  }
 0x19f   : > { %v6263_v53 = vmax.f32 %v5815_v47, 0.0  ;;  %v5816_v55 = vadd.f32 %v11978_v61, %v5361_v49  ;;  %v6040_v56 = vadd.f32 %v11978_v61, %v5585_v50  ;;  %3891 = vmatmul.mubr.bf16.gmra.mrb[184].mxu0 %v10958_v41  ;;  %4787 = vmatmul.mubr.bf16.gmra.mrb[184].mxu1 %v10959_v42  ;;  %v10971_v36 = vld [vmem:[%s11454_s5 + $0xa00] ss:$8 sps:$4 sm:$0xff]  }
 0x1a0   : > { %v6487_v54 = vmax.f32 %v6039_v48, 0.0  ;;  %9544 = vmatprep.mubr.msk.bf16.mxu0 %vm2810_vm0, %v10960_v45  ;;  %9656 = vmatprep.mubr.msk.bf16.mxu1 %vm2810_vm0, %v10962_v46 }
 0x1a1   : > { %v10212_v57 = vpack.c.bf16 %v6263_v53, %v6263_v53  ;;  %v6264_v59 = vmax.f32 %v5816_v55, 0.0  ;;  %v6488_v60 = vmax.f32 %v6040_v56, 0.0 }
 0x1a2   : > { %v10436_v58 = vpack.c.bf16 %v6487_v54, %v6487_v54  ;;  %v3684_v62 = vpop.f32.mrb[80].mxu0  ;;  %v4580_v0 = vpop.f32.mrb[80].mxu1 }
 0x1a3   : > { %8504 = vst.msk [vmem:[%s11666_s28 + $0x98] sm:$0xf] %vm8465_vm3, %v10212_v57  ;;  %v10213_v1 = vpack.c.bf16 %v6264_v59, %v6264_v59  ;;  %v10437_v2 = vpack.c.bf16 %v6488_v60, %v6488_v60  ;;  %v5362_v3 = vmul.f32 %v11964_v21, %v3684_v62  ;;  %v5586_v4 = vmul.f32 %v11964_v21, %v4580_v0  ;;  %v3686_v5 = vpop.f32.mrb[81].mxu0  ;;  %v4582_v6 = vpop.f32.mrb[81].mxu1 }
 0x1a4   : > { %8728 = vst.msk [vmem:[%s11666_s28 + $0x418] sm:$0xf] %vm8465_vm3, %v10436_v58  ;;  %v3687_v9 = vpop.f32.mrb[82].mxu0  ;;  %v4583_v10 = vpop.f32.mrb[82].mxu1  ;;  %v10978_v5 = vld [vmem:[%s11454_s5 + $0x324] ss:$8 sps:$4 sm:$0xff]  }
 0x1a5   : > { %8505 = vst.msk [vmem:[%s11666_s28 + $0x9c] sm:$0xf] %vm8465_vm3, %v10213_v1  ;;  %8729 = vst.msk [vmem:[%s11666_s28 + $0x41c] sm:$0xf] %vm8465_vm3, %v10437_v2  ;;  %v5817_v13 = vadd.f32 %v11978_v61, %v5362_v3  ;;  %v6041_v14 = vadd.f32 %v11978_v61, %v5586_v4  ;;  %v5363_v15 = vmul.f32 %v11964_v21, %v3687_v9  ;;  %v3689_v17 = vpop.f32.mrb[83].mxu0  ;;  %v4585_v18 = vpop.f32.mrb[83].mxu1 }
 0x1a6   : > { %v5587_v16 = vmul.f32 %v11964_v21, %v4583_v10  ;;  %v10976_v1 = vld [vmem:[%s11454_s5 + $0x310] ss:$8 sps:$4 sm:$0xff]   ;;  %v10980_v6 = vld [vmem:[%s11454_s5 + $0xa24] ss:$8 sps:$4 sm:$0xff]  }
 0x1a7   : > { %v6265_v63 = vmax.f32 %v5817_v13, 0.0  ;;  %v6489_v19 = vmax.f32 %v6041_v14, 0.0  ;;  %v5818_v20 = vadd.f32 %v11978_v61, %v5363_v15  ;;  %3899 = vmatmul.mubr.bf16.gmra.mrb[188].mxu0 %v10964_v7  ;;  %4795 = vmatmul.mubr.bf16.gmra.mrb[188].mxu1 %v10965_v8  ;;  %v10977_v2 = vld [vmem:[%s11454_s5 + $0xa10] ss:$8 sps:$4 sm:$0xff]  }
 0x1a8   : > { %v6042_v22 = vadd.f32 %v11978_v61, %v5587_v16  ;;  %9545 = vmatprep.mubr.msk.bf16.mxu0 %vm2810_vm0, %v10966_v11  ;;  %9657 = vmatprep.mubr.msk.bf16.mxu1 %vm2810_vm0, %v10968_v12 }
 0x1a9   : > { %v10214_v23 = vpack.c.bf16 %v6265_v63, %v6265_v63  ;;  %v10438_v24 = vpack.c.bf16 %v6489_v19, %v6489_v19  ;;  %v6266_v25 = vmax.f32 %v5818_v20, 0.0 }
 0x1aa   : > { %v6490_v26 = vmax.f32 %v6042_v22, 0.0  ;;  %v3692_v27 = vpop.f32.mrb[84].mxu0  ;;  %v4588_v28 = vpop.f32.mrb[84].mxu1 }
 0x1ab   : > { %8506 = vst.msk [vmem:[%s11666_s28 + $0xa0] sm:$0xf] %vm8465_vm3, %v10214_v23  ;;  %8730 = vst.msk [vmem:[%s11666_s28 + $0x420] sm:$0xf] %vm8465_vm3, %v10438_v24  ;;  %v10215_v29 = vpack.c.bf16 %v6266_v25, %v6266_v25  ;;  %v5364_v31 = vmul.f32 %v11964_v21, %v3692_v27  ;;  %v5588_v32 = vmul.f32 %v11964_v21, %v4588_v28  ;;  %v3694_v33 = vpop.f32.mrb[85].mxu0  ;;  %v4590_v34 = vpop.f32.mrb[85].mxu1 }
 0x1ac   : > { %v10439_v30 = vpack.c.bf16 %v6490_v26, %v6490_v26  ;;  %v3695_v37 = vpop.f32.mrb[86].mxu0  ;;  %v4591_v38 = vpop.f32.mrb[86].mxu1  ;;  %v10984_v33 = vld [vmem:[%s11454_s5 + $0x334] ss:$8 sps:$4 sm:$0xff]  }
 0x1ad   : > { %8507 = vst.msk [vmem:[%s11666_s28 + $0xa4] sm:$0xf] %vm8465_vm3, %v10215_v29  ;;  %v5819_v41 = vadd.f32 %v11978_v61, %v5364_v31  ;;  %v6043_v42 = vadd.f32 %v11978_v61, %v5588_v32  ;;  %v5365_v43 = vmul.f32 %v11964_v21, %v3695_v37  ;;  %v5589_v44 = vmul.f32 %v11964_v21, %v4591_v38  ;;  %v3697_v45 = vpop.f32.mrb[87].mxu0  ;;  %v4593_v46 = vpop.f32.mrb[87].mxu1  ;;  %v10982_v29 = vld [vmem:[%s11454_s5 + $0x320] ss:$8 sps:$4 sm:$0xff]  }
 0x1ae   : > { %8731 = vst.msk [vmem:[%s11666_s28 + $0x424] sm:$0xf] %vm8465_vm3, %v10439_v30  ;;  %v10983_v30 = vld [vmem:[%s11454_s5 + $0xa20] ss:$8 sps:$4 sm:$0xff]   ;;  %v10986_v34 = vld [vmem:[%s11454_s5 + $0xa34] ss:$8 sps:$4 sm:$0xff]  }
 0x1af   : > { %v6267_v47 = vmax.f32 %v5819_v41, 0.0  ;;  %v6491_v48 = vmax.f32 %v6043_v42, 0.0  ;;  %v5820_v49 = vadd.f32 %v11978_v61, %v5365_v43  ;;  %v6044_v50 = vadd.f32 %v11978_v61, %v5589_v44  ;;  %3907 = vmatmul.mubr.bf16.gmra.mrb[192].mxu0 %v10970_v35  ;;  %4803 = vmatmul.mubr.bf16.gmra.mrb[192].mxu1 %v10971_v36 }
 0x1b0   : > { %9546 = vmatprep.mubr.msk.bf16.mxu0 %vm2810_vm0, %v10972_v39  ;;  %9658 = vmatprep.mubr.msk.bf16.mxu1 %vm2810_vm0, %v10974_v40 }
 0x1b1   : > { %v10216_v51 = vpack.c.bf16 %v6267_v47, %v6267_v47  ;;  %v10440_v52 = vpack.c.bf16 %v6491_v48, %v6491_v48  ;;  %v6268_v53 = vmax.f32 %v5820_v49, 0.0  ;;  %v6492_v54 = vmax.f32 %v6044_v50, 0.0 }
 0x1b2   : > { %v3700_v55 = vpop.f32.mrb[88].mxu0  ;;  %v4596_v56 = vpop.f32.mrb[88].mxu1 }
 0x1b3   : > { %8508 = vst.msk [vmem:[%s11666_s28 + $0xa8] sm:$0xf] %vm8465_vm3, %v10216_v51  ;;  %8732 = vst.msk [vmem:[%s11666_s28 + $0x428] sm:$0xf] %vm8465_vm3, %v10440_v52  ;;  %v10217_v57 = vpack.c.bf16 %v6268_v53, %v6268_v53  ;;  %v10441_v58 = vpack.c.bf16 %v6492_v54, %v6492_v54  ;;  %v5366_v59 = vmul.f32 %v11964_v21, %v3700_v55  ;;  %v3702_v62 = vpop.f32.mrb[89].mxu0  ;;  %v4598_v0 = vpop.f32.mrb[89].mxu1 }
 0x1b4   : > { %v5590_v60 = vmul.f32 %v11964_v21, %v4596_v56  ;;  %v3703_v3 = vpop.f32.mrb[90].mxu0  ;;  %v4599_v4 = vpop.f32.mrb[90].mxu1  ;;  %v10990_v62 = vld [vmem:[%s11454_s5 + $0x344] ss:$8 sps:$4 sm:$0xff]  }
 0x1b5   : > { %8509 = vst.msk [vmem:[%s11666_s28 + $0xac] sm:$0xf] %vm8465_vm3, %v10217_v57  ;;  %8733 = vst.msk [vmem:[%s11666_s28 + $0x42c] sm:$0xf] %vm8465_vm3, %v10441_v58  ;;  %v5821_v7 = vadd.f32 %v11978_v61, %v5366_v59  ;;  %v5367_v9 = vmul.f32 %v11964_v21, %v3703_v3  ;;  %v5591_v10 = vmul.f32 %v11964_v21, %v4599_v4  ;;  %v3705_v11 = vpop.f32.mrb[91].mxu0  ;;  %v4601_v12 = vpop.f32.mrb[91].mxu1 }
 0x1b6   : > { %v6045_v8 = vadd.f32 %v11978_v61, %v5590_v60  ;;  %v10988_v57 = vld [vmem:[%s11454_s5 + $0x330] ss:$8 sps:$4 sm:$0xff]   ;;  %v10992_v0 = vld [vmem:[%s11454_s5 + $0xa44] ss:$8 sps:$4 sm:$0xff]  }
 0x1b7   : > { %v6269_v13 = vmax.f32 %v5821_v7, 0.0  ;;  %v5822_v15 = vadd.f32 %v11978_v61, %v5367_v9  ;;  %v6046_v16 = vadd.f32 %v11978_v61, %v5591_v10  ;;  %3915 = vmatmul.mubr.bf16.gmra.mrb[196].mxu0 %v10976_v1  ;;  %4811 = vmatmul.mubr.bf16.gmra.mrb[196].mxu1 %v10977_v2  ;;  %v10989_v58 = vld [vmem:[%s11454_s5 + $0xa30] ss:$8 sps:$4 sm:$0xff]  }
 0x1b8   : > { %v6493_v14 = vmax.f32 %v6045_v8, 0.0  ;;  %9547 = vmatprep.mubr.msk.bf16.mxu0 %vm2810_vm0, %v10978_v5  ;;  %9659 = vmatprep.mubr.msk.bf16.mxu1 %vm2810_vm0, %v10980_v6 }
 0x1b9   : > { %v10218_v17 = vpack.c.bf16 %v6269_v13, %v6269_v13  ;;  %v6270_v63 = vmax.f32 %v5822_v15, 0.0  ;;  %v6494_v19 = vmax.f32 %v6046_v16, 0.0 }
 0x1ba   : > { %v10442_v18 = vpack.c.bf16 %v6493_v14, %v6493_v14  ;;  %v3708_v20 = vpop.f32.mrb[92].mxu0  ;;  %v4604_v22 = vpop.f32.mrb[92].mxu1 }
 0x1bb   : > { %8510 = vst.msk [vmem:[%s11666_s28 + $0xb0] sm:$0xf] %vm8465_vm3, %v10218_v17  ;;  %v10219_v23 = vpack.c.bf16 %v6270_v63, %v6270_v63  ;;  %v10443_v24 = vpack.c.bf16 %v6494_v19, %v6494_v19  ;;  %v5368_v25 = vmul.f32 %v11964_v21, %v3708_v20  ;;  %v5592_v26 = vmul.f32 %v11964_v21, %v4604_v22  ;;  %v3710_v27 = vpop.f32.mrb[93].mxu0  ;;  %v4606_v28 = vpop.f32.mrb[93].mxu1 }
 0x1bc   : > { %8734 = vst.msk [vmem:[%s11666_s28 + $0x430] sm:$0xf] %vm8465_vm3, %v10442_v18  ;;  %v3711_v31 = vpop.f32.mrb[94].mxu0  ;;  %v4607_v32 = vpop.f32.mrb[94].mxu1  ;;  %v10996_v27 = vld [vmem:[%s11454_s5 + $0x354] ss:$8 sps:$4 sm:$0xff]  }
 0x1bd   : > { %8511 = vst.msk [vmem:[%s11666_s28 + $0xb4] sm:$0xf] %vm8465_vm3, %v10219_v23  ;;  %8735 = vst.msk [vmem:[%s11666_s28 + $0x434] sm:$0xf] %vm8465_vm3, %v10443_v24  ;;  %v5823_v35 = vadd.f32 %v11978_v61, %v5368_v25  ;;  %v6047_v36 = vadd.f32 %v11978_v61, %v5592_v26  ;;  %v5369_v37 = vmul.f32 %v11964_v21, %v3711_v31  ;;  %v3713_v39 = vpop.f32.mrb[95].mxu0  ;;  %v4609_v40 = vpop.f32.mrb[95].mxu1 }
 0x1be   : > { %v5593_v38 = vmul.f32 %v11964_v21, %v4607_v32  ;;  %v10994_v23 = vld [vmem:[%s11454_s5 + $0x340] ss:$8 sps:$4 sm:$0xff]   ;;  %v10998_v28 = vld [vmem:[%s11454_s5 + $0xa54] ss:$8 sps:$4 sm:$0xff]  }
 0x1bf   : > { %v6271_v41 = vmax.f32 %v5823_v35, 0.0  ;;  %v6495_v42 = vmax.f32 %v6047_v36, 0.0  ;;  %v5824_v43 = vadd.f32 %v11978_v61, %v5369_v37  ;;  %3923 = vmatmul.mubr.bf16.gmra.mrb[200].mxu0 %v10982_v29  ;;  %4819 = vmatmul.mubr.bf16.gmra.mrb[200].mxu1 %v10983_v30  ;;  %v10995_v24 = vld [vmem:[%s11454_s5 + $0xa40] ss:$8 sps:$4 sm:$0xff]  }
 0x1c0   : > { %v6048_v44 = vadd.f32 %v11978_v61, %v5593_v38  ;;  %9548 = vmatprep.mubr.msk.bf16.mxu0 %vm2810_vm0, %v10984_v33  ;;  %9660 = vmatprep.mubr.msk.bf16.mxu1 %vm2810_vm0, %v10986_v34 }
 0x1c1   : > { %v10220_v45 = vpack.c.bf16 %v6271_v41, %v6271_v41  ;;  %v10444_v46 = vpack.c.bf16 %v6495_v42, %v6495_v42  ;;  %v6272_v47 = vmax.f32 %v5824_v43, 0.0 }
 0x1c2   : > { %v6496_v48 = vmax.f32 %v6048_v44, 0.0  ;;  %v3716_v49 = vpop.f32.mrb[96].mxu0  ;;  %v4612_v50 = vpop.f32.mrb[96].mxu1 }
 0x1c3   : > { %8512 = vst.msk [vmem:[%s11666_s28 + $0xb8] sm:$0xf] %vm8465_vm3, %v10220_v45  ;;  %8736 = vst.msk [vmem:[%s11666_s28 + $0x438] sm:$0xf] %vm8465_vm3, %v10444_v46  ;;  %v10221_v51 = vpack.c.bf16 %v6272_v47, %v6272_v47  ;;  %v5370_v53 = vmul.f32 %v11964_v21, %v3716_v49  ;;  %v5594_v54 = vmul.f32 %v11964_v21, %v4612_v50  ;;  %v3718_v55 = vpop.f32.mrb[97].mxu0  ;;  %v4614_v56 = vpop.f32.mrb[97].mxu1 }
 0x1c4   : > { %v10445_v52 = vpack.c.bf16 %v6496_v48, %v6496_v48  ;;  %v3719_v59 = vpop.f32.mrb[98].mxu0  ;;  %v4615_v60 = vpop.f32.mrb[98].mxu1  ;;  %v11002_v55 = vld [vmem:[%s11454_s5 + $0x364] ss:$8 sps:$4 sm:$0xff]  }
 0x1c5   : > { %8513 = vst.msk [vmem:[%s11666_s28 + $0xbc] sm:$0xf] %vm8465_vm3, %v10221_v51  ;;  %v5825_v1 = vadd.f32 %v11978_v61, %v5370_v53  ;;  %v6049_v2 = vadd.f32 %v11978_v61, %v5594_v54  ;;  %v5371_v3 = vmul.f32 %v11964_v21, %v3719_v59  ;;  %v5595_v4 = vmul.f32 %v11964_v21, %v4615_v60  ;;  %v3721_v5 = vpop.f32.mrb[99].mxu0  ;;  %v4617_v6 = vpop.f32.mrb[99].mxu1  ;;  %v11000_v51 = vld [vmem:[%s11454_s5 + $0x350] ss:$8 sps:$4 sm:$0xff]  }
 0x1c6   : > { %8737 = vst.msk [vmem:[%s11666_s28 + $0x43c] sm:$0xf] %vm8465_vm3, %v10445_v52  ;;  %v11001_v52 = vld [vmem:[%s11454_s5 + $0xa50] ss:$8 sps:$4 sm:$0xff]   ;;  %v11004_v56 = vld [vmem:[%s11454_s5 + $0xa64] ss:$8 sps:$4 sm:$0xff]  }
 0x1c7   : > { %v6273_v7 = vmax.f32 %v5825_v1, 0.0  ;;  %v6497_v8 = vmax.f32 %v6049_v2, 0.0  ;;  %v5826_v9 = vadd.f32 %v11978_v61, %v5371_v3  ;;  %v6050_v10 = vadd.f32 %v11978_v61, %v5595_v4  ;;  %3931 = vmatmul.mubr.bf16.gmra.mrb[204].mxu0 %v10988_v57  ;;  %4827 = vmatmul.mubr.bf16.gmra.mrb[204].mxu1 %v10989_v58 }
 0x1c8   : > { %9549 = vmatprep.mubr.msk.bf16.mxu0 %vm2810_vm0, %v10990_v62  ;;  %9661 = vmatprep.mubr.msk.bf16.mxu1 %vm2810_vm0, %v10992_v0 }
 0x1c9   : > { %v10222_v11 = vpack.c.bf16 %v6273_v7, %v6273_v7  ;;  %v10446_v12 = vpack.c.bf16 %v6497_v8, %v6497_v8  ;;  %v6274_v13 = vmax.f32 %v5826_v9, 0.0  ;;  %v6498_v14 = vmax.f32 %v6050_v10, 0.0 }
 0x1ca   : > { %v3724_v15 = vpop.f32.mrb[100].mxu0  ;;  %v4620_v16 = vpop.f32.mrb[100].mxu1 }
 0x1cb   : > { %8514 = vst.msk [vmem:[%s11666_s28 + $0xc0] sm:$0xf] %vm8465_vm3, %v10222_v11  ;;  %8738 = vst.msk [vmem:[%s11666_s28 + $0x440] sm:$0xf] %vm8465_vm3, %v10446_v12  ;;  %v10223_v17 = vpack.c.bf16 %v6274_v13, %v6274_v13  ;;  %v10447_v18 = vpack.c.bf16 %v6498_v14, %v6498_v14  ;;  %v5372_v63 = vmul.f32 %v11964_v21, %v3724_v15  ;;  %v3726_v20 = vpop.f32.mrb[101].mxu0  ;;  %v4622_v22 = vpop.f32.mrb[101].mxu1 }
 0x1cc   : > { %v5596_v19 = vmul.f32 %v11964_v21, %v4620_v16  ;;  %v3727_v25 = vpop.f32.mrb[102].mxu0  ;;  %v4623_v26 = vpop.f32.mrb[102].mxu1  ;;  %v11008_v20 = vld [vmem:[%s11454_s5 + $0x374] ss:$8 sps:$4 sm:$0xff]  }
 0x1cd   : > { %8515 = vst.msk [vmem:[%s11666_s28 + $0xc4] sm:$0xf] %vm8465_vm3, %v10223_v17  ;;  %8739 = vst.msk [vmem:[%s11666_s28 + $0x444] sm:$0xf] %vm8465_vm3, %v10447_v18  ;;  %v5827_v29 = vadd.f32 %v11978_v61, %v5372_v63  ;;  %v5373_v31 = vmul.f32 %v11964_v21, %v3727_v25  ;;  %v5597_v32 = vmul.f32 %v11964_v21, %v4623_v26  ;;  %v3729_v33 = vpop.f32.mrb[103].mxu0  ;;  %v4625_v34 = vpop.f32.mrb[103].mxu1 }
 0x1ce   : > { %v6051_v30 = vadd.f32 %v11978_v61, %v5596_v19  ;;  %v11006_v17 = vld [vmem:[%s11454_s5 + $0x360] ss:$8 sps:$4 sm:$0xff]   ;;  %v11010_v22 = vld [vmem:[%s11454_s5 + $0xa74] ss:$8 sps:$4 sm:$0xff]  }
 0x1cf   : > { %v6275_v35 = vmax.f32 %v5827_v29, 0.0  ;;  %v5828_v37 = vadd.f32 %v11978_v61, %v5373_v31  ;;  %v6052_v38 = vadd.f32 %v11978_v61, %v5597_v32  ;;  %3939 = vmatmul.mubr.bf16.gmra.mrb[208].mxu0 %v10994_v23  ;;  %4835 = vmatmul.mubr.bf16.gmra.mrb[208].mxu1 %v10995_v24  ;;  %v11007_v18 = vld [vmem:[%s11454_s5 + $0xa60] ss:$8 sps:$4 sm:$0xff]  }
 0x1d0   : > { %v6499_v36 = vmax.f32 %v6051_v30, 0.0  ;;  %9550 = vmatprep.mubr.msk.bf16.mxu0 %vm2810_vm0, %v10996_v27  ;;  %9662 = vmatprep.mubr.msk.bf16.mxu1 %vm2810_vm0, %v10998_v28 }
 0x1d1   : > { %v10224_v39 = vpack.c.bf16 %v6275_v35, %v6275_v35  ;;  %v6276_v41 = vmax.f32 %v5828_v37, 0.0  ;;  %v6500_v42 = vmax.f32 %v6052_v38, 0.0 }
 0x1d2   : > { %v10448_v40 = vpack.c.bf16 %v6499_v36, %v6499_v36  ;;  %v3732_v43 = vpop.f32.mrb[104].mxu0  ;;  %v4628_v44 = vpop.f32.mrb[104].mxu1 }
 0x1d3   : > { %8516 = vst.msk [vmem:[%s11666_s28 + $0xc8] sm:$0xf] %vm8465_vm3, %v10224_v39  ;;  %v10225_v45 = vpack.c.bf16 %v6276_v41, %v6276_v41  ;;  %v10449_v46 = vpack.c.bf16 %v6500_v42, %v6500_v42  ;;  %v5374_v47 = vmul.f32 %v11964_v21, %v3732_v43  ;;  %v5598_v48 = vmul.f32 %v11964_v21, %v4628_v44  ;;  %v3734_v49 = vpop.f32.mrb[105].mxu0  ;;  %v4630_v50 = vpop.f32.mrb[105].mxu1 }
 0x1d4   : > { %8740 = vst.msk [vmem:[%s11666_s28 + $0x448] sm:$0xf] %vm8465_vm3, %v10448_v40  ;;  %v3735_v53 = vpop.f32.mrb[106].mxu0  ;;  %v4631_v54 = vpop.f32.mrb[106].mxu1  ;;  %v11014_v49 = vld [vmem:[%s11454_s5 + $0x384] ss:$8 sps:$4 sm:$0xff]  }
 0x1d5   : > { %8517 = vst.msk [vmem:[%s11666_s28 + $0xcc] sm:$0xf] %vm8465_vm3, %v10225_v45  ;;  %8741 = vst.msk [vmem:[%s11666_s28 + $0x44c] sm:$0xf] %vm8465_vm3, %v10449_v46  ;;  %v5829_v57 = vadd.f32 %v11978_v61, %v5374_v47  ;;  %v6053_v58 = vadd.f32 %v11978_v61, %v5598_v48  ;;  %v5375_v59 = vmul.f32 %v11964_v21, %v3735_v53  ;;  %v3737_v62 = vpop.f32.mrb[107].mxu0  ;;  %v4633_v0 = vpop.f32.mrb[107].mxu1 }
 0x1d6   : > { %v5599_v60 = vmul.f32 %v11964_v21, %v4631_v54  ;;  %v11012_v45 = vld [vmem:[%s11454_s5 + $0x370] ss:$8 sps:$4 sm:$0xff]   ;;  %v11016_v50 = vld [vmem:[%s11454_s5 + $0xa84] ss:$8 sps:$4 sm:$0xff]  }
 0x1d7   : > { %v6277_v1 = vmax.f32 %v5829_v57, 0.0  ;;  %v6501_v2 = vmax.f32 %v6053_v58, 0.0  ;;  %v5830_v3 = vadd.f32 %v11978_v61, %v5375_v59  ;;  %3947 = vmatmul.mubr.bf16.gmra.mrb[212].mxu0 %v11000_v51  ;;  %4843 = vmatmul.mubr.bf16.gmra.mrb[212].mxu1 %v11001_v52  ;;  %v11013_v46 = vld [vmem:[%s11454_s5 + $0xa70] ss:$8 sps:$4 sm:$0xff]   ;;  %v12300_v59 = vld [vmem:[%s14036_s3] ss:$0 sm:$0xff] }
 0x1d8   : > { %v6054_v4 = vadd.f32 %v11978_v61, %v5599_v60  ;;  %9551 = vmatprep.mubr.msk.bf16.mxu0 %vm2810_vm0, %v11002_v55  ;;  %9663 = vmatprep.mubr.msk.bf16.mxu1 %vm2810_vm0, %v11004_v56 }
 0x1d9   : > { %v10226_v5 = vpack.c.bf16 %v6277_v1, %v6277_v1  ;;  %v10450_v6 = vpack.c.bf16 %v6501_v2, %v6501_v2  ;;  %v6278_v7 = vmax.f32 %v5830_v3, 0.0 }
 0x1da   : > { %v6502_v8 = vmax.f32 %v6054_v4, 0.0  ;;  %v3740_v9 = vpop.f32.mrb[108].mxu0  ;;  %v4636_v10 = vpop.f32.mrb[108].mxu1 }
 0x1db   : > { %8518 = vst.msk [vmem:[%s11666_s28 + $0xd0] sm:$0xf] %vm8465_vm3, %v10226_v5  ;;  %8742 = vst.msk [vmem:[%s11666_s28 + $0x450] sm:$0xf] %vm8465_vm3, %v10450_v6  ;;  %v10227_v11 = vpack.c.bf16 %v6278_v7, %v6278_v7  ;;  %v5376_v13 = vmul.f32 %v11964_v21, %v3740_v9  ;;  %v5600_v14 = vmul.f32 %v11964_v21, %v4636_v10  ;;  %v3742_v15 = vpop.f32.mrb[109].mxu0  ;;  %v4638_v16 = vpop.f32.mrb[109].mxu1 }
 0x1dc   : > { %v10451_v12 = vpack.c.bf16 %v6502_v8, %v6502_v8  ;;  %v3743_v63 = vpop.f32.mrb[110].mxu0  ;;  %v4639_v19 = vpop.f32.mrb[110].mxu1  ;;  %v11020_v15 = vld [vmem:[%s11454_s5 + $0x394] ss:$8 sps:$4 sm:$0xff]  }
 0x1dd   : > { %8519 = vst.msk [vmem:[%s11666_s28 + $0xd4] sm:$0xf] %vm8465_vm3, %v10227_v11  ;;  %v5831_v23 = vadd.f32 %v11978_v61, %v5376_v13  ;;  %v6055_v24 = vadd.f32 %v11978_v61, %v5600_v14  ;;  %v5377_v25 = vmul.f32 %v11964_v21, %v3743_v63  ;;  %v5601_v26 = vmul.f32 %v11964_v21, %v4639_v19  ;;  %v3745_v27 = vpop.f32.mrb[111].mxu0  ;;  %v4641_v28 = vpop.f32.mrb[111].mxu1  ;;  %v11018_v11 = vld [vmem:[%s11454_s5 + $0x380] ss:$8 sps:$4 sm:$0xff]  }
 0x1de   : > { %8743 = vst.msk [vmem:[%s11666_s28 + $0x454] sm:$0xf] %vm8465_vm3, %v10451_v12  ;;  %v11019_v12 = vld [vmem:[%s11454_s5 + $0xa80] ss:$8 sps:$4 sm:$0xff]   ;;  %v11022_v16 = vld [vmem:[%s11454_s5 + $0xa94] ss:$8 sps:$4 sm:$0xff]  }
 0x1df   : > { %v6279_v29 = vmax.f32 %v5831_v23, 0.0  ;;  %v6503_v30 = vmax.f32 %v6055_v24, 0.0  ;;  %v5832_v31 = vadd.f32 %v11978_v61, %v5377_v25  ;;  %v6056_v32 = vadd.f32 %v11978_v61, %v5601_v26  ;;  %3955 = vmatmul.mubr.bf16.gmra.mrb[216].mxu0 %v11006_v17  ;;  %4851 = vmatmul.mubr.bf16.gmra.mrb[216].mxu1 %v11007_v18 }
 0x1e0   : > { %9552 = vmatprep.mubr.msk.bf16.mxu0 %vm2810_vm0, %v11008_v20  ;;  %9664 = vmatprep.mubr.msk.bf16.mxu1 %vm2810_vm0, %v11010_v22 }
 0x1e1   : > { %v10228_v33 = vpack.c.bf16 %v6279_v29, %v6279_v29  ;;  %v10452_v34 = vpack.c.bf16 %v6503_v30, %v6503_v30  ;;  %v6280_v35 = vmax.f32 %v5832_v31, 0.0  ;;  %v6504_v36 = vmax.f32 %v6056_v32, 0.0 }
 0x1e2   : > { %v3748_v37 = vpop.f32.mrb[112].mxu0  ;;  %v4644_v38 = vpop.f32.mrb[112].mxu1 }
 0x1e3   : > { %8520 = vst.msk [vmem:[%s11666_s28 + $0xd8] sm:$0xf] %vm8465_vm3, %v10228_v33  ;;  %8744 = vst.msk [vmem:[%s11666_s28 + $0x458] sm:$0xf] %vm8465_vm3, %v10452_v34  ;;  %v10229_v39 = vpack.c.bf16 %v6280_v35, %v6280_v35  ;;  %v10453_v40 = vpack.c.bf16 %v6504_v36, %v6504_v36  ;;  %v5378_v41 = vmul.f32 %v11964_v21, %v3748_v37  ;;  %v3750_v43 = vpop.f32.mrb[113].mxu0  ;;  %v4646_v44 = vpop.f32.mrb[113].mxu1 }
 0x1e4   : > { %v5602_v42 = vmul.f32 %v11964_v21, %v4644_v38  ;;  %v3751_v47 = vpop.f32.mrb[114].mxu0  ;;  %v4647_v48 = vpop.f32.mrb[114].mxu1  ;;  %v12293_v21 = vld [vmem:[%s14035_s2] ss:$0 sm:$0xff]  ;;  %v11026_v43 = vld [vmem:[%s11454_s5 + $0x3a4] ss:$8 sps:$4 sm:$0xff]  }
 0x1e5   : > { %8521 = vst.msk [vmem:[%s11666_s28 + $0xdc] sm:$0xf] %vm8465_vm3, %v10229_v39  ;;  %8745 = vst.msk [vmem:[%s11666_s28 + $0x45c] sm:$0xf] %vm8465_vm3, %v10453_v40  ;;  %v5833_v51 = vadd.f32 %v11978_v61, %v5378_v41  ;;  %v5379_v53 = vmul.f32 %v12293_v21, %v3751_v47  ;;  %v5603_v54 = vmul.f32 %v12293_v21, %v4647_v48  ;;  %v3753_v55 = vpop.f32.mrb[115].mxu0  ;;  %v4649_v56 = vpop.f32.mrb[115].mxu1 }
 0x1e6   : > { %v6057_v52 = vadd.f32 %v11978_v61, %v5602_v42  ;;  %v11024_v39 = vld [vmem:[%s11454_s5 + $0x390] ss:$8 sps:$4 sm:$0xff]   ;;  %v11028_v44 = vld [vmem:[%s11454_s5 + $0xaa4] ss:$8 sps:$4 sm:$0xff]  }
 0x1e7   : > { %v6281_v57 = vmax.f32 %v5833_v51, 0.0  ;;  %v5834_v61 = vadd.f32 %v12300_v59, %v5379_v53  ;;  %v6058_v60 = vadd.f32 %v12300_v59, %v5603_v54  ;;  %3963 = vmatmul.mubr.bf16.gmra.mrb[220].mxu0 %v11012_v45  ;;  %4859 = vmatmul.mubr.bf16.gmra.mrb[220].mxu1 %v11013_v46  ;;  %v11025_v40 = vld [vmem:[%s11454_s5 + $0xa90] ss:$8 sps:$4 sm:$0xff]  }
 0x1e8   : > { %v6505_v58 = vmax.f32 %v6057_v52, 0.0  ;;  %9553 = vmatprep.mubr.msk.bf16.mxu0 %vm2810_vm0, %v11014_v49  ;;  %9665 = vmatprep.mubr.msk.bf16.mxu1 %vm2810_vm0, %v11016_v50 }
 0x1e9   : > { %v10230_v62 = vpack.c.bf16 %v6281_v57, %v6281_v57  ;;  %v6282_v1 = vmax.f32 %v5834_v61, 0.0  ;;  %v6506_v2 = vmax.f32 %v6058_v60, 0.0 }
 0x1ea   : > { %v10454_v0 = vpack.c.bf16 %v6505_v58, %v6505_v58  ;;  %v3756_v3 = vpop.f32.mrb[116].mxu0  ;;  %v4652_v4 = vpop.f32.mrb[116].mxu1 }
 0x1eb   : > { %8522 = vst.msk [vmem:[%s11666_s28 + $0xe0] sm:$0xf] %vm8465_vm3, %v10230_v62  ;;  %v10231_v5 = vpack.c.bf16 %v6282_v1, %v6282_v1  ;;  %v10455_v6 = vpack.c.bf16 %v6506_v2, %v6506_v2  ;;  %v5380_v7 = vmul.f32 %v12293_v21, %v3756_v3  ;;  %v5604_v8 = vmul.f32 %v12293_v21, %v4652_v4  ;;  %v3758_v9 = vpop.f32.mrb[117].mxu0  ;;  %v4654_v10 = vpop.f32.mrb[117].mxu1 }
 0x1ec   : > { %8746 = vst.msk [vmem:[%s11666_s28 + $0x460] sm:$0xf] %vm8465_vm3, %v10454_v0  ;;  %v3759_v13 = vpop.f32.mrb[118].mxu0  ;;  %v4655_v14 = vpop.f32.mrb[118].mxu1  ;;  %v11032_v9 = vld [vmem:[%s11454_s5 + $0x3b4] ss:$8 sps:$4 sm:$0xff]  }
 0x1ed   : > { %8523 = vst.msk [vmem:[%s11666_s28 + $0xe4] sm:$0xf] %vm8465_vm3, %v10231_v5  ;;  %8747 = vst.msk [vmem:[%s11666_s28 + $0x464] sm:$0xf] %vm8465_vm3, %v10455_v6  ;;  %v5835_v17 = vadd.f32 %v12300_v59, %v5380_v7  ;;  %v6059_v18 = vadd.f32 %v12300_v59, %v5604_v8  ;;  %v5381_v63 = vmul.f32 %v12293_v21, %v3759_v13  ;;  %v3761_v20 = vpop.f32.mrb[119].mxu0  ;;  %v4657_v22 = vpop.f32.mrb[119].mxu1 }
 0x1ee   : > { %v5605_v19 = vmul.f32 %v12293_v21, %v4655_v14  ;;  %v11030_v5 = vld [vmem:[%s11454_s5 + $0x3a0] ss:$8 sps:$4 sm:$0xff]   ;;  %v11034_v10 = vld [vmem:[%s11454_s5 + $0xab4] ss:$8 sps:$4 sm:$0xff]  }
 0x1ef   : > { %v6283_v23 = vmax.f32 %v5835_v17, 0.0  ;;  %v6507_v24 = vmax.f32 %v6059_v18, 0.0  ;;  %v5836_v25 = vadd.f32 %v12300_v59, %v5381_v63  ;;  %3971 = vmatmul.mubr.bf16.gmra.mrb[224].mxu0 %v11018_v11  ;;  %4867 = vmatmul.mubr.bf16.gmra.mrb[224].mxu1 %v11019_v12  ;;  %v11031_v6 = vld [vmem:[%s11454_s5 + $0xaa0] ss:$8 sps:$4 sm:$0xff]  }
 0x1f0   : > { %v6060_v26 = vadd.f32 %v12300_v59, %v5605_v19  ;;  %9554 = vmatprep.mubr.msk.bf16.mxu0 %vm2810_vm0, %v11020_v15  ;;  %9666 = vmatprep.mubr.msk.bf16.mxu1 %vm2810_vm0, %v11022_v16 }
 0x1f1   : > { %v10232_v27 = vpack.c.bf16 %v6283_v23, %v6283_v23  ;;  %v10456_v28 = vpack.c.bf16 %v6507_v24, %v6507_v24  ;;  %v6284_v29 = vmax.f32 %v5836_v25, 0.0 }
 0x1f2   : > { %v6508_v30 = vmax.f32 %v6060_v26, 0.0  ;;  %v3764_v31 = vpop.f32.mrb[120].mxu0  ;;  %v4660_v32 = vpop.f32.mrb[120].mxu1 }
 0x1f3   : > { %8524 = vst.msk [vmem:[%s11666_s28 + $0xe8] sm:$0xf] %vm8465_vm3, %v10232_v27  ;;  %8748 = vst.msk [vmem:[%s11666_s28 + $0x468] sm:$0xf] %vm8465_vm3, %v10456_v28  ;;  %v10233_v33 = vpack.c.bf16 %v6284_v29, %v6284_v29  ;;  %v5382_v35 = vmul.f32 %v12293_v21, %v3764_v31  ;;  %v5606_v36 = vmul.f32 %v12293_v21, %v4660_v32  ;;  %v3766_v37 = vpop.f32.mrb[121].mxu0  ;;  %v4662_v38 = vpop.f32.mrb[121].mxu1 }
 0x1f4   : > { %v10457_v34 = vpack.c.bf16 %v6508_v30, %v6508_v30  ;;  %v3767_v41 = vpop.f32.mrb[122].mxu0  ;;  %v4663_v42 = vpop.f32.mrb[122].mxu1  ;;  %v11038_v37 = vld [vmem:[%s11454_s5 + $0x3c4] ss:$8 sps:$4 sm:$0xff]  }
 0x1f5   : > { %8525 = vst.msk [vmem:[%s11666_s28 + $0xec] sm:$0xf] %vm8465_vm3, %v10233_v33  ;;  %v5837_v45 = vadd.f32 %v12300_v59, %v5382_v35  ;;  %v6061_v46 = vadd.f32 %v12300_v59, %v5606_v36  ;;  %v5383_v47 = vmul.f32 %v12293_v21, %v3767_v41  ;;  %v5607_v48 = vmul.f32 %v12293_v21, %v4663_v42  ;;  %v3769_v49 = vpop.f32.mrb[123].mxu0  ;;  %v4665_v50 = vpop.f32.mrb[123].mxu1  ;;  %v11036_v33 = vld [vmem:[%s11454_s5 + $0x3b0] ss:$8 sps:$4 sm:$0xff]  }
 0x1f6   : > { %8749 = vst.msk [vmem:[%s11666_s28 + $0x46c] sm:$0xf] %vm8465_vm3, %v10457_v34  ;;  %v11037_v34 = vld [vmem:[%s11454_s5 + $0xab0] ss:$8 sps:$4 sm:$0xff]   ;;  %v11040_v38 = vld [vmem:[%s11454_s5 + $0xac4] ss:$8 sps:$4 sm:$0xff]  }
 0x1f7   : > { %v6285_v51 = vmax.f32 %v5837_v45, 0.0  ;;  %v6509_v52 = vmax.f32 %v6061_v46, 0.0  ;;  %v5838_v53 = vadd.f32 %v12300_v59, %v5383_v47  ;;  %v6062_v54 = vadd.f32 %v12300_v59, %v5607_v48  ;;  %3979 = vmatmul.mubr.bf16.gmra.mrb[228].mxu0 %v11024_v39  ;;  %4875 = vmatmul.mubr.bf16.gmra.mrb[228].mxu1 %v11025_v40 }
 0x1f8   : > { %9555 = vmatprep.mubr.msk.bf16.mxu0 %vm2810_vm0, %v11026_v43  ;;  %9667 = vmatprep.mubr.msk.bf16.mxu1 %vm2810_vm0, %v11028_v44 }
 0x1f9   : > { %v10234_v55 = vpack.c.bf16 %v6285_v51, %v6285_v51  ;;  %v10458_v56 = vpack.c.bf16 %v6509_v52, %v6509_v52  ;;  %v6286_v57 = vmax.f32 %v5838_v53, 0.0  ;;  %v6510_v58 = vmax.f32 %v6062_v54, 0.0 }
 0x1fa   : > { %v3772_v61 = vpop.f32.mrb[124].mxu0  ;;  %v4668_v60 = vpop.f32.mrb[124].mxu1 }
 0x1fb   : > { %8526 = vst.msk [vmem:[%s11666_s28 + $0xf0] sm:$0xf] %vm8465_vm3, %v10234_v55  ;;  %8750 = vst.msk [vmem:[%s11666_s28 + $0x470] sm:$0xf] %vm8465_vm3, %v10458_v56  ;;  %v10235_v62 = vpack.c.bf16 %v6286_v57, %v6286_v57  ;;  %v10459_v0 = vpack.c.bf16 %v6510_v58, %v6510_v58  ;;  %v5384_v1 = vmul.f32 %v12293_v21, %v3772_v61  ;;  %v3774_v3 = vpop.f32.mrb[125].mxu0  ;;  %v4670_v4 = vpop.f32.mrb[125].mxu1 }
 0x1fc   : > { %v5608_v2 = vmul.f32 %v12293_v21, %v4668_v60  ;;  %v3775_v7 = vpop.f32.mrb[126].mxu0  ;;  %v4671_v8 = vpop.f32.mrb[126].mxu1  ;;  %v11044_v3 = vld [vmem:[%s11454_s5 + $0x3d4] ss:$8 sps:$4 sm:$0xff]  }
 0x1fd   : > { %8527 = vst.msk [vmem:[%s11666_s28 + $0xf4] sm:$0xf] %vm8465_vm3, %v10235_v62  ;;  %8751 = vst.msk [vmem:[%s11666_s28 + $0x474] sm:$0xf] %vm8465_vm3, %v10459_v0  ;;  %v5839_v11 = vadd.f32 %v12300_v59, %v5384_v1  ;;  %v5385_v13 = vmul.f32 %v12293_v21, %v3775_v7  ;;  %v5609_v14 = vmul.f32 %v12293_v21, %v4671_v8  ;;  %v3777_v15 = vpop.f32.mrb[127].mxu0  ;;  %v4673_v16 = vpop.f32.mrb[127].mxu1 }
 0x1fe   : > { %v6063_v12 = vadd.f32 %v12300_v59, %v5608_v2  ;;  %v11042_v62 = vld [vmem:[%s11454_s5 + $0x3c0] ss:$8 sps:$4 sm:$0xff]   ;;  %v11046_v4 = vld [vmem:[%s11454_s5 + $0xad4] ss:$8 sps:$4 sm:$0xff]  }
 0x1ff   : > { %v6287_v17 = vmax.f32 %v5839_v11, 0.0  ;;  %v5840_v63 = vadd.f32 %v12300_v59, %v5385_v13  ;;  %v6064_v19 = vadd.f32 %v12300_v59, %v5609_v14  ;;  %3987 = vmatmul.mubr.bf16.gmra.mrb[232].mxu0 %v11030_v5  ;;  %4883 = vmatmul.mubr.bf16.gmra.mrb[232].mxu1 %v11031_v6  ;;  %v11043_v0 = vld [vmem:[%s11454_s5 + $0xac0] ss:$8 sps:$4 sm:$0xff]  }
 0x200   : > { %v6511_v18 = vmax.f32 %v6063_v12, 0.0  ;;  %9556 = vmatprep.mubr.msk.bf16.mxu0 %vm2810_vm0, %v11032_v9  ;;  %9668 = vmatprep.mubr.msk.bf16.mxu1 %vm2810_vm0, %v11034_v10 }
 0x201   : > { %v10236_v20 = vpack.c.bf16 %v6287_v17, %v6287_v17  ;;  %v6288_v23 = vmax.f32 %v5840_v63, 0.0  ;;  %v6512_v24 = vmax.f32 %v6064_v19, 0.0 }
 0x202   : > { %v10460_v22 = vpack.c.bf16 %v6511_v18, %v6511_v18  ;;  %v3780_v25 = vpop.f32.mrb[128].mxu0  ;;  %v4676_v26 = vpop.f32.mrb[128].mxu1 }
 0x203   : > { %8528 = vst.msk [vmem:[%s11666_s28 + $0xf8] sm:$0xf] %vm8465_vm3, %v10236_v20  ;;  %v10237_v27 = vpack.c.bf16 %v6288_v23, %v6288_v23  ;;  %v10461_v28 = vpack.c.bf16 %v6512_v24, %v6512_v24  ;;  %v5386_v29 = vmul.f32 %v12293_v21, %v3780_v25  ;;  %v5610_v30 = vmul.f32 %v12293_v21, %v4676_v26  ;;  %v3782_v31 = vpop.f32.mrb[129].mxu0  ;;  %v4678_v32 = vpop.f32.mrb[129].mxu1 }
 0x204   : > { %8752 = vst.msk [vmem:[%s11666_s28 + $0x478] sm:$0xf] %vm8465_vm3, %v10460_v22  ;;  %v3783_v35 = vpop.f32.mrb[130].mxu0  ;;  %v4679_v36 = vpop.f32.mrb[130].mxu1  ;;  %v11050_v31 = vld [vmem:[%s11454_s5 + $0x3e4] ss:$8 sps:$4 sm:$0xff]  }
 0x205   : > { %8529 = vst.msk [vmem:[%s11666_s28 + $0xfc] sm:$0xf] %vm8465_vm3, %v10237_v27  ;;  %8753 = vst.msk [vmem:[%s11666_s28 + $0x47c] sm:$0xf] %vm8465_vm3, %v10461_v28  ;;  %v5841_v39 = vadd.f32 %v12300_v59, %v5386_v29  ;;  %v6065_v40 = vadd.f32 %v12300_v59, %v5610_v30  ;;  %v5387_v41 = vmul.f32 %v12293_v21, %v3783_v35  ;;  %v3785_v43 = vpop.f32.mrb[131].mxu0  ;;  %v4681_v44 = vpop.f32.mrb[131].mxu1 }
 0x206   : > { %v5611_v42 = vmul.f32 %v12293_v21, %v4679_v36  ;;  %v11048_v27 = vld [vmem:[%s11454_s5 + $0x3d0] ss:$8 sps:$4 sm:$0xff]   ;;  %v11052_v32 = vld [vmem:[%s11454_s5 + $0xae4] ss:$8 sps:$4 sm:$0xff]  }
 0x207   : > { %v6289_v45 = vmax.f32 %v5841_v39, 0.0  ;;  %v6513_v46 = vmax.f32 %v6065_v40, 0.0  ;;  %v5842_v47 = vadd.f32 %v12300_v59, %v5387_v41  ;;  %3995 = vmatmul.mubr.bf16.gmra.mrb[236].mxu0 %v11036_v33  ;;  %4891 = vmatmul.mubr.bf16.gmra.mrb[236].mxu1 %v11037_v34  ;;  %v11049_v28 = vld [vmem:[%s11454_s5 + $0xad0] ss:$8 sps:$4 sm:$0xff]  }
 0x208   : > { %v6066_v48 = vadd.f32 %v12300_v59, %v5611_v42  ;;  %9557 = vmatprep.mubr.msk.bf16.mxu0 %vm2810_vm0, %v11038_v37  ;;  %9669 = vmatprep.mubr.msk.bf16.mxu1 %vm2810_vm0, %v11040_v38 }
 0x209   : > { %v10238_v49 = vpack.c.bf16 %v6289_v45, %v6289_v45  ;;  %v10462_v50 = vpack.c.bf16 %v6513_v46, %v6513_v46  ;;  %v6290_v51 = vmax.f32 %v5842_v47, 0.0 }
 0x20a   : > { %v6514_v52 = vmax.f32 %v6066_v48, 0.0  ;;  %v3788_v53 = vpop.f32.mrb[132].mxu0  ;;  %v4684_v54 = vpop.f32.mrb[132].mxu1 }
 0x20b   : > { %8530 = vst.msk [vmem:[%s11666_s28 + $0x100] sm:$0xf] %vm8465_vm3, %v10238_v49  ;;  %8754 = vst.msk [vmem:[%s11666_s28 + $0x480] sm:$0xf] %vm8465_vm3, %v10462_v50  ;;  %v10239_v55 = vpack.c.bf16 %v6290_v51, %v6290_v51  ;;  %v5388_v57 = vmul.f32 %v12293_v21, %v3788_v53  ;;  %v5612_v58 = vmul.f32 %v12293_v21, %v4684_v54  ;;  %v3790_v61 = vpop.f32.mrb[133].mxu0  ;;  %v4686_v60 = vpop.f32.mrb[133].mxu1 }
 0x20c   : > { %v10463_v56 = vpack.c.bf16 %v6514_v52, %v6514_v52  ;;  %v3791_v1 = vpop.f32.mrb[134].mxu0  ;;  %v4687_v2 = vpop.f32.mrb[134].mxu1  ;;  %v11056_v61 = vld [vmem:[%s11454_s5 + $0x3f4] ss:$8 sps:$4 sm:$0xff]  }
 0x20d   : > { %8531 = vst.msk [vmem:[%s11666_s28 + $0x104] sm:$0xf] %vm8465_vm3, %v10239_v55  ;;  %v5843_v5 = vadd.f32 %v12300_v59, %v5388_v57  ;;  %v6067_v6 = vadd.f32 %v12300_v59, %v5612_v58  ;;  %v5389_v7 = vmul.f32 %v12293_v21, %v3791_v1  ;;  %v5613_v8 = vmul.f32 %v12293_v21, %v4687_v2  ;;  %v3793_v9 = vpop.f32.mrb[135].mxu0  ;;  %v4689_v10 = vpop.f32.mrb[135].mxu1  ;;  %v11054_v55 = vld [vmem:[%s11454_s5 + $0x3e0] ss:$8 sps:$4 sm:$0xff]  }
 0x20e   : > { %8755 = vst.msk [vmem:[%s11666_s28 + $0x484] sm:$0xf] %vm8465_vm3, %v10463_v56  ;;  %v11055_v56 = vld [vmem:[%s11454_s5 + $0xae0] ss:$8 sps:$4 sm:$0xff]   ;;  %v11058_v60 = vld [vmem:[%s11454_s5 + $0xaf4] ss:$8 sps:$4 sm:$0xff]  }
 0x20f   : > { %v6291_v11 = vmax.f32 %v5843_v5, 0.0  ;;  %v6515_v12 = vmax.f32 %v6067_v6, 0.0  ;;  %v5844_v13 = vadd.f32 %v12300_v59, %v5389_v7  ;;  %v6068_v14 = vadd.f32 %v12300_v59, %v5613_v8  ;;  %4003 = vmatmul.mubr.bf16.gmra.mrb[240].mxu0 %v11042_v62  ;;  %4899 = vmatmul.mubr.bf16.gmra.mrb[240].mxu1 %v11043_v0 }
 0x210   : > { %9558 = vmatprep.mubr.msk.bf16.mxu0 %vm2810_vm0, %v11044_v3  ;;  %9670 = vmatprep.mubr.msk.bf16.mxu1 %vm2810_vm0, %v11046_v4 }
 0x211   : > { %v10240_v15 = vpack.c.bf16 %v6291_v11, %v6291_v11  ;;  %v10464_v16 = vpack.c.bf16 %v6515_v12, %v6515_v12  ;;  %v6292_v17 = vmax.f32 %v5844_v13, 0.0  ;;  %v6516_v18 = vmax.f32 %v6068_v14, 0.0 }
 0x212   : > { %v3796_v63 = vpop.f32.mrb[136].mxu0  ;;  %v4692_v19 = vpop.f32.mrb[136].mxu1 }
 0x213   : > { %8532 = vst.msk [vmem:[%s11666_s28 + $0x108] sm:$0xf] %vm8465_vm3, %v10240_v15  ;;  %8756 = vst.msk [vmem:[%s11666_s28 + $0x488] sm:$0xf] %vm8465_vm3, %v10464_v16  ;;  %v10241_v20 = vpack.c.bf16 %v6292_v17, %v6292_v17  ;;  %v10465_v22 = vpack.c.bf16 %v6516_v18, %v6516_v18  ;;  %v5390_v23 = vmul.f32 %v12293_v21, %v3796_v63  ;;  %v3798_v25 = vpop.f32.mrb[137].mxu0  ;;  %v4694_v26 = vpop.f32.mrb[137].mxu1 }
 0x214   : > { %v5614_v24 = vmul.f32 %v12293_v21, %v4692_v19  ;;  %v3799_v29 = vpop.f32.mrb[138].mxu0  ;;  %v4695_v30 = vpop.f32.mrb[138].mxu1  ;;  %v11064_v25 = vld [vmem:[%s11454_s5 + $0x404] ss:$8 sps:$4 sm:$0xff]  }
 0x215   : > { %8533 = vst.msk [vmem:[%s11666_s28 + $0x10c] sm:$0xf] %vm8465_vm3, %v10241_v20  ;;  %8757 = vst.msk [vmem:[%s11666_s28 + $0x48c] sm:$0xf] %vm8465_vm3, %v10465_v22  ;;  %v5845_v33 = vadd.f32 %v12300_v59, %v5390_v23  ;;  %v5391_v35 = vmul.f32 %v12293_v21, %v3799_v29  ;;  %v5615_v36 = vmul.f32 %v12293_v21, %v4695_v30  ;;  %v3801_v37 = vpop.f32.mrb[139].mxu0  ;;  %v4697_v38 = vpop.f32.mrb[139].mxu1 }
 0x216   : > { %v6069_v34 = vadd.f32 %v12300_v59, %v5614_v24  ;;  %v11060_v20 = vld [vmem:[%s11454_s5 + $0x3f0] ss:$8 sps:$4 sm:$0xff]   ;;  %v11067_v26 = vld [vmem:[%s11454_s5 + $0xb04] ss:$8 sps:$4 sm:$0xff]  }
 0x217   : > { %v6293_v39 = vmax.f32 %v5845_v33, 0.0  ;;  %v5846_v41 = vadd.f32 %v12300_v59, %v5391_v35  ;;  %v6070_v42 = vadd.f32 %v12300_v59, %v5615_v36  ;;  %4011 = vmatmul.mubr.bf16.gmra.mrb[244].mxu0 %v11048_v27  ;;  %4907 = vmatmul.mubr.bf16.gmra.mrb[244].mxu1 %v11049_v28  ;;  %v11061_v22 = vld [vmem:[%s11454_s5 + $0xaf0] ss:$8 sps:$4 sm:$0xff]  }
 0x218   : > { %v6517_v40 = vmax.f32 %v6069_v34, 0.0  ;;  %9559 = vmatprep.mubr.msk.bf16.mxu0 %vm2810_vm0, %v11050_v31  ;;  %9671 = vmatprep.mubr.msk.bf16.mxu1 %vm2810_vm0, %v11052_v32 }
 0x219   : > { %v10242_v43 = vpack.c.bf16 %v6293_v39, %v6293_v39  ;;  %v6294_v45 = vmax.f32 %v5846_v41, 0.0  ;;  %v6518_v46 = vmax.f32 %v6070_v42, 0.0 }
 0x21a   : > { %v10466_v44 = vpack.c.bf16 %v6517_v40, %v6517_v40  ;;  %v3804_v47 = vpop.f32.mrb[140].mxu0  ;;  %v4700_v48 = vpop.f32.mrb[140].mxu1 }
 0x21b   : > { %8534 = vst.msk [vmem:[%s11666_s28 + $0x110] sm:$0xf] %vm8465_vm3, %v10242_v43  ;;  %v10243_v49 = vpack.c.bf16 %v6294_v45, %v6294_v45  ;;  %v10467_v50 = vpack.c.bf16 %v6518_v46, %v6518_v46  ;;  %v5392_v51 = vmul.f32 %v12293_v21, %v3804_v47  ;;  %v5616_v52 = vmul.f32 %v12293_v21, %v4700_v48  ;;  %v3806_v53 = vpop.f32.mrb[141].mxu0  ;;  %v4702_v54 = vpop.f32.mrb[141].mxu1 }
 0x21c   : > { %8758 = vst.msk [vmem:[%s11666_s28 + $0x490] sm:$0xf] %vm8465_vm3, %v10466_v44  ;;  %v3807_v57 = vpop.f32.mrb[142].mxu0  ;;  %v4703_v58 = vpop.f32.mrb[142].mxu1  ;;  %v11070_v53 = vld [vmem:[%s11454_s5 + $0x414] ss:$8 sps:$4 sm:$0xff]  }
 0x21d   : > { %8535 = vst.msk [vmem:[%s11666_s28 + $0x114] sm:$0xf] %vm8465_vm3, %v10243_v49  ;;  %8759 = vst.msk [vmem:[%s11666_s28 + $0x494] sm:$0xf] %vm8465_vm3, %v10467_v50  ;;  %v5847_v62 = vadd.f32 %v12300_v59, %v5392_v51  ;;  %v6071_v0 = vadd.f32 %v12300_v59, %v5616_v52  ;;  %v5393_v1 = vmul.f32 %v12293_v21, %v3807_v57  ;;  %v3809_v3 = vpop.f32.mrb[143].mxu0  ;;  %v4705_v4 = vpop.f32.mrb[143].mxu1 }
 0x21e   : > { %v5617_v2 = vmul.f32 %v12293_v21, %v4703_v58  ;;  %v11062_v49 = vld [vmem:[%s11454_s5 + $0x400] ss:$8 sps:$4 sm:$0xff]   ;;  %v11073_v54 = vld [vmem:[%s11454_s5 + $0xb14] ss:$8 sps:$4 sm:$0xff]  }
 0x21f   : > { %v6295_v5 = vmax.f32 %v5847_v62, 0.0  ;;  %v6519_v6 = vmax.f32 %v6071_v0, 0.0  ;;  %v5848_v7 = vadd.f32 %v12300_v59, %v5393_v1  ;;  %4019 = vmatmul.mubr.bf16.gmra.mrb[248].mxu0 %v11054_v55  ;;  %4915 = vmatmul.mubr.bf16.gmra.mrb[248].mxu1 %v11055_v56  ;;  %v11065_v50 = vld [vmem:[%s11454_s5 + $0xb00] ss:$8 sps:$4 sm:$0xff]  }
 0x220   : > { %v6072_v8 = vadd.f32 %v12300_v59, %v5617_v2  ;;  %9560 = vmatprep.mubr.msk.bf16.mxu0 %vm2810_vm0, %v11056_v61  ;;  %9672 = vmatprep.mubr.msk.bf16.mxu1 %vm2810_vm0, %v11058_v60 }
 0x221   : > { %v10244_v9 = vpack.c.bf16 %v6295_v5, %v6295_v5  ;;  %v10468_v10 = vpack.c.bf16 %v6519_v6, %v6519_v6  ;;  %v6296_v11 = vmax.f32 %v5848_v7, 0.0 }
 0x222   : > { %v6520_v12 = vmax.f32 %v6072_v8, 0.0  ;;  %v3812_v13 = vpop.f32.mrb[144].mxu0  ;;  %v4708_v14 = vpop.f32.mrb[144].mxu1 }
 0x223   : > { %8536 = vst.msk [vmem:[%s11666_s28 + $0x118] sm:$0xf] %vm8465_vm3, %v10244_v9  ;;  %8760 = vst.msk [vmem:[%s11666_s28 + $0x498] sm:$0xf] %vm8465_vm3, %v10468_v10  ;;  %v10245_v15 = vpack.c.bf16 %v6296_v11, %v6296_v11  ;;  %v5394_v17 = vmul.f32 %v12293_v21, %v3812_v13  ;;  %v5618_v18 = vmul.f32 %v12293_v21, %v4708_v14  ;;  %v3814_v63 = vpop.f32.mrb[145].mxu0  ;;  %v4710_v19 = vpop.f32.mrb[145].mxu1 }
 0x224   : > { %v10469_v16 = vpack.c.bf16 %v6520_v12, %v6520_v12  ;;  %v3815_v23 = vpop.f32.mrb[146].mxu0  ;;  %v4711_v24 = vpop.f32.mrb[146].mxu1  ;;  %v11076_v63 = vld [vmem:[%s11454_s5 + $0x424] ss:$8 sps:$4 sm:$0xff]  }
 0x225   : > { %8537 = vst.msk [vmem:[%s11666_s28 + $0x11c] sm:$0xf] %vm8465_vm3, %v10245_v15  ;;  %v5849_v27 = vadd.f32 %v12300_v59, %v5394_v17  ;;  %v6073_v28 = vadd.f32 %v12300_v59, %v5618_v18  ;;  %v5395_v29 = vmul.f32 %v12293_v21, %v3815_v23  ;;  %v5619_v30 = vmul.f32 %v12293_v21, %v4711_v24  ;;  %v3817_v31 = vpop.f32.mrb[147].mxu0  ;;  %v4713_v32 = vpop.f32.mrb[147].mxu1  ;;  %v11068_v15 = vld [vmem:[%s11454_s5 + $0x410] ss:$8 sps:$4 sm:$0xff]  }
 0x226   : > { %8761 = vst.msk [vmem:[%s11666_s28 + $0x49c] sm:$0xf] %vm8465_vm3, %v10469_v16  ;;  %v11071_v16 = vld [vmem:[%s11454_s5 + $0xb10] ss:$8 sps:$4 sm:$0xff]   ;;  %v11079_v19 = vld [vmem:[%s11454_s5 + $0xb24] ss:$8 sps:$4 sm:$0xff]  }
 0x227   : > { %v6297_v33 = vmax.f32 %v5849_v27, 0.0  ;;  %v6521_v34 = vmax.f32 %v6073_v28, 0.0  ;;  %v5850_v35 = vadd.f32 %v12300_v59, %v5395_v29  ;;  %v6074_v36 = vadd.f32 %v12300_v59, %v5619_v30  ;;  %4027 = vmatmul.mubr.bf16.gmra.mrb[252].mxu0 %v11060_v20  ;;  %4923 = vmatmul.mubr.bf16.gmra.mrb[252].mxu1 %v11061_v22 }
 0x228   : > { %9561 = vmatprep.mubr.msk.bf16.mxu0 %vm2810_vm0, %v11064_v25  ;;  %9673 = vmatprep.mubr.msk.bf16.mxu1 %vm2810_vm0, %v11067_v26 }
 0x229   : > { %v10246_v37 = vpack.c.bf16 %v6297_v33, %v6297_v33  ;;  %v10470_v38 = vpack.c.bf16 %v6521_v34, %v6521_v34  ;;  %v6298_v39 = vmax.f32 %v5850_v35, 0.0  ;;  %v6522_v40 = vmax.f32 %v6074_v36, 0.0 }
 0x22a   : > { %v3820_v41 = vpop.f32.mrb[148].mxu0  ;;  %v4716_v42 = vpop.f32.mrb[148].mxu1 }
 0x22b   : > { %8538 = vst.msk [vmem:[%s11666_s28 + $0x120] sm:$0xf] %vm8465_vm3, %v10246_v37  ;;  %8762 = vst.msk [vmem:[%s11666_s28 + $0x4a0] sm:$0xf] %vm8465_vm3, %v10470_v38  ;;  %v10247_v43 = vpack.c.bf16 %v6298_v39, %v6298_v39  ;;  %v10471_v44 = vpack.c.bf16 %v6522_v40, %v6522_v40  ;;  %v5396_v45 = vmul.f32 %v12293_v21, %v3820_v41  ;;  %v3822_v47 = vpop.f32.mrb[149].mxu0  ;;  %v4718_v48 = vpop.f32.mrb[149].mxu1 }
 0x22c   : > { %v5620_v46 = vmul.f32 %v12293_v21, %v4716_v42  ;;  %v3823_v51 = vpop.f32.mrb[150].mxu0  ;;  %v4719_v52 = vpop.f32.mrb[150].mxu1  ;;  %v11082_v47 = vld [vmem:[%s11454_s5 + $0x434] ss:$8 sps:$4 sm:$0xff]  }
 0x22d   : > { %8539 = vst.msk [vmem:[%s11666_s28 + $0x124] sm:$0xf] %vm8465_vm3, %v10247_v43  ;;  %8763 = vst.msk [vmem:[%s11666_s28 + $0x4a4] sm:$0xf] %vm8465_vm3, %v10471_v44  ;;  %v5851_v55 = vadd.f32 %v12300_v59, %v5396_v45  ;;  %v5397_v57 = vmul.f32 %v12293_v21, %v3823_v51  ;;  %v5621_v58 = vmul.f32 %v12293_v21, %v4719_v52  ;;  %v3825_v61 = vpop.f32.mrb[151].mxu0  ;;  %v4721_v60 = vpop.f32.mrb[151].mxu1 }
 0x22e   : > { %v6075_v56 = vadd.f32 %v12300_v59, %v5620_v46  ;;  %v11074_v43 = vld [vmem:[%s11454_s5 + $0x420] ss:$8 sps:$4 sm:$0xff]   ;;  %v11085_v48 = vld [vmem:[%s11454_s5 + $0xb34] ss:$8 sps:$4 sm:$0xff]  }
 0x22f   : > { %v6299_v62 = vmax.f32 %v5851_v55, 0.0  ;;  %v5852_v1 = vadd.f32 %v12300_v59, %v5397_v57  ;;  %v6076_v2 = vadd.f32 %v12300_v59, %v5621_v58  ;;  %4035 = vmatmul.mubr.bf16.gmra.mrb[0].mxu0 %v11062_v49  ;;  %4931 = vmatmul.mubr.bf16.gmra.mrb[0].mxu1 %v11065_v50  ;;  %v11077_v44 = vld [vmem:[%s11454_s5 + $0xb20] ss:$8 sps:$4 sm:$0xff]  }
 0x230   : > { %v6523_v0 = vmax.f32 %v6075_v56, 0.0  ;;  %9562 = vmatprep.mubr.msk.bf16.mxu0 %vm2810_vm0, %v11070_v53  ;;  %9674 = vmatprep.mubr.msk.bf16.mxu1 %vm2810_vm0, %v11073_v54 }
 0x231   : > { %v10248_v3 = vpack.c.bf16 %v6299_v62, %v6299_v62  ;;  %v6300_v5 = vmax.f32 %v5852_v1, 0.0  ;;  %v6524_v6 = vmax.f32 %v6076_v2, 0.0 }
 0x232   : > { %v10472_v4 = vpack.c.bf16 %v6523_v0, %v6523_v0  ;;  %v3828_v7 = vpop.f32.mrb[152].mxu0  ;;  %v4724_v8 = vpop.f32.mrb[152].mxu1 }
 0x233   : > { %8540 = vst.msk [vmem:[%s11666_s28 + $0x128] sm:$0xf] %vm8465_vm3, %v10248_v3  ;;  %v10249_v9 = vpack.c.bf16 %v6300_v5, %v6300_v5  ;;  %v10473_v10 = vpack.c.bf16 %v6524_v6, %v6524_v6  ;;  %v5398_v11 = vmul.f32 %v12293_v21, %v3828_v7  ;;  %v5622_v12 = vmul.f32 %v12293_v21, %v4724_v8  ;;  %v3830_v13 = vpop.f32.mrb[153].mxu0  ;;  %v4726_v14 = vpop.f32.mrb[153].mxu1 }
 0x234   : > { %8764 = vst.msk [vmem:[%s11666_s28 + $0x4a8] sm:$0xf] %vm8465_vm3, %v10472_v4  ;;  %v3831_v17 = vpop.f32.mrb[154].mxu0  ;;  %v4727_v18 = vpop.f32.mrb[154].mxu1  ;;  %v11088_v13 = vld [vmem:[%s11454_s5 + $0x444] ss:$8 sps:$4 sm:$0xff]  }
 0x235   : > { %8541 = vst.msk [vmem:[%s11666_s28 + $0x12c] sm:$0xf] %vm8465_vm3, %v10249_v9  ;;  %8765 = vst.msk [vmem:[%s11666_s28 + $0x4ac] sm:$0xf] %vm8465_vm3, %v10473_v10  ;;  %v5853_v20 = vadd.f32 %v12300_v59, %v5398_v11  ;;  %v6077_v22 = vadd.f32 %v12300_v59, %v5622_v12  ;;  %v5399_v23 = vmul.f32 %v12293_v21, %v3831_v17  ;;  %v3833_v25 = vpop.f32.mrb[155].mxu0  ;;  %v4729_v26 = vpop.f32.mrb[155].mxu1 }
 0x236   : > { %v5623_v24 = vmul.f32 %v12293_v21, %v4727_v18  ;;  %v11080_v9 = vld [vmem:[%s11454_s5 + $0x430] ss:$8 sps:$4 sm:$0xff]   ;;  %v11091_v14 = vld [vmem:[%s11454_s5 + $0xb44] ss:$8 sps:$4 sm:$0xff]  }
 0x237   : > { %v6301_v27 = vmax.f32 %v5853_v20, 0.0  ;;  %v6525_v28 = vmax.f32 %v6077_v22, 0.0  ;;  %v5854_v29 = vadd.f32 %v12300_v59, %v5399_v23  ;;  %4043 = vmatmul.mubr.bf16.gmra.mrb[4].mxu0 %v11068_v15  ;;  %4939 = vmatmul.mubr.bf16.gmra.mrb[4].mxu1 %v11071_v16  ;;  %v11083_v10 = vld [vmem:[%s11454_s5 + $0xb30] ss:$8 sps:$4 sm:$0xff]  }
 0x238   : > { %v6078_v30 = vadd.f32 %v12300_v59, %v5623_v24  ;;  %9563 = vmatprep.mubr.msk.bf16.mxu0 %vm2810_vm0, %v11076_v63  ;;  %9675 = vmatprep.mubr.msk.bf16.mxu1 %vm2810_vm0, %v11079_v19 }
 0x239   : > { %v10250_v31 = vpack.c.bf16 %v6301_v27, %v6301_v27  ;;  %v10474_v32 = vpack.c.bf16 %v6525_v28, %v6525_v28  ;;  %v6302_v33 = vmax.f32 %v5854_v29, 0.0 }
 0x23a   : > { %v6526_v34 = vmax.f32 %v6078_v30, 0.0  ;;  %v3836_v35 = vpop.f32.mrb[156].mxu0  ;;  %v4732_v36 = vpop.f32.mrb[156].mxu1 }
 0x23b   : > { %8542 = vst.msk [vmem:[%s11666_s28 + $0x130] sm:$0xf] %vm8465_vm3, %v10250_v31  ;;  %8766 = vst.msk [vmem:[%s11666_s28 + $0x4b0] sm:$0xf] %vm8465_vm3, %v10474_v32  ;;  %v10251_v37 = vpack.c.bf16 %v6302_v33, %v6302_v33  ;;  %v5400_v39 = vmul.f32 %v12293_v21, %v3836_v35  ;;  %v5624_v40 = vmul.f32 %v12293_v21, %v4732_v36  ;;  %v3838_v41 = vpop.f32.mrb[157].mxu0  ;;  %v4734_v42 = vpop.f32.mrb[157].mxu1 }
 0x23c   : > { %v10475_v38 = vpack.c.bf16 %v6526_v34, %v6526_v34  ;;  %v3839_v45 = vpop.f32.mrb[158].mxu0  ;;  %v4735_v46 = vpop.f32.mrb[158].mxu1  ;;  %v11094_v41 = vld [vmem:[%s11454_s5 + $0x454] ss:$8 sps:$4 sm:$0xff]  }
 0x23d   : > { %8543 = vst.msk [vmem:[%s11666_s28 + $0x134] sm:$0xf] %vm8465_vm3, %v10251_v37  ;;  %v5855_v49 = vadd.f32 %v12300_v59, %v5400_v39  ;;  %v6079_v50 = vadd.f32 %v12300_v59, %v5624_v40  ;;  %v5401_v51 = vmul.f32 %v12293_v21, %v3839_v45  ;;  %v5625_v52 = vmul.f32 %v12293_v21, %v4735_v46  ;;  %v3841_v53 = vpop.f32.mrb[159].mxu0  ;;  %v4737_v54 = vpop.f32.mrb[159].mxu1  ;;  %v11086_v37 = vld [vmem:[%s11454_s5 + $0x440] ss:$8 sps:$4 sm:$0xff]  }
 0x23e   : > { %8767 = vst.msk [vmem:[%s11666_s28 + $0x4b4] sm:$0xf] %vm8465_vm3, %v10475_v38  ;;  %v11089_v38 = vld [vmem:[%s11454_s5 + $0xb40] ss:$8 sps:$4 sm:$0xff]   ;;  %v11097_v42 = vld [vmem:[%s11454_s5 + $0xb54] ss:$8 sps:$4 sm:$0xff]  }
 0x23f   : > { %v6303_v55 = vmax.f32 %v5855_v49, 0.0  ;;  %v6527_v56 = vmax.f32 %v6079_v50, 0.0  ;;  %v5856_v57 = vadd.f32 %v12300_v59, %v5401_v51  ;;  %v6080_v58 = vadd.f32 %v12300_v59, %v5625_v52  ;;  %4051 = vmatmul.mubr.bf16.gmra.mrb[8].mxu0 %v11074_v43  ;;  %4947 = vmatmul.mubr.bf16.gmra.mrb[8].mxu1 %v11077_v44 }
 0x240   : > { %9564 = vmatprep.mubr.msk.bf16.mxu0 %vm2810_vm0, %v11082_v47  ;;  %9676 = vmatprep.mubr.msk.bf16.mxu1 %vm2810_vm0, %v11085_v48 }
 0x241   : > { %v10252_v61 = vpack.c.bf16 %v6303_v55, %v6303_v55  ;;  %v10476_v60 = vpack.c.bf16 %v6527_v56, %v6527_v56  ;;  %v6304_v62 = vmax.f32 %v5856_v57, 0.0  ;;  %v6528_v0 = vmax.f32 %v6080_v58, 0.0 }
 0x242   : > { %v3844_v1 = vpop.f32.mrb[160].mxu0  ;;  %v4740_v2 = vpop.f32.mrb[160].mxu1 }
 0x243   : > { %8544 = vst.msk [vmem:[%s11666_s28 + $0x138] sm:$0xf] %vm8465_vm3, %v10252_v61  ;;  %8768 = vst.msk [vmem:[%s11666_s28 + $0x4b8] sm:$0xf] %vm8465_vm3, %v10476_v60  ;;  %v10253_v3 = vpack.c.bf16 %v6304_v62, %v6304_v62  ;;  %v10477_v4 = vpack.c.bf16 %v6528_v0, %v6528_v0  ;;  %v5402_v5 = vmul.f32 %v12293_v21, %v3844_v1  ;;  %v3846_v7 = vpop.f32.mrb[161].mxu0  ;;  %v4742_v8 = vpop.f32.mrb[161].mxu1 }
 0x244   : > { %v5626_v6 = vmul.f32 %v12293_v21, %v4740_v2  ;;  %v3847_v11 = vpop.f32.mrb[162].mxu0  ;;  %v4743_v12 = vpop.f32.mrb[162].mxu1  ;;  %v11100_v7 = vld [vmem:[%s11454_s5 + $0x464] ss:$8 sps:$4 sm:$0xff]  }
 0x245   : > { %8545 = vst.msk [vmem:[%s11666_s28 + $0x13c] sm:$0xf] %vm8465_vm3, %v10253_v3  ;;  %8769 = vst.msk [vmem:[%s11666_s28 + $0x4bc] sm:$0xf] %vm8465_vm3, %v10477_v4  ;;  %v5857_v15 = vadd.f32 %v12300_v59, %v5402_v5  ;;  %v5403_v17 = vmul.f32 %v12293_v21, %v3847_v11  ;;  %v5627_v18 = vmul.f32 %v12293_v21, %v4743_v12  ;;  %v3849_v63 = vpop.f32.mrb[163].mxu0  ;;  %v4745_v19 = vpop.f32.mrb[163].mxu1 }
 0x246   : > { %v6081_v16 = vadd.f32 %v12300_v59, %v5626_v6  ;;  %v11092_v3 = vld [vmem:[%s11454_s5 + $0x450] ss:$8 sps:$4 sm:$0xff]   ;;  %v11103_v8 = vld [vmem:[%s11454_s5 + $0xb64] ss:$8 sps:$4 sm:$0xff]  }
 0x247   : > { %v6305_v20 = vmax.f32 %v5857_v15, 0.0  ;;  %v5858_v23 = vadd.f32 %v12300_v59, %v5403_v17  ;;  %v6082_v24 = vadd.f32 %v12300_v59, %v5627_v18  ;;  %4059 = vmatmul.mubr.bf16.gmra.mrb[12].mxu0 %v11080_v9  ;;  %4955 = vmatmul.mubr.bf16.gmra.mrb[12].mxu1 %v11083_v10  ;;  %v11095_v4 = vld [vmem:[%s11454_s5 + $0xb50] ss:$8 sps:$4 sm:$0xff]  }
 0x248   : > { %v6529_v22 = vmax.f32 %v6081_v16, 0.0  ;;  %9565 = vmatprep.mubr.msk.bf16.mxu0 %vm2810_vm0, %v11088_v13  ;;  %9677 = vmatprep.mubr.msk.bf16.mxu1 %vm2810_vm0, %v11091_v14 }
 0x249   : > { %v10254_v25 = vpack.c.bf16 %v6305_v20, %v6305_v20  ;;  %v6306_v27 = vmax.f32 %v5858_v23, 0.0  ;;  %v6530_v28 = vmax.f32 %v6082_v24, 0.0 }
 0x24a   : > { %v10478_v26 = vpack.c.bf16 %v6529_v22, %v6529_v22  ;;  %v3852_v29 = vpop.f32.mrb[164].mxu0  ;;  %v4748_v30 = vpop.f32.mrb[164].mxu1 }
 0x24b   : > { %8546 = vst.msk [vmem:[%s11666_s28 + $0x140] sm:$0xf] %vm8465_vm3, %v10254_v25  ;;  %v10255_v31 = vpack.c.bf16 %v6306_v27, %v6306_v27  ;;  %v10479_v32 = vpack.c.bf16 %v6530_v28, %v6530_v28  ;;  %v5404_v33 = vmul.f32 %v12293_v21, %v3852_v29  ;;  %v5628_v34 = vmul.f32 %v12293_v21, %v4748_v30  ;;  %v3854_v35 = vpop.f32.mrb[165].mxu0  ;;  %v4750_v36 = vpop.f32.mrb[165].mxu1  ;;  %v12621_v25 = vld [vmem:[%s14035_s2] ss:$0 sm:$0xff] }
 0x24c   : > { %8770 = vst.msk [vmem:[%s11666_s28 + $0x4c0] sm:$0xf] %vm8465_vm3, %v10478_v26  ;;  %v3855_v39 = vpop.f32.mrb[166].mxu0  ;;  %v4751_v40 = vpop.f32.mrb[166].mxu1  ;;  %v11098_v30 = vld [vmem:[%s11454_s5 + $0x460] ss:$8 sps:$4 sm:$0xff]  }
 0x24d   : > { %8547 = vst.msk [vmem:[%s11666_s28 + $0x144] sm:$0xf] %vm8465_vm3, %v10255_v31  ;;  %8771 = vst.msk [vmem:[%s11666_s28 + $0x4c4] sm:$0xf] %vm8465_vm3, %v10479_v32  ;;  %v5859_v43 = vadd.f32 %v12300_v59, %v5404_v33  ;;  %v6083_v44 = vadd.f32 %v12300_v59, %v5628_v34  ;;  %v5405_v45 = vmul.f32 %v12293_v21, %v3855_v39  ;;  %v3857_v47 = vpop.f32.mrb[167].mxu0  ;;  %v4753_v48 = vpop.f32.mrb[167].mxu1 }
 0x24e   : > { %v5629_v46 = vmul.f32 %v12293_v21, %v4751_v40  ;;  %v11101_v31 = vld [vmem:[%s11454_s5 + $0xb60] ss:$8 sps:$4 sm:$0xff]   ;;  %v11106_v34 = vld [vmem:[%s11454_s5 + $0x474] ss:$8 sps:$4 sm:$0xff]  }
 0x24f   : > { %v6307_v49 = vmax.f32 %v5859_v43, 0.0  ;;  %v6531_v50 = vmax.f32 %v6083_v44, 0.0  ;;  %v5860_v51 = vadd.f32 %v12300_v59, %v5405_v45  ;;  %4067 = vmatmul.mubr.bf16.gmra.mrb[16].mxu0 %v11086_v37  ;;  %4963 = vmatmul.mubr.bf16.gmra.mrb[16].mxu1 %v11089_v38  ;;  %v11109_v35 = vld [vmem:[%s11454_s5 + $0xb74] ss:$8 sps:$4 sm:$0xff]   ;;  %v12636_v36 = vld [vmem:[%s14036_s3] ss:$0 sm:$0xff] }
 0x250   : > { %v6084_v52 = vadd.f32 %v12300_v59, %v5629_v46  ;;  %9566 = vmatprep.mubr.msk.bf16.mxu0 %vm2810_vm0, %v11094_v41  ;;  %9678 = vmatprep.mubr.msk.bf16.mxu1 %vm2810_vm0, %v11097_v42 }
 0x251   : > { %v10256_v53 = vpack.c.bf16 %v6307_v49, %v6307_v49  ;;  %v10480_v54 = vpack.c.bf16 %v6531_v50, %v6531_v50  ;;  %v6308_v55 = vmax.f32 %v5860_v51, 0.0 }
 0x252   : > { %v6532_v56 = vmax.f32 %v6084_v52, 0.0  ;;  %v3860_v57 = vpop.f32.mrb[168].mxu0  ;;  %v4756_v58 = vpop.f32.mrb[168].mxu1 }
 0x253   : > { %8548 = vst.msk [vmem:[%s11666_s28 + $0x148] sm:$0xf] %vm8465_vm3, %v10256_v53  ;;  %8772 = vst.msk [vmem:[%s11666_s28 + $0x4c8] sm:$0xf] %vm8465_vm3, %v10480_v54  ;;  %v10257_v61 = vpack.c.bf16 %v6308_v55, %v6308_v55  ;;  %v5406_v62 = vmul.f32 %v12293_v21, %v3860_v57  ;;  %v5630_v0 = vmul.f32 %v12293_v21, %v4756_v58  ;;  %v3862_v1 = vpop.f32.mrb[169].mxu0  ;;  %v4758_v2 = vpop.f32.mrb[169].mxu1 }
 0x254   : > { %v10481_v60 = vpack.c.bf16 %v6532_v56, %v6532_v56  ;;  %v3863_v5 = vpop.f32.mrb[170].mxu0  ;;  %v4759_v6 = vpop.f32.mrb[170].mxu1  ;;  %v11112_v1 = vld [vmem:[%s11454_s5 + $0x484] ss:$8 sps:$4 sm:$0xff]  }
 0x255   : > { %8549 = vst.msk [vmem:[%s11666_s28 + $0x14c] sm:$0xf] %vm8465_vm3, %v10257_v61  ;;  %v5861_v9 = vadd.f32 %v12300_v59, %v5406_v62  ;;  %v6085_v10 = vadd.f32 %v12300_v59, %v5630_v0  ;;  %v5407_v11 = vmul.f32 %v12293_v21, %v3863_v5  ;;  %v5631_v12 = vmul.f32 %v12293_v21, %v4759_v6  ;;  %v3865_v13 = vpop.f32.mrb[171].mxu0  ;;  %v4761_v14 = vpop.f32.mrb[171].mxu1  ;;  %v11104_v61 = vld [vmem:[%s11454_s5 + $0x470] ss:$8 sps:$4 sm:$0xff]  }
 0x256   : > { %8773 = vst.msk [vmem:[%s11666_s28 + $0x4cc] sm:$0xf] %vm8465_vm3, %v10481_v60  ;;  %v11107_v60 = vld [vmem:[%s11454_s5 + $0xb70] ss:$8 sps:$4 sm:$0xff]   ;;  %v11115_v2 = vld [vmem:[%s11454_s5 + $0xb84] ss:$8 sps:$4 sm:$0xff]  }
 0x257   : > { %v6309_v15 = vmax.f32 %v5861_v9, 0.0  ;;  %v6533_v16 = vmax.f32 %v6085_v10, 0.0  ;;  %v5862_v17 = vadd.f32 %v12300_v59, %v5407_v11  ;;  %v6086_v18 = vadd.f32 %v12300_v59, %v5631_v12  ;;  %4075 = vmatmul.mubr.bf16.gmra.mrb[20].mxu0 %v11092_v3  ;;  %4971 = vmatmul.mubr.bf16.gmra.mrb[20].mxu1 %v11095_v4 }
 0x258   : > { %9567 = vmatprep.mubr.msk.bf16.mxu0 %vm2810_vm0, %v11100_v7  ;;  %9679 = vmatprep.mubr.msk.bf16.mxu1 %vm2810_vm0, %v11103_v8 }
 0x259   : > { %v10258_v63 = vpack.c.bf16 %v6309_v15, %v6309_v15  ;;  %v10482_v21 = vpack.c.bf16 %v6533_v16, %v6533_v16  ;;  %v6310_v19 = vmax.f32 %v5862_v17, 0.0  ;;  %v6534_v20 = vmax.f32 %v6086_v18, 0.0 }
 0x25a   : > { %v3868_v22 = vpop.f32.mrb[172].mxu0  ;;  %v4764_v23 = vpop.f32.mrb[172].mxu1 }
 0x25b   : > { %8550 = vst.msk [vmem:[%s11666_s28 + $0x150] sm:$0xf] %vm8465_vm3, %v10258_v63  ;;  %8774 = vst.msk [vmem:[%s11666_s28 + $0x4d0] sm:$0xf] %vm8465_vm3, %v10482_v21  ;;  %v10259_v59 = vpack.c.bf16 %v6310_v19, %v6310_v19  ;;  %v10483_v24 = vpack.c.bf16 %v6534_v20, %v6534_v20  ;;  %v5408_v26 = vmul.f32 %v12621_v25, %v3868_v22  ;;  %v3870_v28 = vpop.f32.mrb[173].mxu0  ;;  %v4766_v29 = vpop.f32.mrb[173].mxu1 }
 0x25c   : > { %v5632_v27 = vmul.f32 %v12621_v25, %v4764_v23  ;;  %v3871_v32 = vpop.f32.mrb[174].mxu0  ;;  %v4767_v33 = vpop.f32.mrb[174].mxu1  ;;  %v11118_v28 = vld [vmem:[%s11454_s5 + $0x494] ss:$8 sps:$4 sm:$0xff]  }
 0x25d   : > { %8551 = vst.msk [vmem:[%s11666_s28 + $0x154] sm:$0xf] %vm8465_vm3, %v10259_v59  ;;  %8775 = vst.msk [vmem:[%s11666_s28 + $0x4d4] sm:$0xf] %vm8465_vm3, %v10483_v24  ;;  %v5863_v37 = vadd.f32 %v12636_v36, %v5408_v26  ;;  %v5409_v39 = vmul.f32 %v12621_v25, %v3871_v32  ;;  %v5633_v40 = vmul.f32 %v12621_v25, %v4767_v33  ;;  %v3873_v41 = vpop.f32.mrb[175].mxu0  ;;  %v4769_v42 = vpop.f32.mrb[175].mxu1 }
 0x25e   : > { %v6087_v38 = vadd.f32 %v12636_v36, %v5632_v27  ;;  %v11110_v59 = vld [vmem:[%s11454_s5 + $0x480] ss:$8 sps:$4 sm:$0xff]   ;;  %v11121_v29 = vld [vmem:[%s11454_s5 + $0xb94] ss:$8 sps:$4 sm:$0xff]  }
 0x25f   : > { %v6311_v43 = vmax.f32 %v5863_v37, 0.0  ;;  %v5864_v45 = vadd.f32 %v12636_v36, %v5409_v39  ;;  %v6088_v46 = vadd.f32 %v12636_v36, %v5633_v40  ;;  %4083 = vmatmul.mubr.bf16.gmra.mrb[24].mxu0 %v11098_v30  ;;  %4979 = vmatmul.mubr.bf16.gmra.mrb[24].mxu1 %v11101_v31  ;;  %v11113_v24 = vld [vmem:[%s11454_s5 + $0xb80] ss:$8 sps:$4 sm:$0xff]  }
 0x260   : > { %v6535_v44 = vmax.f32 %v6087_v38, 0.0  ;;  %9568 = vmatprep.mubr.msk.bf16.mxu0 %vm2810_vm0, %v11106_v34  ;;  %9680 = vmatprep.mubr.msk.bf16.mxu1 %vm2810_vm0, %v11109_v35 }
 0x261   : > { %v10260_v47 = vpack.c.bf16 %v6311_v43, %v6311_v43  ;;  %v6312_v49 = vmax.f32 %v5864_v45, 0.0  ;;  %v6536_v50 = vmax.f32 %v6088_v46, 0.0 }
 0x262   : > { %v10484_v48 = vpack.c.bf16 %v6535_v44, %v6535_v44  ;;  %v3876_v51 = vpop.f32.mrb[176].mxu0  ;;  %v4772_v52 = vpop.f32.mrb[176].mxu1 }
 0x263   : > { %8552 = vst.msk [vmem:[%s11666_s28 + $0x158] sm:$0xf] %vm8465_vm3, %v10260_v47  ;;  %v10261_v53 = vpack.c.bf16 %v6312_v49, %v6312_v49  ;;  %v10485_v54 = vpack.c.bf16 %v6536_v50, %v6536_v50  ;;  %v5410_v55 = vmul.f32 %v12621_v25, %v3876_v51  ;;  %v5634_v56 = vmul.f32 %v12621_v25, %v4772_v52  ;;  %v3878_v57 = vpop.f32.mrb[177].mxu0  ;;  %v4774_v58 = vpop.f32.mrb[177].mxu1 }
 0x264   : > { %8776 = vst.msk [vmem:[%s11666_s28 + $0x4d8] sm:$0xf] %vm8465_vm3, %v10484_v48  ;;  %v3879_v62 = vpop.f32.mrb[178].mxu0  ;;  %v4775_v0 = vpop.f32.mrb[178].mxu1  ;;  %v11124_v57 = vld [vmem:[%s11454_s5 + $0x4a4] ss:$8 sps:$4 sm:$0xff]  }
 0x265   : > { %8553 = vst.msk [vmem:[%s11666_s28 + $0x15c] sm:$0xf] %vm8465_vm3, %v10261_v53  ;;  %8777 = vst.msk [vmem:[%s11666_s28 + $0x4dc] sm:$0xf] %vm8465_vm3, %v10485_v54  ;;  %v5865_v3 = vadd.f32 %v12636_v36, %v5410_v55  ;;  %v6089_v4 = vadd.f32 %v12636_v36, %v5634_v56  ;;  %v5411_v5 = vmul.f32 %v12621_v25, %v3879_v62  ;;  %v3881_v7 = vpop.f32.mrb[179].mxu0  ;;  %v4777_v8 = vpop.f32.mrb[179].mxu1 }
 0x266   : > { %v5635_v6 = vmul.f32 %v12621_v25, %v4775_v0  ;;  %v11116_v53 = vld [vmem:[%s11454_s5 + $0x490] ss:$8 sps:$4 sm:$0xff]   ;;  %v11127_v58 = vld [vmem:[%s11454_s5 + $0xba4] ss:$8 sps:$4 sm:$0xff]  }
 0x267   : > { %v6313_v9 = vmax.f32 %v5865_v3, 0.0  ;;  %v6537_v10 = vmax.f32 %v6089_v4, 0.0  ;;  %v5866_v11 = vadd.f32 %v12636_v36, %v5411_v5  ;;  %4091 = vmatmul.mubr.bf16.gmra.mrb[28].mxu0 %v11104_v61  ;;  %4987 = vmatmul.mubr.bf16.gmra.mrb[28].mxu1 %v11107_v60  ;;  %v11119_v54 = vld [vmem:[%s11454_s5 + $0xb90] ss:$8 sps:$4 sm:$0xff]  }
 0x268   : > { %v6090_v12 = vadd.f32 %v12636_v36, %v5635_v6  ;;  %9569 = vmatprep.mubr.msk.bf16.mxu0 %vm2810_vm0, %v11112_v1  ;;  %9681 = vmatprep.mubr.msk.bf16.mxu1 %vm2810_vm0, %v11115_v2 }
 0x269   : > { %v10262_v13 = vpack.c.bf16 %v6313_v9, %v6313_v9  ;;  %v10486_v14 = vpack.c.bf16 %v6537_v10, %v6537_v10  ;;  %v6314_v15 = vmax.f32 %v5866_v11, 0.0 }
 0x26a   : > { %v6538_v16 = vmax.f32 %v6090_v12, 0.0  ;;  %v3884_v17 = vpop.f32.mrb[180].mxu0  ;;  %v4780_v18 = vpop.f32.mrb[180].mxu1 }
 0x26b   : > { %8554 = vst.msk [vmem:[%s11666_s28 + $0x160] sm:$0xf] %vm8465_vm3, %v10262_v13  ;;  %8778 = vst.msk [vmem:[%s11666_s28 + $0x4e0] sm:$0xf] %vm8465_vm3, %v10486_v14  ;;  %v10263_v63 = vpack.c.bf16 %v6314_v15, %v6314_v15  ;;  %v5412_v19 = vmul.f32 %v12621_v25, %v3884_v17  ;;  %v5636_v20 = vmul.f32 %v12621_v25, %v4780_v18  ;;  %v3886_v22 = vpop.f32.mrb[181].mxu0  ;;  %v4782_v23 = vpop.f32.mrb[181].mxu1 }
 0x26c   : > { %v10487_v21 = vpack.c.bf16 %v6538_v16, %v6538_v16  ;;  %v3887_v26 = vpop.f32.mrb[182].mxu0  ;;  %v4783_v27 = vpop.f32.mrb[182].mxu1  ;;  %v11130_v22 = vld [vmem:[%s11454_s5 + $0x4b4] ss:$8 sps:$4 sm:$0xff]  }
 0x26d   : > { %8555 = vst.msk [vmem:[%s11666_s28 + $0x164] sm:$0xf] %vm8465_vm3, %v10263_v63  ;;  %v5867_v30 = vadd.f32 %v12636_v36, %v5412_v19  ;;  %v6091_v31 = vadd.f32 %v12636_v36, %v5636_v20  ;;  %v5413_v32 = vmul.f32 %v12621_v25, %v3887_v26  ;;  %v5637_v33 = vmul.f32 %v12621_v25, %v4783_v27  ;;  %v3889_v34 = vpop.f32.mrb[183].mxu0  ;;  %v4785_v35 = vpop.f32.mrb[183].mxu1  ;;  %v11122_v63 = vld [vmem:[%s11454_s5 + $0x4a0] ss:$8 sps:$4 sm:$0xff]  }
 0x26e   : > { %8779 = vst.msk [vmem:[%s11666_s28 + $0x4e4] sm:$0xf] %vm8465_vm3, %v10487_v21  ;;  %v11125_v21 = vld [vmem:[%s11454_s5 + $0xba0] ss:$8 sps:$4 sm:$0xff]   ;;  %v11133_v23 = vld [vmem:[%s11454_s5 + $0xbb4] ss:$8 sps:$4 sm:$0xff]  }
 0x26f   : > { %v6315_v37 = vmax.f32 %v5867_v30, 0.0  ;;  %v6539_v38 = vmax.f32 %v6091_v31, 0.0  ;;  %v5868_v39 = vadd.f32 %v12636_v36, %v5413_v32  ;;  %v6092_v40 = vadd.f32 %v12636_v36, %v5637_v33  ;;  %4099 = vmatmul.mubr.bf16.gmra.mrb[32].mxu0 %v11110_v59  ;;  %4995 = vmatmul.mubr.bf16.gmra.mrb[32].mxu1 %v11113_v24 }
 0x270   : > { %9570 = vmatprep.mubr.msk.bf16.mxu0 %vm2810_vm0, %v11118_v28  ;;  %9682 = vmatprep.mubr.msk.bf16.mxu1 %vm2810_vm0, %v11121_v29 }
 0x271   : > { %v10264_v41 = vpack.c.bf16 %v6315_v37, %v6315_v37  ;;  %v10488_v42 = vpack.c.bf16 %v6539_v38, %v6539_v38  ;;  %v6316_v43 = vmax.f32 %v5868_v39, 0.0  ;;  %v6540_v44 = vmax.f32 %v6092_v40, 0.0 }
 0x272   : > { %v3892_v45 = vpop.f32.mrb[184].mxu0  ;;  %v4788_v46 = vpop.f32.mrb[184].mxu1 }
 0x273   : > { %8556 = vst.msk [vmem:[%s11666_s28 + $0x168] sm:$0xf] %vm8465_vm3, %v10264_v41  ;;  %8780 = vst.msk [vmem:[%s11666_s28 + $0x4e8] sm:$0xf] %vm8465_vm3, %v10488_v42  ;;  %v10265_v47 = vpack.c.bf16 %v6316_v43, %v6316_v43  ;;  %v10489_v48 = vpack.c.bf16 %v6540_v44, %v6540_v44  ;;  %v5414_v49 = vmul.f32 %v12621_v25, %v3892_v45  ;;  %v3894_v51 = vpop.f32.mrb[185].mxu0  ;;  %v4790_v52 = vpop.f32.mrb[185].mxu1 }
 0x274   : > { %v5638_v50 = vmul.f32 %v12621_v25, %v4788_v46  ;;  %v3895_v55 = vpop.f32.mrb[186].mxu0  ;;  %v4791_v56 = vpop.f32.mrb[186].mxu1  ;;  %v11136_v51 = vld [vmem:[%s11454_s5 + $0x4c4] ss:$8 sps:$4 sm:$0xff]  }
 0x275   : > { %8557 = vst.msk [vmem:[%s11666_s28 + $0x16c] sm:$0xf] %vm8465_vm3, %v10265_v47  ;;  %8781 = vst.msk [vmem:[%s11666_s28 + $0x4ec] sm:$0xf] %vm8465_vm3, %v10489_v48  ;;  %v5869_v61 = vadd.f32 %v12636_v36, %v5414_v49  ;;  %v5415_v62 = vmul.f32 %v12621_v25, %v3895_v55  ;;  %v5639_v0 = vmul.f32 %v12621_v25, %v4791_v56  ;;  %v3897_v1 = vpop.f32.mrb[187].mxu0  ;;  %v4793_v2 = vpop.f32.mrb[187].mxu1 }
 0x276   : > { %v6093_v60 = vadd.f32 %v12636_v36, %v5638_v50  ;;  %v11128_v47 = vld [vmem:[%s11454_s5 + $0x4b0] ss:$8 sps:$4 sm:$0xff]   ;;  %v11139_v52 = vld [vmem:[%s11454_s5 + $0xbc4] ss:$8 sps:$4 sm:$0xff]  }
 0x277   : > { %v6317_v3 = vmax.f32 %v5869_v61, 0.0  ;;  %v5870_v5 = vadd.f32 %v12636_v36, %v5415_v62  ;;  %v6094_v6 = vadd.f32 %v12636_v36, %v5639_v0  ;;  %4107 = vmatmul.mubr.bf16.gmra.mrb[36].mxu0 %v11116_v53  ;;  %5003 = vmatmul.mubr.bf16.gmra.mrb[36].mxu1 %v11119_v54  ;;  %v11131_v48 = vld [vmem:[%s11454_s5 + $0xbb0] ss:$8 sps:$4 sm:$0xff]  }
 0x278   : > { %v6541_v4 = vmax.f32 %v6093_v60, 0.0  ;;  %9571 = vmatprep.mubr.msk.bf16.mxu0 %vm2810_vm0, %v11124_v57  ;;  %9683 = vmatprep.mubr.msk.bf16.mxu1 %vm2810_vm0, %v11127_v58 }
 0x279   : > { %v10266_v7 = vpack.c.bf16 %v6317_v3, %v6317_v3  ;;  %v6318_v9 = vmax.f32 %v5870_v5, 0.0  ;;  %v6542_v10 = vmax.f32 %v6094_v6, 0.0 }
 0x27a   : > { %v10490_v8 = vpack.c.bf16 %v6541_v4, %v6541_v4  ;;  %v3900_v11 = vpop.f32.mrb[188].mxu0  ;;  %v4796_v12 = vpop.f32.mrb[188].mxu1 }
 0x27b   : > { %8558 = vst.msk [vmem:[%s11666_s28 + $0x170] sm:$0xf] %vm8465_vm3, %v10266_v7  ;;  %v10267_v13 = vpack.c.bf16 %v6318_v9, %v6318_v9  ;;  %v10491_v14 = vpack.c.bf16 %v6542_v10, %v6542_v10  ;;  %v5416_v15 = vmul.f32 %v12621_v25, %v3900_v11  ;;  %v5640_v16 = vmul.f32 %v12621_v25, %v4796_v12  ;;  %v3902_v17 = vpop.f32.mrb[189].mxu0  ;;  %v4798_v18 = vpop.f32.mrb[189].mxu1 }
 0x27c   : > { %8782 = vst.msk [vmem:[%s11666_s28 + $0x4f0] sm:$0xf] %vm8465_vm3, %v10490_v8  ;;  %v3903_v19 = vpop.f32.mrb[190].mxu0  ;;  %v4799_v20 = vpop.f32.mrb[190].mxu1  ;;  %v11142_v17 = vld [vmem:[%s11454_s5 + $0x4d4] ss:$8 sps:$4 sm:$0xff]  }
 0x27d   : > { %8559 = vst.msk [vmem:[%s11666_s28 + $0x174] sm:$0xf] %vm8465_vm3, %v10267_v13  ;;  %8783 = vst.msk [vmem:[%s11666_s28 + $0x4f4] sm:$0xf] %vm8465_vm3, %v10491_v14  ;;  %v5871_v59 = vadd.f32 %v12636_v36, %v5416_v15  ;;  %v6095_v24 = vadd.f32 %v12636_v36, %v5640_v16  ;;  %v5417_v26 = vmul.f32 %v12621_v25, %v3903_v19  ;;  %v3905_v28 = vpop.f32.mrb[191].mxu0  ;;  %v4801_v29 = vpop.f32.mrb[191].mxu1 }
 0x27e   : > { %v5641_v27 = vmul.f32 %v12621_v25, %v4799_v20  ;;  %v11134_v13 = vld [vmem:[%s11454_s5 + $0x4c0] ss:$8 sps:$4 sm:$0xff]   ;;  %v11145_v18 = vld [vmem:[%s11454_s5 + $0xbd4] ss:$8 sps:$4 sm:$0xff]  }
 0x27f   : > { %v6319_v30 = vmax.f32 %v5871_v59, 0.0  ;;  %v6543_v31 = vmax.f32 %v6095_v24, 0.0  ;;  %v5872_v32 = vadd.f32 %v12636_v36, %v5417_v26  ;;  %4115 = vmatmul.mubr.bf16.gmra.mrb[40].mxu0 %v11122_v63  ;;  %5011 = vmatmul.mubr.bf16.gmra.mrb[40].mxu1 %v11125_v21  ;;  %v11137_v14 = vld [vmem:[%s11454_s5 + $0xbc0] ss:$8 sps:$4 sm:$0xff]  }
 0x280   : > { %v6096_v33 = vadd.f32 %v12636_v36, %v5641_v27  ;;  %9572 = vmatprep.mubr.msk.bf16.mxu0 %vm2810_vm0, %v11130_v22  ;;  %9684 = vmatprep.mubr.msk.bf16.mxu1 %vm2810_vm0, %v11133_v23 }
 0x281   : > { %v10268_v34 = vpack.c.bf16 %v6319_v30, %v6319_v30  ;;  %v10492_v35 = vpack.c.bf16 %v6543_v31, %v6543_v31  ;;  %v6320_v37 = vmax.f32 %v5872_v32, 0.0 }
 0x282   : > { %v6544_v38 = vmax.f32 %v6096_v33, 0.0  ;;  %v3908_v39 = vpop.f32.mrb[192].mxu0  ;;  %v4804_v40 = vpop.f32.mrb[192].mxu1 }
 0x283   : > { %8560 = vst.msk [vmem:[%s11666_s28 + $0x178] sm:$0xf] %vm8465_vm3, %v10268_v34  ;;  %8784 = vst.msk [vmem:[%s11666_s28 + $0x4f8] sm:$0xf] %vm8465_vm3, %v10492_v35  ;;  %v10269_v41 = vpack.c.bf16 %v6320_v37, %v6320_v37  ;;  %v5418_v43 = vmul.f32 %v12621_v25, %v3908_v39  ;;  %v5642_v44 = vmul.f32 %v12621_v25, %v4804_v40  ;;  %v3910_v45 = vpop.f32.mrb[193].mxu0  ;;  %v4806_v46 = vpop.f32.mrb[193].mxu1 }
 0x284   : > { %v10493_v42 = vpack.c.bf16 %v6544_v38, %v6544_v38  ;;  %v3911_v49 = vpop.f32.mrb[194].mxu0  ;;  %v4807_v50 = vpop.f32.mrb[194].mxu1  ;;  %v11148_v45 = vld [vmem:[%s11454_s5 + $0x4e4] ss:$8 sps:$4 sm:$0xff]  }
 0x285   : > { %8561 = vst.msk [vmem:[%s11666_s28 + $0x17c] sm:$0xf] %vm8465_vm3, %v10269_v41  ;;  %v5873_v53 = vadd.f32 %v12636_v36, %v5418_v43  ;;  %v6097_v54 = vadd.f32 %v12636_v36, %v5642_v44  ;;  %v5419_v55 = vmul.f32 %v12621_v25, %v3911_v49  ;;  %v5643_v56 = vmul.f32 %v12621_v25, %v4807_v50  ;;  %v3913_v57 = vpop.f32.mrb[195].mxu0  ;;  %v4809_v58 = vpop.f32.mrb[195].mxu1  ;;  %v11140_v41 = vld [vmem:[%s11454_s5 + $0x4d0] ss:$8 sps:$4 sm:$0xff]  }
 0x286   : > { %8785 = vst.msk [vmem:[%s11666_s28 + $0x4fc] sm:$0xf] %vm8465_vm3, %v10493_v42  ;;  %v11143_v42 = vld [vmem:[%s11454_s5 + $0xbd0] ss:$8 sps:$4 sm:$0xff]   ;;  %v11151_v46 = vld [vmem:[%s11454_s5 + $0xbe4] ss:$8 sps:$4 sm:$0xff]  }
 0x287   : > { %v6321_v61 = vmax.f32 %v5873_v53, 0.0  ;;  %v6545_v60 = vmax.f32 %v6097_v54, 0.0  ;;  %v5874_v62 = vadd.f32 %v12636_v36, %v5419_v55  ;;  %v6098_v0 = vadd.f32 %v12636_v36, %v5643_v56  ;;  %4123 = vmatmul.mubr.bf16.gmra.mrb[44].mxu0 %v11128_v47  ;;  %5019 = vmatmul.mubr.bf16.gmra.mrb[44].mxu1 %v11131_v48 }
 0x288   : > { %9573 = vmatprep.mubr.msk.bf16.mxu0 %vm2810_vm0, %v11136_v51  ;;  %9685 = vmatprep.mubr.msk.bf16.mxu1 %vm2810_vm0, %v11139_v52 }
 0x289   : > { %v10270_v1 = vpack.c.bf16 %v6321_v61, %v6321_v61  ;;  %v10494_v2 = vpack.c.bf16 %v6545_v60, %v6545_v60  ;;  %v6322_v3 = vmax.f32 %v5874_v62, 0.0  ;;  %v6546_v4 = vmax.f32 %v6098_v0, 0.0 }
 0x28a   : > { %v3916_v5 = vpop.f32.mrb[196].mxu0  ;;  %v4812_v6 = vpop.f32.mrb[196].mxu1 }
 0x28b   : > { %8562 = vst.msk [vmem:[%s11666_s28 + $0x180] sm:$0xf] %vm8465_vm3, %v10270_v1  ;;  %8786 = vst.msk [vmem:[%s11666_s28 + $0x500] sm:$0xf] %vm8465_vm3, %v10494_v2  ;;  %v10271_v7 = vpack.c.bf16 %v6322_v3, %v6322_v3  ;;  %v10495_v8 = vpack.c.bf16 %v6546_v4, %v6546_v4  ;;  %v5420_v9 = vmul.f32 %v12621_v25, %v3916_v5  ;;  %v3918_v11 = vpop.f32.mrb[197].mxu0  ;;  %v4814_v12 = vpop.f32.mrb[197].mxu1 }
 0x28c   : > { %v5644_v10 = vmul.f32 %v12621_v25, %v4812_v6  ;;  %v3919_v15 = vpop.f32.mrb[198].mxu0  ;;  %v4815_v16 = vpop.f32.mrb[198].mxu1  ;;  %v11154_v11 = vld [vmem:[%s11454_s5 + $0x4f4] ss:$8 sps:$4 sm:$0xff]  }
 0x28d   : > { %8563 = vst.msk [vmem:[%s11666_s28 + $0x184] sm:$0xf] %vm8465_vm3, %v10271_v7  ;;  %8787 = vst.msk [vmem:[%s11666_s28 + $0x504] sm:$0xf] %vm8465_vm3, %v10495_v8  ;;  %v5875_v63 = vadd.f32 %v12636_v36, %v5420_v9  ;;  %v5421_v19 = vmul.f32 %v12621_v25, %v3919_v15  ;;  %v5645_v20 = vmul.f32 %v12621_v25, %v4815_v16  ;;  %v3921_v22 = vpop.f32.mrb[199].mxu0  ;;  %v4817_v23 = vpop.f32.mrb[199].mxu1 }
 0x28e   : > { %v6099_v21 = vadd.f32 %v12636_v36, %v5644_v10  ;;  %v11146_v7 = vld [vmem:[%s11454_s5 + $0x4e0] ss:$8 sps:$4 sm:$0xff]   ;;  %v11157_v12 = vld [vmem:[%s11454_s5 + $0xbf4] ss:$8 sps:$4 sm:$0xff]  }
 0x28f   : > { %v6323_v59 = vmax.f32 %v5875_v63, 0.0  ;;  %v5876_v26 = vadd.f32 %v12636_v36, %v5421_v19  ;;  %v6100_v27 = vadd.f32 %v12636_v36, %v5645_v20  ;;  %4131 = vmatmul.mubr.bf16.gmra.mrb[48].mxu0 %v11134_v13  ;;  %5027 = vmatmul.mubr.bf16.gmra.mrb[48].mxu1 %v11137_v14  ;;  %v11149_v8 = vld [vmem:[%s11454_s5 + $0xbe0] ss:$8 sps:$4 sm:$0xff]  }
 0x290   : > { %v6547_v24 = vmax.f32 %v6099_v21, 0.0  ;;  %9574 = vmatprep.mubr.msk.bf16.mxu0 %vm2810_vm0, %v11142_v17  ;;  %9686 = vmatprep.mubr.msk.bf16.mxu1 %vm2810_vm0, %v11145_v18 }
 0x291   : > { %v10272_v28 = vpack.c.bf16 %v6323_v59, %v6323_v59  ;;  %v6324_v30 = vmax.f32 %v5876_v26, 0.0  ;;  %v6548_v31 = vmax.f32 %v6100_v27, 0.0 }
 0x292   : > { %v10496_v29 = vpack.c.bf16 %v6547_v24, %v6547_v24  ;;  %v3924_v32 = vpop.f32.mrb[200].mxu0  ;;  %v4820_v33 = vpop.f32.mrb[200].mxu1 }
 0x293   : > { %8564 = vst.msk [vmem:[%s11666_s28 + $0x188] sm:$0xf] %vm8465_vm3, %v10272_v28  ;;  %v10273_v34 = vpack.c.bf16 %v6324_v30, %v6324_v30  ;;  %v10497_v35 = vpack.c.bf16 %v6548_v31, %v6548_v31  ;;  %v5422_v37 = vmul.f32 %v12621_v25, %v3924_v32  ;;  %v5646_v38 = vmul.f32 %v12621_v25, %v4820_v33  ;;  %v3926_v39 = vpop.f32.mrb[201].mxu0  ;;  %v4822_v40 = vpop.f32.mrb[201].mxu1 }
 0x294   : > { %8788 = vst.msk [vmem:[%s11666_s28 + $0x508] sm:$0xf] %vm8465_vm3, %v10496_v29  ;;  %v3927_v43 = vpop.f32.mrb[202].mxu0  ;;  %v4823_v44 = vpop.f32.mrb[202].mxu1  ;;  %v11160_v39 = vld [vmem:[%s11454_s5 + $0x504] ss:$8 sps:$4 sm:$0xff]  }
 0x295   : > { %8565 = vst.msk [vmem:[%s11666_s28 + $0x18c] sm:$0xf] %vm8465_vm3, %v10273_v34  ;;  %8789 = vst.msk [vmem:[%s11666_s28 + $0x50c] sm:$0xf] %vm8465_vm3, %v10497_v35  ;;  %v5877_v47 = vadd.f32 %v12636_v36, %v5422_v37  ;;  %v6101_v48 = vadd.f32 %v12636_v36, %v5646_v38  ;;  %v5423_v49 = vmul.f32 %v12621_v25, %v3927_v43  ;;  %v3929_v51 = vpop.f32.mrb[203].mxu0  ;;  %v4825_v52 = vpop.f32.mrb[203].mxu1 }
 0x296   : > { %v5647_v50 = vmul.f32 %v12621_v25, %v4823_v44  ;;  %v11152_v34 = vld [vmem:[%s11454_s5 + $0x4f0] ss:$8 sps:$4 sm:$0xff]   ;;  %v11163_v40 = vld [vmem:[%s11454_s5 + $0xc04] ss:$8 sps:$4 sm:$0xff]  }
 0x297   : > { %v6325_v53 = vmax.f32 %v5877_v47, 0.0  ;;  %v6549_v54 = vmax.f32 %v6101_v48, 0.0  ;;  %v5878_v55 = vadd.f32 %v12636_v36, %v5423_v49  ;;  %4139 = vmatmul.mubr.bf16.gmra.mrb[52].mxu0 %v11140_v41  ;;  %5035 = vmatmul.mubr.bf16.gmra.mrb[52].mxu1 %v11143_v42  ;;  %v11155_v35 = vld [vmem:[%s11454_s5 + $0xbf0] ss:$8 sps:$4 sm:$0xff]  }
 0x298   : > { %v6102_v56 = vadd.f32 %v12636_v36, %v5647_v50  ;;  %9575 = vmatprep.mubr.msk.bf16.mxu0 %vm2810_vm0, %v11148_v45  ;;  %9687 = vmatprep.mubr.msk.bf16.mxu1 %vm2810_vm0, %v11151_v46 }
 0x299   : > { %v10274_v57 = vpack.c.bf16 %v6325_v53, %v6325_v53  ;;  %v10498_v58 = vpack.c.bf16 %v6549_v54, %v6549_v54  ;;  %v6326_v61 = vmax.f32 %v5878_v55, 0.0 }
 0x29a   : > { %v6550_v60 = vmax.f32 %v6102_v56, 0.0  ;;  %v3932_v62 = vpop.f32.mrb[204].mxu0  ;;  %v4828_v0 = vpop.f32.mrb[204].mxu1 }
 0x29b   : > { %8566 = vst.msk [vmem:[%s11666_s28 + $0x190] sm:$0xf] %vm8465_vm3, %v10274_v57  ;;  %8790 = vst.msk [vmem:[%s11666_s28 + $0x510] sm:$0xf] %vm8465_vm3, %v10498_v58  ;;  %v10275_v1 = vpack.c.bf16 %v6326_v61, %v6326_v61  ;;  %v5424_v3 = vmul.f32 %v12621_v25, %v3932_v62  ;;  %v5648_v4 = vmul.f32 %v12621_v25, %v4828_v0  ;;  %v3934_v5 = vpop.f32.mrb[205].mxu0  ;;  %v4830_v6 = vpop.f32.mrb[205].mxu1 }
 0x29c   : > { %v10499_v2 = vpack.c.bf16 %v6550_v60, %v6550_v60  ;;  %v3935_v9 = vpop.f32.mrb[206].mxu0  ;;  %v4831_v10 = vpop.f32.mrb[206].mxu1  ;;  %v11166_v5 = vld [vmem:[%s11454_s5 + $0x514] ss:$8 sps:$4 sm:$0xff]  }
 0x29d   : > { %8567 = vst.msk [vmem:[%s11666_s28 + $0x194] sm:$0xf] %vm8465_vm3, %v10275_v1  ;;  %v5879_v13 = vadd.f32 %v12636_v36, %v5424_v3  ;;  %v6103_v14 = vadd.f32 %v12636_v36, %v5648_v4  ;;  %v5425_v15 = vmul.f32 %v12621_v25, %v3935_v9  ;;  %v5649_v16 = vmul.f32 %v12621_v25, %v4831_v10  ;;  %v3937_v17 = vpop.f32.mrb[207].mxu0  ;;  %v4833_v18 = vpop.f32.mrb[207].mxu1  ;;  %v11158_v1 = vld [vmem:[%s11454_s5 + $0x500] ss:$8 sps:$4 sm:$0xff]  }
 0x29e   : > { %8791 = vst.msk [vmem:[%s11666_s28 + $0x514] sm:$0xf] %vm8465_vm3, %v10499_v2  ;;  %v11161_v2 = vld [vmem:[%s11454_s5 + $0xc00] ss:$8 sps:$4 sm:$0xff]   ;;  %v11169_v6 = vld [vmem:[%s11454_s5 + $0xc14] ss:$8 sps:$4 sm:$0xff]  }
 0x29f   : > { %v6327_v63 = vmax.f32 %v5879_v13, 0.0  ;;  %v6551_v21 = vmax.f32 %v6103_v14, 0.0  ;;  %v5880_v19 = vadd.f32 %v12636_v36, %v5425_v15  ;;  %v6104_v20 = vadd.f32 %v12636_v36, %v5649_v16  ;;  %4147 = vmatmul.mubr.bf16.gmra.mrb[56].mxu0 %v11146_v7  ;;  %5043 = vmatmul.mubr.bf16.gmra.mrb[56].mxu1 %v11149_v8 }
 0x2a0   : > { %9576 = vmatprep.mubr.msk.bf16.mxu0 %vm2810_vm0, %v11154_v11  ;;  %9688 = vmatprep.mubr.msk.bf16.mxu1 %vm2810_vm0, %v11157_v12 }
 0x2a1   : > { %v10276_v22 = vpack.c.bf16 %v6327_v63, %v6327_v63  ;;  %v10500_v23 = vpack.c.bf16 %v6551_v21, %v6551_v21  ;;  %v6328_v59 = vmax.f32 %v5880_v19, 0.0  ;;  %v6552_v24 = vmax.f32 %v6104_v20, 0.0 }
 0x2a2   : > { %v3940_v26 = vpop.f32.mrb[208].mxu0  ;;  %v4836_v27 = vpop.f32.mrb[208].mxu1 }
 0x2a3   : > { %8568 = vst.msk [vmem:[%s11666_s28 + $0x198] sm:$0xf] %vm8465_vm3, %v10276_v22  ;;  %8792 = vst.msk [vmem:[%s11666_s28 + $0x518] sm:$0xf] %vm8465_vm3, %v10500_v23  ;;  %v10277_v28 = vpack.c.bf16 %v6328_v59, %v6328_v59  ;;  %v10501_v29 = vpack.c.bf16 %v6552_v24, %v6552_v24  ;;  %v5426_v30 = vmul.f32 %v12621_v25, %v3940_v26  ;;  %v3942_v32 = vpop.f32.mrb[209].mxu0  ;;  %v4838_v33 = vpop.f32.mrb[209].mxu1 }
 0x2a4   : > { %v5650_v31 = vmul.f32 %v12621_v25, %v4836_v27  ;;  %v3943_v37 = vpop.f32.mrb[210].mxu0  ;;  %v4839_v38 = vpop.f32.mrb[210].mxu1  ;;  %v11172_v32 = vld [vmem:[%s11454_s5 + $0x524] ss:$8 sps:$4 sm:$0xff]  }
 0x2a5   : > { %8569 = vst.msk [vmem:[%s11666_s28 + $0x19c] sm:$0xf] %vm8465_vm3, %v10277_v28  ;;  %8793 = vst.msk [vmem:[%s11666_s28 + $0x51c] sm:$0xf] %vm8465_vm3, %v10501_v29  ;;  %v5881_v41 = vadd.f32 %v12636_v36, %v5426_v30  ;;  %v5427_v43 = vmul.f32 %v12621_v25, %v3943_v37  ;;  %v5651_v44 = vmul.f32 %v12621_v25, %v4839_v38  ;;  %v3945_v45 = vpop.f32.mrb[211].mxu0  ;;  %v4841_v46 = vpop.f32.mrb[211].mxu1 }
 0x2a6   : > { %v6105_v42 = vadd.f32 %v12636_v36, %v5650_v31  ;;  %v11164_v28 = vld [vmem:[%s11454_s5 + $0x510] ss:$8 sps:$4 sm:$0xff]   ;;  %v11175_v33 = vld [vmem:[%s11454_s5 + $0xc24] ss:$8 sps:$4 sm:$0xff]  }
 0x2a7   : > { %v6329_v47 = vmax.f32 %v5881_v41, 0.0  ;;  %v5882_v49 = vadd.f32 %v12636_v36, %v5427_v43  ;;  %v6106_v50 = vadd.f32 %v12636_v36, %v5651_v44  ;;  %4155 = vmatmul.mubr.bf16.gmra.mrb[60].mxu0 %v11152_v34  ;;  %5051 = vmatmul.mubr.bf16.gmra.mrb[60].mxu1 %v11155_v35  ;;  %v11167_v29 = vld [vmem:[%s11454_s5 + $0xc10] ss:$8 sps:$4 sm:$0xff]  }
 0x2a8   : > { %v6553_v48 = vmax.f32 %v6105_v42, 0.0  ;;  %9577 = vmatprep.mubr.msk.bf16.mxu0 %vm2810_vm0, %v11160_v39  ;;  %9689 = vmatprep.mubr.msk.bf16.mxu1 %vm2810_vm0, %v11163_v40 }
 0x2a9   : > { %v10278_v51 = vpack.c.bf16 %v6329_v47, %v6329_v47  ;;  %v6330_v53 = vmax.f32 %v5882_v49, 0.0  ;;  %v6554_v54 = vmax.f32 %v6106_v50, 0.0 }
 0x2aa   : > { %v10502_v52 = vpack.c.bf16 %v6553_v48, %v6553_v48  ;;  %v3948_v55 = vpop.f32.mrb[212].mxu0  ;;  %v4844_v56 = vpop.f32.mrb[212].mxu1 }
 0x2ab   : > { %8570 = vst.msk [vmem:[%s11666_s28 + $0x1a0] sm:$0xf] %vm8465_vm3, %v10278_v51  ;;  %v10279_v57 = vpack.c.bf16 %v6330_v53, %v6330_v53  ;;  %v10503_v58 = vpack.c.bf16 %v6554_v54, %v6554_v54  ;;  %v5428_v61 = vmul.f32 %v12621_v25, %v3948_v55  ;;  %v5652_v60 = vmul.f32 %v12621_v25, %v4844_v56  ;;  %v3950_v62 = vpop.f32.mrb[213].mxu0  ;;  %v4846_v0 = vpop.f32.mrb[213].mxu1 }
 0x2ac   : > { %8794 = vst.msk [vmem:[%s11666_s28 + $0x520] sm:$0xf] %vm8465_vm3, %v10502_v52  ;;  %v3951_v3 = vpop.f32.mrb[214].mxu0  ;;  %v4847_v4 = vpop.f32.mrb[214].mxu1  ;;  %v11178_v62 = vld [vmem:[%s11454_s5 + $0x534] ss:$8 sps:$4 sm:$0xff]  }
 0x2ad   : > { %8571 = vst.msk [vmem:[%s11666_s28 + $0x1a4] sm:$0xf] %vm8465_vm3, %v10279_v57  ;;  %8795 = vst.msk [vmem:[%s11666_s28 + $0x524] sm:$0xf] %vm8465_vm3, %v10503_v58  ;;  %v5883_v7 = vadd.f32 %v12636_v36, %v5428_v61  ;;  %v6107_v8 = vadd.f32 %v12636_v36, %v5652_v60  ;;  %v5429_v9 = vmul.f32 %v12621_v25, %v3951_v3  ;;  %v3953_v11 = vpop.f32.mrb[215].mxu0  ;;  %v4849_v12 = vpop.f32.mrb[215].mxu1 }
 0x2ae   : > { %v5653_v10 = vmul.f32 %v12621_v25, %v4847_v4  ;;  %v11170_v57 = vld [vmem:[%s11454_s5 + $0x520] ss:$8 sps:$4 sm:$0xff]   ;;  %v11181_v0 = vld [vmem:[%s11454_s5 + $0xc34] ss:$8 sps:$4 sm:$0xff]  }
 0x2af   : > { %v6331_v13 = vmax.f32 %v5883_v7, 0.0  ;;  %v6555_v14 = vmax.f32 %v6107_v8, 0.0  ;;  %v5884_v15 = vadd.f32 %v12636_v36, %v5429_v9  ;;  %4163 = vmatmul.mubr.bf16.gmra.mrb[64].mxu0 %v11158_v1  ;;  %5059 = vmatmul.mubr.bf16.gmra.mrb[64].mxu1 %v11161_v2  ;;  %v11173_v58 = vld [vmem:[%s11454_s5 + $0xc20] ss:$8 sps:$4 sm:$0xff]  }
 0x2b0   : > { %v6108_v16 = vadd.f32 %v12636_v36, %v5653_v10  ;;  %9578 = vmatprep.mubr.msk.bf16.mxu0 %vm2810_vm0, %v11166_v5  ;;  %9690 = vmatprep.mubr.msk.bf16.mxu1 %vm2810_vm0, %v11169_v6 }
 0x2b1   : > { %v10280_v17 = vpack.c.bf16 %v6331_v13, %v6331_v13  ;;  %v10504_v18 = vpack.c.bf16 %v6555_v14, %v6555_v14  ;;  %v6332_v63 = vmax.f32 %v5884_v15, 0.0 }
 0x2b2   : > { %v6556_v21 = vmax.f32 %v6108_v16, 0.0  ;;  %v3956_v19 = vpop.f32.mrb[216].mxu0  ;;  %v4852_v20 = vpop.f32.mrb[216].mxu1 }
 0x2b3   : > { %8572 = vst.msk [vmem:[%s11666_s28 + $0x1a8] sm:$0xf] %vm8465_vm3, %v10280_v17  ;;  %8796 = vst.msk [vmem:[%s11666_s28 + $0x528] sm:$0xf] %vm8465_vm3, %v10504_v18  ;;  %v10281_v22 = vpack.c.bf16 %v6332_v63, %v6332_v63  ;;  %v5430_v59 = vmul.f32 %v12621_v25, %v3956_v19  ;;  %v5654_v24 = vmul.f32 %v12621_v25, %v4852_v20  ;;  %v3958_v26 = vpop.f32.mrb[217].mxu0  ;;  %v4854_v27 = vpop.f32.mrb[217].mxu1 }
 0x2b4   : > { %v10505_v23 = vpack.c.bf16 %v6556_v21, %v6556_v21  ;;  %v3959_v30 = vpop.f32.mrb[218].mxu0  ;;  %v4855_v31 = vpop.f32.mrb[218].mxu1  ;;  %v11184_v26 = vld [vmem:[%s11454_s5 + $0x544] ss:$8 sps:$4 sm:$0xff]  }
 0x2b5   : > { %8573 = vst.msk [vmem:[%s11666_s28 + $0x1ac] sm:$0xf] %vm8465_vm3, %v10281_v22  ;;  %v5885_v34 = vadd.f32 %v12636_v36, %v5430_v59  ;;  %v6109_v35 = vadd.f32 %v12636_v36, %v5654_v24  ;;  %v5431_v37 = vmul.f32 %v12621_v25, %v3959_v30  ;;  %v5655_v38 = vmul.f32 %v12621_v25, %v4855_v31  ;;  %v3961_v39 = vpop.f32.mrb[219].mxu0  ;;  %v4857_v40 = vpop.f32.mrb[219].mxu1  ;;  %v11176_v22 = vld [vmem:[%s11454_s5 + $0x530] ss:$8 sps:$4 sm:$0xff]  }
 0x2b6   : > { %8797 = vst.msk [vmem:[%s11666_s28 + $0x52c] sm:$0xf] %vm8465_vm3, %v10505_v23  ;;  %v11179_v23 = vld [vmem:[%s11454_s5 + $0xc30] ss:$8 sps:$4 sm:$0xff]   ;;  %v11187_v27 = vld [vmem:[%s11454_s5 + $0xc44] ss:$8 sps:$4 sm:$0xff]  }
 0x2b7   : > { %v6333_v41 = vmax.f32 %v5885_v34, 0.0  ;;  %v6557_v42 = vmax.f32 %v6109_v35, 0.0  ;;  %v5886_v43 = vadd.f32 %v12636_v36, %v5431_v37  ;;  %v6110_v44 = vadd.f32 %v12636_v36, %v5655_v38  ;;  %4171 = vmatmul.mubr.bf16.gmra.mrb[68].mxu0 %v11164_v28  ;;  %5067 = vmatmul.mubr.bf16.gmra.mrb[68].mxu1 %v11167_v29 }
 0x2b8   : > { %9579 = vmatprep.mubr.msk.bf16.mxu0 %vm2810_vm0, %v11172_v32  ;;  %9691 = vmatprep.mubr.msk.bf16.mxu1 %vm2810_vm0, %v11175_v33 }
 0x2b9   : > { %v10282_v45 = vpack.c.bf16 %v6333_v41, %v6333_v41  ;;  %v10506_v46 = vpack.c.bf16 %v6557_v42, %v6557_v42  ;;  %v6334_v47 = vmax.f32 %v5886_v43, 0.0  ;;  %v6558_v48 = vmax.f32 %v6110_v44, 0.0 }
 0x2ba   : > { %v3964_v49 = vpop.f32.mrb[220].mxu0  ;;  %v4860_v50 = vpop.f32.mrb[220].mxu1 }
 0x2bb   : > { %8574 = vst.msk [vmem:[%s11666_s28 + $0x1b0] sm:$0xf] %vm8465_vm3, %v10282_v45  ;;  %8798 = vst.msk [vmem:[%s11666_s28 + $0x530] sm:$0xf] %vm8465_vm3, %v10506_v46  ;;  %v10283_v51 = vpack.c.bf16 %v6334_v47, %v6334_v47  ;;  %v10507_v52 = vpack.c.bf16 %v6558_v48, %v6558_v48  ;;  %v5432_v53 = vmul.f32 %v12621_v25, %v3964_v49  ;;  %v3966_v55 = vpop.f32.mrb[221].mxu0  ;;  %v4862_v56 = vpop.f32.mrb[221].mxu1 }
 0x2bc   : > { %v5656_v54 = vmul.f32 %v12621_v25, %v4860_v50  ;;  %v3967_v61 = vpop.f32.mrb[222].mxu0  ;;  %v4863_v60 = vpop.f32.mrb[222].mxu1  ;;  %v11190_v55 = vld [vmem:[%s11454_s5 + $0x554] ss:$8 sps:$4 sm:$0xff]  }
 0x2bd   : > { %8575 = vst.msk [vmem:[%s11666_s28 + $0x1b4] sm:$0xf] %vm8465_vm3, %v10283_v51  ;;  %8799 = vst.msk [vmem:[%s11666_s28 + $0x534] sm:$0xf] %vm8465_vm3, %v10507_v52  ;;  %v5887_v1 = vadd.f32 %v12636_v36, %v5432_v53  ;;  %v5433_v3 = vmul.f32 %v12621_v25, %v3967_v61  ;;  %v5657_v4 = vmul.f32 %v12621_v25, %v4863_v60  ;;  %v3969_v5 = vpop.f32.mrb[223].mxu0  ;;  %v4865_v6 = vpop.f32.mrb[223].mxu1 }
 0x2be   : > { %v6111_v2 = vadd.f32 %v12636_v36, %v5656_v54  ;;  %v11182_v51 = vld [vmem:[%s11454_s5 + $0x540] ss:$8 sps:$4 sm:$0xff]   ;;  %v11193_v56 = vld [vmem:[%s11454_s5 + $0xc54] ss:$8 sps:$4 sm:$0xff]  }
 0x2bf   : > { %v6335_v7 = vmax.f32 %v5887_v1, 0.0  ;;  %v5888_v9 = vadd.f32 %v12636_v36, %v5433_v3  ;;  %v6112_v10 = vadd.f32 %v12636_v36, %v5657_v4  ;;  %4179 = vmatmul.mubr.bf16.gmra.mrb[72].mxu0 %v11170_v57  ;;  %5075 = vmatmul.mubr.bf16.gmra.mrb[72].mxu1 %v11173_v58  ;;  %v11185_v52 = vld [vmem:[%s11454_s5 + $0xc40] ss:$8 sps:$4 sm:$0xff]  }
 0x2c0   : > { %v6559_v8 = vmax.f32 %v6111_v2, 0.0  ;;  %9580 = vmatprep.mubr.msk.bf16.mxu0 %vm2810_vm0, %v11178_v62  ;;  %9692 = vmatprep.mubr.msk.bf16.mxu1 %vm2810_vm0, %v11181_v0  ;;  %v12958_v3 = vld [vmem:[%s14036_s3] ss:$0 sm:$0xff] }
 0x2c1   : > { %v10284_v11 = vpack.c.bf16 %v6335_v7, %v6335_v7  ;;  %v6336_v13 = vmax.f32 %v5888_v9, 0.0  ;;  %v6560_v14 = vmax.f32 %v6112_v10, 0.0 }
 0x2c2   : > { %v10508_v12 = vpack.c.bf16 %v6559_v8, %v6559_v8  ;;  %v3972_v15 = vpop.f32.mrb[224].mxu0  ;;  %v4868_v16 = vpop.f32.mrb[224].mxu1 }
 0x2c3   : > { %8576 = vst.msk [vmem:[%s11666_s28 + $0x1b8] sm:$0xf] %vm8465_vm3, %v10284_v11  ;;  %v10285_v17 = vpack.c.bf16 %v6336_v13, %v6336_v13  ;;  %v10509_v18 = vpack.c.bf16 %v6560_v14, %v6560_v14  ;;  %v5434_v63 = vmul.f32 %v12621_v25, %v3972_v15  ;;  %v5658_v21 = vmul.f32 %v12621_v25, %v4868_v16  ;;  %v3974_v19 = vpop.f32.mrb[225].mxu0  ;;  %v4870_v20 = vpop.f32.mrb[225].mxu1 }
 0x2c4   : > { %8800 = vst.msk [vmem:[%s11666_s28 + $0x538] sm:$0xf] %vm8465_vm3, %v10508_v12  ;;  %v3975_v59 = vpop.f32.mrb[226].mxu0  ;;  %v4871_v24 = vpop.f32.mrb[226].mxu1  ;;  %v11196_v19 = vld [vmem:[%s11454_s5 + $0x564] ss:$8 sps:$4 sm:$0xff]  }
 0x2c5   : > { %8577 = vst.msk [vmem:[%s11666_s28 + $0x1bc] sm:$0xf] %vm8465_vm3, %v10285_v17  ;;  %8801 = vst.msk [vmem:[%s11666_s28 + $0x53c] sm:$0xf] %vm8465_vm3, %v10509_v18  ;;  %v5889_v28 = vadd.f32 %v12636_v36, %v5434_v63  ;;  %v6113_v29 = vadd.f32 %v12636_v36, %v5658_v21  ;;  %v5435_v30 = vmul.f32 %v12621_v25, %v3975_v59  ;;  %v3977_v32 = vpop.f32.mrb[227].mxu0  ;;  %v4873_v33 = vpop.f32.mrb[227].mxu1 }
 0x2c6   : > { %v5659_v31 = vmul.f32 %v12621_v25, %v4871_v24  ;;  %v11188_v17 = vld [vmem:[%s11454_s5 + $0x550] ss:$8 sps:$4 sm:$0xff]   ;;  %v11199_v20 = vld [vmem:[%s11454_s5 + $0xc64] ss:$8 sps:$4 sm:$0xff]  }
 0x2c7   : > { %v6337_v34 = vmax.f32 %v5889_v28, 0.0  ;;  %v6561_v35 = vmax.f32 %v6113_v29, 0.0  ;;  %v5890_v37 = vadd.f32 %v12636_v36, %v5435_v30  ;;  %4187 = vmatmul.mubr.bf16.gmra.mrb[76].mxu0 %v11176_v22  ;;  %5083 = vmatmul.mubr.bf16.gmra.mrb[76].mxu1 %v11179_v23  ;;  %v11191_v18 = vld [vmem:[%s11454_s5 + $0xc50] ss:$8 sps:$4 sm:$0xff]  }
 0x2c8   : > { %v6114_v38 = vadd.f32 %v12636_v36, %v5659_v31  ;;  %9581 = vmatprep.mubr.msk.bf16.mxu0 %vm2810_vm0, %v11184_v26  ;;  %9693 = vmatprep.mubr.msk.bf16.mxu1 %vm2810_vm0, %v11187_v27 }
 0x2c9   : > { %v10286_v39 = vpack.c.bf16 %v6337_v34, %v6337_v34  ;;  %v10510_v40 = vpack.c.bf16 %v6561_v35, %v6561_v35  ;;  %v6338_v41 = vmax.f32 %v5890_v37, 0.0 }
 0x2ca   : > { %v6562_v42 = vmax.f32 %v6114_v38, 0.0  ;;  %v3980_v43 = vpop.f32.mrb[228].mxu0  ;;  %v4876_v44 = vpop.f32.mrb[228].mxu1 }
 0x2cb   : > { %8578 = vst.msk [vmem:[%s11666_s28 + $0x1c0] sm:$0xf] %vm8465_vm3, %v10286_v39  ;;  %8802 = vst.msk [vmem:[%s11666_s28 + $0x540] sm:$0xf] %vm8465_vm3, %v10510_v40  ;;  %v10287_v45 = vpack.c.bf16 %v6338_v41, %v6338_v41  ;;  %v5436_v47 = vmul.f32 %v12621_v25, %v3980_v43  ;;  %v5660_v48 = vmul.f32 %v12621_v25, %v4876_v44  ;;  %v3982_v49 = vpop.f32.mrb[229].mxu0  ;;  %v4878_v50 = vpop.f32.mrb[229].mxu1 }
 0x2cc   : > { %v10511_v46 = vpack.c.bf16 %v6562_v42, %v6562_v42  ;;  %v3983_v53 = vpop.f32.mrb[230].mxu0  ;;  %v4879_v54 = vpop.f32.mrb[230].mxu1  ;;  %v12951_v25 = vld [vmem:[%s14035_s2] ss:$0 sm:$0xff]  ;;  %v11202_v49 = vld [vmem:[%s11454_s5 + $0x574] ss:$8 sps:$4 sm:$0xff]  }
 0x2cd   : > { %8579 = vst.msk [vmem:[%s11666_s28 + $0x1c4] sm:$0xf] %vm8465_vm3, %v10287_v45  ;;  %v5891_v57 = vadd.f32 %v12636_v36, %v5436_v47  ;;  %v6115_v58 = vadd.f32 %v12636_v36, %v5660_v48  ;;  %v5437_v61 = vmul.f32 %v12951_v25, %v3983_v53  ;;  %v5661_v60 = vmul.f32 %v12951_v25, %v4879_v54  ;;  %v3985_v62 = vpop.f32.mrb[231].mxu0  ;;  %v4881_v0 = vpop.f32.mrb[231].mxu1  ;;  %v11194_v45 = vld [vmem:[%s11454_s5 + $0x560] ss:$8 sps:$4 sm:$0xff]  }
 0x2ce   : > { %8803 = vst.msk [vmem:[%s11666_s28 + $0x544] sm:$0xf] %vm8465_vm3, %v10511_v46  ;;  %v11197_v46 = vld [vmem:[%s11454_s5 + $0xc60] ss:$8 sps:$4 sm:$0xff]   ;;  %v11205_v50 = vld [vmem:[%s11454_s5 + $0xc74] ss:$8 sps:$4 sm:$0xff]  }
 0x2cf   : > { %v6339_v1 = vmax.f32 %v5891_v57, 0.0  ;;  %v6563_v2 = vmax.f32 %v6115_v58, 0.0  ;;  %v5892_v36 = vadd.f32 %v12958_v3, %v5437_v61  ;;  %v6116_v4 = vadd.f32 %v12958_v3, %v5661_v60  ;;  %4195 = vmatmul.mubr.bf16.gmra.mrb[80].mxu0 %v11182_v51  ;;  %5091 = vmatmul.mubr.bf16.gmra.mrb[80].mxu1 %v11185_v52 }
 0x2d0   : > { %9582 = vmatprep.mubr.msk.bf16.mxu0 %vm2810_vm0, %v11190_v55  ;;  %9694 = vmatprep.mubr.msk.bf16.mxu1 %vm2810_vm0, %v11193_v56 }
 0x2d1   : > { %v10288_v5 = vpack.c.bf16 %v6339_v1, %v6339_v1  ;;  %v10512_v6 = vpack.c.bf16 %v6563_v2, %v6563_v2  ;;  %v6340_v7 = vmax.f32 %v5892_v36, 0.0  ;;  %v6564_v8 = vmax.f32 %v6116_v4, 0.0 }
 0x2d2   : > { %v3988_v9 = vpop.f32.mrb[232].mxu0  ;;  %v4884_v10 = vpop.f32.mrb[232].mxu1 }
 0x2d3   : > { %8580 = vst.msk [vmem:[%s11666_s28 + $0x1c8] sm:$0xf] %vm8465_vm3, %v10288_v5  ;;  %8804 = vst.msk [vmem:[%s11666_s28 + $0x548] sm:$0xf] %vm8465_vm3, %v10512_v6  ;;  %v10289_v11 = vpack.c.bf16 %v6340_v7, %v6340_v7  ;;  %v10513_v12 = vpack.c.bf16 %v6564_v8, %v6564_v8  ;;  %v5438_v13 = vmul.f32 %v12951_v25, %v3988_v9  ;;  %v3990_v15 = vpop.f32.mrb[233].mxu0  ;;  %v4886_v16 = vpop.f32.mrb[233].mxu1 }
 0x2d4   : > { %v5662_v14 = vmul.f32 %v12951_v25, %v4884_v10  ;;  %v3991_v63 = vpop.f32.mrb[234].mxu0  ;;  %v4887_v21 = vpop.f32.mrb[234].mxu1  ;;  %v11208_v15 = vld [vmem:[%s11454_s5 + $0x584] ss:$8 sps:$4 sm:$0xff]  }
 0x2d5   : > { %8581 = vst.msk [vmem:[%s11666_s28 + $0x1cc] sm:$0xf] %vm8465_vm3, %v10289_v11  ;;  %8805 = vst.msk [vmem:[%s11666_s28 + $0x54c] sm:$0xf] %vm8465_vm3, %v10513_v12  ;;  %v5893_v22 = vadd.f32 %v12958_v3, %v5438_v13  ;;  %v5439_v59 = vmul.f32 %v12951_v25, %v3991_v63  ;;  %v5663_v24 = vmul.f32 %v12951_v25, %v4887_v21  ;;  %v3993_v26 = vpop.f32.mrb[235].mxu0  ;;  %v4889_v27 = vpop.f32.mrb[235].mxu1 }
 0x2d6   : > { %v6117_v23 = vadd.f32 %v12958_v3, %v5662_v14  ;;  %v11200_v11 = vld [vmem:[%s11454_s5 + $0x570] ss:$8 sps:$4 sm:$0xff]   ;;  %v11211_v16 = vld [vmem:[%s11454_s5 + $0xc84] ss:$8 sps:$4 sm:$0xff]  }
 0x2d7   : > { %v6341_v28 = vmax.f32 %v5893_v22, 0.0  ;;  %v5894_v30 = vadd.f32 %v12958_v3, %v5439_v59  ;;  %v6118_v31 = vadd.f32 %v12958_v3, %v5663_v24  ;;  %4203 = vmatmul.mubr.bf16.gmra.mrb[84].mxu0 %v11188_v17  ;;  %5099 = vmatmul.mubr.bf16.gmra.mrb[84].mxu1 %v11191_v18  ;;  %v11203_v12 = vld [vmem:[%s11454_s5 + $0xc70] ss:$8 sps:$4 sm:$0xff]  }
 0x2d8   : > { %v6565_v29 = vmax.f32 %v6117_v23, 0.0  ;;  %9583 = vmatprep.mubr.msk.bf16.mxu0 %vm2810_vm0, %v11196_v19  ;;  %9695 = vmatprep.mubr.msk.bf16.mxu1 %vm2810_vm0, %v11199_v20 }
 0x2d9   : > { %v10290_v32 = vpack.c.bf16 %v6341_v28, %v6341_v28  ;;  %v6342_v34 = vmax.f32 %v5894_v30, 0.0  ;;  %v6566_v35 = vmax.f32 %v6118_v31, 0.0 }
 0x2da   : > { %v10514_v33 = vpack.c.bf16 %v6565_v29, %v6565_v29  ;;  %v3996_v37 = vpop.f32.mrb[236].mxu0  ;;  %v4892_v38 = vpop.f32.mrb[236].mxu1 }
 0x2db   : > { %8582 = vst.msk [vmem:[%s11666_s28 + $0x1d0] sm:$0xf] %vm8465_vm3, %v10290_v32  ;;  %v10291_v39 = vpack.c.bf16 %v6342_v34, %v6342_v34  ;;  %v10515_v40 = vpack.c.bf16 %v6566_v35, %v6566_v35  ;;  %v5440_v41 = vmul.f32 %v12951_v25, %v3996_v37  ;;  %v5664_v42 = vmul.f32 %v12951_v25, %v4892_v38  ;;  %v3998_v43 = vpop.f32.mrb[237].mxu0  ;;  %v4894_v44 = vpop.f32.mrb[237].mxu1 }
 0x2dc   : > { %8806 = vst.msk [vmem:[%s11666_s28 + $0x550] sm:$0xf] %vm8465_vm3, %v10514_v33  ;;  %v3999_v47 = vpop.f32.mrb[238].mxu0  ;;  %v4895_v48 = vpop.f32.mrb[238].mxu1  ;;  %v11214_v43 = vld [vmem:[%s11454_s5 + $0x594] ss:$8 sps:$4 sm:$0xff]  }
 0x2dd   : > { %8583 = vst.msk [vmem:[%s11666_s28 + $0x1d4] sm:$0xf] %vm8465_vm3, %v10291_v39  ;;  %8807 = vst.msk [vmem:[%s11666_s28 + $0x554] sm:$0xf] %vm8465_vm3, %v10515_v40  ;;  %v5895_v51 = vadd.f32 %v12958_v3, %v5440_v41  ;;  %v6119_v52 = vadd.f32 %v12958_v3, %v5664_v42  ;;  %v5441_v53 = vmul.f32 %v12951_v25, %v3999_v47  ;;  %v4001_v55 = vpop.f32.mrb[239].mxu0  ;;  %v4897_v56 = vpop.f32.mrb[239].mxu1 }
 0x2de   : > { %v5665_v54 = vmul.f32 %v12951_v25, %v4895_v48  ;;  %v11206_v39 = vld [vmem:[%s11454_s5 + $0x580] ss:$8 sps:$4 sm:$0xff]   ;;  %v11217_v44 = vld [vmem:[%s11454_s5 + $0xc94] ss:$8 sps:$4 sm:$0xff]  }
 0x2df   : > { %v6343_v57 = vmax.f32 %v5895_v51, 0.0  ;;  %v6567_v58 = vmax.f32 %v6119_v52, 0.0  ;;  %v5896_v61 = vadd.f32 %v12958_v3, %v5441_v53  ;;  %4211 = vmatmul.mubr.bf16.gmra.mrb[88].mxu0 %v11194_v45  ;;  %5107 = vmatmul.mubr.bf16.gmra.mrb[88].mxu1 %v11197_v46  ;;  %v11209_v40 = vld [vmem:[%s11454_s5 + $0xc80] ss:$8 sps:$4 sm:$0xff]  }
 0x2e0   : > { %v6120_v60 = vadd.f32 %v12958_v3, %v5665_v54  ;;  %9584 = vmatprep.mubr.msk.bf16.mxu0 %vm2810_vm0, %v11202_v49  ;;  %9696 = vmatprep.mubr.msk.bf16.mxu1 %vm2810_vm0, %v11205_v50 }
 0x2e1   : > { %v10292_v62 = vpack.c.bf16 %v6343_v57, %v6343_v57  ;;  %v10516_v0 = vpack.c.bf16 %v6567_v58, %v6567_v58  ;;  %v6344_v1 = vmax.f32 %v5896_v61, 0.0 }
 0x2e2   : > { %v6568_v2 = vmax.f32 %v6120_v60, 0.0  ;;  %v4004_v36 = vpop.f32.mrb[240].mxu0  ;;  %v4900_v4 = vpop.f32.mrb[240].mxu1 }
 0x2e3   : > { %8584 = vst.msk [vmem:[%s11666_s28 + $0x1d8] sm:$0xf] %vm8465_vm3, %v10292_v62  ;;  %8808 = vst.msk [vmem:[%s11666_s28 + $0x558] sm:$0xf] %vm8465_vm3, %v10516_v0  ;;  %v10293_v5 = vpack.c.bf16 %v6344_v1, %v6344_v1  ;;  %v5442_v7 = vmul.f32 %v12951_v25, %v4004_v36  ;;  %v5666_v8 = vmul.f32 %v12951_v25, %v4900_v4  ;;  %v4006_v9 = vpop.f32.mrb[241].mxu0  ;;  %v4902_v10 = vpop.f32.mrb[241].mxu1 }
 0x2e4   : > { %v10517_v6 = vpack.c.bf16 %v6568_v2, %v6568_v2  ;;  %v4007_v13 = vpop.f32.mrb[242].mxu0  ;;  %v4903_v14 = vpop.f32.mrb[242].mxu1  ;;  %v11220_v9 = vld [vmem:[%s11454_s5 + $0x5a4] ss:$8 sps:$4 sm:$0xff]  }
 0x2e5   : > { %8585 = vst.msk [vmem:[%s11666_s28 + $0x1dc] sm:$0xf] %vm8465_vm3, %v10293_v5  ;;  %v5897_v17 = vadd.f32 %v12958_v3, %v5442_v7  ;;  %v6121_v18 = vadd.f32 %v12958_v3, %v5666_v8  ;;  %v5443_v63 = vmul.f32 %v12951_v25, %v4007_v13  ;;  %v5667_v21 = vmul.f32 %v12951_v25, %v4903_v14  ;;  %v4009_v19 = vpop.f32.mrb[243].mxu0  ;;  %v4905_v20 = vpop.f32.mrb[243].mxu1  ;;  %v11212_v5 = vld [vmem:[%s11454_s5 + $0x590] ss:$8 sps:$4 sm:$0xff]  }
 0x2e6   : > { %8809 = vst.msk [vmem:[%s11666_s28 + $0x55c] sm:$0xf] %vm8465_vm3, %v10517_v6  ;;  %v11215_v6 = vld [vmem:[%s11454_s5 + $0xc90] ss:$8 sps:$4 sm:$0xff]   ;;  %v11223_v10 = vld [vmem:[%s11454_s5 + $0xca4] ss:$8 sps:$4 sm:$0xff]  }
 0x2e7   : > { %v6345_v22 = vmax.f32 %v5897_v17, 0.0  ;;  %v6569_v23 = vmax.f32 %v6121_v18, 0.0  ;;  %v5898_v59 = vadd.f32 %v12958_v3, %v5443_v63  ;;  %v6122_v24 = vadd.f32 %v12958_v3, %v5667_v21  ;;  %4219 = vmatmul.mubr.bf16.gmra.mrb[92].mxu0 %v11200_v11  ;;  %5115 = vmatmul.mubr.bf16.gmra.mrb[92].mxu1 %v11203_v12 }
 0x2e8   : > { %9585 = vmatprep.mubr.msk.bf16.mxu0 %vm2810_vm0, %v11208_v15  ;;  %9697 = vmatprep.mubr.msk.bf16.mxu1 %vm2810_vm0, %v11211_v16 }
 0x2e9   : > { %v10294_v26 = vpack.c.bf16 %v6345_v22, %v6345_v22  ;;  %v10518_v27 = vpack.c.bf16 %v6569_v23, %v6569_v23  ;;  %v6346_v28 = vmax.f32 %v5898_v59, 0.0  ;;  %v6570_v29 = vmax.f32 %v6122_v24, 0.0 }
 0x2ea   : > { %v4012_v30 = vpop.f32.mrb[244].mxu0  ;;  %v4908_v31 = vpop.f32.mrb[244].mxu1 }
 0x2eb   : > { %8586 = vst.msk [vmem:[%s11666_s28 + $0x1e0] sm:$0xf] %vm8465_vm3, %v10294_v26  ;;  %8810 = vst.msk [vmem:[%s11666_s28 + $0x560] sm:$0xf] %vm8465_vm3, %v10518_v27  ;;  %v10295_v32 = vpack.c.bf16 %v6346_v28, %v6346_v28  ;;  %v10519_v33 = vpack.c.bf16 %v6570_v29, %v6570_v29  ;;  %v5444_v34 = vmul.f32 %v12951_v25, %v4012_v30  ;;  %v4014_v37 = vpop.f32.mrb[245].mxu0  ;;  %v4910_v38 = vpop.f32.mrb[245].mxu1 }
 0x2ec   : > { %v5668_v35 = vmul.f32 %v12951_v25, %v4908_v31  ;;  %v4015_v41 = vpop.f32.mrb[246].mxu0  ;;  %v4911_v42 = vpop.f32.mrb[246].mxu1  ;;  %v11226_v37 = vld [vmem:[%s11454_s5 + $0x5b4] ss:$8 sps:$4 sm:$0xff]  }
 0x2ed   : > { %8587 = vst.msk [vmem:[%s11666_s28 + $0x1e4] sm:$0xf] %vm8465_vm3, %v10295_v32  ;;  %8811 = vst.msk [vmem:[%s11666_s28 + $0x564] sm:$0xf] %vm8465_vm3, %v10519_v33  ;;  %v5899_v45 = vadd.f32 %v12958_v3, %v5444_v34  ;;  %v5445_v47 = vmul.f32 %v12951_v25, %v4015_v41  ;;  %v5669_v48 = vmul.f32 %v12951_v25, %v4911_v42  ;;  %v4017_v49 = vpop.f32.mrb[247].mxu0  ;;  %v4913_v50 = vpop.f32.mrb[247].mxu1 }
 0x2ee   : > { %v6123_v46 = vadd.f32 %v12958_v3, %v5668_v35  ;;  %v11218_v32 = vld [vmem:[%s11454_s5 + $0x5a0] ss:$8 sps:$4 sm:$0xff]   ;;  %v11229_v38 = vld [vmem:[%s11454_s5 + $0xcb4] ss:$8 sps:$4 sm:$0xff]  }
 0x2ef   : > { %v6347_v51 = vmax.f32 %v5899_v45, 0.0  ;;  %v5900_v53 = vadd.f32 %v12958_v3, %v5445_v47  ;;  %v6124_v54 = vadd.f32 %v12958_v3, %v5669_v48  ;;  %4227 = vmatmul.mubr.bf16.gmra.mrb[96].mxu0 %v11206_v39  ;;  %5123 = vmatmul.mubr.bf16.gmra.mrb[96].mxu1 %v11209_v40  ;;  %v11221_v33 = vld [vmem:[%s11454_s5 + $0xca0] ss:$8 sps:$4 sm:$0xff]  }
 0x2f0   : > { %v6571_v52 = vmax.f32 %v6123_v46, 0.0  ;;  %9586 = vmatprep.mubr.msk.bf16.mxu0 %vm2810_vm0, %v11214_v43  ;;  %9698 = vmatprep.mubr.msk.bf16.mxu1 %vm2810_vm0, %v11217_v44 }
 0x2f1   : > { %v10296_v55 = vpack.c.bf16 %v6347_v51, %v6347_v51  ;;  %v6348_v57 = vmax.f32 %v5900_v53, 0.0  ;;  %v6572_v58 = vmax.f32 %v6124_v54, 0.0 }
 0x2f2   : > { %v10520_v56 = vpack.c.bf16 %v6571_v52, %v6571_v52  ;;  %v4020_v61 = vpop.f32.mrb[248].mxu0  ;;  %v4916_v60 = vpop.f32.mrb[248].mxu1 }
 0x2f3   : > { %8588 = vst.msk [vmem:[%s11666_s28 + $0x1e8] sm:$0xf] %vm8465_vm3, %v10296_v55  ;;  %v10297_v62 = vpack.c.bf16 %v6348_v57, %v6348_v57  ;;  %v10521_v0 = vpack.c.bf16 %v6572_v58, %v6572_v58  ;;  %v5446_v1 = vmul.f32 %v12951_v25, %v4020_v61  ;;  %v5670_v2 = vmul.f32 %v12951_v25, %v4916_v60  ;;  %v4022_v36 = vpop.f32.mrb[249].mxu0  ;;  %v4918_v4 = vpop.f32.mrb[249].mxu1 }
 0x2f4   : > { %8812 = vst.msk [vmem:[%s11666_s28 + $0x568] sm:$0xf] %vm8465_vm3, %v10520_v56  ;;  %v4023_v7 = vpop.f32.mrb[250].mxu0  ;;  %v4919_v8 = vpop.f32.mrb[250].mxu1  ;;  %v11232_v36 = vld [vmem:[%s11454_s5 + $0x5c4] ss:$8 sps:$4 sm:$0xff]  }
 0x2f5   : > { %8589 = vst.msk [vmem:[%s11666_s28 + $0x1ec] sm:$0xf] %vm8465_vm3, %v10297_v62  ;;  %8813 = vst.msk [vmem:[%s11666_s28 + $0x56c] sm:$0xf] %vm8465_vm3, %v10521_v0  ;;  %v5901_v11 = vadd.f32 %v12958_v3, %v5446_v1  ;;  %v6125_v12 = vadd.f32 %v12958_v3, %v5670_v2  ;;  %v5447_v13 = vmul.f32 %v12951_v25, %v4023_v7  ;;  %v4025_v15 = vpop.f32.mrb[251].mxu0  ;;  %v4921_v16 = vpop.f32.mrb[251].mxu1 }
 0x2f6   : > { %v5671_v14 = vmul.f32 %v12951_v25, %v4919_v8  ;;  %v11224_v62 = vld [vmem:[%s11454_s5 + $0x5b0] ss:$8 sps:$4 sm:$0xff]   ;;  %v11235_v4 = vld [vmem:[%s11454_s5 + $0xcc4] ss:$8 sps:$4 sm:$0xff]  }
 0x2f7   : > { %v6349_v17 = vmax.f32 %v5901_v11, 0.0  ;;  %v6573_v18 = vmax.f32 %v6125_v12, 0.0  ;;  %v5902_v63 = vadd.f32 %v12958_v3, %v5447_v13  ;;  %4235 = vmatmul.mubr.bf16.gmra.mrb[100].mxu0 %v11212_v5  ;;  %5131 = vmatmul.mubr.bf16.gmra.mrb[100].mxu1 %v11215_v6  ;;  %v11227_v0 = vld [vmem:[%s11454_s5 + $0xcb0] ss:$8 sps:$4 sm:$0xff]  }
 0x2f8   : > { %v6126_v21 = vadd.f32 %v12958_v3, %v5671_v14  ;;  %9587 = vmatprep.mubr.msk.bf16.mxu0 %vm2810_vm0, %v11220_v9  ;;  %9699 = vmatprep.mubr.msk.bf16.mxu1 %vm2810_vm0, %v11223_v10 }
 0x2f9   : > { %v10298_v19 = vpack.c.bf16 %v6349_v17, %v6349_v17  ;;  %v10522_v20 = vpack.c.bf16 %v6573_v18, %v6573_v18  ;;  %v6350_v22 = vmax.f32 %v5902_v63, 0.0 }
 0x2fa   : > { %v6574_v23 = vmax.f32 %v6126_v21, 0.0  ;;  %v4028_v59 = vpop.f32.mrb[252].mxu0  ;;  %v4924_v24 = vpop.f32.mrb[252].mxu1 }
 0x2fb   : > { %8590 = vst.msk [vmem:[%s11666_s28 + $0x1f0] sm:$0xf] %vm8465_vm3, %v10298_v19  ;;  %8814 = vst.msk [vmem:[%s11666_s28 + $0x570] sm:$0xf] %vm8465_vm3, %v10522_v20  ;;  %v10299_v26 = vpack.c.bf16 %v6350_v22, %v6350_v22  ;;  %v5448_v28 = vmul.f32 %v12951_v25, %v4028_v59  ;;  %v5672_v29 = vmul.f32 %v12951_v25, %v4924_v24  ;;  %v4030_v30 = vpop.f32.mrb[253].mxu0  ;;  %v4926_v31 = vpop.f32.mrb[253].mxu1 }
 0x2fc   : > { %v10523_v27 = vpack.c.bf16 %v6574_v23, %v6574_v23  ;;  %v4031_v34 = vpop.f32.mrb[254].mxu0  ;;  %v4927_v35 = vpop.f32.mrb[254].mxu1  ;;  %v11238_v30 = vld [vmem:[%s11454_s5 + $0x5d4] ss:$8 sps:$4 sm:$0xff]  }
 0x2fd   : > { %8591 = vst.msk [vmem:[%s11666_s28 + $0x1f4] sm:$0xf] %vm8465_vm3, %v10299_v26  ;;  %v5903_v39 = vadd.f32 %v12958_v3, %v5448_v28  ;;  %v6127_v40 = vadd.f32 %v12958_v3, %v5672_v29  ;;  %v5449_v41 = vmul.f32 %v12951_v25, %v4031_v34  ;;  %v5673_v42 = vmul.f32 %v12951_v25, %v4927_v35  ;;  %v4033_v43 = vpop.f32.mrb[255].mxu0  ;;  %v4929_v44 = vpop.f32.mrb[255].mxu1  ;;  %v11230_v26 = vld [vmem:[%s11454_s5 + $0x5c0] ss:$8 sps:$4 sm:$0xff]  }
 0x2fe   : > { %8815 = vst.msk [vmem:[%s11666_s28 + $0x574] sm:$0xf] %vm8465_vm3, %v10523_v27  ;;  %v11233_v27 = vld [vmem:[%s11454_s5 + $0xcc0] ss:$8 sps:$4 sm:$0xff]   ;;  %v11241_v31 = vld [vmem:[%s11454_s5 + $0xcd4] ss:$8 sps:$4 sm:$0xff]  }
 0x2ff   : > { %v6351_v45 = vmax.f32 %v5903_v39, 0.0  ;;  %v6575_v46 = vmax.f32 %v6127_v40, 0.0  ;;  %v5904_v47 = vadd.f32 %v12958_v3, %v5449_v41  ;;  %v6128_v48 = vadd.f32 %v12958_v3, %v5673_v42  ;;  %4243 = vmatmul.mubr.bf16.gmra.mrb[104].mxu0 %v11218_v32  ;;  %5139 = vmatmul.mubr.bf16.gmra.mrb[104].mxu1 %v11221_v33 }
 0x300   : > { %9588 = vmatprep.mubr.msk.bf16.mxu0 %vm2810_vm0, %v11226_v37  ;;  %9700 = vmatprep.mubr.msk.bf16.mxu1 %vm2810_vm0, %v11229_v38 }
 0x301   : > { %v10300_v49 = vpack.c.bf16 %v6351_v45, %v6351_v45  ;;  %v10524_v50 = vpack.c.bf16 %v6575_v46, %v6575_v46  ;;  %v6352_v51 = vmax.f32 %v5904_v47, 0.0  ;;  %v6576_v52 = vmax.f32 %v6128_v48, 0.0 }
 0x302   : > { %v4036_v53 = vpop.f32.mrb[0].mxu0  ;;  %v4932_v54 = vpop.f32.mrb[0].mxu1 }
 0x303   : > { %8592 = vst.msk [vmem:[%s11666_s28 + $0x1f8] sm:$0xf] %vm8465_vm3, %v10300_v49  ;;  %8816 = vst.msk [vmem:[%s11666_s28 + $0x578] sm:$0xf] %vm8465_vm3, %v10524_v50  ;;  %v10301_v55 = vpack.c.bf16 %v6352_v51, %v6352_v51  ;;  %v10525_v56 = vpack.c.bf16 %v6576_v52, %v6576_v52  ;;  %v5450_v57 = vmul.f32 %v12951_v25, %v4036_v53  ;;  %v4038_v61 = vpop.f32.mrb[1].mxu0  ;;  %v4934_v60 = vpop.f32.mrb[1].mxu1 }
 0x304   : > { %v5674_v58 = vmul.f32 %v12951_v25, %v4932_v54  ;;  %v4039_v1 = vpop.f32.mrb[2].mxu0  ;;  %v4935_v2 = vpop.f32.mrb[2].mxu1  ;;  %v11244_v61 = vld [vmem:[%s11454_s5 + $0x5e4] ss:$8 sps:$4 sm:$0xff]  }
 0x305   : > { %8593 = vst.msk [vmem:[%s11666_s28 + $0x1fc] sm:$0xf] %vm8465_vm3, %v10301_v55  ;;  %8817 = vst.msk [vmem:[%s11666_s28 + $0x57c] sm:$0xf] %vm8465_vm3, %v10525_v56  ;;  %v5905_v5 = vadd.f32 %v12958_v3, %v5450_v57  ;;  %v5451_v7 = vmul.f32 %v12951_v25, %v4039_v1  ;;  %v5675_v8 = vmul.f32 %v12951_v25, %v4935_v2  ;;  %v4041_v9 = vpop.f32.mrb[3].mxu0  ;;  %v4937_v10 = vpop.f32.mrb[3].mxu1 }
 0x306   : > { %v6129_v6 = vadd.f32 %v12958_v3, %v5674_v58  ;;  %v11236_v55 = vld [vmem:[%s11454_s5 + $0x5d0] ss:$8 sps:$4 sm:$0xff]   ;;  %v11247_v60 = vld [vmem:[%s11454_s5 + $0xce4] ss:$8 sps:$4 sm:$0xff]  }
 0x307   : > { %v6353_v11 = vmax.f32 %v5905_v5, 0.0  ;;  %v5906_v13 = vadd.f32 %v12958_v3, %v5451_v7  ;;  %v6130_v14 = vadd.f32 %v12958_v3, %v5675_v8  ;;  %4251 = vmatmul.mubr.bf16.gmra.mrb[108].mxu0 %v11224_v62  ;;  %5147 = vmatmul.mubr.bf16.gmra.mrb[108].mxu1 %v11227_v0  ;;  %v11239_v56 = vld [vmem:[%s11454_s5 + $0xcd0] ss:$8 sps:$4 sm:$0xff]  }
 0x308   : > { %v6577_v12 = vmax.f32 %v6129_v6, 0.0  ;;  %9589 = vmatprep.mubr.msk.bf16.mxu0 %vm2810_vm0, %v11232_v36  ;;  %9701 = vmatprep.mubr.msk.bf16.mxu1 %vm2810_vm0, %v11235_v4 }
 0x309   : > { %v10302_v15 = vpack.c.bf16 %v6353_v11, %v6353_v11  ;;  %v6354_v17 = vmax.f32 %v5906_v13, 0.0  ;;  %v6578_v18 = vmax.f32 %v6130_v14, 0.0 }
 0x30a   : > { %v10526_v16 = vpack.c.bf16 %v6577_v12, %v6577_v12  ;;  %v4044_v63 = vpop.f32.mrb[4].mxu0  ;;  %v4940_v21 = vpop.f32.mrb[4].mxu1 }
 0x30b   : > { %8594 = vst.msk [vmem:[%s11666_s28 + $0x200] sm:$0xf] %vm8465_vm3, %v10302_v15  ;;  %v10303_v19 = vpack.c.bf16 %v6354_v17, %v6354_v17  ;;  %v10527_v20 = vpack.c.bf16 %v6578_v18, %v6578_v18  ;;  %v5452_v22 = vmul.f32 %v12951_v25, %v4044_v63  ;;  %v5676_v23 = vmul.f32 %v12951_v25, %v4940_v21  ;;  %v4046_v59 = vpop.f32.mrb[5].mxu0  ;;  %v4942_v24 = vpop.f32.mrb[5].mxu1 }
 0x30c   : > { %8818 = vst.msk [vmem:[%s11666_s28 + $0x580] sm:$0xf] %vm8465_vm3, %v10526_v16  ;;  %v4047_v28 = vpop.f32.mrb[6].mxu0  ;;  %v4943_v29 = vpop.f32.mrb[6].mxu1  ;;  %v11250_v59 = vld [vmem:[%s11454_s5 + $0x5f4] ss:$8 sps:$4 sm:$0xff]  }
 0x30d   : > { %8595 = vst.msk [vmem:[%s11666_s28 + $0x204] sm:$0xf] %vm8465_vm3, %v10303_v19  ;;  %8819 = vst.msk [vmem:[%s11666_s28 + $0x584] sm:$0xf] %vm8465_vm3, %v10527_v20  ;;  %v5907_v32 = vadd.f32 %v12958_v3, %v5452_v22  ;;  %v6131_v33 = vadd.f32 %v12958_v3, %v5676_v23  ;;  %v5453_v34 = vmul.f32 %v12951_v25, %v4047_v28  ;;  %v4049_v37 = vpop.f32.mrb[7].mxu0  ;;  %v4945_v38 = vpop.f32.mrb[7].mxu1 }
 0x30e   : > { %v5677_v35 = vmul.f32 %v12951_v25, %v4943_v29  ;;  %v11242_v19 = vld [vmem:[%s11454_s5 + $0x5e0] ss:$8 sps:$4 sm:$0xff]   ;;  %v11253_v24 = vld [vmem:[%s11454_s5 + $0xcf4] ss:$8 sps:$4 sm:$0xff]  }
 0x30f   : > { %v6355_v39 = vmax.f32 %v5907_v32, 0.0  ;;  %v6579_v40 = vmax.f32 %v6131_v33, 0.0  ;;  %v5908_v41 = vadd.f32 %v12958_v3, %v5453_v34  ;;  %4259 = vmatmul.mubr.bf16.gmra.mrb[112].mxu0 %v11230_v26  ;;  %5155 = vmatmul.mubr.bf16.gmra.mrb[112].mxu1 %v11233_v27  ;;  %v11245_v20 = vld [vmem:[%s11454_s5 + $0xce0] ss:$8 sps:$4 sm:$0xff]  }
 0x310   : > { %v6132_v42 = vadd.f32 %v12958_v3, %v5677_v35  ;;  %9590 = vmatprep.mubr.msk.bf16.mxu0 %vm2810_vm0, %v11238_v30  ;;  %9702 = vmatprep.mubr.msk.bf16.mxu1 %vm2810_vm0, %v11241_v31 }
 0x311   : > { %v10304_v43 = vpack.c.bf16 %v6355_v39, %v6355_v39  ;;  %v10528_v44 = vpack.c.bf16 %v6579_v40, %v6579_v40  ;;  %v6356_v45 = vmax.f32 %v5908_v41, 0.0 }
 0x312   : > { %v6580_v46 = vmax.f32 %v6132_v42, 0.0  ;;  %v4052_v47 = vpop.f32.mrb[8].mxu0  ;;  %v4948_v48 = vpop.f32.mrb[8].mxu1 }
 0x313   : > { %8596 = vst.msk [vmem:[%s11666_s28 + $0x208] sm:$0xf] %vm8465_vm3, %v10304_v43  ;;  %8820 = vst.msk [vmem:[%s11666_s28 + $0x588] sm:$0xf] %vm8465_vm3, %v10528_v44  ;;  %v10305_v49 = vpack.c.bf16 %v6356_v45, %v6356_v45  ;;  %v5454_v51 = vmul.f32 %v12951_v25, %v4052_v47  ;;  %v5678_v52 = vmul.f32 %v12951_v25, %v4948_v48  ;;  %v4054_v53 = vpop.f32.mrb[9].mxu0  ;;  %v4950_v54 = vpop.f32.mrb[9].mxu1 }
 0x314   : > { %v10529_v50 = vpack.c.bf16 %v6580_v46, %v6580_v46  ;;  %v4055_v57 = vpop.f32.mrb[10].mxu0  ;;  %v4951_v58 = vpop.f32.mrb[10].mxu1  ;;  %v11256_v53 = vld [vmem:[%s11454_s5 + $0x604] ss:$8 sps:$4 sm:$0xff]  }
 0x315   : > { %8597 = vst.msk [vmem:[%s11666_s28 + $0x20c] sm:$0xf] %vm8465_vm3, %v10305_v49  ;;  %v5909_v62 = vadd.f32 %v12958_v3, %v5454_v51  ;;  %v6133_v0 = vadd.f32 %v12958_v3, %v5678_v52  ;;  %v5455_v1 = vmul.f32 %v12951_v25, %v4055_v57  ;;  %v5679_v2 = vmul.f32 %v12951_v25, %v4951_v58  ;;  %v4057_v36 = vpop.f32.mrb[11].mxu0  ;;  %v4953_v4 = vpop.f32.mrb[11].mxu1  ;;  %v11248_v49 = vld [vmem:[%s11454_s5 + $0x5f0] ss:$8 sps:$4 sm:$0xff]  }
 0x316   : > { %8821 = vst.msk [vmem:[%s11666_s28 + $0x58c] sm:$0xf] %vm8465_vm3, %v10529_v50  ;;  %v11251_v50 = vld [vmem:[%s11454_s5 + $0xcf0] ss:$8 sps:$4 sm:$0xff]   ;;  %v11259_v54 = vld [vmem:[%s11454_s5 + $0xd04] ss:$8 sps:$4 sm:$0xff]  }
 0x317   : > { %v6357_v5 = vmax.f32 %v5909_v62, 0.0  ;;  %v6581_v6 = vmax.f32 %v6133_v0, 0.0  ;;  %v5910_v7 = vadd.f32 %v12958_v3, %v5455_v1  ;;  %v6134_v8 = vadd.f32 %v12958_v3, %v5679_v2  ;;  %4267 = vmatmul.mubr.bf16.gmra.mrb[116].mxu0 %v11236_v55  ;;  %5163 = vmatmul.mubr.bf16.gmra.mrb[116].mxu1 %v11239_v56 }
 0x318   : > { %9591 = vmatprep.mubr.msk.bf16.mxu0 %vm2810_vm0, %v11244_v61  ;;  %9703 = vmatprep.mubr.msk.bf16.mxu1 %vm2810_vm0, %v11247_v60 }
 0x319   : > { %v10306_v9 = vpack.c.bf16 %v6357_v5, %v6357_v5  ;;  %v10530_v10 = vpack.c.bf16 %v6581_v6, %v6581_v6  ;;  %v6358_v11 = vmax.f32 %v5910_v7, 0.0  ;;  %v6582_v12 = vmax.f32 %v6134_v8, 0.0 }
 0x31a   : > { %v4060_v13 = vpop.f32.mrb[12].mxu0  ;;  %v4956_v14 = vpop.f32.mrb[12].mxu1 }
 0x31b   : > { %8598 = vst.msk [vmem:[%s11666_s28 + $0x210] sm:$0xf] %vm8465_vm3, %v10306_v9  ;;  %8822 = vst.msk [vmem:[%s11666_s28 + $0x590] sm:$0xf] %vm8465_vm3, %v10530_v10  ;;  %v10307_v15 = vpack.c.bf16 %v6358_v11, %v6358_v11  ;;  %v10531_v16 = vpack.c.bf16 %v6582_v12, %v6582_v12  ;;  %v5456_v17 = vmul.f32 %v12951_v25, %v4060_v13  ;;  %v4062_v63 = vpop.f32.mrb[13].mxu0  ;;  %v4958_v21 = vpop.f32.mrb[13].mxu1 }
 0x31c   : > { %v5680_v18 = vmul.f32 %v12951_v25, %v4956_v14  ;;  %v4063_v22 = vpop.f32.mrb[14].mxu0  ;;  %v4959_v23 = vpop.f32.mrb[14].mxu1  ;;  %v11262_v63 = vld [vmem:[%s11454_s5 + $0x614] ss:$8 sps:$4 sm:$0xff]  }
 0x31d   : > { %8599 = vst.msk [vmem:[%s11666_s28 + $0x214] sm:$0xf] %vm8465_vm3, %v10307_v15  ;;  %8823 = vst.msk [vmem:[%s11666_s28 + $0x594] sm:$0xf] %vm8465_vm3, %v10531_v16  ;;  %v5911_v26 = vadd.f32 %v12958_v3, %v5456_v17  ;;  %v5457_v28 = vmul.f32 %v12951_v25, %v4063_v22  ;;  %v5681_v29 = vmul.f32 %v12951_v25, %v4959_v23  ;;  %v4065_v30 = vpop.f32.mrb[15].mxu0  ;;  %v4961_v31 = vpop.f32.mrb[15].mxu1 }
 0x31e   : > { %v6135_v27 = vadd.f32 %v12958_v3, %v5680_v18  ;;  %v11254_v15 = vld [vmem:[%s11454_s5 + $0x600] ss:$8 sps:$4 sm:$0xff]   ;;  %v11265_v21 = vld [vmem:[%s11454_s5 + $0xd14] ss:$8 sps:$4 sm:$0xff]  }
 0x31f   : > { %v6359_v32 = vmax.f32 %v5911_v26, 0.0  ;;  %v5912_v34 = vadd.f32 %v12958_v3, %v5457_v28  ;;  %v6136_v35 = vadd.f32 %v12958_v3, %v5681_v29  ;;  %4275 = vmatmul.mubr.bf16.gmra.mrb[120].mxu0 %v11242_v19  ;;  %5171 = vmatmul.mubr.bf16.gmra.mrb[120].mxu1 %v11245_v20  ;;  %v11257_v16 = vld [vmem:[%s11454_s5 + $0xd00] ss:$8 sps:$4 sm:$0xff]  }
 0x320   : > { %v6583_v33 = vmax.f32 %v6135_v27, 0.0  ;;  %9592 = vmatprep.mubr.msk.bf16.mxu0 %vm2810_vm0, %v11250_v59  ;;  %9704 = vmatprep.mubr.msk.bf16.mxu1 %vm2810_vm0, %v11253_v24 }
 0x321   : > { %v10308_v37 = vpack.c.bf16 %v6359_v32, %v6359_v32  ;;  %v6360_v39 = vmax.f32 %v5912_v34, 0.0  ;;  %v6584_v40 = vmax.f32 %v6136_v35, 0.0 }
 0x322   : > { %v10532_v38 = vpack.c.bf16 %v6583_v33, %v6583_v33  ;;  %v4068_v41 = vpop.f32.mrb[16].mxu0  ;;  %v4964_v42 = vpop.f32.mrb[16].mxu1 }
 0x323   : > { %8600 = vst.msk [vmem:[%s11666_s28 + $0x218] sm:$0xf] %vm8465_vm3, %v10308_v37  ;;  %v10309_v43 = vpack.c.bf16 %v6360_v39, %v6360_v39  ;;  %v10533_v44 = vpack.c.bf16 %v6584_v40, %v6584_v40  ;;  %v5458_v45 = vmul.f32 %v12951_v25, %v4068_v41  ;;  %v5682_v46 = vmul.f32 %v12951_v25, %v4964_v42  ;;  %v4070_v47 = vpop.f32.mrb[17].mxu0  ;;  %v4966_v48 = vpop.f32.mrb[17].mxu1 }
 0x324   : > { %8824 = vst.msk [vmem:[%s11666_s28 + $0x598] sm:$0xf] %vm8465_vm3, %v10532_v38  ;;  %v4071_v51 = vpop.f32.mrb[18].mxu0  ;;  %v4967_v52 = vpop.f32.mrb[18].mxu1  ;;  %v11268_v47 = vld [vmem:[%s11454_s5 + $0x624] ss:$8 sps:$4 sm:$0xff]  }
 0x325   : > { %8601 = vst.msk [vmem:[%s11666_s28 + $0x21c] sm:$0xf] %vm8465_vm3, %v10309_v43  ;;  %8825 = vst.msk [vmem:[%s11666_s28 + $0x59c] sm:$0xf] %vm8465_vm3, %v10533_v44  ;;  %v5913_v55 = vadd.f32 %v12958_v3, %v5458_v45  ;;  %v6137_v56 = vadd.f32 %v12958_v3, %v5682_v46  ;;  %v5459_v57 = vmul.f32 %v12951_v25, %v4071_v51  ;;  %v4073_v61 = vpop.f32.mrb[19].mxu0  ;;  %v4969_v60 = vpop.f32.mrb[19].mxu1 }
 0x326   : > { %v5683_v58 = vmul.f32 %v12951_v25, %v4967_v52  ;;  %v11260_v43 = vld [vmem:[%s11454_s5 + $0x610] ss:$8 sps:$4 sm:$0xff]   ;;  %v11271_v48 = vld [vmem:[%s11454_s5 + $0xd24] ss:$8 sps:$4 sm:$0xff]  }
 0x327   : > { %v6361_v62 = vmax.f32 %v5913_v55, 0.0  ;;  %v6585_v0 = vmax.f32 %v6137_v56, 0.0  ;;  %v5914_v1 = vadd.f32 %v12958_v3, %v5459_v57  ;;  %4283 = vmatmul.mubr.bf16.gmra.mrb[124].mxu0 %v11248_v49  ;;  %5179 = vmatmul.mubr.bf16.gmra.mrb[124].mxu1 %v11251_v50  ;;  %v11263_v44 = vld [vmem:[%s11454_s5 + $0xd10] ss:$8 sps:$4 sm:$0xff]  }
 0x328   : > { %v6138_v2 = vadd.f32 %v12958_v3, %v5683_v58  ;;  %9593 = vmatprep.mubr.msk.bf16.mxu0 %vm2810_vm0, %v11256_v53  ;;  %9705 = vmatprep.mubr.msk.bf16.mxu1 %vm2810_vm0, %v11259_v54 }
 0x329   : > { %v10310_v36 = vpack.c.bf16 %v6361_v62, %v6361_v62  ;;  %v10534_v4 = vpack.c.bf16 %v6585_v0, %v6585_v0  ;;  %v6362_v5 = vmax.f32 %v5914_v1, 0.0 }
 0x32a   : > { %v6586_v6 = vmax.f32 %v6138_v2, 0.0  ;;  %v4076_v7 = vpop.f32.mrb[20].mxu0  ;;  %v4972_v8 = vpop.f32.mrb[20].mxu1 }
 0x32b   : > { %8602 = vst.msk [vmem:[%s11666_s28 + $0x220] sm:$0xf] %vm8465_vm3, %v10310_v36  ;;  %8826 = vst.msk [vmem:[%s11666_s28 + $0x5a0] sm:$0xf] %vm8465_vm3, %v10534_v4  ;;  %v10311_v9 = vpack.c.bf16 %v6362_v5, %v6362_v5  ;;  %v5460_v11 = vmul.f32 %v12951_v25, %v4076_v7  ;;  %v5684_v12 = vmul.f32 %v12951_v25, %v4972_v8  ;;  %v4078_v13 = vpop.f32.mrb[21].mxu0  ;;  %v4974_v14 = vpop.f32.mrb[21].mxu1 }
 0x32c   : > { %v10535_v10 = vpack.c.bf16 %v6586_v6, %v6586_v6  ;;  %v4079_v17 = vpop.f32.mrb[22].mxu0  ;;  %v4975_v18 = vpop.f32.mrb[22].mxu1  ;;  %v11274_v13 = vld [vmem:[%s11454_s5 + $0x634] ss:$8 sps:$4 sm:$0xff]  }
 0x32d   : > { %8603 = vst.msk [vmem:[%s11666_s28 + $0x224] sm:$0xf] %vm8465_vm3, %v10311_v9  ;;  %v5915_v19 = vadd.f32 %v12958_v3, %v5460_v11  ;;  %v6139_v20 = vadd.f32 %v12958_v3, %v5684_v12  ;;  %v5461_v22 = vmul.f32 %v12951_v25, %v4079_v17  ;;  %v5685_v23 = vmul.f32 %v12951_v25, %v4975_v18  ;;  %v4081_v59 = vpop.f32.mrb[23].mxu0  ;;  %v4977_v24 = vpop.f32.mrb[23].mxu1  ;;  %v11266_v9 = vld [vmem:[%s11454_s5 + $0x620] ss:$8 sps:$4 sm:$0xff]  }
 0x32e   : > { %8827 = vst.msk [vmem:[%s11666_s28 + $0x5a4] sm:$0xf] %vm8465_vm3, %v10535_v10  ;;  %v11269_v10 = vld [vmem:[%s11454_s5 + $0xd20] ss:$8 sps:$4 sm:$0xff]   ;;  %v11277_v14 = vld [vmem:[%s11454_s5 + $0xd34] ss:$8 sps:$4 sm:$0xff]  }
 0x32f   : > { %v6363_v26 = vmax.f32 %v5915_v19, 0.0  ;;  %v6587_v27 = vmax.f32 %v6139_v20, 0.0  ;;  %v5916_v28 = vadd.f32 %v12958_v3, %v5461_v22  ;;  %v6140_v29 = vadd.f32 %v12958_v3, %v5685_v23  ;;  %4291 = vmatmul.mubr.bf16.gmra.mrb[128].mxu0 %v11254_v15  ;;  %5187 = vmatmul.mubr.bf16.gmra.mrb[128].mxu1 %v11257_v16 }
 0x330   : > { %9594 = vmatprep.mubr.msk.bf16.mxu0 %vm2810_vm0, %v11262_v63  ;;  %9706 = vmatprep.mubr.msk.bf16.mxu1 %vm2810_vm0, %v11265_v21 }
 0x331   : > { %v10312_v30 = vpack.c.bf16 %v6363_v26, %v6363_v26  ;;  %v10536_v31 = vpack.c.bf16 %v6587_v27, %v6587_v27  ;;  %v6364_v32 = vmax.f32 %v5916_v28, 0.0  ;;  %v6588_v33 = vmax.f32 %v6140_v29, 0.0 }
 0x332   : > { %v4084_v34 = vpop.f32.mrb[24].mxu0  ;;  %v4980_v35 = vpop.f32.mrb[24].mxu1 }
 0x333   : > { %8604 = vst.msk [vmem:[%s11666_s28 + $0x228] sm:$0xf] %vm8465_vm3, %v10312_v30  ;;  %8828 = vst.msk [vmem:[%s11666_s28 + $0x5a8] sm:$0xf] %vm8465_vm3, %v10536_v31  ;;  %v10313_v37 = vpack.c.bf16 %v6364_v32, %v6364_v32  ;;  %v10537_v38 = vpack.c.bf16 %v6588_v33, %v6588_v33  ;;  %v5462_v39 = vmul.f32 %v12951_v25, %v4084_v34  ;;  %v4086_v41 = vpop.f32.mrb[25].mxu0  ;;  %v4982_v42 = vpop.f32.mrb[25].mxu1 }
 0x334   : > { %v5686_v40 = vmul.f32 %v12951_v25, %v4980_v35  ;;  %v4087_v45 = vpop.f32.mrb[26].mxu0  ;;  %v4983_v46 = vpop.f32.mrb[26].mxu1  ;;  %v13279_v30 = vld [vmem:[%s14035_s2] ss:$0 sm:$0xff]  ;;  %v11272_v35 = vld [vmem:[%s11454_s5 + $0x630] ss:$8 sps:$4 sm:$0xff]  }
 0x335   : > { %8605 = vst.msk [vmem:[%s11666_s28 + $0x22c] sm:$0xf] %vm8465_vm3, %v10313_v37  ;;  %8829 = vst.msk [vmem:[%s11666_s28 + $0x5ac] sm:$0xf] %vm8465_vm3, %v10537_v38  ;;  %v5917_v49 = vadd.f32 %v12958_v3, %v5462_v39  ;;  %v5463_v51 = vmul.f32 %v12951_v25, %v4087_v45  ;;  %v5687_v52 = vmul.f32 %v12951_v25, %v4983_v46  ;;  %v4089_v53 = vpop.f32.mrb[27].mxu0  ;;  %v4985_v54 = vpop.f32.mrb[27].mxu1 }
 0x336   : > { %v6141_v50 = vadd.f32 %v12958_v3, %v5686_v40  ;;  %v11275_v37 = vld [vmem:[%s11454_s5 + $0xd30] ss:$8 sps:$4 sm:$0xff]   ;;  %v11280_v40 = vld [vmem:[%s11454_s5 + $0x644] ss:$8 sps:$4 sm:$0xff]   ;;  %v13294_v42 = vld [vmem:[%s14036_s3] ss:$0 sm:$0xff] }
 0x337   : > { %v6365_v55 = vmax.f32 %v5917_v49, 0.0  ;;  %v5918_v57 = vadd.f32 %v12958_v3, %v5463_v51  ;;  %v6142_v58 = vadd.f32 %v12958_v3, %v5687_v52  ;;  %4299 = vmatmul.mubr.bf16.gmra.mrb[132].mxu0 %v11260_v43  ;;  %5195 = vmatmul.mubr.bf16.gmra.mrb[132].mxu1 %v11263_v44  ;;  %v11283_v41 = vld [vmem:[%s11454_s5 + $0xd44] ss:$8 sps:$4 sm:$0xff]  }
 0x338   : > { %v6589_v56 = vmax.f32 %v6141_v50, 0.0  ;;  %9595 = vmatprep.mubr.msk.bf16.mxu0 %vm2810_vm0, %v11268_v47  ;;  %9707 = vmatprep.mubr.msk.bf16.mxu1 %vm2810_vm0, %v11271_v48 }
 0x339   : > { %v10314_v61 = vpack.c.bf16 %v6365_v55, %v6365_v55  ;;  %v6366_v62 = vmax.f32 %v5918_v57, 0.0  ;;  %v6590_v0 = vmax.f32 %v6142_v58, 0.0 }
 0x33a   : > { %v10538_v60 = vpack.c.bf16 %v6589_v56, %v6589_v56  ;;  %v4092_v1 = vpop.f32.mrb[28].mxu0  ;;  %v4988_v2 = vpop.f32.mrb[28].mxu1 }
 0x33b   : > { %8606 = vst.msk [vmem:[%s11666_s28 + $0x230] sm:$0xf] %vm8465_vm3, %v10314_v61  ;;  %v10315_v36 = vpack.c.bf16 %v6366_v62, %v6366_v62  ;;  %v10539_v4 = vpack.c.bf16 %v6590_v0, %v6590_v0  ;;  %v5464_v5 = vmul.f32 %v12951_v25, %v4092_v1  ;;  %v5688_v6 = vmul.f32 %v12951_v25, %v4988_v2  ;;  %v4094_v7 = vpop.f32.mrb[29].mxu0  ;;  %v4990_v8 = vpop.f32.mrb[29].mxu1 }
 0x33c   : > { %8830 = vst.msk [vmem:[%s11666_s28 + $0x5b0] sm:$0xf] %vm8465_vm3, %v10538_v60  ;;  %v4095_v11 = vpop.f32.mrb[30].mxu0  ;;  %v4991_v12 = vpop.f32.mrb[30].mxu1  ;;  %v11286_v7 = vld [vmem:[%s11454_s5 + $0x654] ss:$8 sps:$4 sm:$0xff]  }
 0x33d   : > { %8607 = vst.msk [vmem:[%s11666_s28 + $0x234] sm:$0xf] %vm8465_vm3, %v10315_v36  ;;  %8831 = vst.msk [vmem:[%s11666_s28 + $0x5b4] sm:$0xf] %vm8465_vm3, %v10539_v4  ;;  %v5919_v15 = vadd.f32 %v12958_v3, %v5464_v5  ;;  %v6143_v16 = vadd.f32 %v12958_v3, %v5688_v6  ;;  %v5465_v17 = vmul.f32 %v12951_v25, %v4095_v11  ;;  %v4097_v63 = vpop.f32.mrb[31].mxu0  ;;  %v4993_v21 = vpop.f32.mrb[31].mxu1 }
 0x33e   : > { %v5689_v18 = vmul.f32 %v12951_v25, %v4991_v12  ;;  %v11278_v36 = vld [vmem:[%s11454_s5 + $0x640] ss:$8 sps:$4 sm:$0xff]   ;;  %v11289_v8 = vld [vmem:[%s11454_s5 + $0xd54] ss:$8 sps:$4 sm:$0xff]  }
 0x33f   : > { %v6367_v19 = vmax.f32 %v5919_v15, 0.0  ;;  %v6591_v20 = vmax.f32 %v6143_v16, 0.0  ;;  %v5920_v22 = vadd.f32 %v12958_v3, %v5465_v17  ;;  %4307 = vmatmul.mubr.bf16.gmra.mrb[136].mxu0 %v11266_v9  ;;  %5203 = vmatmul.mubr.bf16.gmra.mrb[136].mxu1 %v11269_v10  ;;  %v11281_v4 = vld [vmem:[%s11454_s5 + $0xd40] ss:$8 sps:$4 sm:$0xff]  }
 0x340   : > { %v6144_v23 = vadd.f32 %v12958_v3, %v5689_v18  ;;  %9596 = vmatprep.mubr.msk.bf16.mxu0 %vm2810_vm0, %v11274_v13  ;;  %9708 = vmatprep.mubr.msk.bf16.mxu1 %vm2810_vm0, %v11277_v14 }
 0x341   : > { %v10316_v59 = vpack.c.bf16 %v6367_v19, %v6367_v19  ;;  %v10540_v25 = vpack.c.bf16 %v6591_v20, %v6591_v20  ;;  %v6368_v24 = vmax.f32 %v5920_v22, 0.0 }
 0x342   : > { %v6592_v26 = vmax.f32 %v6144_v23, 0.0  ;;  %v4100_v27 = vpop.f32.mrb[32].mxu0  ;;  %v4996_v28 = vpop.f32.mrb[32].mxu1 }
 0x343   : > { %8608 = vst.msk [vmem:[%s11666_s28 + $0x238] sm:$0xf] %vm8465_vm3, %v10316_v59  ;;  %8832 = vst.msk [vmem:[%s11666_s28 + $0x5b8] sm:$0xf] %vm8465_vm3, %v10540_v25  ;;  %v10317_v3 = vpack.c.bf16 %v6368_v24, %v6368_v24  ;;  %v5466_v31 = vmul.f32 %v13279_v30, %v4100_v27  ;;  %v5690_v32 = vmul.f32 %v13279_v30, %v4996_v28  ;;  %v4102_v33 = vpop.f32.mrb[33].mxu0  ;;  %v4998_v34 = vpop.f32.mrb[33].mxu1 }
 0x344   : > { %v10541_v29 = vpack.c.bf16 %v6592_v26, %v6592_v26  ;;  %v4103_v38 = vpop.f32.mrb[34].mxu0  ;;  %v4999_v39 = vpop.f32.mrb[34].mxu1  ;;  %v11292_v33 = vld [vmem:[%s11454_s5 + $0x664] ss:$8 sps:$4 sm:$0xff]  }
 0x345   : > { %8609 = vst.msk [vmem:[%s11666_s28 + $0x23c] sm:$0xf] %vm8465_vm3, %v10317_v3  ;;  %v5921_v43 = vadd.f32 %v13294_v42, %v5466_v31  ;;  %v6145_v44 = vadd.f32 %v13294_v42, %v5690_v32  ;;  %v5467_v45 = vmul.f32 %v13279_v30, %v4103_v38  ;;  %v5691_v46 = vmul.f32 %v13279_v30, %v4999_v39  ;;  %v4105_v47 = vpop.f32.mrb[35].mxu0  ;;  %v5001_v48 = vpop.f32.mrb[35].mxu1  ;;  %v11284_v3 = vld [vmem:[%s11454_s5 + $0x650] ss:$8 sps:$4 sm:$0xff]  }
 0x346   : > { %8833 = vst.msk [vmem:[%s11666_s28 + $0x5bc] sm:$0xf] %vm8465_vm3, %v10541_v29  ;;  %v11287_v29 = vld [vmem:[%s11454_s5 + $0xd50] ss:$8 sps:$4 sm:$0xff]   ;;  %v11295_v34 = vld [vmem:[%s11454_s5 + $0xd64] ss:$8 sps:$4 sm:$0xff]  }
 0x347   : > { %v6369_v49 = vmax.f32 %v5921_v43, 0.0  ;;  %v6593_v50 = vmax.f32 %v6145_v44, 0.0  ;;  %v5922_v51 = vadd.f32 %v13294_v42, %v5467_v45  ;;  %v6146_v52 = vadd.f32 %v13294_v42, %v5691_v46  ;;  %4315 = vmatmul.mubr.bf16.gmra.mrb[140].mxu0 %v11272_v35  ;;  %5211 = vmatmul.mubr.bf16.gmra.mrb[140].mxu1 %v11275_v37 }
 0x348   : > { %9597 = vmatprep.mubr.msk.bf16.mxu0 %vm2810_vm0, %v11280_v40  ;;  %9709 = vmatprep.mubr.msk.bf16.mxu1 %vm2810_vm0, %v11283_v41 }
 0x349   : > { %v10318_v53 = vpack.c.bf16 %v6369_v49, %v6369_v49  ;;  %v10542_v54 = vpack.c.bf16 %v6593_v50, %v6593_v50  ;;  %v6370_v55 = vmax.f32 %v5922_v51, 0.0  ;;  %v6594_v56 = vmax.f32 %v6146_v52, 0.0 }
 0x34a   : > { %v4108_v57 = vpop.f32.mrb[36].mxu0  ;;  %v5004_v58 = vpop.f32.mrb[36].mxu1 }
 0x34b   : > { %8610 = vst.msk [vmem:[%s11666_s28 + $0x240] sm:$0xf] %vm8465_vm3, %v10318_v53  ;;  %8834 = vst.msk [vmem:[%s11666_s28 + $0x5c0] sm:$0xf] %vm8465_vm3, %v10542_v54  ;;  %v10319_v61 = vpack.c.bf16 %v6370_v55, %v6370_v55  ;;  %v10543_v60 = vpack.c.bf16 %v6594_v56, %v6594_v56  ;;  %v5468_v62 = vmul.f32 %v13279_v30, %v4108_v57  ;;  %v4110_v1 = vpop.f32.mrb[37].mxu0  ;;  %v5006_v2 = vpop.f32.mrb[37].mxu1 }
 0x34c   : > { %v5692_v0 = vmul.f32 %v13279_v30, %v5004_v58  ;;  %v4111_v5 = vpop.f32.mrb[38].mxu0  ;;  %v5007_v6 = vpop.f32.mrb[38].mxu1  ;;  %v11298_v1 = vld [vmem:[%s11454_s5 + $0x674] ss:$8 sps:$4 sm:$0xff]  }
 0x34d   : > { %8611 = vst.msk [vmem:[%s11666_s28 + $0x244] sm:$0xf] %vm8465_vm3, %v10319_v61  ;;  %8835 = vst.msk [vmem:[%s11666_s28 + $0x5c4] sm:$0xf] %vm8465_vm3, %v10543_v60  ;;  %v5923_v9 = vadd.f32 %v13294_v42, %v5468_v62  ;;  %v5469_v11 = vmul.f32 %v13279_v30, %v4111_v5  ;;  %v5693_v12 = vmul.f32 %v13279_v30, %v5007_v6  ;;  %v4113_v13 = vpop.f32.mrb[39].mxu0  ;;  %v5009_v14 = vpop.f32.mrb[39].mxu1 }
 0x34e   : > { %v6147_v10 = vadd.f32 %v13294_v42, %v5692_v0  ;;  %v11290_v61 = vld [vmem:[%s11454_s5 + $0x660] ss:$8 sps:$4 sm:$0xff]   ;;  %v11301_v2 = vld [vmem:[%s11454_s5 + $0xd74] ss:$8 sps:$4 sm:$0xff]  }
 0x34f   : > { %v6371_v15 = vmax.f32 %v5923_v9, 0.0  ;;  %v5924_v17 = vadd.f32 %v13294_v42, %v5469_v11  ;;  %v6148_v18 = vadd.f32 %v13294_v42, %v5693_v12  ;;  %4323 = vmatmul.mubr.bf16.gmra.mrb[144].mxu0 %v11278_v36  ;;  %5219 = vmatmul.mubr.bf16.gmra.mrb[144].mxu1 %v11281_v4  ;;  %v11293_v60 = vld [vmem:[%s11454_s5 + $0xd60] ss:$8 sps:$4 sm:$0xff]  }
 0x350   : > { %v6595_v16 = vmax.f32 %v6147_v10, 0.0  ;;  %9598 = vmatprep.mubr.msk.bf16.mxu0 %vm2810_vm0, %v11286_v7  ;;  %9710 = vmatprep.mubr.msk.bf16.mxu1 %vm2810_vm0, %v11289_v8 }
 0x351   : > { %v10320_v63 = vpack.c.bf16 %v6371_v15, %v6371_v15  ;;  %v6372_v19 = vmax.f32 %v5924_v17, 0.0  ;;  %v6596_v20 = vmax.f32 %v6148_v18, 0.0 }
 0x352   : > { %v10544_v21 = vpack.c.bf16 %v6595_v16, %v6595_v16  ;;  %v4116_v22 = vpop.f32.mrb[40].mxu0  ;;  %v5012_v23 = vpop.f32.mrb[40].mxu1 }
 0x353   : > { %8612 = vst.msk [vmem:[%s11666_s28 + $0x248] sm:$0xf] %vm8465_vm3, %v10320_v63  ;;  %v10321_v59 = vpack.c.bf16 %v6372_v19, %v6372_v19  ;;  %v10545_v25 = vpack.c.bf16 %v6596_v20, %v6596_v20  ;;  %v5470_v24 = vmul.f32 %v13279_v30, %v4116_v22  ;;  %v5694_v26 = vmul.f32 %v13279_v30, %v5012_v23  ;;  %v4118_v27 = vpop.f32.mrb[41].mxu0  ;;  %v5014_v28 = vpop.f32.mrb[41].mxu1 }
 0x354   : > { %8836 = vst.msk [vmem:[%s11666_s28 + $0x5c8] sm:$0xf] %vm8465_vm3, %v10544_v21  ;;  %v4119_v31 = vpop.f32.mrb[42].mxu0  ;;  %v5015_v32 = vpop.f32.mrb[42].mxu1  ;;  %v11304_v27 = vld [vmem:[%s11454_s5 + $0x684] ss:$8 sps:$4 sm:$0xff]  }
 0x355   : > { %8613 = vst.msk [vmem:[%s11666_s28 + $0x24c] sm:$0xf] %vm8465_vm3, %v10321_v59  ;;  %8837 = vst.msk [vmem:[%s11666_s28 + $0x5cc] sm:$0xf] %vm8465_vm3, %v10545_v25  ;;  %v5925_v35 = vadd.f32 %v13294_v42, %v5470_v24  ;;  %v6149_v37 = vadd.f32 %v13294_v42, %v5694_v26  ;;  %v5471_v38 = vmul.f32 %v13279_v30, %v4119_v31  ;;  %v4121_v40 = vpop.f32.mrb[43].mxu0  ;;  %v5017_v41 = vpop.f32.mrb[43].mxu1 }
 0x356   : > { %v5695_v39 = vmul.f32 %v13279_v30, %v5015_v32  ;;  %v11296_v59 = vld [vmem:[%s11454_s5 + $0x670] ss:$8 sps:$4 sm:$0xff]   ;;  %v11307_v28 = vld [vmem:[%s11454_s5 + $0xd84] ss:$8 sps:$4 sm:$0xff]  }
 0x357   : > { %v6373_v43 = vmax.f32 %v5925_v35, 0.0  ;;  %v6597_v44 = vmax.f32 %v6149_v37, 0.0  ;;  %v5926_v45 = vadd.f32 %v13294_v42, %v5471_v38  ;;  %4331 = vmatmul.mubr.bf16.gmra.mrb[148].mxu0 %v11284_v3  ;;  %5227 = vmatmul.mubr.bf16.gmra.mrb[148].mxu1 %v11287_v29  ;;  %v11299_v25 = vld [vmem:[%s11454_s5 + $0xd70] ss:$8 sps:$4 sm:$0xff]  }
 0x358   : > { %v6150_v46 = vadd.f32 %v13294_v42, %v5695_v39  ;;  %9599 = vmatprep.mubr.msk.bf16.mxu0 %vm2810_vm0, %v11292_v33  ;;  %9711 = vmatprep.mubr.msk.bf16.mxu1 %vm2810_vm0, %v11295_v34 }
 0x359   : > { %v10322_v47 = vpack.c.bf16 %v6373_v43, %v6373_v43  ;;  %v10546_v48 = vpack.c.bf16 %v6597_v44, %v6597_v44  ;;  %v6374_v49 = vmax.f32 %v5926_v45, 0.0 }
 0x35a   : > { %v6598_v50 = vmax.f32 %v6150_v46, 0.0  ;;  %v4124_v51 = vpop.f32.mrb[44].mxu0  ;;  %v5020_v52 = vpop.f32.mrb[44].mxu1 }
 0x35b   : > { %8614 = vst.msk [vmem:[%s11666_s28 + $0x250] sm:$0xf] %vm8465_vm3, %v10322_v47  ;;  %8838 = vst.msk [vmem:[%s11666_s28 + $0x5d0] sm:$0xf] %vm8465_vm3, %v10546_v48  ;;  %v10323_v53 = vpack.c.bf16 %v6374_v49, %v6374_v49  ;;  %v5472_v55 = vmul.f32 %v13279_v30, %v4124_v51  ;;  %v5696_v56 = vmul.f32 %v13279_v30, %v5020_v52  ;;  %v4126_v57 = vpop.f32.mrb[45].mxu0  ;;  %v5022_v58 = vpop.f32.mrb[45].mxu1 }
 0x35c   : > { %v10547_v54 = vpack.c.bf16 %v6598_v50, %v6598_v50  ;;  %v4127_v62 = vpop.f32.mrb[46].mxu0  ;;  %v5023_v0 = vpop.f32.mrb[46].mxu1  ;;  %v11310_v57 = vld [vmem:[%s11454_s5 + $0x694] ss:$8 sps:$4 sm:$0xff]  }
 0x35d   : > { %8615 = vst.msk [vmem:[%s11666_s28 + $0x254] sm:$0xf] %vm8465_vm3, %v10323_v53  ;;  %v5927_v36 = vadd.f32 %v13294_v42, %v5472_v55  ;;  %v6151_v4 = vadd.f32 %v13294_v42, %v5696_v56  ;;  %v5473_v5 = vmul.f32 %v13279_v30, %v4127_v62  ;;  %v5697_v6 = vmul.f32 %v13279_v30, %v5023_v0  ;;  %v4129_v7 = vpop.f32.mrb[47].mxu0  ;;  %v5025_v8 = vpop.f32.mrb[47].mxu1  ;;  %v11302_v53 = vld [vmem:[%s11454_s5 + $0x680] ss:$8 sps:$4 sm:$0xff]  }
 0x35e   : > { %8839 = vst.msk [vmem:[%s11666_s28 + $0x5d4] sm:$0xf] %vm8465_vm3, %v10547_v54  ;;  %v11305_v54 = vld [vmem:[%s11454_s5 + $0xd80] ss:$8 sps:$4 sm:$0xff]   ;;  %v11313_v58 = vld [vmem:[%s11454_s5 + $0xd94] ss:$8 sps:$4 sm:$0xff]  }
 0x35f   : > { %v6375_v9 = vmax.f32 %v5927_v36, 0.0  ;;  %v6599_v10 = vmax.f32 %v6151_v4, 0.0  ;;  %v5928_v11 = vadd.f32 %v13294_v42, %v5473_v5  ;;  %v6152_v12 = vadd.f32 %v13294_v42, %v5697_v6  ;;  %4339 = vmatmul.mubr.bf16.gmra.mrb[152].mxu0 %v11290_v61  ;;  %5235 = vmatmul.mubr.bf16.gmra.mrb[152].mxu1 %v11293_v60 }
 0x360   : > { %9600 = vmatprep.mubr.msk.bf16.mxu0 %vm2810_vm0, %v11298_v1  ;;  %9712 = vmatprep.mubr.msk.bf16.mxu1 %vm2810_vm0, %v11301_v2 }
 0x361   : > { %v10324_v13 = vpack.c.bf16 %v6375_v9, %v6375_v9  ;;  %v10548_v14 = vpack.c.bf16 %v6599_v10, %v6599_v10  ;;  %v6376_v15 = vmax.f32 %v5928_v11, 0.0  ;;  %v6600_v16 = vmax.f32 %v6152_v12, 0.0 }
 0x362   : > { %v4132_v17 = vpop.f32.mrb[48].mxu0  ;;  %v5028_v18 = vpop.f32.mrb[48].mxu1 }
 0x363   : > { %8616 = vst.msk [vmem:[%s11666_s28 + $0x258] sm:$0xf] %vm8465_vm3, %v10324_v13  ;;  %8840 = vst.msk [vmem:[%s11666_s28 + $0x5d8] sm:$0xf] %vm8465_vm3, %v10548_v14  ;;  %v10325_v63 = vpack.c.bf16 %v6376_v15, %v6376_v15  ;;  %v10549_v21 = vpack.c.bf16 %v6600_v16, %v6600_v16  ;;  %v5474_v19 = vmul.f32 %v13279_v30, %v4132_v17  ;;  %v4134_v22 = vpop.f32.mrb[49].mxu0  ;;  %v5030_v23 = vpop.f32.mrb[49].mxu1 }
 0x364   : > { %v5698_v20 = vmul.f32 %v13279_v30, %v5028_v18  ;;  %v4135_v24 = vpop.f32.mrb[50].mxu0  ;;  %v5031_v26 = vpop.f32.mrb[50].mxu1  ;;  %v11316_v22 = vld [vmem:[%s11454_s5 + $0x6a4] ss:$8 sps:$4 sm:$0xff]  }
 0x365   : > { %8617 = vst.msk [vmem:[%s11666_s28 + $0x25c] sm:$0xf] %vm8465_vm3, %v10325_v63  ;;  %8841 = vst.msk [vmem:[%s11666_s28 + $0x5dc] sm:$0xf] %vm8465_vm3, %v10549_v21  ;;  %v5929_v3 = vadd.f32 %v13294_v42, %v5474_v19  ;;  %v5475_v31 = vmul.f32 %v13279_v30, %v4135_v24  ;;  %v5699_v32 = vmul.f32 %v13279_v30, %v5031_v26  ;;  %v4137_v33 = vpop.f32.mrb[51].mxu0  ;;  %v5033_v34 = vpop.f32.mrb[51].mxu1 }
 0x366   : > { %v6153_v29 = vadd.f32 %v13294_v42, %v5698_v20  ;;  %v11308_v63 = vld [vmem:[%s11454_s5 + $0x690] ss:$8 sps:$4 sm:$0xff]   ;;  %v11319_v23 = vld [vmem:[%s11454_s5 + $0xda4] ss:$8 sps:$4 sm:$0xff]  }
 0x367   : > { %v6377_v35 = vmax.f32 %v5929_v3, 0.0  ;;  %v5930_v38 = vadd.f32 %v13294_v42, %v5475_v31  ;;  %v6154_v39 = vadd.f32 %v13294_v42, %v5699_v32  ;;  %4347 = vmatmul.mubr.bf16.gmra.mrb[156].mxu0 %v11296_v59  ;;  %5243 = vmatmul.mubr.bf16.gmra.mrb[156].mxu1 %v11299_v25  ;;  %v11311_v21 = vld [vmem:[%s11454_s5 + $0xd90] ss:$8 sps:$4 sm:$0xff]  }
 0x368   : > { %v6601_v37 = vmax.f32 %v6153_v29, 0.0  ;;  %9601 = vmatprep.mubr.msk.bf16.mxu0 %vm2810_vm0, %v11304_v27  ;;  %9713 = vmatprep.mubr.msk.bf16.mxu1 %vm2810_vm0, %v11307_v28 }
 0x369   : > { %v10326_v40 = vpack.c.bf16 %v6377_v35, %v6377_v35  ;;  %v6378_v43 = vmax.f32 %v5930_v38, 0.0  ;;  %v6602_v44 = vmax.f32 %v6154_v39, 0.0 }
 0x36a   : > { %v10550_v41 = vpack.c.bf16 %v6601_v37, %v6601_v37  ;;  %v4140_v45 = vpop.f32.mrb[52].mxu0  ;;  %v5036_v46 = vpop.f32.mrb[52].mxu1 }
 0x36b   : > { %8618 = vst.msk [vmem:[%s11666_s28 + $0x260] sm:$0xf] %vm8465_vm3, %v10326_v40  ;;  %v10327_v47 = vpack.c.bf16 %v6378_v43, %v6378_v43  ;;  %v10551_v48 = vpack.c.bf16 %v6602_v44, %v6602_v44  ;;  %v5476_v49 = vmul.f32 %v13279_v30, %v4140_v45  ;;  %v5700_v50 = vmul.f32 %v13279_v30, %v5036_v46  ;;  %v4142_v51 = vpop.f32.mrb[53].mxu0  ;;  %v5038_v52 = vpop.f32.mrb[53].mxu1 }
 0x36c   : > { %8842 = vst.msk [vmem:[%s11666_s28 + $0x5e0] sm:$0xf] %vm8465_vm3, %v10550_v41  ;;  %v4143_v55 = vpop.f32.mrb[54].mxu0  ;;  %v5039_v56 = vpop.f32.mrb[54].mxu1  ;;  %v11322_v51 = vld [vmem:[%s11454_s5 + $0x6b4] ss:$8 sps:$4 sm:$0xff]  }
 0x36d   : > { %8619 = vst.msk [vmem:[%s11666_s28 + $0x264] sm:$0xf] %vm8465_vm3, %v10327_v47  ;;  %8843 = vst.msk [vmem:[%s11666_s28 + $0x5e4] sm:$0xf] %vm8465_vm3, %v10551_v48  ;;  %v5931_v61 = vadd.f32 %v13294_v42, %v5476_v49  ;;  %v6155_v60 = vadd.f32 %v13294_v42, %v5700_v50  ;;  %v5477_v62 = vmul.f32 %v13279_v30, %v4143_v55  ;;  %v4145_v1 = vpop.f32.mrb[55].mxu0  ;;  %v5041_v2 = vpop.f32.mrb[55].mxu1 }
 0x36e   : > { %v5701_v0 = vmul.f32 %v13279_v30, %v5039_v56  ;;  %v11314_v47 = vld [vmem:[%s11454_s5 + $0x6a0] ss:$8 sps:$4 sm:$0xff]   ;;  %v11325_v52 = vld [vmem:[%s11454_s5 + $0xdb4] ss:$8 sps:$4 sm:$0xff]  }
 0x36f   : > { %v6379_v36 = vmax.f32 %v5931_v61, 0.0  ;;  %v6603_v4 = vmax.f32 %v6155_v60, 0.0  ;;  %v5932_v5 = vadd.f32 %v13294_v42, %v5477_v62  ;;  %4355 = vmatmul.mubr.bf16.gmra.mrb[160].mxu0 %v11302_v53  ;;  %5251 = vmatmul.mubr.bf16.gmra.mrb[160].mxu1 %v11305_v54  ;;  %v11317_v48 = vld [vmem:[%s11454_s5 + $0xda0] ss:$8 sps:$4 sm:$0xff]  }
 0x370   : > { %v6156_v6 = vadd.f32 %v13294_v42, %v5701_v0  ;;  %9602 = vmatprep.mubr.msk.bf16.mxu0 %vm2810_vm0, %v11310_v57  ;;  %9714 = vmatprep.mubr.msk.bf16.mxu1 %vm2810_vm0, %v11313_v58 }
 0x371   : > { %v10328_v7 = vpack.c.bf16 %v6379_v36, %v6379_v36  ;;  %v10552_v8 = vpack.c.bf16 %v6603_v4, %v6603_v4  ;;  %v6380_v9 = vmax.f32 %v5932_v5, 0.0 }
 0x372   : > { %v6604_v10 = vmax.f32 %v6156_v6, 0.0  ;;  %v4148_v11 = vpop.f32.mrb[56].mxu0  ;;  %v5044_v12 = vpop.f32.mrb[56].mxu1 }
 0x373   : > { %8620 = vst.msk [vmem:[%s11666_s28 + $0x268] sm:$0xf] %vm8465_vm3, %v10328_v7  ;;  %8844 = vst.msk [vmem:[%s11666_s28 + $0x5e8] sm:$0xf] %vm8465_vm3, %v10552_v8  ;;  %v10329_v13 = vpack.c.bf16 %v6380_v9, %v6380_v9  ;;  %v5478_v15 = vmul.f32 %v13279_v30, %v4148_v11  ;;  %v5702_v16 = vmul.f32 %v13279_v30, %v5044_v12  ;;  %v4150_v17 = vpop.f32.mrb[57].mxu0  ;;  %v5046_v18 = vpop.f32.mrb[57].mxu1 }
 0x374   : > { %v10553_v14 = vpack.c.bf16 %v6604_v10, %v6604_v10  ;;  %v4151_v19 = vpop.f32.mrb[58].mxu0  ;;  %v5047_v20 = vpop.f32.mrb[58].mxu1  ;;  %v11328_v17 = vld [vmem:[%s11454_s5 + $0x6c4] ss:$8 sps:$4 sm:$0xff]  }
 0x375   : > { %8621 = vst.msk [vmem:[%s11666_s28 + $0x26c] sm:$0xf] %vm8465_vm3, %v10329_v13  ;;  %v5933_v59 = vadd.f32 %v13294_v42, %v5478_v15  ;;  %v6157_v25 = vadd.f32 %v13294_v42, %v5702_v16  ;;  %v5479_v24 = vmul.f32 %v13279_v30, %v4151_v19  ;;  %v5703_v26 = vmul.f32 %v13279_v30, %v5047_v20  ;;  %v4153_v27 = vpop.f32.mrb[59].mxu0  ;;  %v5049_v28 = vpop.f32.mrb[59].mxu1  ;;  %v11320_v13 = vld [vmem:[%s11454_s5 + $0x6b0] ss:$8 sps:$4 sm:$0xff]  }
 0x376   : > { %8845 = vst.msk [vmem:[%s11666_s28 + $0x5ec] sm:$0xf] %vm8465_vm3, %v10553_v14  ;;  %v11323_v14 = vld [vmem:[%s11454_s5 + $0xdb0] ss:$8 sps:$4 sm:$0xff]   ;;  %v11331_v18 = vld [vmem:[%s11454_s5 + $0xdc4] ss:$8 sps:$4 sm:$0xff]  }
 0x377   : > { %v6381_v3 = vmax.f32 %v5933_v59, 0.0  ;;  %v6605_v29 = vmax.f32 %v6157_v25, 0.0  ;;  %v5934_v31 = vadd.f32 %v13294_v42, %v5479_v24  ;;  %v6158_v32 = vadd.f32 %v13294_v42, %v5703_v26  ;;  %4363 = vmatmul.mubr.bf16.gmra.mrb[164].mxu0 %v11308_v63  ;;  %5259 = vmatmul.mubr.bf16.gmra.mrb[164].mxu1 %v11311_v21 }
 0x378   : > { %9603 = vmatprep.mubr.msk.bf16.mxu0 %vm2810_vm0, %v11316_v22  ;;  %9715 = vmatprep.mubr.msk.bf16.mxu1 %vm2810_vm0, %v11319_v23 }
 0x379   : > { %v10330_v33 = vpack.c.bf16 %v6381_v3, %v6381_v3  ;;  %v10554_v34 = vpack.c.bf16 %v6605_v29, %v6605_v29  ;;  %v6382_v35 = vmax.f32 %v5934_v31, 0.0  ;;  %v6606_v37 = vmax.f32 %v6158_v32, 0.0 }
 0x37a   : > { %v4156_v38 = vpop.f32.mrb[60].mxu0  ;;  %v5052_v39 = vpop.f32.mrb[60].mxu1 }
 0x37b   : > { %8622 = vst.msk [vmem:[%s11666_s28 + $0x270] sm:$0xf] %vm8465_vm3, %v10330_v33  ;;  %8846 = vst.msk [vmem:[%s11666_s28 + $0x5f0] sm:$0xf] %vm8465_vm3, %v10554_v34  ;;  %v10331_v40 = vpack.c.bf16 %v6382_v35, %v6382_v35  ;;  %v10555_v41 = vpack.c.bf16 %v6606_v37, %v6606_v37  ;;  %v5480_v43 = vmul.f32 %v13279_v30, %v4156_v38  ;;  %v4158_v45 = vpop.f32.mrb[61].mxu0  ;;  %v5054_v46 = vpop.f32.mrb[61].mxu1 }
 0x37c   : > { %v5704_v44 = vmul.f32 %v13279_v30, %v5052_v39  ;;  %v4159_v49 = vpop.f32.mrb[62].mxu0  ;;  %v5055_v50 = vpop.f32.mrb[62].mxu1  ;;  %v11334_v45 = vld [vmem:[%s11454_s5 + $0x6d4] ss:$8 sps:$4 sm:$0xff]  }
 0x37d   : > { %8623 = vst.msk [vmem:[%s11666_s28 + $0x274] sm:$0xf] %vm8465_vm3, %v10331_v40  ;;  %8847 = vst.msk [vmem:[%s11666_s28 + $0x5f4] sm:$0xf] %vm8465_vm3, %v10555_v41  ;;  %v5935_v53 = vadd.f32 %v13294_v42, %v5480_v43  ;;  %v5481_v55 = vmul.f32 %v13279_v30, %v4159_v49  ;;  %v5705_v56 = vmul.f32 %v13279_v30, %v5055_v50  ;;  %v4161_v57 = vpop.f32.mrb[63].mxu0  ;;  %v5057_v58 = vpop.f32.mrb[63].mxu1 }
 0x37e   : > { %v6159_v54 = vadd.f32 %v13294_v42, %v5704_v44  ;;  %v11326_v40 = vld [vmem:[%s11454_s5 + $0x6c0] ss:$8 sps:$4 sm:$0xff]   ;;  %v11337_v46 = vld [vmem:[%s11454_s5 + $0xdd4] ss:$8 sps:$4 sm:$0xff]  }
 0x37f   : > { %v6383_v61 = vmax.f32 %v5935_v53, 0.0  ;;  %v5936_v62 = vadd.f32 %v13294_v42, %v5481_v55  ;;  %v6160_v0 = vadd.f32 %v13294_v42, %v5705_v56  ;;  %4371 = vmatmul.mubr.bf16.gmra.mrb[168].mxu0 %v11314_v47  ;;  %5267 = vmatmul.mubr.bf16.gmra.mrb[168].mxu1 %v11317_v48  ;;  %v11329_v41 = vld [vmem:[%s11454_s5 + $0xdc0] ss:$8 sps:$4 sm:$0xff]  }
 0x380   : > { %v6607_v60 = vmax.f32 %v6159_v54, 0.0  ;;  %9604 = vmatprep.mubr.msk.bf16.mxu0 %vm2810_vm0, %v11322_v51  ;;  %9716 = vmatprep.mubr.msk.bf16.mxu1 %vm2810_vm0, %v11325_v52 }
 0x381   : > { %v10332_v1 = vpack.c.bf16 %v6383_v61, %v6383_v61  ;;  %v6384_v36 = vmax.f32 %v5936_v62, 0.0  ;;  %v6608_v4 = vmax.f32 %v6160_v0, 0.0 }
 0x382   : > { %v10556_v2 = vpack.c.bf16 %v6607_v60, %v6607_v60  ;;  %v4164_v5 = vpop.f32.mrb[64].mxu0  ;;  %v5060_v6 = vpop.f32.mrb[64].mxu1 }
 0x383   : > { %8624 = vst.msk [vmem:[%s11666_s28 + $0x278] sm:$0xf] %vm8465_vm3, %v10332_v1  ;;  %v10333_v7 = vpack.c.bf16 %v6384_v36, %v6384_v36  ;;  %v10557_v8 = vpack.c.bf16 %v6608_v4, %v6608_v4  ;;  %v5482_v9 = vmul.f32 %v13279_v30, %v4164_v5  ;;  %v5706_v10 = vmul.f32 %v13279_v30, %v5060_v6  ;;  %v4166_v11 = vpop.f32.mrb[65].mxu0  ;;  %v5062_v12 = vpop.f32.mrb[65].mxu1 }
 0x384   : > { %8848 = vst.msk [vmem:[%s11666_s28 + $0x5f8] sm:$0xf] %vm8465_vm3, %v10556_v2  ;;  %v4167_v15 = vpop.f32.mrb[66].mxu0  ;;  %v5063_v16 = vpop.f32.mrb[66].mxu1  ;;  %v11340_v11 = vld [vmem:[%s11454_s5 + $0x6e4] ss:$8 sps:$4 sm:$0xff]  }
 0x385   : > { %8625 = vst.msk [vmem:[%s11666_s28 + $0x27c] sm:$0xf] %vm8465_vm3, %v10333_v7  ;;  %8849 = vst.msk [vmem:[%s11666_s28 + $0x5fc] sm:$0xf] %vm8465_vm3, %v10557_v8  ;;  %v5937_v63 = vadd.f32 %v13294_v42, %v5482_v9  ;;  %v6161_v21 = vadd.f32 %v13294_v42, %v5706_v10  ;;  %v5483_v19 = vmul.f32 %v13279_v30, %v4167_v15  ;;  %v4169_v22 = vpop.f32.mrb[67].mxu0  ;;  %v5065_v23 = vpop.f32.mrb[67].mxu1 }
 0x386   : > { %v5707_v20 = vmul.f32 %v13279_v30, %v5063_v16  ;;  %v11332_v7 = vld [vmem:[%s11454_s5 + $0x6d0] ss:$8 sps:$4 sm:$0xff]   ;;  %v11343_v12 = vld [vmem:[%s11454_s5 + $0xde4] ss:$8 sps:$4 sm:$0xff]  }
 0x387   : > { %v6385_v59 = vmax.f32 %v5937_v63, 0.0  ;;  %v6609_v25 = vmax.f32 %v6161_v21, 0.0  ;;  %v5938_v24 = vadd.f32 %v13294_v42, %v5483_v19  ;;  %4379 = vmatmul.mubr.bf16.gmra.mrb[172].mxu0 %v11320_v13  ;;  %5275 = vmatmul.mubr.bf16.gmra.mrb[172].mxu1 %v11323_v14  ;;  %v11335_v8 = vld [vmem:[%s11454_s5 + $0xdd0] ss:$8 sps:$4 sm:$0xff]  }
 0x388   : > { %v6162_v26 = vadd.f32 %v13294_v42, %v5707_v20  ;;  %9605 = vmatprep.mubr.msk.bf16.mxu0 %vm2810_vm0, %v11328_v17  ;;  %9717 = vmatprep.mubr.msk.bf16.mxu1 %vm2810_vm0, %v11331_v18 }
 0x389   : > { %v10334_v27 = vpack.c.bf16 %v6385_v59, %v6385_v59  ;;  %v10558_v28 = vpack.c.bf16 %v6609_v25, %v6609_v25  ;;  %v6386_v3 = vmax.f32 %v5938_v24, 0.0 }
 0x38a   : > { %v6610_v29 = vmax.f32 %v6162_v26, 0.0  ;;  %v4172_v31 = vpop.f32.mrb[68].mxu0  ;;  %v5068_v32 = vpop.f32.mrb[68].mxu1 }
 0x38b   : > { %8626 = vst.msk [vmem:[%s11666_s28 + $0x280] sm:$0xf] %vm8465_vm3, %v10334_v27  ;;  %8850 = vst.msk [vmem:[%s11666_s28 + $0x600] sm:$0xf] %vm8465_vm3, %v10558_v28  ;;  %v10335_v33 = vpack.c.bf16 %v6386_v3, %v6386_v3  ;;  %v5484_v35 = vmul.f32 %v13279_v30, %v4172_v31  ;;  %v5708_v37 = vmul.f32 %v13279_v30, %v5068_v32  ;;  %v4174_v38 = vpop.f32.mrb[69].mxu0  ;;  %v5070_v39 = vpop.f32.mrb[69].mxu1 }
 0x38c   : > { %v10559_v34 = vpack.c.bf16 %v6610_v29, %v6610_v29  ;;  %v4175_v43 = vpop.f32.mrb[70].mxu0  ;;  %v5071_v44 = vpop.f32.mrb[70].mxu1  ;;  %v11346_v38 = vld [vmem:[%s11454_s5 + $0x6f4] ss:$8 sps:$4 sm:$0xff]  }
 0x38d   : > { %8627 = vst.msk [vmem:[%s11666_s28 + $0x284] sm:$0xf] %vm8465_vm3, %v10335_v33  ;;  %v5939_v47 = vadd.f32 %v13294_v42, %v5484_v35  ;;  %v6163_v48 = vadd.f32 %v13294_v42, %v5708_v37  ;;  %v5485_v49 = vmul.f32 %v13279_v30, %v4175_v43  ;;  %v5709_v50 = vmul.f32 %v13279_v30, %v5071_v44  ;;  %v4177_v51 = vpop.f32.mrb[71].mxu0  ;;  %v5073_v52 = vpop.f32.mrb[71].mxu1  ;;  %v11338_v33 = vld [vmem:[%s11454_s5 + $0x6e0] ss:$8 sps:$4 sm:$0xff]  }
 0x38e   : > { %8851 = vst.msk [vmem:[%s11666_s28 + $0x604] sm:$0xf] %vm8465_vm3, %v10559_v34  ;;  %v11341_v34 = vld [vmem:[%s11454_s5 + $0xde0] ss:$8 sps:$4 sm:$0xff]   ;;  %v11349_v39 = vld [vmem:[%s11454_s5 + $0xdf4] ss:$8 sps:$4 sm:$0xff]  }
 0x38f   : > { %v6387_v53 = vmax.f32 %v5939_v47, 0.0  ;;  %v6611_v54 = vmax.f32 %v6163_v48, 0.0  ;;  %v5940_v55 = vadd.f32 %v13294_v42, %v5485_v49  ;;  %v6164_v56 = vadd.f32 %v13294_v42, %v5709_v50  ;;  %4387 = vmatmul.mubr.bf16.gmra.mrb[176].mxu0 %v11326_v40  ;;  %5283 = vmatmul.mubr.bf16.gmra.mrb[176].mxu1 %v11329_v41 }
 0x390   : > { %9606 = vmatprep.mubr.msk.bf16.mxu0 %vm2810_vm0, %v11334_v45  ;;  %9718 = vmatprep.mubr.msk.bf16.mxu1 %vm2810_vm0, %v11337_v46 }
 0x391   : > { %v10336_v57 = vpack.c.bf16 %v6387_v53, %v6387_v53  ;;  %v10560_v58 = vpack.c.bf16 %v6611_v54, %v6611_v54  ;;  %v6388_v61 = vmax.f32 %v5940_v55, 0.0  ;;  %v6612_v60 = vmax.f32 %v6164_v56, 0.0 }
 0x392   : > { %v4180_v62 = vpop.f32.mrb[72].mxu0  ;;  %v5076_v0 = vpop.f32.mrb[72].mxu1 }
 0x393   : > { %8628 = vst.msk [vmem:[%s11666_s28 + $0x288] sm:$0xf] %vm8465_vm3, %v10336_v57  ;;  %8852 = vst.msk [vmem:[%s11666_s28 + $0x608] sm:$0xf] %vm8465_vm3, %v10560_v58  ;;  %v10337_v1 = vpack.c.bf16 %v6388_v61, %v6388_v61  ;;  %v10561_v2 = vpack.c.bf16 %v6612_v60, %v6612_v60  ;;  %v5486_v36 = vmul.f32 %v13279_v30, %v4180_v62  ;;  %v4182_v5 = vpop.f32.mrb[73].mxu0  ;;  %v5078_v6 = vpop.f32.mrb[73].mxu1 }
 0x394   : > { %v5710_v4 = vmul.f32 %v13279_v30, %v5076_v0  ;;  %v4183_v9 = vpop.f32.mrb[74].mxu0  ;;  %v5079_v10 = vpop.f32.mrb[74].mxu1 }
 0x395   : > { %8629 = vst.msk [vmem:[%s11666_s28 + $0x28c] sm:$0xf] %vm8465_vm3, %v10337_v1  ;;  %8853 = vst.msk [vmem:[%s11666_s28 + $0x60c] sm:$0xf] %vm8465_vm3, %v10561_v2  ;;  %v5941_v13 = vadd.f32 %v13294_v42, %v5486_v36  ;;  %v5487_v15 = vmul.f32 %v13279_v30, %v4183_v9  ;;  %v5711_v16 = vmul.f32 %v13279_v30, %v5079_v10  ;;  %v4185_v17 = vpop.f32.mrb[75].mxu0  ;;  %v5081_v18 = vpop.f32.mrb[75].mxu1 }
 0x396   : > { %v6165_v14 = vadd.f32 %v13294_v42, %v5710_v4  ;;  %v11344_v1 = vld [vmem:[%s11454_s5 + $0x6f0] ss:$8 sps:$4 sm:$0xff]  }
 0x397   : > { %v6389_v63 = vmax.f32 %v5941_v13, 0.0  ;;  %v5942_v19 = vadd.f32 %v13294_v42, %v5487_v15  ;;  %v6166_v20 = vadd.f32 %v13294_v42, %v5711_v16  ;;  %4395 = vmatmul.mubr.bf16.gmra.mrb[180].mxu0 %v11332_v7  ;;  %5291 = vmatmul.mubr.bf16.gmra.mrb[180].mxu1 %v11335_v8  ;;  %v11347_v2 = vld [vmem:[%s11454_s5 + $0xdf0] ss:$8 sps:$4 sm:$0xff]  }
 0x398   : > { %v6613_v21 = vmax.f32 %v6165_v14, 0.0  ;;  %9607 = vmatprep.mubr.msk.bf16.mxu0 %vm2810_vm0, %v11340_v11  ;;  %9719 = vmatprep.mubr.msk.bf16.mxu1 %vm2810_vm0, %v11343_v12 }
 0x399   : > { %v10338_v22 = vpack.c.bf16 %v6389_v63, %v6389_v63  ;;  %v6390_v59 = vmax.f32 %v5942_v19, 0.0  ;;  %v6614_v25 = vmax.f32 %v6166_v20, 0.0 }
 0x39a   : > { %v10562_v23 = vpack.c.bf16 %v6613_v21, %v6613_v21  ;;  %v4188_v24 = vpop.f32.mrb[76].mxu0  ;;  %v5084_v26 = vpop.f32.mrb[76].mxu1 }
 0x39b   : > { %8630 = vst.msk [vmem:[%s11666_s28 + $0x290] sm:$0xf] %vm8465_vm3, %v10338_v22  ;;  %v10339_v27 = vpack.c.bf16 %v6390_v59, %v6390_v59  ;;  %v10563_v28 = vpack.c.bf16 %v6614_v25, %v6614_v25  ;;  %v5488_v3 = vmul.f32 %v13279_v30, %v4188_v24  ;;  %v5712_v29 = vmul.f32 %v13279_v30, %v5084_v26  ;;  %v4190_v31 = vpop.f32.mrb[77].mxu0  ;;  %v5086_v32 = vpop.f32.mrb[77].mxu1 }
 0x39c   : > { %8854 = vst.msk [vmem:[%s11666_s28 + $0x610] sm:$0xf] %vm8465_vm3, %v10562_v23  ;;  %v4191_v35 = vpop.f32.mrb[78].mxu0  ;;  %v5087_v37 = vpop.f32.mrb[78].mxu1 }
 0x39d   : > { %8631 = vst.msk [vmem:[%s11666_s28 + $0x294] sm:$0xf] %vm8465_vm3, %v10339_v27  ;;  %8855 = vst.msk [vmem:[%s11666_s28 + $0x614] sm:$0xf] %vm8465_vm3, %v10563_v28  ;;  %v5943_v40 = vadd.f32 %v13294_v42, %v5488_v3  ;;  %v6167_v41 = vadd.f32 %v13294_v42, %v5712_v29  ;;  %v5489_v43 = vmul.f32 %v13279_v30, %v4191_v35  ;;  %v4193_v45 = vpop.f32.mrb[79].mxu0  ;;  %v5089_v46 = vpop.f32.mrb[79].mxu1 }
 0x39e   : > { %v5713_v44 = vmul.f32 %v13279_v30, %v5087_v37 }
 0x39f   : > { %v6391_v47 = vmax.f32 %v5943_v40, 0.0  ;;  %v6615_v48 = vmax.f32 %v6167_v41, 0.0  ;;  %v5944_v49 = vadd.f32 %v13294_v42, %v5489_v43  ;;  %4403 = vmatmul.mubr.bf16.gmra.mrb[184].mxu0 %v11338_v33  ;;  %5299 = vmatmul.mubr.bf16.gmra.mrb[184].mxu1 %v11341_v34 }
 0x3a0   : > { %v6168_v50 = vadd.f32 %v13294_v42, %v5713_v44  ;;  %9608 = vmatprep.mubr.msk.bf16.mxu0 %vm2810_vm0, %v11346_v38  ;;  %9720 = vmatprep.mubr.msk.bf16.mxu1 %vm2810_vm0, %v11349_v39 }
 0x3a1   : > { %v10340_v51 = vpack.c.bf16 %v6391_v47, %v6391_v47  ;;  %v10564_v52 = vpack.c.bf16 %v6615_v48, %v6615_v48  ;;  %v6392_v53 = vmax.f32 %v5944_v49, 0.0 }
 0x3a2   : > { %v6616_v54 = vmax.f32 %v6168_v50, 0.0  ;;  %v4196_v55 = vpop.f32.mrb[80].mxu0  ;;  %v5092_v56 = vpop.f32.mrb[80].mxu1 }
 0x3a3   : > { %8632 = vst.msk [vmem:[%s11666_s28 + $0x298] sm:$0xf] %vm8465_vm3, %v10340_v51  ;;  %8856 = vst.msk [vmem:[%s11666_s28 + $0x618] sm:$0xf] %vm8465_vm3, %v10564_v52  ;;  %v10341_v57 = vpack.c.bf16 %v6392_v53, %v6392_v53  ;;  %v5490_v61 = vmul.f32 %v13279_v30, %v4196_v55  ;;  %v5714_v60 = vmul.f32 %v13279_v30, %v5092_v56  ;;  %v4198_v62 = vpop.f32.mrb[81].mxu0  ;;  %v5094_v0 = vpop.f32.mrb[81].mxu1 }
 0x3a4   : > { %v10565_v58 = vpack.c.bf16 %v6616_v54, %v6616_v54  ;;  %v4199_v36 = vpop.f32.mrb[82].mxu0  ;;  %v5095_v4 = vpop.f32.mrb[82].mxu1 }
 0x3a5   : > { %8633 = vst.msk [vmem:[%s11666_s28 + $0x29c] sm:$0xf] %vm8465_vm3, %v10341_v57  ;;  %v5945_v5 = vadd.f32 %v13294_v42, %v5490_v61  ;;  %v6169_v6 = vadd.f32 %v13294_v42, %v5714_v60  ;;  %v5491_v7 = vmul.f32 %v13279_v30, %v4199_v36  ;;  %v5715_v8 = vmul.f32 %v13279_v30, %v5095_v4  ;;  %v4201_v9 = vpop.f32.mrb[83].mxu0  ;;  %v5097_v10 = vpop.f32.mrb[83].mxu1 }
 0x3a6   : > { %8857 = vst.msk [vmem:[%s11666_s28 + $0x61c] sm:$0xf] %vm8465_vm3, %v10565_v58 }
 0x3a7   : > { %v6393_v11 = vmax.f32 %v5945_v5, 0.0  ;;  %v6617_v12 = vmax.f32 %v6169_v6, 0.0  ;;  %v5946_v13 = vadd.f32 %v13294_v42, %v5491_v7  ;;  %v6170_v14 = vadd.f32 %v13294_v42, %v5715_v8  ;;  %4411 = vmatmul.mubr.bf16.gmra.mrb[188].mxu0 %v11344_v1  ;;  %5307 = vmatmul.mubr.bf16.gmra.mrb[188].mxu1 %v11347_v2  ;;  %v13603_v8 = vld [vmem:[%s14035_s2] ss:$0 sm:$0xff] }
 0x3a9   : > { %v10342_v15 = vpack.c.bf16 %v6393_v11, %v6393_v11  ;;  %v10566_v16 = vpack.c.bf16 %v6617_v12, %v6617_v12  ;;  %v6394_v17 = vmax.f32 %v5946_v13, 0.0  ;;  %v6618_v18 = vmax.f32 %v6170_v14, 0.0  ;;  %v13614_v14 = vld [vmem:[%s14036_s3] ss:$0 sm:$0xff] }
 0x3aa   : > { %v4204_v63 = vpop.f32.mrb[84].mxu0  ;;  %v5100_v21 = vpop.f32.mrb[84].mxu1 }
 0x3ab   : > { %8634 = vst.msk [vmem:[%s11666_s28 + $0x2a0] sm:$0xf] %vm8465_vm3, %v10342_v15  ;;  %8858 = vst.msk [vmem:[%s11666_s28 + $0x620] sm:$0xf] %vm8465_vm3, %v10566_v16  ;;  %v10343_v19 = vpack.c.bf16 %v6394_v17, %v6394_v17  ;;  %v10567_v20 = vpack.c.bf16 %v6618_v18, %v6618_v18  ;;  %v5492_v22 = vmul.f32 %v13279_v30, %v4204_v63  ;;  %v4206_v59 = vpop.f32.mrb[85].mxu0  ;;  %v5102_v25 = vpop.f32.mrb[85].mxu1 }
 0x3ac   : > { %v5716_v23 = vmul.f32 %v13279_v30, %v5100_v21  ;;  %v4207_v24 = vpop.f32.mrb[86].mxu0  ;;  %v5103_v26 = vpop.f32.mrb[86].mxu1 }
 0x3ad   : > { %8635 = vst.msk [vmem:[%s11666_s28 + $0x2a4] sm:$0xf] %vm8465_vm3, %v10343_v19  ;;  %8859 = vst.msk [vmem:[%s11666_s28 + $0x624] sm:$0xf] %vm8465_vm3, %v10567_v20  ;;  %v5947_v27 = vadd.f32 %v13294_v42, %v5492_v22  ;;  %v5493_v3 = vmul.f32 %v13279_v30, %v4207_v24  ;;  %v5717_v29 = vmul.f32 %v13279_v30, %v5103_v26  ;;  %v4209_v31 = vpop.f32.mrb[87].mxu0  ;;  %v5105_v32 = vpop.f32.mrb[87].mxu1 }
 0x3ae   : > { %v6171_v28 = vadd.f32 %v13294_v42, %v5716_v23 }
 0x3af   : > { %v6395_v33 = vmax.f32 %v5947_v27, 0.0  ;;  %v5948_v35 = vadd.f32 %v13294_v42, %v5493_v3  ;;  %v6172_v37 = vadd.f32 %v13294_v42, %v5717_v29 }
 0x3b0   : > { %v6619_v34 = vmax.f32 %v6171_v28, 0.0 }
 0x3b1   : > { %v10344_v38 = vpack.c.bf16 %v6395_v33, %v6395_v33  ;;  %v6396_v40 = vmax.f32 %v5948_v35, 0.0  ;;  %v6620_v41 = vmax.f32 %v6172_v37, 0.0 }
 0x3b2   : > { %v10568_v39 = vpack.c.bf16 %v6619_v34, %v6619_v34  ;;  %v4212_v43 = vpop.f32.mrb[88].mxu0  ;;  %v5108_v44 = vpop.f32.mrb[88].mxu1 }
 0x3b3   : > { %8636 = vst.msk [vmem:[%s11666_s28 + $0x2a8] sm:$0xf] %vm8465_vm3, %v10344_v38  ;;  %v10345_v45 = vpack.c.bf16 %v6396_v40, %v6396_v40  ;;  %v10569_v46 = vpack.c.bf16 %v6620_v41, %v6620_v41  ;;  %v5494_v47 = vmul.f32 %v13279_v30, %v4212_v43  ;;  %v5718_v48 = vmul.f32 %v13279_v30, %v5108_v44  ;;  %v4214_v49 = vpop.f32.mrb[89].mxu0  ;;  %v5110_v50 = vpop.f32.mrb[89].mxu1 }
 0x3b4   : > { %8860 = vst.msk [vmem:[%s11666_s28 + $0x628] sm:$0xf] %vm8465_vm3, %v10568_v39  ;;  %v4215_v51 = vpop.f32.mrb[90].mxu0  ;;  %v5111_v52 = vpop.f32.mrb[90].mxu1 }
 0x3b5   : > { %8637 = vst.msk [vmem:[%s11666_s28 + $0x2ac] sm:$0xf] %vm8465_vm3, %v10345_v45  ;;  %8861 = vst.msk [vmem:[%s11666_s28 + $0x62c] sm:$0xf] %vm8465_vm3, %v10569_v46  ;;  %v5949_v53 = vadd.f32 %v13294_v42, %v5494_v47  ;;  %v6173_v54 = vadd.f32 %v13294_v42, %v5718_v48  ;;  %v5495_v55 = vmul.f32 %v13279_v30, %v4215_v51  ;;  %v4217_v57 = vpop.f32.mrb[91].mxu0  ;;  %v5113_v58 = vpop.f32.mrb[91].mxu1 }
 0x3b6   : > { %v5719_v56 = vmul.f32 %v13279_v30, %v5111_v52 }
 0x3b7   : > { %v6397_v61 = vmax.f32 %v5949_v53, 0.0  ;;  %v6621_v60 = vmax.f32 %v6173_v54, 0.0  ;;  %v5950_v62 = vadd.f32 %v13294_v42, %v5495_v55 }
 0x3b8   : > { %v6174_v0 = vadd.f32 %v13294_v42, %v5719_v56 }
 0x3b9   : > { %v10346_v1 = vpack.c.bf16 %v6397_v61, %v6397_v61  ;;  %v10570_v2 = vpack.c.bf16 %v6621_v60, %v6621_v60  ;;  %v6398_v36 = vmax.f32 %v5950_v62, 0.0 }
 0x3ba   : > { %v6622_v4 = vmax.f32 %v6174_v0, 0.0  ;;  %v4220_v5 = vpop.f32.mrb[92].mxu0  ;;  %v5116_v6 = vpop.f32.mrb[92].mxu1 }
 0x3bb   : > { %8638 = vst.msk [vmem:[%s11666_s28 + $0x2b0] sm:$0xf] %vm8465_vm3, %v10346_v1  ;;  %8862 = vst.msk [vmem:[%s11666_s28 + $0x630] sm:$0xf] %vm8465_vm3, %v10570_v2  ;;  %v10347_v30 = vpack.c.bf16 %v6398_v36, %v6398_v36  ;;  %v5496_v42 = vmul.f32 %v13603_v8, %v4220_v5  ;;  %v5720_v9 = vmul.f32 %v13603_v8, %v5116_v6  ;;  %v4222_v10 = vpop.f32.mrb[93].mxu0  ;;  %v5118_v11 = vpop.f32.mrb[93].mxu1 }
 0x3bc   : > { %v10571_v7 = vpack.c.bf16 %v6622_v4, %v6622_v4  ;;  %v4223_v12 = vpop.f32.mrb[94].mxu0  ;;  %v5119_v13 = vpop.f32.mrb[94].mxu1 }
 0x3bd   : > { %8639 = vst.msk [vmem:[%s11666_s28 + $0x2b4] sm:$0xf] %vm8465_vm3, %v10347_v30  ;;  %v5951_v15 = vadd.f32 %v13614_v14, %v5496_v42  ;;  %v6175_v16 = vadd.f32 %v13614_v14, %v5720_v9  ;;  %v5497_v17 = vmul.f32 %v13603_v8, %v4223_v12  ;;  %v5721_v18 = vmul.f32 %v13603_v8, %v5119_v13  ;;  %v4225_v63 = vpop.f32.mrb[95].mxu0  ;;  %v5121_v21 = vpop.f32.mrb[95].mxu1 }
 0x3be   : > { %8863 = vst.msk [vmem:[%s11666_s28 + $0x634] sm:$0xf] %vm8465_vm3, %v10571_v7 }
 0x3bf   : > { %v6399_v19 = vmax.f32 %v5951_v15, 0.0  ;;  %v6623_v20 = vmax.f32 %v6175_v16, 0.0  ;;  %v5952_v22 = vadd.f32 %v13614_v14, %v5497_v17  ;;  %v6176_v23 = vadd.f32 %v13614_v14, %v5721_v18 }
 0x3c1   : > { %v10348_v59 = vpack.c.bf16 %v6399_v19, %v6399_v19  ;;  %v10572_v25 = vpack.c.bf16 %v6623_v20, %v6623_v20  ;;  %v6400_v24 = vmax.f32 %v5952_v22, 0.0  ;;  %v6624_v26 = vmax.f32 %v6176_v23, 0.0 }
 0x3c2   : > { %v4228_v27 = vpop.f32.mrb[96].mxu0  ;;  %v5124_v28 = vpop.f32.mrb[96].mxu1 }
 0x3c3   : > { %8640 = vst.msk [vmem:[%s11666_s28 + $0x2b8] sm:$0xf] %vm8465_vm3, %v10348_v59  ;;  %8864 = vst.msk [vmem:[%s11666_s28 + $0x638] sm:$0xf] %vm8465_vm3, %v10572_v25  ;;  %v10349_v3 = vpack.c.bf16 %v6400_v24, %v6400_v24  ;;  %v10573_v29 = vpack.c.bf16 %v6624_v26, %v6624_v26  ;;  %v5498_v31 = vmul.f32 %v13603_v8, %v4228_v27  ;;  %v4230_v33 = vpop.f32.mrb[97].mxu0  ;;  %v5126_v34 = vpop.f32.mrb[97].mxu1 }
 0x3c4   : > { %v5722_v32 = vmul.f32 %v13603_v8, %v5124_v28  ;;  %v4231_v35 = vpop.f32.mrb[98].mxu0  ;;  %v5127_v37 = vpop.f32.mrb[98].mxu1 }
 0x3c5   : > { %8641 = vst.msk [vmem:[%s11666_s28 + $0x2bc] sm:$0xf] %vm8465_vm3, %v10349_v3  ;;  %8865 = vst.msk [vmem:[%s11666_s28 + $0x63c] sm:$0xf] %vm8465_vm3, %v10573_v29  ;;  %v5953_v38 = vadd.f32 %v13614_v14, %v5498_v31  ;;  %v5499_v40 = vmul.f32 %v13603_v8, %v4231_v35  ;;  %v5723_v41 = vmul.f32 %v13603_v8, %v5127_v37  ;;  %v4233_v43 = vpop.f32.mrb[99].mxu0  ;;  %v5129_v44 = vpop.f32.mrb[99].mxu1 }
 0x3c6   : > { %v6177_v39 = vadd.f32 %v13614_v14, %v5722_v32 }
 0x3c7   : > { %v6401_v45 = vmax.f32 %v5953_v38, 0.0  ;;  %v5954_v47 = vadd.f32 %v13614_v14, %v5499_v40  ;;  %v6178_v48 = vadd.f32 %v13614_v14, %v5723_v41 }
 0x3c8   : > { %v6625_v46 = vmax.f32 %v6177_v39, 0.0 }
 0x3c9   : > { %v10350_v49 = vpack.c.bf16 %v6401_v45, %v6401_v45  ;;  %v6402_v51 = vmax.f32 %v5954_v47, 0.0  ;;  %v6626_v52 = vmax.f32 %v6178_v48, 0.0 }
 0x3ca   : > { %v10574_v50 = vpack.c.bf16 %v6625_v46, %v6625_v46  ;;  %v4236_v53 = vpop.f32.mrb[100].mxu0  ;;  %v5132_v54 = vpop.f32.mrb[100].mxu1 }
 0x3cb   : > { %8642 = vst.msk [vmem:[%s11666_s28 + $0x2c0] sm:$0xf] %vm8465_vm3, %v10350_v49  ;;  %v10351_v55 = vpack.c.bf16 %v6402_v51, %v6402_v51  ;;  %v10575_v56 = vpack.c.bf16 %v6626_v52, %v6626_v52  ;;  %v5500_v57 = vmul.f32 %v13603_v8, %v4236_v53  ;;  %v5724_v58 = vmul.f32 %v13603_v8, %v5132_v54  ;;  %v4238_v61 = vpop.f32.mrb[101].mxu0  ;;  %v5134_v60 = vpop.f32.mrb[101].mxu1 }
 0x3cc   : > { %8866 = vst.msk [vmem:[%s11666_s28 + $0x640] sm:$0xf] %vm8465_vm3, %v10574_v50  ;;  %v4239_v62 = vpop.f32.mrb[102].mxu0  ;;  %v5135_v0 = vpop.f32.mrb[102].mxu1 }
 0x3cd   : > { %8643 = vst.msk [vmem:[%s11666_s28 + $0x2c4] sm:$0xf] %vm8465_vm3, %v10351_v55  ;;  %8867 = vst.msk [vmem:[%s11666_s28 + $0x644] sm:$0xf] %vm8465_vm3, %v10575_v56  ;;  %v5955_v1 = vadd.f32 %v13614_v14, %v5500_v57  ;;  %v6179_v2 = vadd.f32 %v13614_v14, %v5724_v58  ;;  %v5501_v36 = vmul.f32 %v13603_v8, %v4239_v62  ;;  %v4241_v5 = vpop.f32.mrb[103].mxu0  ;;  %v5137_v6 = vpop.f32.mrb[103].mxu1 }
 0x3ce   : > { %v5725_v4 = vmul.f32 %v13603_v8, %v5135_v0 }
 0x3cf   : > { %v6403_v30 = vmax.f32 %v5955_v1, 0.0  ;;  %v6627_v7 = vmax.f32 %v6179_v2, 0.0  ;;  %v5956_v42 = vadd.f32 %v13614_v14, %v5501_v36 }
 0x3d0   : > { %v6180_v9 = vadd.f32 %v13614_v14, %v5725_v4 }
 0x3d1   : > { %v10352_v10 = vpack.c.bf16 %v6403_v30, %v6403_v30  ;;  %v10576_v11 = vpack.c.bf16 %v6627_v7, %v6627_v7  ;;  %v6404_v12 = vmax.f32 %v5956_v42, 0.0 }
 0x3d2   : > { %v6628_v13 = vmax.f32 %v6180_v9, 0.0  ;;  %v4244_v15 = vpop.f32.mrb[104].mxu0  ;;  %v5140_v16 = vpop.f32.mrb[104].mxu1 }
 0x3d3   : > { %8644 = vst.msk [vmem:[%s11666_s28 + $0x2c8] sm:$0xf] %vm8465_vm3, %v10352_v10  ;;  %8868 = vst.msk [vmem:[%s11666_s28 + $0x648] sm:$0xf] %vm8465_vm3, %v10576_v11  ;;  %v10353_v17 = vpack.c.bf16 %v6404_v12, %v6404_v12  ;;  %v5502_v63 = vmul.f32 %v13603_v8, %v4244_v15  ;;  %v5726_v21 = vmul.f32 %v13603_v8, %v5140_v16  ;;  %v4246_v19 = vpop.f32.mrb[105].mxu0  ;;  %v5142_v20 = vpop.f32.mrb[105].mxu1 }
 0x3d4   : > { %v10577_v18 = vpack.c.bf16 %v6628_v13, %v6628_v13  ;;  %v4247_v22 = vpop.f32.mrb[106].mxu0  ;;  %v5143_v23 = vpop.f32.mrb[106].mxu1 }
 0x3d5   : > { %8645 = vst.msk [vmem:[%s11666_s28 + $0x2cc] sm:$0xf] %vm8465_vm3, %v10353_v17  ;;  %v5957_v59 = vadd.f32 %v13614_v14, %v5502_v63  ;;  %v6181_v25 = vadd.f32 %v13614_v14, %v5726_v21  ;;  %v5503_v24 = vmul.f32 %v13603_v8, %v4247_v22  ;;  %v5727_v26 = vmul.f32 %v13603_v8, %v5143_v23  ;;  %v4249_v27 = vpop.f32.mrb[107].mxu0  ;;  %v5145_v28 = vpop.f32.mrb[107].mxu1 }
 0x3d6   : > { %8869 = vst.msk [vmem:[%s11666_s28 + $0x64c] sm:$0xf] %vm8465_vm3, %v10577_v18 }
 0x3d7   : > { %v6405_v3 = vmax.f32 %v5957_v59, 0.0  ;;  %v6629_v29 = vmax.f32 %v6181_v25, 0.0  ;;  %v5958_v31 = vadd.f32 %v13614_v14, %v5503_v24  ;;  %v6182_v32 = vadd.f32 %v13614_v14, %v5727_v26 }
 0x3d9   : > { %v10354_v33 = vpack.c.bf16 %v6405_v3, %v6405_v3  ;;  %v10578_v34 = vpack.c.bf16 %v6629_v29, %v6629_v29  ;;  %v6406_v35 = vmax.f32 %v5958_v31, 0.0  ;;  %v6630_v37 = vmax.f32 %v6182_v32, 0.0 }
 0x3da   : > { %v4252_v38 = vpop.f32.mrb[108].mxu0  ;;  %v5148_v39 = vpop.f32.mrb[108].mxu1 }
 0x3db   : > { %8646 = vst.msk [vmem:[%s11666_s28 + $0x2d0] sm:$0xf] %vm8465_vm3, %v10354_v33  ;;  %8870 = vst.msk [vmem:[%s11666_s28 + $0x650] sm:$0xf] %vm8465_vm3, %v10578_v34  ;;  %v10355_v40 = vpack.c.bf16 %v6406_v35, %v6406_v35  ;;  %v10579_v41 = vpack.c.bf16 %v6630_v37, %v6630_v37  ;;  %v5504_v43 = vmul.f32 %v13603_v8, %v4252_v38  ;;  %v4254_v45 = vpop.f32.mrb[109].mxu0  ;;  %v5150_v46 = vpop.f32.mrb[109].mxu1 }
 0x3dc   : > { %v5728_v44 = vmul.f32 %v13603_v8, %v5148_v39  ;;  %v4255_v47 = vpop.f32.mrb[110].mxu0  ;;  %v5151_v48 = vpop.f32.mrb[110].mxu1 }
 0x3dd   : > { %8647 = vst.msk [vmem:[%s11666_s28 + $0x2d4] sm:$0xf] %vm8465_vm3, %v10355_v40  ;;  %8871 = vst.msk [vmem:[%s11666_s28 + $0x654] sm:$0xf] %vm8465_vm3, %v10579_v41  ;;  %v5959_v49 = vadd.f32 %v13614_v14, %v5504_v43  ;;  %v5505_v51 = vmul.f32 %v13603_v8, %v4255_v47  ;;  %v5729_v52 = vmul.f32 %v13603_v8, %v5151_v48  ;;  %v4257_v53 = vpop.f32.mrb[111].mxu0  ;;  %v5153_v54 = vpop.f32.mrb[111].mxu1 }
 0x3de   : > { %v6183_v50 = vadd.f32 %v13614_v14, %v5728_v44 }
 0x3df   : > { %v6407_v55 = vmax.f32 %v5959_v49, 0.0  ;;  %v5960_v57 = vadd.f32 %v13614_v14, %v5505_v51  ;;  %v6184_v58 = vadd.f32 %v13614_v14, %v5729_v52 }
 0x3e0   : > { %v6631_v56 = vmax.f32 %v6183_v50, 0.0 }
 0x3e1   : > { %v10356_v61 = vpack.c.bf16 %v6407_v55, %v6407_v55  ;;  %v6408_v62 = vmax.f32 %v5960_v57, 0.0  ;;  %v6632_v0 = vmax.f32 %v6184_v58, 0.0 }
 0x3e2   : > { %v10580_v60 = vpack.c.bf16 %v6631_v56, %v6631_v56  ;;  %v4260_v1 = vpop.f32.mrb[112].mxu0  ;;  %v5156_v2 = vpop.f32.mrb[112].mxu1 }
 0x3e3   : > { %8648 = vst.msk [vmem:[%s11666_s28 + $0x2d8] sm:$0xf] %vm8465_vm3, %v10356_v61  ;;  %v10357_v36 = vpack.c.bf16 %v6408_v62, %v6408_v62  ;;  %v10581_v4 = vpack.c.bf16 %v6632_v0, %v6632_v0  ;;  %v5506_v5 = vmul.f32 %v13603_v8, %v4260_v1  ;;  %v5730_v6 = vmul.f32 %v13603_v8, %v5156_v2  ;;  %v4262_v30 = vpop.f32.mrb[113].mxu0  ;;  %v5158_v7 = vpop.f32.mrb[113].mxu1 }
 0x3e4   : > { %8872 = vst.msk [vmem:[%s11666_s28 + $0x658] sm:$0xf] %vm8465_vm3, %v10580_v60  ;;  %v4263_v42 = vpop.f32.mrb[114].mxu0  ;;  %v5159_v9 = vpop.f32.mrb[114].mxu1 }
 0x3e5   : > { %8649 = vst.msk [vmem:[%s11666_s28 + $0x2dc] sm:$0xf] %vm8465_vm3, %v10357_v36  ;;  %8873 = vst.msk [vmem:[%s11666_s28 + $0x65c] sm:$0xf] %vm8465_vm3, %v10581_v4  ;;  %v5961_v10 = vadd.f32 %v13614_v14, %v5506_v5  ;;  %v6185_v11 = vadd.f32 %v13614_v14, %v5730_v6  ;;  %v5507_v12 = vmul.f32 %v13603_v8, %v4263_v42  ;;  %v4265_v15 = vpop.f32.mrb[115].mxu0  ;;  %v5161_v16 = vpop.f32.mrb[115].mxu1 }
 0x3e6   : > { %v5731_v13 = vmul.f32 %v13603_v8, %v5159_v9 }
 0x3e7   : > { %v6409_v17 = vmax.f32 %v5961_v10, 0.0  ;;  %v6633_v18 = vmax.f32 %v6185_v11, 0.0  ;;  %v5962_v63 = vadd.f32 %v13614_v14, %v5507_v12 }
 0x3e8   : > { %v6186_v21 = vadd.f32 %v13614_v14, %v5731_v13 }
 0x3e9   : > { %v10358_v19 = vpack.c.bf16 %v6409_v17, %v6409_v17  ;;  %v10582_v20 = vpack.c.bf16 %v6633_v18, %v6633_v18  ;;  %v6410_v22 = vmax.f32 %v5962_v63, 0.0 }
 0x3ea   : > { %v6634_v23 = vmax.f32 %v6186_v21, 0.0  ;;  %v4268_v59 = vpop.f32.mrb[116].mxu0  ;;  %v5164_v25 = vpop.f32.mrb[116].mxu1 }
 0x3eb   : > { %8650 = vst.msk [vmem:[%s11666_s28 + $0x2e0] sm:$0xf] %vm8465_vm3, %v10358_v19  ;;  %8874 = vst.msk [vmem:[%s11666_s28 + $0x660] sm:$0xf] %vm8465_vm3, %v10582_v20  ;;  %v10359_v24 = vpack.c.bf16 %v6410_v22, %v6410_v22  ;;  %v5508_v27 = vmul.f32 %v13603_v8, %v4268_v59  ;;  %v5732_v28 = vmul.f32 %v13603_v8, %v5164_v25  ;;  %v4270_v3 = vpop.f32.mrb[117].mxu0  ;;  %v5166_v29 = vpop.f32.mrb[117].mxu1 }
 0x3ec   : > { %v10583_v26 = vpack.c.bf16 %v6634_v23, %v6634_v23  ;;  %v4271_v31 = vpop.f32.mrb[118].mxu0  ;;  %v5167_v32 = vpop.f32.mrb[118].mxu1 }
 0x3ed   : > { %8651 = vst.msk [vmem:[%s11666_s28 + $0x2e4] sm:$0xf] %vm8465_vm3, %v10359_v24  ;;  %v5963_v33 = vadd.f32 %v13614_v14, %v5508_v27  ;;  %v6187_v34 = vadd.f32 %v13614_v14, %v5732_v28  ;;  %v5509_v35 = vmul.f32 %v13603_v8, %v4271_v31  ;;  %v5733_v37 = vmul.f32 %v13603_v8, %v5167_v32  ;;  %v4273_v38 = vpop.f32.mrb[119].mxu0  ;;  %v5169_v39 = vpop.f32.mrb[119].mxu1 }
 0x3ee   : > { %8875 = vst.msk [vmem:[%s11666_s28 + $0x664] sm:$0xf] %vm8465_vm3, %v10583_v26 }
 0x3ef   : > { %v6411_v40 = vmax.f32 %v5963_v33, 0.0  ;;  %v6635_v41 = vmax.f32 %v6187_v34, 0.0  ;;  %v5964_v43 = vadd.f32 %v13614_v14, %v5509_v35  ;;  %v6188_v44 = vadd.f32 %v13614_v14, %v5733_v37 }
 0x3f1   : > { %v10360_v45 = vpack.c.bf16 %v6411_v40, %v6411_v40  ;;  %v10584_v46 = vpack.c.bf16 %v6635_v41, %v6635_v41  ;;  %v6412_v47 = vmax.f32 %v5964_v43, 0.0  ;;  %v6636_v48 = vmax.f32 %v6188_v44, 0.0 }
 0x3f2   : > { %v4276_v49 = vpop.f32.mrb[120].mxu0  ;;  %v5172_v50 = vpop.f32.mrb[120].mxu1 }
 0x3f3   : > { %8652 = vst.msk [vmem:[%s11666_s28 + $0x2e8] sm:$0xf] %vm8465_vm3, %v10360_v45  ;;  %8876 = vst.msk [vmem:[%s11666_s28 + $0x668] sm:$0xf] %vm8465_vm3, %v10584_v46  ;;  %v10361_v51 = vpack.c.bf16 %v6412_v47, %v6412_v47  ;;  %v10585_v52 = vpack.c.bf16 %v6636_v48, %v6636_v48  ;;  %v5510_v53 = vmul.f32 %v13603_v8, %v4276_v49  ;;  %v4278_v55 = vpop.f32.mrb[121].mxu0  ;;  %v5174_v56 = vpop.f32.mrb[121].mxu1 }
 0x3f4   : > { %v5734_v54 = vmul.f32 %v13603_v8, %v5172_v50  ;;  %v4279_v57 = vpop.f32.mrb[122].mxu0  ;;  %v5175_v58 = vpop.f32.mrb[122].mxu1 }
 0x3f5   : > { %8653 = vst.msk [vmem:[%s11666_s28 + $0x2ec] sm:$0xf] %vm8465_vm3, %v10361_v51  ;;  %8877 = vst.msk [vmem:[%s11666_s28 + $0x66c] sm:$0xf] %vm8465_vm3, %v10585_v52  ;;  %v5965_v61 = vadd.f32 %v13614_v14, %v5510_v53  ;;  %v5511_v62 = vmul.f32 %v13603_v8, %v4279_v57  ;;  %v5735_v0 = vmul.f32 %v13603_v8, %v5175_v58  ;;  %v4281_v1 = vpop.f32.mrb[123].mxu0  ;;  %v5177_v2 = vpop.f32.mrb[123].mxu1 }
 0x3f6   : > { %v6189_v60 = vadd.f32 %v13614_v14, %v5734_v54 }
 0x3f7   : > { %v6413_v36 = vmax.f32 %v5965_v61, 0.0  ;;  %v5966_v5 = vadd.f32 %v13614_v14, %v5511_v62  ;;  %v6190_v6 = vadd.f32 %v13614_v14, %v5735_v0 }
 0x3f8   : > { %v6637_v4 = vmax.f32 %v6189_v60, 0.0 }
 0x3f9   : > { %v10362_v30 = vpack.c.bf16 %v6413_v36, %v6413_v36  ;;  %v6414_v42 = vmax.f32 %v5966_v5, 0.0  ;;  %v6638_v9 = vmax.f32 %v6190_v6, 0.0 }
 0x3fa   : > { %v10586_v7 = vpack.c.bf16 %v6637_v4, %v6637_v4  ;;  %v4284_v10 = vpop.f32.mrb[124].mxu0  ;;  %v5180_v11 = vpop.f32.mrb[124].mxu1 }
 0x3fb   : > { %8654 = vst.msk [vmem:[%s11666_s28 + $0x2f0] sm:$0xf] %vm8465_vm3, %v10362_v30  ;;  %v10363_v12 = vpack.c.bf16 %v6414_v42, %v6414_v42  ;;  %v10587_v13 = vpack.c.bf16 %v6638_v9, %v6638_v9  ;;  %v5512_v15 = vmul.f32 %v13603_v8, %v4284_v10  ;;  %v5736_v16 = vmul.f32 %v13603_v8, %v5180_v11  ;;  %v4286_v17 = vpop.f32.mrb[125].mxu0  ;;  %v5182_v18 = vpop.f32.mrb[125].mxu1 }
 0x3fc   : > { %8878 = vst.msk [vmem:[%s11666_s28 + $0x670] sm:$0xf] %vm8465_vm3, %v10586_v7  ;;  %v4287_v63 = vpop.f32.mrb[126].mxu0  ;;  %v5183_v21 = vpop.f32.mrb[126].mxu1 }
 0x3fd   : > { %8655 = vst.msk [vmem:[%s11666_s28 + $0x2f4] sm:$0xf] %vm8465_vm3, %v10363_v12  ;;  %8879 = vst.msk [vmem:[%s11666_s28 + $0x674] sm:$0xf] %vm8465_vm3, %v10587_v13  ;;  %v5967_v19 = vadd.f32 %v13614_v14, %v5512_v15  ;;  %v6191_v20 = vadd.f32 %v13614_v14, %v5736_v16  ;;  %v5513_v22 = vmul.f32 %v13603_v8, %v4287_v63  ;;  %v4289_v59 = vpop.f32.mrb[127].mxu0  ;;  %v5185_v25 = vpop.f32.mrb[127].mxu1 }
 0x3fe   : > { %v5737_v23 = vmul.f32 %v13603_v8, %v5183_v21 }
 0x3ff   : > { %v6415_v24 = vmax.f32 %v5967_v19, 0.0  ;;  %v6639_v26 = vmax.f32 %v6191_v20, 0.0  ;;  %v5968_v27 = vadd.f32 %v13614_v14, %v5513_v22 }
 0x400   : > { %v6192_v28 = vadd.f32 %v13614_v14, %v5737_v23 }
 0x401   : > { %v10364_v3 = vpack.c.bf16 %v6415_v24, %v6415_v24  ;;  %v10588_v29 = vpack.c.bf16 %v6639_v26, %v6639_v26  ;;  %v6416_v31 = vmax.f32 %v5968_v27, 0.0 }
 0x402   : > { %v6640_v32 = vmax.f32 %v6192_v28, 0.0  ;;  %v4292_v33 = vpop.f32.mrb[128].mxu0  ;;  %v5188_v34 = vpop.f32.mrb[128].mxu1 }
 0x403   : > { %8656 = vst.msk [vmem:[%s11666_s28 + $0x2f8] sm:$0xf] %vm8465_vm3, %v10364_v3  ;;  %8880 = vst.msk [vmem:[%s11666_s28 + $0x678] sm:$0xf] %vm8465_vm3, %v10588_v29  ;;  %v10365_v35 = vpack.c.bf16 %v6416_v31, %v6416_v31  ;;  %v5514_v38 = vmul.f32 %v13603_v8, %v4292_v33  ;;  %v5738_v39 = vmul.f32 %v13603_v8, %v5188_v34  ;;  %v4294_v40 = vpop.f32.mrb[129].mxu0  ;;  %v5190_v41 = vpop.f32.mrb[129].mxu1 }
 0x404   : > { %v10589_v37 = vpack.c.bf16 %v6640_v32, %v6640_v32  ;;  %v4295_v43 = vpop.f32.mrb[130].mxu0  ;;  %v5191_v44 = vpop.f32.mrb[130].mxu1 }
 0x405   : > { %8657 = vst.msk [vmem:[%s11666_s28 + $0x2fc] sm:$0xf] %vm8465_vm3, %v10365_v35  ;;  %v5969_v45 = vadd.f32 %v13614_v14, %v5514_v38  ;;  %v6193_v46 = vadd.f32 %v13614_v14, %v5738_v39  ;;  %v5515_v47 = vmul.f32 %v13603_v8, %v4295_v43  ;;  %v5739_v48 = vmul.f32 %v13603_v8, %v5191_v44  ;;  %v4297_v49 = vpop.f32.mrb[131].mxu0  ;;  %v5193_v50 = vpop.f32.mrb[131].mxu1 }
 0x406   : > { %8881 = vst.msk [vmem:[%s11666_s28 + $0x67c] sm:$0xf] %vm8465_vm3, %v10589_v37 }
 0x407   : > { %v6417_v51 = vmax.f32 %v5969_v45, 0.0  ;;  %v6641_v52 = vmax.f32 %v6193_v46, 0.0  ;;  %v5970_v53 = vadd.f32 %v13614_v14, %v5515_v47  ;;  %v6194_v54 = vadd.f32 %v13614_v14, %v5739_v48 }
 0x409   : > { %v10366_v55 = vpack.c.bf16 %v6417_v51, %v6417_v51  ;;  %v10590_v56 = vpack.c.bf16 %v6641_v52, %v6641_v52  ;;  %v6418_v57 = vmax.f32 %v5970_v53, 0.0  ;;  %v6642_v58 = vmax.f32 %v6194_v54, 0.0 }
 0x40a   : > { %v4300_v61 = vpop.f32.mrb[132].mxu0  ;;  %v5196_v60 = vpop.f32.mrb[132].mxu1 }
 0x40b   : > { %8658 = vst.msk [vmem:[%s11666_s28 + $0x300] sm:$0xf] %vm8465_vm3, %v10366_v55  ;;  %8882 = vst.msk [vmem:[%s11666_s28 + $0x680] sm:$0xf] %vm8465_vm3, %v10590_v56  ;;  %v10367_v62 = vpack.c.bf16 %v6418_v57, %v6418_v57  ;;  %v10591_v0 = vpack.c.bf16 %v6642_v58, %v6642_v58  ;;  %v5516_v1 = vmul.f32 %v13603_v8, %v4300_v61  ;;  %v4302_v36 = vpop.f32.mrb[133].mxu0  ;;  %v5198_v4 = vpop.f32.mrb[133].mxu1 }
 0x40c   : > { %v5740_v2 = vmul.f32 %v13603_v8, %v5196_v60  ;;  %v4303_v5 = vpop.f32.mrb[134].mxu0  ;;  %v5199_v6 = vpop.f32.mrb[134].mxu1 }
 0x40d   : > { %8659 = vst.msk [vmem:[%s11666_s28 + $0x304] sm:$0xf] %vm8465_vm3, %v10367_v62  ;;  %8883 = vst.msk [vmem:[%s11666_s28 + $0x684] sm:$0xf] %vm8465_vm3, %v10591_v0  ;;  %v5971_v30 = vadd.f32 %v13614_v14, %v5516_v1  ;;  %v5517_v42 = vmul.f32 %v13603_v8, %v4303_v5  ;;  %v5741_v9 = vmul.f32 %v13603_v8, %v5199_v6  ;;  %v4305_v10 = vpop.f32.mrb[135].mxu0  ;;  %v5201_v11 = vpop.f32.mrb[135].mxu1 }
 0x40e   : > { %v6195_v7 = vadd.f32 %v13614_v14, %v5740_v2 }
 0x40f   : > { %v6419_v12 = vmax.f32 %v5971_v30, 0.0  ;;  %v5972_v15 = vadd.f32 %v13614_v14, %v5517_v42  ;;  %v6196_v16 = vadd.f32 %v13614_v14, %v5741_v9 }
 0x410   : > { %v6643_v13 = vmax.f32 %v6195_v7, 0.0 }
 0x411   : > { %v10368_v17 = vpack.c.bf16 %v6419_v12, %v6419_v12  ;;  %v6420_v63 = vmax.f32 %v5972_v15, 0.0  ;;  %v6644_v21 = vmax.f32 %v6196_v16, 0.0 }
 0x412   : > { %v10592_v18 = vpack.c.bf16 %v6643_v13, %v6643_v13  ;;  %v4308_v19 = vpop.f32.mrb[136].mxu0  ;;  %v5204_v20 = vpop.f32.mrb[136].mxu1 }
 0x413   : > { %8660 = vst.msk [vmem:[%s11666_s28 + $0x308] sm:$0xf] %vm8465_vm3, %v10368_v17  ;;  %v10369_v22 = vpack.c.bf16 %v6420_v63, %v6420_v63  ;;  %v10593_v23 = vpack.c.bf16 %v6644_v21, %v6644_v21  ;;  %v5518_v59 = vmul.f32 %v13603_v8, %v4308_v19  ;;  %v5742_v25 = vmul.f32 %v13603_v8, %v5204_v20  ;;  %v4310_v24 = vpop.f32.mrb[137].mxu0  ;;  %v5206_v26 = vpop.f32.mrb[137].mxu1 }
 0x414   : > { %8884 = vst.msk [vmem:[%s11666_s28 + $0x688] sm:$0xf] %vm8465_vm3, %v10592_v18  ;;  %v4311_v27 = vpop.f32.mrb[138].mxu0  ;;  %v5207_v28 = vpop.f32.mrb[138].mxu1 }
 0x415   : > { %8661 = vst.msk [vmem:[%s11666_s28 + $0x30c] sm:$0xf] %vm8465_vm3, %v10369_v22  ;;  %8885 = vst.msk [vmem:[%s11666_s28 + $0x68c] sm:$0xf] %vm8465_vm3, %v10593_v23  ;;  %v5973_v3 = vadd.f32 %v13614_v14, %v5518_v59  ;;  %v6197_v29 = vadd.f32 %v13614_v14, %v5742_v25  ;;  %v5519_v31 = vmul.f32 %v13603_v8, %v4311_v27  ;;  %v4313_v33 = vpop.f32.mrb[139].mxu0  ;;  %v5209_v34 = vpop.f32.mrb[139].mxu1 }
 0x416   : > { %v5743_v32 = vmul.f32 %v13603_v8, %v5207_v28 }
 0x417   : > { %v6421_v35 = vmax.f32 %v5973_v3, 0.0  ;;  %v6645_v37 = vmax.f32 %v6197_v29, 0.0  ;;  %v5974_v38 = vadd.f32 %v13614_v14, %v5519_v31 }
 0x418   : > { %v6198_v39 = vadd.f32 %v13614_v14, %v5743_v32 }
 0x419   : > { %v10370_v40 = vpack.c.bf16 %v6421_v35, %v6421_v35  ;;  %v10594_v41 = vpack.c.bf16 %v6645_v37, %v6645_v37  ;;  %v6422_v43 = vmax.f32 %v5974_v38, 0.0 }
 0x41a   : > { %v6646_v44 = vmax.f32 %v6198_v39, 0.0  ;;  %v4316_v45 = vpop.f32.mrb[140].mxu0  ;;  %v5212_v46 = vpop.f32.mrb[140].mxu1 }
 0x41b   : > { %8662 = vst.msk [vmem:[%s11666_s28 + $0x310] sm:$0xf] %vm8465_vm3, %v10370_v40  ;;  %8886 = vst.msk [vmem:[%s11666_s28 + $0x690] sm:$0xf] %vm8465_vm3, %v10594_v41  ;;  %v10371_v47 = vpack.c.bf16 %v6422_v43, %v6422_v43  ;;  %v5520_v49 = vmul.f32 %v13603_v8, %v4316_v45  ;;  %v5744_v50 = vmul.f32 %v13603_v8, %v5212_v46  ;;  %v4318_v51 = vpop.f32.mrb[141].mxu0  ;;  %v5214_v52 = vpop.f32.mrb[141].mxu1 }
 0x41c   : > { %v10595_v48 = vpack.c.bf16 %v6646_v44, %v6646_v44  ;;  %v4319_v53 = vpop.f32.mrb[142].mxu0  ;;  %v5215_v54 = vpop.f32.mrb[142].mxu1 }
 0x41d   : > { %8663 = vst.msk [vmem:[%s11666_s28 + $0x314] sm:$0xf] %vm8465_vm3, %v10371_v47  ;;  %v5975_v55 = vadd.f32 %v13614_v14, %v5520_v49  ;;  %v6199_v56 = vadd.f32 %v13614_v14, %v5744_v50  ;;  %v5521_v57 = vmul.f32 %v13603_v8, %v4319_v53  ;;  %v5745_v58 = vmul.f32 %v13603_v8, %v5215_v54  ;;  %v4321_v61 = vpop.f32.mrb[143].mxu0  ;;  %v5217_v60 = vpop.f32.mrb[143].mxu1 }
 0x41e   : > { %8887 = vst.msk [vmem:[%s11666_s28 + $0x694] sm:$0xf] %vm8465_vm3, %v10595_v48 }
 0x41f   : > { %v6423_v62 = vmax.f32 %v5975_v55, 0.0  ;;  %v6647_v0 = vmax.f32 %v6199_v56, 0.0  ;;  %v5976_v1 = vadd.f32 %v13614_v14, %v5521_v57  ;;  %v6200_v2 = vadd.f32 %v13614_v14, %v5745_v58 }
 0x421   : > { %v10372_v36 = vpack.c.bf16 %v6423_v62, %v6423_v62  ;;  %v10596_v4 = vpack.c.bf16 %v6647_v0, %v6647_v0  ;;  %v6424_v5 = vmax.f32 %v5976_v1, 0.0  ;;  %v6648_v6 = vmax.f32 %v6200_v2, 0.0 }
 0x422   : > { %v4324_v30 = vpop.f32.mrb[144].mxu0  ;;  %v5220_v7 = vpop.f32.mrb[144].mxu1 }
 0x423   : > { %8664 = vst.msk [vmem:[%s11666_s28 + $0x318] sm:$0xf] %vm8465_vm3, %v10372_v36  ;;  %8888 = vst.msk [vmem:[%s11666_s28 + $0x698] sm:$0xf] %vm8465_vm3, %v10596_v4  ;;  %v10373_v42 = vpack.c.bf16 %v6424_v5, %v6424_v5  ;;  %v10597_v9 = vpack.c.bf16 %v6648_v6, %v6648_v6  ;;  %v5522_v10 = vmul.f32 %v13603_v8, %v4324_v30  ;;  %v4326_v12 = vpop.f32.mrb[145].mxu0  ;;  %v5222_v13 = vpop.f32.mrb[145].mxu1 }
 0x424   : > { %v5746_v11 = vmul.f32 %v13603_v8, %v5220_v7  ;;  %v4327_v15 = vpop.f32.mrb[146].mxu0  ;;  %v5223_v16 = vpop.f32.mrb[146].mxu1 }
 0x425   : > { %8665 = vst.msk [vmem:[%s11666_s28 + $0x31c] sm:$0xf] %vm8465_vm3, %v10373_v42  ;;  %8889 = vst.msk [vmem:[%s11666_s28 + $0x69c] sm:$0xf] %vm8465_vm3, %v10597_v9  ;;  %v5977_v17 = vadd.f32 %v13614_v14, %v5522_v10  ;;  %v5523_v63 = vmul.f32 %v13603_v8, %v4327_v15  ;;  %v5747_v21 = vmul.f32 %v13603_v8, %v5223_v16  ;;  %v4329_v19 = vpop.f32.mrb[147].mxu0  ;;  %v5225_v20 = vpop.f32.mrb[147].mxu1 }
 0x426   : > { %v6201_v18 = vadd.f32 %v13614_v14, %v5746_v11 }
 0x427   : > { %v6425_v22 = vmax.f32 %v5977_v17, 0.0  ;;  %v5978_v59 = vadd.f32 %v13614_v14, %v5523_v63  ;;  %v6202_v25 = vadd.f32 %v13614_v14, %v5747_v21 }
 0x428   : > { %v6649_v23 = vmax.f32 %v6201_v18, 0.0 }
 0x429   : > { %v10374_v24 = vpack.c.bf16 %v6425_v22, %v6425_v22  ;;  %v6426_v27 = vmax.f32 %v5978_v59, 0.0  ;;  %v6650_v28 = vmax.f32 %v6202_v25, 0.0 }
 0x42a   : > { %v10598_v26 = vpack.c.bf16 %v6649_v23, %v6649_v23  ;;  %v4332_v3 = vpop.f32.mrb[148].mxu0  ;;  %v5228_v29 = vpop.f32.mrb[148].mxu1 }
 0x42b   : > { %8666 = vst.msk [vmem:[%s11666_s28 + $0x320] sm:$0xf] %vm8465_vm3, %v10374_v24  ;;  %v10375_v31 = vpack.c.bf16 %v6426_v27, %v6426_v27  ;;  %v10599_v32 = vpack.c.bf16 %v6650_v28, %v6650_v28  ;;  %v5524_v33 = vmul.f32 %v13603_v8, %v4332_v3  ;;  %v5748_v34 = vmul.f32 %v13603_v8, %v5228_v29  ;;  %v4334_v35 = vpop.f32.mrb[149].mxu0  ;;  %v5230_v37 = vpop.f32.mrb[149].mxu1 }
 0x42c   : > { %8890 = vst.msk [vmem:[%s11666_s28 + $0x6a0] sm:$0xf] %vm8465_vm3, %v10598_v26  ;;  %v4335_v38 = vpop.f32.mrb[150].mxu0  ;;  %v5231_v39 = vpop.f32.mrb[150].mxu1 }
 0x42d   : > { %8667 = vst.msk [vmem:[%s11666_s28 + $0x324] sm:$0xf] %vm8465_vm3, %v10375_v31  ;;  %8891 = vst.msk [vmem:[%s11666_s28 + $0x6a4] sm:$0xf] %vm8465_vm3, %v10599_v32  ;;  %v5979_v40 = vadd.f32 %v13614_v14, %v5524_v33  ;;  %v6203_v41 = vadd.f32 %v13614_v14, %v5748_v34  ;;  %v5525_v43 = vmul.f32 %v13603_v8, %v4335_v38  ;;  %v4337_v45 = vpop.f32.mrb[151].mxu0  ;;  %v5233_v46 = vpop.f32.mrb[151].mxu1 }
 0x42e   : > { %v5749_v44 = vmul.f32 %v13603_v8, %v5231_v39 }
 0x42f   : > { %v6427_v47 = vmax.f32 %v5979_v40, 0.0  ;;  %v6651_v48 = vmax.f32 %v6203_v41, 0.0  ;;  %v5980_v49 = vadd.f32 %v13614_v14, %v5525_v43 }
 0x430   : > { %v6204_v50 = vadd.f32 %v13614_v14, %v5749_v44 }
 0x431   : > { %v10376_v51 = vpack.c.bf16 %v6427_v47, %v6427_v47  ;;  %v10600_v52 = vpack.c.bf16 %v6651_v48, %v6651_v48  ;;  %v6428_v53 = vmax.f32 %v5980_v49, 0.0 }
 0x432   : > { %v6652_v54 = vmax.f32 %v6204_v50, 0.0  ;;  %v4340_v55 = vpop.f32.mrb[152].mxu0  ;;  %v5236_v56 = vpop.f32.mrb[152].mxu1 }
 0x433   : > { %8668 = vst.msk [vmem:[%s11666_s28 + $0x328] sm:$0xf] %vm8465_vm3, %v10376_v51  ;;  %8892 = vst.msk [vmem:[%s11666_s28 + $0x6a8] sm:$0xf] %vm8465_vm3, %v10600_v52  ;;  %v10377_v57 = vpack.c.bf16 %v6428_v53, %v6428_v53  ;;  %v5526_v61 = vmul.f32 %v13603_v8, %v4340_v55  ;;  %v5750_v60 = vmul.f32 %v13603_v8, %v5236_v56  ;;  %v4342_v62 = vpop.f32.mrb[153].mxu0  ;;  %v5238_v0 = vpop.f32.mrb[153].mxu1 }
 0x434   : > { %v10601_v58 = vpack.c.bf16 %v6652_v54, %v6652_v54  ;;  %v4343_v1 = vpop.f32.mrb[154].mxu0  ;;  %v5239_v2 = vpop.f32.mrb[154].mxu1 }
 0x435   : > { %8669 = vst.msk [vmem:[%s11666_s28 + $0x32c] sm:$0xf] %vm8465_vm3, %v10377_v57  ;;  %v5981_v36 = vadd.f32 %v13614_v14, %v5526_v61  ;;  %v6205_v4 = vadd.f32 %v13614_v14, %v5750_v60  ;;  %v5527_v5 = vmul.f32 %v13603_v8, %v4343_v1  ;;  %v5751_v6 = vmul.f32 %v13603_v8, %v5239_v2  ;;  %v4345_v30 = vpop.f32.mrb[155].mxu0  ;;  %v5241_v7 = vpop.f32.mrb[155].mxu1 }
 0x436   : > { %8893 = vst.msk [vmem:[%s11666_s28 + $0x6ac] sm:$0xf] %vm8465_vm3, %v10601_v58 }
 0x437   : > { %v6429_v42 = vmax.f32 %v5981_v36, 0.0  ;;  %v6653_v9 = vmax.f32 %v6205_v4, 0.0  ;;  %v5982_v10 = vadd.f32 %v13614_v14, %v5527_v5  ;;  %v6206_v11 = vadd.f32 %v13614_v14, %v5751_v6 }
 0x439   : > { %v10378_v12 = vpack.c.bf16 %v6429_v42, %v6429_v42  ;;  %v10602_v13 = vpack.c.bf16 %v6653_v9, %v6653_v9  ;;  %v6430_v15 = vmax.f32 %v5982_v10, 0.0  ;;  %v6654_v16 = vmax.f32 %v6206_v11, 0.0 }
 0x43a   : > { %v4348_v17 = vpop.f32.mrb[156].mxu0  ;;  %v5244_v18 = vpop.f32.mrb[156].mxu1 }
 0x43b   : > { %8670 = vst.msk [vmem:[%s11666_s28 + $0x330] sm:$0xf] %vm8465_vm3, %v10378_v12  ;;  %8894 = vst.msk [vmem:[%s11666_s28 + $0x6b0] sm:$0xf] %vm8465_vm3, %v10602_v13  ;;  %v10379_v63 = vpack.c.bf16 %v6430_v15, %v6430_v15  ;;  %v10603_v21 = vpack.c.bf16 %v6654_v16, %v6654_v16  ;;  %v5528_v19 = vmul.f32 %v13603_v8, %v4348_v17  ;;  %v4350_v22 = vpop.f32.mrb[157].mxu0  ;;  %v5246_v23 = vpop.f32.mrb[157].mxu1 }
 0x43c   : > { %v5752_v20 = vmul.f32 %v13603_v8, %v5244_v18  ;;  %v4351_v59 = vpop.f32.mrb[158].mxu0  ;;  %v5247_v25 = vpop.f32.mrb[158].mxu1  ;;  %v13909_v15 = vld [vmem:[%s14035_s2] ss:$0 sm:$0xff] }
 0x43d   : > { %8671 = vst.msk [vmem:[%s11666_s28 + $0x334] sm:$0xf] %vm8465_vm3, %v10379_v63  ;;  %8895 = vst.msk [vmem:[%s11666_s28 + $0x6b4] sm:$0xf] %vm8465_vm3, %v10603_v21  ;;  %v5983_v24 = vadd.f32 %v13614_v14, %v5528_v19  ;;  %v5529_v27 = vmul.f32 %v13603_v8, %v4351_v59  ;;  %v5753_v28 = vmul.f32 %v13603_v8, %v5247_v25  ;;  %v4353_v3 = vpop.f32.mrb[159].mxu0  ;;  %v5249_v29 = vpop.f32.mrb[159].mxu1 }
 0x43e   : > { %v6207_v26 = vadd.f32 %v13614_v14, %v5752_v20  ;;  %v13916_v19 = vld [vmem:[%s14036_s3] ss:$0 sm:$0xff] }
 0x43f   : > { %v6431_v31 = vmax.f32 %v5983_v24, 0.0  ;;  %v5984_v33 = vadd.f32 %v13614_v14, %v5529_v27  ;;  %v6208_v34 = vadd.f32 %v13614_v14, %v5753_v28 }
 0x440   : > { %v6655_v32 = vmax.f32 %v6207_v26, 0.0 }
 0x441   : > { %v10380_v35 = vpack.c.bf16 %v6431_v31, %v6431_v31  ;;  %v6432_v38 = vmax.f32 %v5984_v33, 0.0  ;;  %v6656_v39 = vmax.f32 %v6208_v34, 0.0 }
 0x442   : > { %v10604_v37 = vpack.c.bf16 %v6655_v32, %v6655_v32  ;;  %v4356_v40 = vpop.f32.mrb[160].mxu0  ;;  %v5252_v41 = vpop.f32.mrb[160].mxu1 }
 0x443   : > { %8672 = vst.msk [vmem:[%s11666_s28 + $0x338] sm:$0xf] %vm8465_vm3, %v10380_v35  ;;  %v10381_v43 = vpack.c.bf16 %v6432_v38, %v6432_v38  ;;  %v10605_v44 = vpack.c.bf16 %v6656_v39, %v6656_v39  ;;  %v5530_v45 = vmul.f32 %v13603_v8, %v4356_v40  ;;  %v5754_v46 = vmul.f32 %v13603_v8, %v5252_v41  ;;  %v4358_v47 = vpop.f32.mrb[161].mxu0  ;;  %v5254_v48 = vpop.f32.mrb[161].mxu1 }
 0x444   : > { %8896 = vst.msk [vmem:[%s11666_s28 + $0x6b8] sm:$0xf] %vm8465_vm3, %v10604_v37  ;;  %v4359_v49 = vpop.f32.mrb[162].mxu0  ;;  %v5255_v50 = vpop.f32.mrb[162].mxu1 }
 0x445   : > { %8673 = vst.msk [vmem:[%s11666_s28 + $0x33c] sm:$0xf] %vm8465_vm3, %v10381_v43  ;;  %8897 = vst.msk [vmem:[%s11666_s28 + $0x6bc] sm:$0xf] %vm8465_vm3, %v10605_v44  ;;  %v5985_v51 = vadd.f32 %v13614_v14, %v5530_v45  ;;  %v6209_v52 = vadd.f32 %v13614_v14, %v5754_v46  ;;  %v5531_v53 = vmul.f32 %v13603_v8, %v4359_v49  ;;  %v4361_v55 = vpop.f32.mrb[163].mxu0  ;;  %v5257_v56 = vpop.f32.mrb[163].mxu1 }
 0x446   : > { %v5755_v54 = vmul.f32 %v13603_v8, %v5255_v50 }
 0x447   : > { %v6433_v57 = vmax.f32 %v5985_v51, 0.0  ;;  %v6657_v58 = vmax.f32 %v6209_v52, 0.0  ;;  %v5986_v61 = vadd.f32 %v13614_v14, %v5531_v53 }
 0x448   : > { %v6210_v60 = vadd.f32 %v13614_v14, %v5755_v54 }
 0x449   : > { %v10382_v62 = vpack.c.bf16 %v6433_v57, %v6433_v57  ;;  %v10606_v0 = vpack.c.bf16 %v6657_v58, %v6657_v58  ;;  %v6434_v1 = vmax.f32 %v5986_v61, 0.0 }
 0x44a   : > { %v6658_v2 = vmax.f32 %v6210_v60, 0.0  ;;  %v4364_v36 = vpop.f32.mrb[164].mxu0  ;;  %v5260_v4 = vpop.f32.mrb[164].mxu1 }
 0x44b   : > { %8674 = vst.msk [vmem:[%s11666_s28 + $0x340] sm:$0xf] %vm8465_vm3, %v10382_v62  ;;  %8898 = vst.msk [vmem:[%s11666_s28 + $0x6c0] sm:$0xf] %vm8465_vm3, %v10606_v0  ;;  %v10383_v5 = vpack.c.bf16 %v6434_v1, %v6434_v1  ;;  %v5532_v30 = vmul.f32 %v13603_v8, %v4364_v36  ;;  %v5756_v7 = vmul.f32 %v13603_v8, %v5260_v4  ;;  %v4366_v42 = vpop.f32.mrb[165].mxu0  ;;  %v5262_v9 = vpop.f32.mrb[165].mxu1 }
 0x44c   : > { %v10607_v6 = vpack.c.bf16 %v6658_v2, %v6658_v2  ;;  %v4367_v10 = vpop.f32.mrb[166].mxu0  ;;  %v5263_v11 = vpop.f32.mrb[166].mxu1 }
 0x44d   : > { %8675 = vst.msk [vmem:[%s11666_s28 + $0x344] sm:$0xf] %vm8465_vm3, %v10383_v5  ;;  %v5987_v12 = vadd.f32 %v13614_v14, %v5532_v30  ;;  %v6211_v13 = vadd.f32 %v13614_v14, %v5756_v7  ;;  %v5533_v8 = vmul.f32 %v13909_v15, %v4367_v10  ;;  %v5757_v16 = vmul.f32 %v13909_v15, %v5263_v11  ;;  %v4369_v17 = vpop.f32.mrb[167].mxu0  ;;  %v5265_v18 = vpop.f32.mrb[167].mxu1 }
 0x44e   : > { %8899 = vst.msk [vmem:[%s11666_s28 + $0x6c4] sm:$0xf] %vm8465_vm3, %v10607_v6 }
 0x44f   : > { %v6435_v63 = vmax.f32 %v5987_v12, 0.0  ;;  %v6659_v21 = vmax.f32 %v6211_v13, 0.0  ;;  %v5988_v14 = vadd.f32 %v13916_v19, %v5533_v8  ;;  %v6212_v20 = vadd.f32 %v13916_v19, %v5757_v16 }
 0x451   : > { %v10384_v22 = vpack.c.bf16 %v6435_v63, %v6435_v63  ;;  %v10608_v23 = vpack.c.bf16 %v6659_v21, %v6659_v21  ;;  %v6436_v59 = vmax.f32 %v5988_v14, 0.0  ;;  %v6660_v25 = vmax.f32 %v6212_v20, 0.0 }
 0x452   : > { %v4372_v24 = vpop.f32.mrb[168].mxu0  ;;  %v5268_v26 = vpop.f32.mrb[168].mxu1 }
 0x453   : > { %8676 = vst.msk [vmem:[%s11666_s28 + $0x348] sm:$0xf] %vm8465_vm3, %v10384_v22  ;;  %8900 = vst.msk [vmem:[%s11666_s28 + $0x6c8] sm:$0xf] %vm8465_vm3, %v10608_v23  ;;  %v10385_v27 = vpack.c.bf16 %v6436_v59, %v6436_v59  ;;  %v10609_v28 = vpack.c.bf16 %v6660_v25, %v6660_v25  ;;  %v5534_v3 = vmul.f32 %v13909_v15, %v4372_v24  ;;  %v4374_v31 = vpop.f32.mrb[169].mxu0  ;;  %v5270_v32 = vpop.f32.mrb[169].mxu1 }
 0x454   : > { %v5758_v29 = vmul.f32 %v13909_v15, %v5268_v26  ;;  %v4375_v33 = vpop.f32.mrb[170].mxu0  ;;  %v5271_v34 = vpop.f32.mrb[170].mxu1 }
 0x455   : > { %8677 = vst.msk [vmem:[%s11666_s28 + $0x34c] sm:$0xf] %vm8465_vm3, %v10385_v27  ;;  %8901 = vst.msk [vmem:[%s11666_s28 + $0x6cc] sm:$0xf] %vm8465_vm3, %v10609_v28  ;;  %v5989_v35 = vadd.f32 %v13916_v19, %v5534_v3  ;;  %v5535_v38 = vmul.f32 %v13909_v15, %v4375_v33  ;;  %v5759_v39 = vmul.f32 %v13909_v15, %v5271_v34  ;;  %v4377_v40 = vpop.f32.mrb[171].mxu0  ;;  %v5273_v41 = vpop.f32.mrb[171].mxu1 }
 0x456   : > { %v6213_v37 = vadd.f32 %v13916_v19, %v5758_v29 }
 0x457   : > { %v6437_v43 = vmax.f32 %v5989_v35, 0.0  ;;  %v5990_v45 = vadd.f32 %v13916_v19, %v5535_v38  ;;  %v6214_v46 = vadd.f32 %v13916_v19, %v5759_v39 }
 0x458   : > { %v6661_v44 = vmax.f32 %v6213_v37, 0.0 }
 0x459   : > { %v10386_v47 = vpack.c.bf16 %v6437_v43, %v6437_v43  ;;  %v6438_v49 = vmax.f32 %v5990_v45, 0.0  ;;  %v6662_v50 = vmax.f32 %v6214_v46, 0.0 }
 0x45a   : > { %v10610_v48 = vpack.c.bf16 %v6661_v44, %v6661_v44  ;;  %v4380_v51 = vpop.f32.mrb[172].mxu0  ;;  %v5276_v52 = vpop.f32.mrb[172].mxu1 }
 0x45b   : > { %8678 = vst.msk [vmem:[%s11666_s28 + $0x350] sm:$0xf] %vm8465_vm3, %v10386_v47  ;;  %v10387_v53 = vpack.c.bf16 %v6438_v49, %v6438_v49  ;;  %v10611_v54 = vpack.c.bf16 %v6662_v50, %v6662_v50  ;;  %v5536_v55 = vmul.f32 %v13909_v15, %v4380_v51  ;;  %v5760_v56 = vmul.f32 %v13909_v15, %v5276_v52  ;;  %v4382_v57 = vpop.f32.mrb[173].mxu0  ;;  %v5278_v58 = vpop.f32.mrb[173].mxu1 }
 0x45c   : > { %8902 = vst.msk [vmem:[%s11666_s28 + $0x6d0] sm:$0xf] %vm8465_vm3, %v10610_v48  ;;  %v4383_v61 = vpop.f32.mrb[174].mxu0  ;;  %v5279_v60 = vpop.f32.mrb[174].mxu1 }
 0x45d   : > { %8679 = vst.msk [vmem:[%s11666_s28 + $0x354] sm:$0xf] %vm8465_vm3, %v10387_v53  ;;  %8903 = vst.msk [vmem:[%s11666_s28 + $0x6d4] sm:$0xf] %vm8465_vm3, %v10611_v54  ;;  %v5991_v62 = vadd.f32 %v13916_v19, %v5536_v55  ;;  %v6215_v0 = vadd.f32 %v13916_v19, %v5760_v56  ;;  %v5537_v1 = vmul.f32 %v13909_v15, %v4383_v61  ;;  %v4385_v36 = vpop.f32.mrb[175].mxu0  ;;  %v5281_v4 = vpop.f32.mrb[175].mxu1 }
 0x45e   : > { %v5761_v2 = vmul.f32 %v13909_v15, %v5279_v60 }
 0x45f   : > { %v6439_v5 = vmax.f32 %v5991_v62, 0.0  ;;  %v6663_v6 = vmax.f32 %v6215_v0, 0.0  ;;  %v5992_v30 = vadd.f32 %v13916_v19, %v5537_v1 }
 0x460   : > { %v6216_v7 = vadd.f32 %v13916_v19, %v5761_v2 }
 0x461   : > { %v10388_v42 = vpack.c.bf16 %v6439_v5, %v6439_v5  ;;  %v10612_v9 = vpack.c.bf16 %v6663_v6, %v6663_v6  ;;  %v6440_v10 = vmax.f32 %v5992_v30, 0.0 }
 0x462   : > { %v6664_v11 = vmax.f32 %v6216_v7, 0.0  ;;  %v4388_v12 = vpop.f32.mrb[176].mxu0  ;;  %v5284_v13 = vpop.f32.mrb[176].mxu1 }
 0x463   : > { %8680 = vst.msk [vmem:[%s11666_s28 + $0x358] sm:$0xf] %vm8465_vm3, %v10388_v42  ;;  %8904 = vst.msk [vmem:[%s11666_s28 + $0x6d8] sm:$0xf] %vm8465_vm3, %v10612_v9  ;;  %v10389_v8 = vpack.c.bf16 %v6440_v10, %v6440_v10  ;;  %v5538_v17 = vmul.f32 %v13909_v15, %v4388_v12  ;;  %v5762_v18 = vmul.f32 %v13909_v15, %v5284_v13  ;;  %v4390_v63 = vpop.f32.mrb[177].mxu0  ;;  %v5286_v21 = vpop.f32.mrb[177].mxu1 }
 0x464   : > { %v10613_v16 = vpack.c.bf16 %v6664_v11, %v6664_v11  ;;  %v4391_v14 = vpop.f32.mrb[178].mxu0  ;;  %v5287_v20 = vpop.f32.mrb[178].mxu1 }
 0x465   : > { %8681 = vst.msk [vmem:[%s11666_s28 + $0x35c] sm:$0xf] %vm8465_vm3, %v10389_v8  ;;  %v5993_v22 = vadd.f32 %v13916_v19, %v5538_v17  ;;  %v6217_v23 = vadd.f32 %v13916_v19, %v5762_v18  ;;  %v5539_v59 = vmul.f32 %v13909_v15, %v4391_v14  ;;  %v5763_v25 = vmul.f32 %v13909_v15, %v5287_v20  ;;  %v4393_v24 = vpop.f32.mrb[179].mxu0  ;;  %v5289_v26 = vpop.f32.mrb[179].mxu1 }
 0x466   : > { %8905 = vst.msk [vmem:[%s11666_s28 + $0x6dc] sm:$0xf] %vm8465_vm3, %v10613_v16 }
 0x467   : > { %v6441_v27 = vmax.f32 %v5993_v22, 0.0  ;;  %v6665_v28 = vmax.f32 %v6217_v23, 0.0  ;;  %v5994_v3 = vadd.f32 %v13916_v19, %v5539_v59  ;;  %v6218_v29 = vadd.f32 %v13916_v19, %v5763_v25 }
 0x469   : > { %v10390_v31 = vpack.c.bf16 %v6441_v27, %v6441_v27  ;;  %v10614_v32 = vpack.c.bf16 %v6665_v28, %v6665_v28  ;;  %v6442_v33 = vmax.f32 %v5994_v3, 0.0  ;;  %v6666_v34 = vmax.f32 %v6218_v29, 0.0 }
 0x46a   : > { %v4396_v35 = vpop.f32.mrb[180].mxu0  ;;  %v5292_v37 = vpop.f32.mrb[180].mxu1 }
 0x46b   : > { %8682 = vst.msk [vmem:[%s11666_s28 + $0x360] sm:$0xf] %vm8465_vm3, %v10390_v31  ;;  %8906 = vst.msk [vmem:[%s11666_s28 + $0x6e0] sm:$0xf] %vm8465_vm3, %v10614_v32  ;;  %v10391_v38 = vpack.c.bf16 %v6442_v33, %v6442_v33  ;;  %v10615_v39 = vpack.c.bf16 %v6666_v34, %v6666_v34  ;;  %v5540_v40 = vmul.f32 %v13909_v15, %v4396_v35  ;;  %v4398_v43 = vpop.f32.mrb[181].mxu0  ;;  %v5294_v44 = vpop.f32.mrb[181].mxu1 }
 0x46c   : > { %v5764_v41 = vmul.f32 %v13909_v15, %v5292_v37  ;;  %v4399_v45 = vpop.f32.mrb[182].mxu0  ;;  %v5295_v46 = vpop.f32.mrb[182].mxu1 }
 0x46d   : > { %8683 = vst.msk [vmem:[%s11666_s28 + $0x364] sm:$0xf] %vm8465_vm3, %v10391_v38  ;;  %8907 = vst.msk [vmem:[%s11666_s28 + $0x6e4] sm:$0xf] %vm8465_vm3, %v10615_v39  ;;  %v5995_v47 = vadd.f32 %v13916_v19, %v5540_v40  ;;  %v5541_v49 = vmul.f32 %v13909_v15, %v4399_v45  ;;  %v5765_v50 = vmul.f32 %v13909_v15, %v5295_v46  ;;  %v4401_v51 = vpop.f32.mrb[183].mxu0  ;;  %v5297_v52 = vpop.f32.mrb[183].mxu1 }
 0x46e   : > { %v6219_v48 = vadd.f32 %v13916_v19, %v5764_v41 }
 0x46f   : > { %v6443_v53 = vmax.f32 %v5995_v47, 0.0  ;;  %v5996_v55 = vadd.f32 %v13916_v19, %v5541_v49  ;;  %v6220_v56 = vadd.f32 %v13916_v19, %v5765_v50 }
 0x470   : > { %v6667_v54 = vmax.f32 %v6219_v48, 0.0 }
 0x471   : > { %v10392_v57 = vpack.c.bf16 %v6443_v53, %v6443_v53  ;;  %v6444_v61 = vmax.f32 %v5996_v55, 0.0  ;;  %v6668_v60 = vmax.f32 %v6220_v56, 0.0 }
 0x472   : > { %v10616_v58 = vpack.c.bf16 %v6667_v54, %v6667_v54  ;;  %v4404_v62 = vpop.f32.mrb[184].mxu0  ;;  %v5300_v0 = vpop.f32.mrb[184].mxu1 }
 0x473   : > { %8684 = vst.msk [vmem:[%s11666_s28 + $0x368] sm:$0xf] %vm8465_vm3, %v10392_v57  ;;  %v10393_v1 = vpack.c.bf16 %v6444_v61, %v6444_v61  ;;  %v10617_v2 = vpack.c.bf16 %v6668_v60, %v6668_v60  ;;  %v5542_v36 = vmul.f32 %v13909_v15, %v4404_v62  ;;  %v5766_v4 = vmul.f32 %v13909_v15, %v5300_v0  ;;  %v4406_v5 = vpop.f32.mrb[185].mxu0  ;;  %v5302_v6 = vpop.f32.mrb[185].mxu1 }
 0x474   : > { %8908 = vst.msk [vmem:[%s11666_s28 + $0x6e8] sm:$0xf] %vm8465_vm3, %v10616_v58  ;;  %v4407_v30 = vpop.f32.mrb[186].mxu0  ;;  %v5303_v7 = vpop.f32.mrb[186].mxu1 }
 0x475   : > { %8685 = vst.msk [vmem:[%s11666_s28 + $0x36c] sm:$0xf] %vm8465_vm3, %v10393_v1  ;;  %8909 = vst.msk [vmem:[%s11666_s28 + $0x6ec] sm:$0xf] %vm8465_vm3, %v10617_v2  ;;  %v5997_v42 = vadd.f32 %v13916_v19, %v5542_v36  ;;  %v6221_v9 = vadd.f32 %v13916_v19, %v5766_v4  ;;  %v5543_v10 = vmul.f32 %v13909_v15, %v4407_v30  ;;  %v4409_v12 = vpop.f32.mrb[187].mxu0  ;;  %v5305_v13 = vpop.f32.mrb[187].mxu1 }
 0x476   : > { %v5767_v11 = vmul.f32 %v13909_v15, %v5303_v7 }
 0x477   : > { %v6445_v8 = vmax.f32 %v5997_v42, 0.0  ;;  %v6669_v16 = vmax.f32 %v6221_v9, 0.0  ;;  %v5998_v17 = vadd.f32 %v13916_v19, %v5543_v10 }
 0x478   : > { %v6222_v18 = vadd.f32 %v13916_v19, %v5767_v11 }
 0x479   : > { %v10394_v63 = vpack.c.bf16 %v6445_v8, %v6445_v8  ;;  %v10618_v21 = vpack.c.bf16 %v6669_v16, %v6669_v16  ;;  %v6446_v14 = vmax.f32 %v5998_v17, 0.0 }
 0x47a   : > { %v6670_v20 = vmax.f32 %v6222_v18, 0.0  ;;  %v4412_v22 = vpop.f32.mrb[188].mxu0  ;;  %v5308_v23 = vpop.f32.mrb[188].mxu1 }
 0x47b   : > { %8686 = vst.msk [vmem:[%s11666_s28 + $0x370] sm:$0xf] %vm8465_vm3, %v10394_v63  ;;  %8910 = vst.msk [vmem:[%s11666_s28 + $0x6f0] sm:$0xf] %vm8465_vm3, %v10618_v21  ;;  %v10395_v59 = vpack.c.bf16 %v6446_v14, %v6446_v14  ;;  %v5544_v24 = vmul.f32 %v13909_v15, %v4412_v22  ;;  %v5768_v26 = vmul.f32 %v13909_v15, %v5308_v23  ;;  %v4414_v27 = vpop.f32.mrb[189].mxu0  ;;  %v5310_v28 = vpop.f32.mrb[189].mxu1 }
 0x47c   : > { %v10619_v25 = vpack.c.bf16 %v6670_v20, %v6670_v20  ;;  %v4415_v3 = vpop.f32.mrb[190].mxu0  ;;  %v5311_v29 = vpop.f32.mrb[190].mxu1 }
 0x47d   : > { %8687 = vst.msk [vmem:[%s11666_s28 + $0x374] sm:$0xf] %vm8465_vm3, %v10395_v59  ;;  %v5999_v31 = vadd.f32 %v13916_v19, %v5544_v24  ;;  %v6223_v32 = vadd.f32 %v13916_v19, %v5768_v26  ;;  %v5545_v33 = vmul.f32 %v13909_v15, %v4415_v3  ;;  %v5769_v34 = vmul.f32 %v13909_v15, %v5311_v29  ;;  %v4417_v35 = vpop.f32.mrb[191].mxu0  ;;  %v5313_v37 = vpop.f32.mrb[191].mxu1 }
 0x47e   : > { %8911 = vst.msk [vmem:[%s11666_s28 + $0x6f4] sm:$0xf] %vm8465_vm3, %v10619_v25 }
 0x47f   : > { %v6447_v38 = vmax.f32 %v5999_v31, 0.0  ;;  %v6671_v39 = vmax.f32 %v6223_v32, 0.0  ;;  %v6000_v40 = vadd.f32 %v13916_v19, %v5545_v33  ;;  %v6224_v41 = vadd.f32 %v13916_v19, %v5769_v34 }
 0x481   : > { %v10396_v43 = vpack.c.bf16 %v6447_v38, %v6447_v38  ;;  %v10620_v44 = vpack.c.bf16 %v6671_v39, %v6671_v39  ;;  %v6448_v45 = vmax.f32 %v6000_v40, 0.0  ;;  %v6672_v46 = vmax.f32 %v6224_v41, 0.0 }
 0x483   : > { %8688 = vst.msk [vmem:[%s11666_s28 + $0x378] sm:$0xf] %vm8465_vm3, %v10396_v43  ;;  %8912 = vst.msk [vmem:[%s11666_s28 + $0x6f8] sm:$0xf] %vm8465_vm3, %v10620_v44  ;;  %v10397_v47 = vpack.c.bf16 %v6448_v45, %v6448_v45  ;;  %v10621_v48 = vpack.c.bf16 %v6672_v46, %v6672_v46 }
 0x485   : > { %8689 = vst.msk [vmem:[%s11666_s28 + $0x37c] sm:$0xf] %vm8465_vm3, %v10397_v47  ;;  %8913 = vst.msk [vmem:[%s11666_s28 + $0x6fc] sm:$0xf] %vm8465_vm3, %v10621_v48 }
 0x486 PF: > { %s14_s17 = sadd.s32 1, %s11386_s17   ;;  %s14038_s15 = smov %s11382_s16 }
 0x487   : > { %p11_p5 = scmp.ge.s32.totalorder %s14_s17, 9   ;;  %s14039_s16 = smov %s14041_s18 }
 0x489   :  { %13 = sbr.rel (!%p11_p5) target bundleno = 2 (0x2), region = 75 }

</bundles_post_ra>
